<compile_context>
chip_gen: v5e
topology: v5e:2x2
jax: 0.10.0
libtpu: 0.0.40
codegen_flags: <defaults>
</compile_context>

<pallas_src>
import functools

import jax
import jax.numpy as jnp
from jax.experimental import pallas as pl
from jax.experimental.pallas import tpu as pltpu

LANE = 128  # TPU vreg lane width; each LSTM gate is padded to one lane group.


def lstm_kernel(x_ref, wih_ref, whh_ref, b_ref, wfc_ref, bfc_ref, out_ref, *,
                batch):
    """One grid step: full LSTM recurrence + Dout=1 FC head, all in VMEM/vregs.

    x_ref   : (T*B, Din)   time-major rows (row = t*B + b)
    wih_ref : (Din, 4*Hp)  gate-padded W_ih^T
    whh_ref : (Hp, 4*Hp)   gate-padded W_hh^T (rows >= H are zero)
    b_ref   : (1, 4*Hp)    gate-padded (b_ih + b_hh)
    wfc_ref : (1, Hp)      FC weight row (Dout == 1), zero in padded lanes
    bfc_ref : (1, 1)       FC bias
    out_ref : (T, B, 1)    time-major outputs
    """
    B = batch
    TB, _ = x_ref.shape
    T = TB // B
    Hp = whh_ref.shape[0]            # lane-padded hidden size (multiple of 128)

    wih = wih_ref[...]               # (Din, 4*Hp)
    whh = whh_ref[...]               # (Hp, 4*Hp)
    bias = b_ref[...]                # (1, 4*Hp)
    wfc = wfc_ref[...]               # (1, Hp)

    # Hoisted, non-recurrent input projection: ONE matmul for all T steps.
    xw = jnp.dot(x_ref[...], wih, preferred_element_type=jnp.float32) + bias

    h = jnp.zeros((B, Hp), jnp.float32)
    c = jnp.zeros((B, Hp), jnp.float32)
    ys = []

    # Fully unrolled static recurrence: h/c carries live in vregs, no VMEM
    # carry traffic.
    # TODO(synk): for T beyond ~32-64, switch to lax.fori_loop(unroll=4..8)
    # with a small VMEM hidden-state stack to bound code size / vreg pressure.
    # TODO(synk): keep W_hh resident in the MXU weight registers across steps
    # (pltpu.matmul_push_rhs / matmul_acc_lhs / matmul_pop) to stop
    # re-streaming 128 weight rows per step; kept as jnp.dot here for
    # robust/portable lowering (v5e would also need the 4*Hp columns split
    # across its 128-wide MXUs).
    for t in range(T):
        # Contiguous time-major slice; not on the h->h dependency chain, so the
        # scheduler overlaps it with the recurrent matmul.
        x_gate = xw[t * B:(t + 1) * B, :]
        gates = x_gate + jnp.dot(h, whh,
                                 preferred_element_type=jnp.float32,
                                 precision=jax.lax.Precision.HIGHEST)
        # PyTorch gate order (i, f, g, o); Hp == 128 so every slice is a whole
        # 128-lane group: plain vreg views, no masked selects.
        i = jax.nn.sigmoid(gates[:, 0 * Hp:1 * Hp])
        f = jax.nn.sigmoid(gates[:, 1 * Hp:2 * Hp])
        g = jnp.tanh(gates[:, 2 * Hp:3 * Hp])
        o = jax.nn.sigmoid(gates[:, 3 * Hp:4 * Hp])
        c = f * c + i * g
        h = o * jnp.tanh(c)
        # Dout == 1 FC head fused in: VPU multiply + lane reduction (XLU slot,
        # off the recurrence chain) instead of an N=1 MXU matmul.
        # TODO(synk): for Dout > 1, replace this with a batched MXU matmul head
        # over the stacked hidden states.
        ys.append(jnp.sum(h * wfc, axis=1, keepdims=True))       # (B, 1)

    # Stack along the untiled leading axis (no sublane repacking) and write the
    # whole output block exactly once.
    out_ref[...] = jnp.stack(ys, axis=0) + bfc_ref[...]          # (T, B, 1)


@jax.jit
def lstm_forward(x, w_ih, w_hh, b_ih, b_hh, w_fc, b_fc):
    """x: (B, T, D_in) float32 (batch_first, like the PyTorch module)."""
    B, T, Din = x.shape
    H = w_hh.shape[1]
    Dout = w_fc.shape[0]
    assert Dout == 1, "fused FC head in the kernel assumes output_dim == 1"
    Hp = ((H + LANE - 1) // LANE) * LANE     # 128-lane-align each gate group

    def pad_gate_cols(w):
        # (4H, K) torch layout -> (K, 4*Hp): gate g occupies lanes
        # [g*Hp, g*Hp + H); the rest is zero (numerically exact padding).
        K = w.shape[1]
        w4 = jnp.zeros((4, Hp, K), jnp.float32).at[:, :H, :].set(
            w.reshape(4, H, K))
        return w4.reshape(4 * Hp, K).T

    wih_p = pad_gate_cols(w_ih)                                   # (Din, 4*Hp)
    whh_p = jnp.zeros((Hp, 4 * Hp), jnp.float32).at[:H, :].set(
        pad_gate_cols(w_hh))                                      # (Hp, 4*Hp)
    bias_p = jnp.zeros((4, Hp), jnp.float32).at[:, :H].set(
        (b_ih + b_hh).reshape(4, H)).reshape(1, 4 * Hp)           # (1, 4*Hp)
    wfc_p = jnp.zeros((Dout, Hp), jnp.float32).at[:, :H].set(w_fc)  # (1, Hp)
    bfc_p = b_fc.reshape(1, Dout)                                 # (1, 1)

    # Layout plumbing only (not compute hoisting): time-major flattened rows
    # (row = t*B + b) so per-step slices inside the kernel are contiguous.
    x_tm = jnp.transpose(x, (1, 0, 2)).reshape(T * B, Din)

    out_tm = pl.pallas_call(
        functools.partial(lstm_kernel, batch=B),
        out_shape=jax.ShapeDtypeStruct((T, B, Dout), jnp.float32),
        grid_spec=pltpu.PrefetchScalarGridSpec(
            num_scalar_prefetch=0,
            grid=(1,),           # single step: the recurrence lives in-kernel
            in_specs=[
                pl.BlockSpec((T * B, Din), lambda i: (0, 0)),
                pl.BlockSpec((Din, 4 * Hp), lambda i: (0, 0)),
                pl.BlockSpec((Hp, 4 * Hp), lambda i: (0, 0)),
                pl.BlockSpec((1, 4 * Hp), lambda i: (0, 0)),
                pl.BlockSpec((Dout, Hp), lambda i: (0, 0)),
                pl.BlockSpec((1, Dout), lambda i: (0, 0)),
            ],
            out_specs=pl.BlockSpec((T, B, Dout), lambda i: (0, 0, 0)),
        ),
        # TODO(synk): for larger batches add a leading batch-block grid axis
        # with dimension_semantics=("parallel", "arbitrary") so v7x's second
        # TensorCore is used (weights keep constant index_maps -> stay resident).
        compiler_params=pltpu.CompilerParams(
            dimension_semantics=("arbitrary",)),
    )(x_tm, wih_p, whh_p, bias_p, wfc_p, bfc_p)

    # (T, B, Dout) time-major -> (B, T, Dout) batch_first.
    return jnp.transpose(out_tm, (1, 0, 2))


def lstm_reference(x, w_ih, w_hh, b_ih, b_hh, w_fc, b_fc):
    """Pure-JAX reference matching torch.nn.LSTM(batch_first=True) + Linear."""
    B, T, _ = x.shape
    H = w_hh.shape[1]
    h = jnp.zeros((B, H), jnp.float32)
    c = jnp.zeros((B, H), jnp.float32)

    def step(carry, x_t):
        h, c = carry
        gates = x_t @ w_ih.T + h @ w_hh.T + b_ih + b_hh
        i = jax.nn.sigmoid(gates[:, 0 * H:1 * H])
        f = jax.nn.sigmoid(gates[:, 1 * H:2 * H])
        g = jnp.tanh(gates[:, 2 * H:3 * H])
        o = jax.nn.sigmoid(gates[:, 3 * H:4 * H])
        c = f * c + i * g
        h = o * jnp.tanh(c)
        return (h, c), h

    (_, _), hs = jax.lax.scan(step, (h, c), jnp.transpose(x, (1, 0, 2)))
    hs = jnp.transpose(hs, (1, 0, 2))                 # (B, T, H)
    return hs @ w_fc.T + b_fc                         # (B, T, Dout)


if __name__ == "__main__":
    hidden_dim = 64
    input_dim = 7
    output_dim = 1
    batch = 2
    seq = 8

    key = jax.random.PRNGKey(0)
    ks = jax.random.split(key, 7)
    k = 1.0 / jnp.sqrt(hidden_dim)

    # Deterministic synthetic parameters (PyTorch nn.LSTM / nn.Linear shapes).
    w_ih = jax.random.uniform(ks[0], (4 * hidden_dim, input_dim), jnp.float32, -k, k)
    w_hh = jax.random.uniform(ks[1], (4 * hidden_dim, hidden_dim), jnp.float32, -k, k)
    b_ih = jax.random.uniform(ks[2], (4 * hidden_dim,), jnp.float32, -k, k)
    b_hh = jax.random.uniform(ks[3], (4 * hidden_dim,), jnp.float32, -k, k)
    w_fc = jax.random.uniform(ks[4], (output_dim, hidden_dim), jnp.float32, -k, k)
    b_fc = jax.random.uniform(ks[5], (output_dim,), jnp.float32, -k, k)

    x = jax.random.normal(ks[6], (batch, seq, input_dim), jnp.float32)

    out = lstm_forward(x, w_ih, w_hh, b_ih, b_hh, w_fc, b_fc)
    out = jax.block_until_ready(out)

    ref = lstm_reference(x, w_ih, w_hh, b_ih, b_hh, w_fc, b_fc)
    assert out.shape == (batch, seq, output_dim), out.shape
    # Slightly relaxed tolerance: MXU accumulation / summation order differs
    # from the pure-JAX scan reference (recurrent matmul itself is HIGHEST).
    assert jnp.allclose(out, ref, atol=1e-4, rtol=1e-4), "mismatch vs JAX reference"

    # NOTE: nn.LSTM dropout=0.5 is a no-op here (it applies only between stacked
    # layers, num_layers=1, and only in training mode), so nothing is dropped.
    print("KERNEL_OK")
</pallas_src>

<mosaic_0001>
module attributes {stable_mosaic.version = 11 : i64} {
  func.func @lstm_kernel(%arg0: i32, %arg1: memref<16x7xf32, #tpu.memory_space<vmem>>, %arg2: memref<7x512xf32, #tpu.memory_space<vmem>>, %arg3: memref<128x512xf32, #tpu.memory_space<vmem>>, %arg4: memref<1x512xf32, #tpu.memory_space<vmem>>, %arg5: memref<1x128xf32, #tpu.memory_space<vmem>>, %arg6: memref<1x1xf32, #tpu.memory_space<vmem>>, %arg7: memref<8x2x1xf32, #tpu.memory_space<vmem>>) attributes {dimension_semantics = [#tpu.dimension_semantics<arbitrary>], iteration_bounds = array<i64: 1>, scalar_prefetch = 0 : i64, scratch_operands = 0 : i64, tpu.core_type = #tpu.core_type<tc>, window_params = [{pipeline_mode = #tpu.pipeline_mode<synchronous>, transform_indices = @transform_0, window_bounds = array<i64: 16, 7>}, {pipeline_mode = #tpu.pipeline_mode<synchronous>, transform_indices = @transform_1, window_bounds = array<i64: 7, 512>}, {pipeline_mode = #tpu.pipeline_mode<synchronous>, transform_indices = @transform_2, window_bounds = array<i64: 128, 512>}, {pipeline_mode = #tpu.pipeline_mode<synchronous>, transform_indices = @transform_3, window_bounds = array<i64: 1, 512>}, {pipeline_mode = #tpu.pipeline_mode<synchronous>, transform_indices = @transform_4, window_bounds = array<i64: 1, 128>}, {pipeline_mode = #tpu.pipeline_mode<synchronous>, transform_indices = @transform_5, window_bounds = array<i64: 1, 1>}, {pipeline_mode = #tpu.pipeline_mode<synchronous>, transform_indices = @transform_6, window_bounds = array<i64: 8, 2, 1>}]} {
    %c0 = arith.constant 0 : index
    %c0_0 = arith.constant 0 : index
    %0 = vector.load %arg2[%c0, %c0_0] : memref<7x512xf32, #tpu.memory_space<vmem>>, vector<7x512xf32>
    %c0_1 = arith.constant 0 : index
    %c0_2 = arith.constant 0 : index
    %1 = vector.load %arg3[%c0_1, %c0_2] : memref<128x512xf32, #tpu.memory_space<vmem>>, vector<128x512xf32>
    %c0_3 = arith.constant 0 : index
    %c0_4 = arith.constant 0 : index
    %2 = vector.load %arg4[%c0_3, %c0_4] : memref<1x512xf32, #tpu.memory_space<vmem>>, vector<1x512xf32>
    %c0_5 = arith.constant 0 : index
    %c0_6 = arith.constant 0 : index
    %3 = vector.load %arg5[%c0_5, %c0_6] : memref<1x128xf32, #tpu.memory_space<vmem>>, vector<1x128xf32>
    %c0_7 = arith.constant 0 : index
    %c0_8 = arith.constant 0 : index
    %4 = vector.load %arg1[%c0_7, %c0_8] : memref<16x7xf32, #tpu.memory_space<vmem>>, vector<16x7xf32>
    %cst = arith.constant dense<0.000000e+00> : vector<16x512xf32>
    %5 = tpu.matmul %4, %0, %cst {dimension_numbers = #tpu.dot_dimension_numbers<[1], [0], [0], [1], [0, 0, 1, 1], [], []>} : vector<16x7xf32>, vector<7x512xf32>, vector<16x512xf32> -> vector<16x512xf32>
    %6 = vector.broadcast %2 : vector<1x512xf32> to vector<16x512xf32>
    %7 = arith.addf %5, %6 : vector<16x512xf32>
    %cst_9 = arith.constant 0.000000e+00 : f32
    %8 = vector.broadcast %cst_9 : f32 to vector<2x128xf32>
    %cst_10 = arith.constant 0.000000e+00 : f32
    %9 = vector.broadcast %cst_10 : f32 to vector<2x128xf32>
    %10 = vector.extract_strided_slice %7 {offsets = [0, 0], sizes = [2, 512], strides = [1, 1]} : vector<16x512xf32> to vector<2x512xf32>
    %cst_11 = arith.constant dense<0.000000e+00> : vector<2x512xf32>
    %11 = tpu.matmul %8, %1, %cst_11 {dimension_numbers = #tpu.dot_dimension_numbers<[1], [0], [0], [1], [0, 0, 1, 1], [], []>, precision = #tpu.contract_precision<fp32>} : vector<2x128xf32>, vector<128x512xf32>, vector<2x512xf32> -> vector<2x512xf32>
    %12 = arith.addf %10, %11 : vector<2x512xf32>
    %13 = vector.extract_strided_slice %12 {offsets = [0, 0], sizes = [2, 128], strides = [1, 1]} : vector<2x512xf32> to vector<2x128xf32>
    %14 = arith.negf %13 : vector<2x128xf32>
    %15 = math.exp %14 : vector<2x128xf32>
    %cst_12 = arith.constant 1.000000e+00 : f32
    %16 = vector.broadcast %cst_12 : f32 to vector<2x128xf32>
    %17 = arith.addf %16, %15 : vector<2x128xf32>
    %18 = arith.divf %16, %17 : vector<2x128xf32>
    %19 = vector.extract_strided_slice %12 {offsets = [0, 128], sizes = [2, 128], strides = [1, 1]} : vector<2x512xf32> to vector<2x128xf32>
    %20 = arith.negf %19 : vector<2x128xf32>
    %21 = math.exp %20 : vector<2x128xf32>
    %cst_13 = arith.constant 1.000000e+00 : f32
    %22 = vector.broadcast %cst_13 : f32 to vector<2x128xf32>
    %23 = arith.addf %22, %21 : vector<2x128xf32>
    %24 = arith.divf %22, %23 : vector<2x128xf32>
    %25 = vector.extract_strided_slice %12 {offsets = [0, 256], sizes = [2, 128], strides = [1, 1]} : vector<2x512xf32> to vector<2x128xf32>
    %26 = math.tanh %25 : vector<2x128xf32>
    %27 = vector.extract_strided_slice %12 {offsets = [0, 384], sizes = [2, 128], strides = [1, 1]} : vector<2x512xf32> to vector<2x128xf32>
    %28 = arith.negf %27 : vector<2x128xf32>
    %29 = math.exp %28 : vector<2x128xf32>
    %cst_14 = arith.constant 1.000000e+00 : f32
    %30 = vector.broadcast %cst_14 : f32 to vector<2x128xf32>
    %31 = arith.addf %30, %29 : vector<2x128xf32>
    %32 = arith.divf %30, %31 : vector<2x128xf32>
    %33 = arith.mulf %24, %9 : vector<2x128xf32>
    %34 = arith.mulf %18, %26 : vector<2x128xf32>
    %35 = arith.addf %33, %34 : vector<2x128xf32>
    %36 = math.tanh %35 : vector<2x128xf32>
    %37 = arith.mulf %32, %36 : vector<2x128xf32>
    %38 = vector.broadcast %3 : vector<1x128xf32> to vector<2x128xf32>
    %39 = arith.mulf %37, %38 : vector<2x128xf32>
    %cst_15 = arith.constant dense<0.000000e+00> : vector<2xf32>
    %40 = vector.multi_reduction <add>, %39, %cst_15 [1] : vector<2x128xf32> to vector<2xf32>
    %41 = vector.shape_cast %40 : vector<2xf32> to vector<2x1xf32>
    %42 = vector.extract_strided_slice %7 {offsets = [2, 0], sizes = [2, 512], strides = [1, 1]} : vector<16x512xf32> to vector<2x512xf32>
    %cst_16 = arith.constant dense<0.000000e+00> : vector<2x512xf32>
    %43 = tpu.matmul %37, %1, %cst_16 {dimension_numbers = #tpu.dot_dimension_numbers<[1], [0], [0], [1], [0, 0, 1, 1], [], []>, precision = #tpu.contract_precision<fp32>} : vector<2x128xf32>, vector<128x512xf32>, vector<2x512xf32> -> vector<2x512xf32>
    %44 = arith.addf %42, %43 : vector<2x512xf32>
    %45 = vector.extract_strided_slice %44 {offsets = [0, 0], sizes = [2, 128], strides = [1, 1]} : vector<2x512xf32> to vector<2x128xf32>
    %46 = arith.negf %45 : vector<2x128xf32>
    %47 = math.exp %46 : vector<2x128xf32>
    %cst_17 = arith.constant 1.000000e+00 : f32
    %48 = vector.broadcast %cst_17 : f32 to vector<2x128xf32>
    %49 = arith.addf %48, %47 : vector<2x128xf32>
    %50 = arith.divf %48, %49 : vector<2x128xf32>
    %51 = vector.extract_strided_slice %44 {offsets = [0, 128], sizes = [2, 128], strides = [1, 1]} : vector<2x512xf32> to vector<2x128xf32>
    %52 = arith.negf %51 : vector<2x128xf32>
    %53 = math.exp %52 : vector<2x128xf32>
    %cst_18 = arith.constant 1.000000e+00 : f32
    %54 = vector.broadcast %cst_18 : f32 to vector<2x128xf32>
    %55 = arith.addf %54, %53 : vector<2x128xf32>
    %56 = arith.divf %54, %55 : vector<2x128xf32>
    %57 = vector.extract_strided_slice %44 {offsets = [0, 256], sizes = [2, 128], strides = [1, 1]} : vector<2x512xf32> to vector<2x128xf32>
    %58 = math.tanh %57 : vector<2x128xf32>
    %59 = vector.extract_strided_slice %44 {offsets = [0, 384], sizes = [2, 128], strides = [1, 1]} : vector<2x512xf32> to vector<2x128xf32>
    %60 = arith.negf %59 : vector<2x128xf32>
    %61 = math.exp %60 : vector<2x128xf32>
    %cst_19 = arith.constant 1.000000e+00 : f32
    %62 = vector.broadcast %cst_19 : f32 to vector<2x128xf32>
    %63 = arith.addf %62, %61 : vector<2x128xf32>
    %64 = arith.divf %62, %63 : vector<2x128xf32>
    %65 = arith.mulf %56, %35 : vector<2x128xf32>
    %66 = arith.mulf %50, %58 : vector<2x128xf32>
    %67 = arith.addf %65, %66 : vector<2x128xf32>
    %68 = math.tanh %67 : vector<2x128xf32>
    %69 = arith.mulf %64, %68 : vector<2x128xf32>
    %70 = vector.broadcast %3 : vector<1x128xf32> to vector<2x128xf32>
    %71 = arith.mulf %69, %70 : vector<2x128xf32>
    %cst_20 = arith.constant dense<0.000000e+00> : vector<2xf32>
    %72 = vector.multi_reduction <add>, %71, %cst_20 [1] : vector<2x128xf32> to vector<2xf32>
    %73 = vector.shape_cast %72 : vector<2xf32> to vector<2x1xf32>
    %74 = vector.extract_strided_slice %7 {offsets = [4, 0], sizes = [2, 512], strides = [1, 1]} : vector<16x512xf32> to vector<2x512xf32>
    %cst_21 = arith.constant dense<0.000000e+00> : vector<2x512xf32>
    %75 = tpu.matmul %69, %1, %cst_21 {dimension_numbers = #tpu.dot_dimension_numbers<[1], [0], [0], [1], [0, 0, 1, 1], [], []>, precision = #tpu.contract_precision<fp32>} : vector<2x128xf32>, vector<128x512xf32>, vector<2x512xf32> -> vector<2x512xf32>
    %76 = arith.addf %74, %75 : vector<2x512xf32>
    %77 = vector.extract_strided_slice %76 {offsets = [0, 0], sizes = [2, 128], strides = [1, 1]} : vector<2x512xf32> to vector<2x128xf32>
    %78 = arith.negf %77 : vector<2x128xf32>
    %79 = math.exp %78 : vector<2x128xf32>
    %cst_22 = arith.constant 1.000000e+00 : f32
    %80 = vector.broadcast %cst_22 : f32 to vector<2x128xf32>
    %81 = arith.addf %80, %79 : vector<2x128xf32>
    %82 = arith.divf %80, %81 : vector<2x128xf32>
    %83 = vector.extract_strided_slice %76 {offsets = [0, 128], sizes = [2, 128], strides = [1, 1]} : vector<2x512xf32> to vector<2x128xf32>
    %84 = arith.negf %83 : vector<2x128xf32>
    %85 = math.exp %84 : vector<2x128xf32>
    %cst_23 = arith.constant 1.000000e+00 : f32
    %86 = vector.broadcast %cst_23 : f32 to vector<2x128xf32>
    %87 = arith.addf %86, %85 : vector<2x128xf32>
    %88 = arith.divf %86, %87 : vector<2x128xf32>
    %89 = vector.extract_strided_slice %76 {offsets = [0, 256], sizes = [2, 128], strides = [1, 1]} : vector<2x512xf32> to vector<2x128xf32>
    %90 = math.tanh %89 : vector<2x128xf32>
    %91 = vector.extract_strided_slice %76 {offsets = [0, 384], sizes = [2, 128], strides = [1, 1]} : vector<2x512xf32> to vector<2x128xf32>
    %92 = arith.negf %91 : vector<2x128xf32>
    %93 = math.exp %92 : vector<2x128xf32>
    %cst_24 = arith.constant 1.000000e+00 : f32
    %94 = vector.broadcast %cst_24 : f32 to vector<2x128xf32>
    %95 = arith.addf %94, %93 : vector<2x128xf32>
    %96 = arith.divf %94, %95 : vector<2x128xf32>
    %97 = arith.mulf %88, %67 : vector<2x128xf32>
    %98 = arith.mulf %82, %90 : vector<2x128xf32>
    %99 = arith.addf %97, %98 : vector<2x128xf32>
    %100 = math.tanh %99 : vector<2x128xf32>
    %101 = arith.mulf %96, %100 : vector<2x128xf32>
    %102 = vector.broadcast %3 : vector<1x128xf32> to vector<2x128xf32>
    %103 = arith.mulf %101, %102 : vector<2x128xf32>
    %cst_25 = arith.constant dense<0.000000e+00> : vector<2xf32>
    %104 = vector.multi_reduction <add>, %103, %cst_25 [1] : vector<2x128xf32> to vector<2xf32>
    %105 = vector.shape_cast %104 : vector<2xf32> to vector<2x1xf32>
    %106 = vector.extract_strided_slice %7 {offsets = [6, 0], sizes = [2, 512], strides = [1, 1]} : vector<16x512xf32> to vector<2x512xf32>
    %cst_26 = arith.constant dense<0.000000e+00> : vector<2x512xf32>
    %107 = tpu.matmul %101, %1, %cst_26 {dimension_numbers = #tpu.dot_dimension_numbers<[1], [0], [0], [1], [0, 0, 1, 1], [], []>, precision = #tpu.contract_precision<fp32>} : vector<2x128xf32>, vector<128x512xf32>, vector<2x512xf32> -> vector<2x512xf32>
    %108 = arith.addf %106, %107 : vector<2x512xf32>
    %109 = vector.extract_strided_slice %108 {offsets = [0, 0], sizes = [2, 128], strides = [1, 1]} : vector<2x512xf32> to vector<2x128xf32>
    %110 = arith.negf %109 : vector<2x128xf32>
    %111 = math.exp %110 : vector<2x128xf32>
    %cst_27 = arith.constant 1.000000e+00 : f32
    %112 = vector.broadcast %cst_27 : f32 to vector<2x128xf32>
    %113 = arith.addf %112, %111 : vector<2x128xf32>
    %114 = arith.divf %112, %113 : vector<2x128xf32>
    %115 = vector.extract_strided_slice %108 {offsets = [0, 128], sizes = [2, 128], strides = [1, 1]} : vector<2x512xf32> to vector<2x128xf32>
    %116 = arith.negf %115 : vector<2x128xf32>
    %117 = math.exp %116 : vector<2x128xf32>
    %cst_28 = arith.constant 1.000000e+00 : f32
    %118 = vector.broadcast %cst_28 : f32 to vector<2x128xf32>
    %119 = arith.addf %118, %117 : vector<2x128xf32>
    %120 = arith.divf %118, %119 : vector<2x128xf32>
    %121 = vector.extract_strided_slice %108 {offsets = [0, 256], sizes = [2, 128], strides = [1, 1]} : vector<2x512xf32> to vector<2x128xf32>
    %122 = math.tanh %121 : vector<2x128xf32>
    %123 = vector.extract_strided_slice %108 {offsets = [0, 384], sizes = [2, 128], strides = [1, 1]} : vector<2x512xf32> to vector<2x128xf32>
    %124 = arith.negf %123 : vector<2x128xf32>
    %125 = math.exp %124 : vector<2x128xf32>
    %cst_29 = arith.constant 1.000000e+00 : f32
    %126 = vector.broadcast %cst_29 : f32 to vector<2x128xf32>
    %127 = arith.addf %126, %125 : vector<2x128xf32>
    %128 = arith.divf %126, %127 : vector<2x128xf32>
    %129 = arith.mulf %120, %99 : vector<2x128xf32>
    %130 = arith.mulf %114, %122 : vector<2x128xf32>
    %131 = arith.addf %129, %130 : vector<2x128xf32>
    %132 = math.tanh %131 : vector<2x128xf32>
    %133 = arith.mulf %128, %132 : vector<2x128xf32>
    %134 = vector.broadcast %3 : vector<1x128xf32> to vector<2x128xf32>
    %135 = arith.mulf %133, %134 : vector<2x128xf32>
    %cst_30 = arith.constant dense<0.000000e+00> : vector<2xf32>
    %136 = vector.multi_reduction <add>, %135, %cst_30 [1] : vector<2x128xf32> to vector<2xf32>
    %137 = vector.shape_cast %136 : vector<2xf32> to vector<2x1xf32>
    %138 = vector.extract_strided_slice %7 {offsets = [8, 0], sizes = [2, 512], strides = [1, 1]} : vector<16x512xf32> to vector<2x512xf32>
    %cst_31 = arith.constant dense<0.000000e+00> : vector<2x512xf32>
    %139 = tpu.matmul %133, %1, %cst_31 {dimension_numbers = #tpu.dot_dimension_numbers<[1], [0], [0], [1], [0, 0, 1, 1], [], []>, precision = #tpu.contract_precision<fp32>} : vector<2x128xf32>, vector<128x512xf32>, vector<2x512xf32> -> vector<2x512xf32>
    %140 = arith.addf %138, %139 : vector<2x512xf32>
    %141 = vector.extract_strided_slice %140 {offsets = [0, 0], sizes = [2, 128], strides = [1, 1]} : vector<2x512xf32> to vector<2x128xf32>
    %142 = arith.negf %141 : vector<2x128xf32>
    %143 = math.exp %142 : vector<2x128xf32>
    %cst_32 = arith.constant 1.000000e+00 : f32
    %144 = vector.broadcast %cst_32 : f32 to vector<2x128xf32>
    %145 = arith.addf %144, %143 : vector<2x128xf32>
    %146 = arith.divf %144, %145 : vector<2x128xf32>
    %147 = vector.extract_strided_slice %140 {offsets = [0, 128], sizes = [2, 128], strides = [1, 1]} : vector<2x512xf32> to vector<2x128xf32>
    %148 = arith.negf %147 : vector<2x128xf32>
    %149 = math.exp %148 : vector<2x128xf32>
    %cst_33 = arith.constant 1.000000e+00 : f32
    %150 = vector.broadcast %cst_33 : f32 to vector<2x128xf32>
    %151 = arith.addf %150, %149 : vector<2x128xf32>
    %152 = arith.divf %150, %151 : vector<2x128xf32>
    %153 = vector.extract_strided_slice %140 {offsets = [0, 256], sizes = [2, 128], strides = [1, 1]} : vector<2x512xf32> to vector<2x128xf32>
    %154 = math.tanh %153 : vector<2x128xf32>
    %155 = vector.extract_strided_slice %140 {offsets = [0, 384], sizes = [2, 128], strides = [1, 1]} : vector<2x512xf32> to vector<2x128xf32>
    %156 = arith.negf %155 : vector<2x128xf32>
    %157 = math.exp %156 : vector<2x128xf32>
    %cst_34 = arith.constant 1.000000e+00 : f32
    %158 = vector.broadcast %cst_34 : f32 to vector<2x128xf32>
    %159 = arith.addf %158, %157 : vector<2x128xf32>
    %160 = arith.divf %158, %159 : vector<2x128xf32>
    %161 = arith.mulf %152, %131 : vector<2x128xf32>
    %162 = arith.mulf %146, %154 : vector<2x128xf32>
    %163 = arith.addf %161, %162 : vector<2x128xf32>
    %164 = math.tanh %163 : vector<2x128xf32>
    %165 = arith.mulf %160, %164 : vector<2x128xf32>
    %166 = vector.broadcast %3 : vector<1x128xf32> to vector<2x128xf32>
    %167 = arith.mulf %165, %166 : vector<2x128xf32>
    %cst_35 = arith.constant dense<0.000000e+00> : vector<2xf32>
    %168 = vector.multi_reduction <add>, %167, %cst_35 [1] : vector<2x128xf32> to vector<2xf32>
    %169 = vector.shape_cast %168 : vector<2xf32> to vector<2x1xf32>
    %170 = vector.extract_strided_slice %7 {offsets = [10, 0], sizes = [2, 512], strides = [1, 1]} : vector<16x512xf32> to vector<2x512xf32>
    %cst_36 = arith.constant dense<0.000000e+00> : vector<2x512xf32>
    %171 = tpu.matmul %165, %1, %cst_36 {dimension_numbers = #tpu.dot_dimension_numbers<[1], [0], [0], [1], [0, 0, 1, 1], [], []>, precision = #tpu.contract_precision<fp32>} : vector<2x128xf32>, vector<128x512xf32>, vector<2x512xf32> -> vector<2x512xf32>
    %172 = arith.addf %170, %171 : vector<2x512xf32>
    %173 = vector.extract_strided_slice %172 {offsets = [0, 0], sizes = [2, 128], strides = [1, 1]} : vector<2x512xf32> to vector<2x128xf32>
    %174 = arith.negf %173 : vector<2x128xf32>
    %175 = math.exp %174 : vector<2x128xf32>
    %cst_37 = arith.constant 1.000000e+00 : f32
    %176 = vector.broadcast %cst_37 : f32 to vector<2x128xf32>
    %177 = arith.addf %176, %175 : vector<2x128xf32>
    %178 = arith.divf %176, %177 : vector<2x128xf32>
    %179 = vector.extract_strided_slice %172 {offsets = [0, 128], sizes = [2, 128], strides = [1, 1]} : vector<2x512xf32> to vector<2x128xf32>
    %180 = arith.negf %179 : vector<2x128xf32>
    %181 = math.exp %180 : vector<2x128xf32>
    %cst_38 = arith.constant 1.000000e+00 : f32
    %182 = vector.broadcast %cst_38 : f32 to vector<2x128xf32>
    %183 = arith.addf %182, %181 : vector<2x128xf32>
    %184 = arith.divf %182, %183 : vector<2x128xf32>
    %185 = vector.extract_strided_slice %172 {offsets = [0, 256], sizes = [2, 128], strides = [1, 1]} : vector<2x512xf32> to vector<2x128xf32>
    %186 = math.tanh %185 : vector<2x128xf32>
    %187 = vector.extract_strided_slice %172 {offsets = [0, 384], sizes = [2, 128], strides = [1, 1]} : vector<2x512xf32> to vector<2x128xf32>
    %188 = arith.negf %187 : vector<2x128xf32>
    %189 = math.exp %188 : vector<2x128xf32>
    %cst_39 = arith.constant 1.000000e+00 : f32
    %190 = vector.broadcast %cst_39 : f32 to vector<2x128xf32>
    %191 = arith.addf %190, %189 : vector<2x128xf32>
    %192 = arith.divf %190, %191 : vector<2x128xf32>
    %193 = arith.mulf %184, %163 : vector<2x128xf32>
    %194 = arith.mulf %178, %186 : vector<2x128xf32>
    %195 = arith.addf %193, %194 : vector<2x128xf32>
    %196 = math.tanh %195 : vector<2x128xf32>
    %197 = arith.mulf %192, %196 : vector<2x128xf32>
    %198 = vector.broadcast %3 : vector<1x128xf32> to vector<2x128xf32>
    %199 = arith.mulf %197, %198 : vector<2x128xf32>
    %cst_40 = arith.constant dense<0.000000e+00> : vector<2xf32>
    %200 = vector.multi_reduction <add>, %199, %cst_40 [1] : vector<2x128xf32> to vector<2xf32>
    %201 = vector.shape_cast %200 : vector<2xf32> to vector<2x1xf32>
    %202 = vector.extract_strided_slice %7 {offsets = [12, 0], sizes = [2, 512], strides = [1, 1]} : vector<16x512xf32> to vector<2x512xf32>
    %cst_41 = arith.constant dense<0.000000e+00> : vector<2x512xf32>
    %203 = tpu.matmul %197, %1, %cst_41 {dimension_numbers = #tpu.dot_dimension_numbers<[1], [0], [0], [1], [0, 0, 1, 1], [], []>, precision = #tpu.contract_precision<fp32>} : vector<2x128xf32>, vector<128x512xf32>, vector<2x512xf32> -> vector<2x512xf32>
    %204 = arith.addf %202, %203 : vector<2x512xf32>
    %205 = vector.extract_strided_slice %204 {offsets = [0, 0], sizes = [2, 128], strides = [1, 1]} : vector<2x512xf32> to vector<2x128xf32>
    %206 = arith.negf %205 : vector<2x128xf32>
    %207 = math.exp %206 : vector<2x128xf32>
    %cst_42 = arith.constant 1.000000e+00 : f32
    %208 = vector.broadcast %cst_42 : f32 to vector<2x128xf32>
    %209 = arith.addf %208, %207 : vector<2x128xf32>
    %210 = arith.divf %208, %209 : vector<2x128xf32>
    %211 = vector.extract_strided_slice %204 {offsets = [0, 128], sizes = [2, 128], strides = [1, 1]} : vector<2x512xf32> to vector<2x128xf32>
    %212 = arith.negf %211 : vector<2x128xf32>
    %213 = math.exp %212 : vector<2x128xf32>
    %cst_43 = arith.constant 1.000000e+00 : f32
    %214 = vector.broadcast %cst_43 : f32 to vector<2x128xf32>
    %215 = arith.addf %214, %213 : vector<2x128xf32>
    %216 = arith.divf %214, %215 : vector<2x128xf32>
    %217 = vector.extract_strided_slice %204 {offsets = [0, 256], sizes = [2, 128], strides = [1, 1]} : vector<2x512xf32> to vector<2x128xf32>
    %218 = math.tanh %217 : vector<2x128xf32>
    %219 = vector.extract_strided_slice %204 {offsets = [0, 384], sizes = [2, 128], strides = [1, 1]} : vector<2x512xf32> to vector<2x128xf32>
    %220 = arith.negf %219 : vector<2x128xf32>
    %221 = math.exp %220 : vector<2x128xf32>
    %cst_44 = arith.constant 1.000000e+00 : f32
    %222 = vector.broadcast %cst_44 : f32 to vector<2x128xf32>
    %223 = arith.addf %222, %221 : vector<2x128xf32>
    %224 = arith.divf %222, %223 : vector<2x128xf32>
    %225 = arith.mulf %216, %195 : vector<2x128xf32>
    %226 = arith.mulf %210, %218 : vector<2x128xf32>
    %227 = arith.addf %225, %226 : vector<2x128xf32>
    %228 = math.tanh %227 : vector<2x128xf32>
    %229 = arith.mulf %224, %228 : vector<2x128xf32>
    %230 = vector.broadcast %3 : vector<1x128xf32> to vector<2x128xf32>
    %231 = arith.mulf %229, %230 : vector<2x128xf32>
    %cst_45 = arith.constant dense<0.000000e+00> : vector<2xf32>
    %232 = vector.multi_reduction <add>, %231, %cst_45 [1] : vector<2x128xf32> to vector<2xf32>
    %233 = vector.shape_cast %232 : vector<2xf32> to vector<2x1xf32>
    %234 = vector.extract_strided_slice %7 {offsets = [14, 0], sizes = [2, 512], strides = [1, 1]} : vector<16x512xf32> to vector<2x512xf32>
    %cst_46 = arith.constant dense<0.000000e+00> : vector<2x512xf32>
    %235 = tpu.matmul %229, %1, %cst_46 {dimension_numbers = #tpu.dot_dimension_numbers<[1], [0], [0], [1], [0, 0, 1, 1], [], []>, precision = #tpu.contract_precision<fp32>} : vector<2x128xf32>, vector<128x512xf32>, vector<2x512xf32> -> vector<2x512xf32>
    %236 = arith.addf %234, %235 : vector<2x512xf32>
    %237 = vector.extract_strided_slice %236 {offsets = [0, 0], sizes = [2, 128], strides = [1, 1]} : vector<2x512xf32> to vector<2x128xf32>
    %238 = arith.negf %237 : vector<2x128xf32>
    %239 = math.exp %238 : vector<2x128xf32>
    %cst_47 = arith.constant 1.000000e+00 : f32
    %240 = vector.broadcast %cst_47 : f32 to vector<2x128xf32>
    %241 = arith.addf %240, %239 : vector<2x128xf32>
    %242 = arith.divf %240, %241 : vector<2x128xf32>
    %243 = vector.extract_strided_slice %236 {offsets = [0, 128], sizes = [2, 128], strides = [1, 1]} : vector<2x512xf32> to vector<2x128xf32>
    %244 = arith.negf %243 : vector<2x128xf32>
    %245 = math.exp %244 : vector<2x128xf32>
    %cst_48 = arith.constant 1.000000e+00 : f32
    %246 = vector.broadcast %cst_48 : f32 to vector<2x128xf32>
    %247 = arith.addf %246, %245 : vector<2x128xf32>
    %248 = arith.divf %246, %247 : vector<2x128xf32>
    %249 = vector.extract_strided_slice %236 {offsets = [0, 256], sizes = [2, 128], strides = [1, 1]} : vector<2x512xf32> to vector<2x128xf32>
    %250 = math.tanh %249 : vector<2x128xf32>
    %251 = vector.extract_strided_slice %236 {offsets = [0, 384], sizes = [2, 128], strides = [1, 1]} : vector<2x512xf32> to vector<2x128xf32>
    %252 = arith.negf %251 : vector<2x128xf32>
    %253 = math.exp %252 : vector<2x128xf32>
    %cst_49 = arith.constant 1.000000e+00 : f32
    %254 = vector.broadcast %cst_49 : f32 to vector<2x128xf32>
    %255 = arith.addf %254, %253 : vector<2x128xf32>
    %256 = arith.divf %254, %255 : vector<2x128xf32>
    %257 = arith.mulf %248, %227 : vector<2x128xf32>
    %258 = arith.mulf %242, %250 : vector<2x128xf32>
    %259 = arith.addf %257, %258 : vector<2x128xf32>
    %260 = math.tanh %259 : vector<2x128xf32>
    %261 = arith.mulf %256, %260 : vector<2x128xf32>
    %262 = vector.broadcast %3 : vector<1x128xf32> to vector<2x128xf32>
    %263 = arith.mulf %261, %262 : vector<2x128xf32>
    %cst_50 = arith.constant dense<0.000000e+00> : vector<2xf32>
    %264 = vector.multi_reduction <add>, %263, %cst_50 [1] : vector<2x128xf32> to vector<2xf32>
    %265 = vector.shape_cast %264 : vector<2xf32> to vector<2x1xf32>
    %266 = vector.shape_cast %41 : vector<2x1xf32> to vector<1x2x1xf32>
    %267 = vector.shape_cast %73 : vector<2x1xf32> to vector<1x2x1xf32>
    %268 = vector.shape_cast %105 : vector<2x1xf32> to vector<1x2x1xf32>
    %269 = vector.shape_cast %137 : vector<2x1xf32> to vector<1x2x1xf32>
    %270 = vector.shape_cast %169 : vector<2x1xf32> to vector<1x2x1xf32>
    %271 = vector.shape_cast %201 : vector<2x1xf32> to vector<1x2x1xf32>
    %272 = vector.shape_cast %233 : vector<2x1xf32> to vector<1x2x1xf32>
    %273 = vector.shape_cast %265 : vector<2x1xf32> to vector<1x2x1xf32>
    %274 = tpu.concatenate %266, %267, %268, %269, %270, %271, %272, %273 in 0 : vector<1x2x1xf32>, vector<1x2x1xf32>, vector<1x2x1xf32>, vector<1x2x1xf32>, vector<1x2x1xf32>, vector<1x2x1xf32>, vector<1x2x1xf32>, vector<1x2x1xf32> -> vector<8x2x1xf32>
    %c0_51 = arith.constant 0 : index
    %c0_52 = arith.constant 0 : index
    %275 = vector.load %arg6[%c0_51, %c0_52] : memref<1x1xf32, #tpu.memory_space<vmem>>, vector<1x1xf32>
    %276 = vector.shape_cast %275 : vector<1x1xf32> to vector<1x1x1xf32>
    %277 = vector.broadcast %276 : vector<1x1x1xf32> to vector<8x2x1xf32>
    %278 = arith.addf %274, %277 : vector<8x2x1xf32>
    %c0_53 = arith.constant 0 : index
    %c0_54 = arith.constant 0 : index
    %c0_55 = arith.constant 0 : index
    %279 = vector.load %arg7[%c0_53, %c0_54, %c0_55] : memref<8x2x1xf32, #tpu.memory_space<vmem>>, vector<8x2x1xf32>
    tpu.vector_store %arg7[%c0_53, %c0_54, %c0_55], %278 {strides = array<i32>} : memref<8x2x1xf32, #tpu.memory_space<vmem>>, vector<8x2x1xf32>,
    return
  }
  func.func @transform_0(%arg0: i32) -> (i32, i32) {
    %c0_i32 = arith.constant 0 : i32
    %c0_i32_0 = arith.constant 0 : i32
    %c0_i32_1 = arith.constant 0 : i32
    return %c0_i32, %c0_i32_0 : i32, i32
  }
  func.func @transform_1(%arg0: i32) -> (i32, i32) {
    %c0_i32 = arith.constant 0 : i32
    %c0_i32_0 = arith.constant 0 : i32
    %c0_i32_1 = arith.constant 0 : i32
    return %c0_i32, %c0_i32_0 : i32, i32
  }
  func.func @transform_2(%arg0: i32) -> (i32, i32) {
    %c0_i32 = arith.constant 0 : i32
    %c0_i32_0 = arith.constant 0 : i32
    %c0_i32_1 = arith.constant 0 : i32
    return %c0_i32, %c0_i32_0 : i32, i32
  }
  func.func @transform_3(%arg0: i32) -> (i32, i32) {
    %c0_i32 = arith.constant 0 : i32
    %c0_i32_0 = arith.constant 0 : i32
    %c0_i32_1 = arith.constant 0 : i32
    return %c0_i32, %c0_i32_0 : i32, i32
  }
  func.func @transform_4(%arg0: i32) -> (i32, i32) {
    %c0_i32 = arith.constant 0 : i32
    %c0_i32_0 = arith.constant 0 : i32
    %c0_i32_1 = arith.constant 0 : i32
    return %c0_i32, %c0_i32_0 : i32, i32
  }
  func.func @transform_5(%arg0: i32) -> (i32, i32) {
    %c0_i32 = arith.constant 0 : i32
    %c0_i32_0 = arith.constant 0 : i32
    %c0_i32_1 = arith.constant 0 : i32
    return %c0_i32, %c0_i32_0 : i32, i32
  }
  func.func @transform_6(%arg0: i32) -> (i32, i32, i32) {
    %c0_i32 = arith.constant 0 : i32
    %c0_i32_0 = arith.constant 0 : i32
    %c0_i32_1 = arith.constant 0 : i32
    %c0_i32_2 = arith.constant 0 : i32
    return %c0_i32, %c0_i32_0, %c0_i32_1 : i32, i32, i32
  }
}

</mosaic_0001>

<bundles_post_ra>
// kernel: lstm_forward.1
= control target key start
LH: loop header
LB: loop body
LE: loop exit
PB: predicated region body
PF: predicated region fallthrough
CT: control target
= control target key end

     0   :  { %vm113_vm0 = vcmask 1046528   ;;  %vm106_vm1 = vcmask 56320   ;;  %s16550_s1 = inlined_call_operand.vmem [shape: f32[7,512], index: 1, kind: input, shape index: {}]   ;;  %s16551_s2 = inlined_call_operand.vmem [shape: f32[128,512], index: 2, kind: input, shape index: {}]   ;;  %s16552_s0 = inlined_call_operand.vmem [shape: f32[16,7], index: 0, kind: input, shape index: {}]   ;;  %s16553_s4 = inlined_call_operand.vmem [shape: f32[1,128], index: 4, kind: input, shape index: {}]   ;;  %s16554_s3 = inlined_call_operand.vmem [shape: f32[1,512], index: 3, kind: input, shape index: {}]   ;;  %s16555_s5 = inlined_call_operand.<no memory space> [shape: f32[1,1], index: 5, kind: input, shape index: {}]   ;;  %s16556_s6 = inlined_call_operand.vmem [shape: f32[8,2,1], index: 6, kind: output, shape index: {}]  }
   0x1   :  { %v25_v0 = vld [vmem:[%s16550_s1] sm:$0x7f]  ;;  %v27_v1 = vld [vmem:[%s16550_s1 + $0x10] sm:$0x7f]  ;;  %v28_v4 = vld [vmem:[%s16550_s1 + $0x18] sm:$0x7f] }
   0x2   :  { %v89_v2 = vld [vmem:[%s16551_s2 + $0x1e0] sm:$0xff]  ;;  %11804 = vmatpush.msk.msra.mxu0 %vm113_vm0, %v25_v0  ;;  %11810 = vmatpush.msk.msra.mxu2 %vm113_vm0, %v27_v1  ;;  %v26_v6 = vld [vmem:[%s16550_s1 + $0x8] sm:$0x7f] }
   0x3   :  { %v12024_v3 = vand.u32 4294901760, %v89_v2  ;;  %v85_v5 = vld [vmem:[%s16551_s2 + $0x1c0] sm:$0xff]  ;;  %11813 = vmatpush.msk.msra.mxu3 %vm113_vm0, %v28_v4  ;;  %11807 = vmatpush.msk.msra.mxu1 %vm113_vm0, %v26_v6  ;;  %v90_v6 = vld [vmem:[%s16551_s2 + $0x1e8] sm:$0xff] }
   0x4   :  { %v12035_v7 = vand.u32 4294901760, %v85_v5  ;;  %v81_v8 = vld [vmem:[%s16551_s2 + $0x1a0] sm:$0xff] }
   0x5   :  { %17355 = vst [vmem:[#allocation3_spill] sm:$0xff] %v12024_v3  ;;  %v77_v9 = vld [vmem:[%s16551_s2 + $0x180] sm:$0xff]  ;;  %219 = vmatpush.msrb.mxu0 %v12024_v3  ;;  %v12048_v11 = vsub.f32 %v89_v2, %v12024_v3  ;;  %407 = vmatpush.msrb.mxu3 %v12024_v3  ;;  %v12051_v12 = vand.u32 4294901760, %v81_v8 }
   0x6   :  { %17356 = vst [vmem:[#allocation4_spill] sm:$0xff] %v12035_v7  ;;  %v73_v10 = vld [vmem:[%s16551_s2 + $0x160] sm:$0xff]  ;;  %v12053_v13 = vand.u32 4294901760, %v77_v9  ;;  %v12067_v18 = vsub.f32 %v85_v5, %v12035_v7 }
   0x7   :  { %17357 = vst [vmem:[#allocation5_spill] sm:$0xff] %v12048_v11  ;;  %v12055_v14 = vand.u32 4294901760, %v73_v10  ;;  %v69_v15 = vld [vmem:[%s16551_s2 + $0x140] sm:$0xff]  ;;  %356 = vmatpush.msrb.mxu2 %v12048_v11  ;;  %221 = vmatpush.msrb.mxu0 %v12035_v7  ;;  %v12078_v22 = vand.u32 4294901760, %v12048_v11  ;;  %v12081_v23 = vsub.f32 %v81_v8, %v12051_v12 }
   0x8   :  { %17358 = vst [vmem:[#allocation6_spill] sm:$0xff] %v12051_v12  ;;  %v65_v16 = vld [vmem:[%s16551_s2 + $0x120] sm:$0xff]  ;;  %v12069_v19 = vand.u32 4294901760, %v69_v15  ;;  %v12084_v24 = vsub.f32 %v77_v9, %v12053_v13  ;;  %409 = vmatpush.msrb.mxu3 %v12035_v7  ;;  %v12094_v27 = vand.u32 4294901760, %v12067_v18 }
   0x9   :  { %17359 = vst [vmem:[#allocation7_spill] sm:$0xff] %v12053_v13  ;;  %v61_v17 = vld [vmem:[%s16551_s2 + $0x100] sm:$0xff]  ;;  %v12071_v20 = vand.u32 4294901760, %v65_v16  ;;  %v12087_v25 = vsub.f32 %v73_v10, %v12055_v14  ;;  %359 = vmatpush.msrb.mxu2 %v12067_v18  ;;  %223 = vmatpush.msrb.mxu0 %v12051_v12  ;;  %v257_v30 = vsub.f32 %v12048_v11, %v12078_v22  ;;  %v12107_v31 = vand.u32 4294901760, %v12081_v23 }
   0xa   :  { %17360 = vst [vmem:[#allocation8_spill] sm:$0xff] %v12055_v14  ;;  %v12073_v21 = vand.u32 4294901760, %v61_v17  ;;  %v57_v26 = vld [vmem:[%s16551_s2 + $0xe0] sm:$0xff]  ;;  %v12097_v28 = vsub.f32 %v69_v15, %v12069_v19  ;;  %v12110_v32 = vand.u32 4294901760, %v12084_v24  ;;  %v263_v34 = vsub.f32 %v12067_v18, %v12094_v27  ;;  %411 = vmatpush.msrb.mxu3 %v12051_v12 }
   0xb   :  { %17361 = vst [vmem:[#allocation9_spill] sm:$0xff] %v12067_v18  ;;  %v12100_v29 = vsub.f32 %v65_v16, %v12071_v20  ;;  %v12113_v33 = vand.u32 4294901760, %v12087_v25  ;;  %v12121_v36 = vand.u32 4294901760, %v57_v26  ;;  %v53_v37 = vld [vmem:[%s16551_s2 + $0xc0] sm:$0xff]  ;;  %v12126_v38 = vand.u32 4294901760, %v257_v30  ;;  %362 = vmatpush.msrb.mxu2 %v12081_v23  ;;  %225 = vmatpush.msrb.mxu0 %v12053_v13 }
   0xc   :  { %17362 = vst [vmem:[#allocation10_spill] sm:$0xff] %v12069_v19  ;;  %v12119_v35 = vand.u32 4294901760, %v12097_v28  ;;  %v269_v39 = vsub.f32 %v12081_v23, %v12107_v31  ;;  %v275_v40 = vsub.f32 %v12084_v24, %v12110_v32  ;;  %v12135_v41 = vsub.f32 %v61_v17, %v12073_v21  ;;  %v49_v42 = vld [vmem:[%s16551_s2 + $0xa0] sm:$0xff]  ;;  %413 = vmatpush.msrb.mxu3 %v12053_v13 }
   0xd   :  { %17363 = vst [vmem:[#allocation11_spill] sm:$0xff] %v12071_v20  ;;  %v12140_v43 = vand.u32 4294901760, %v263_v34  ;;  %v12144_v44 = vand.u32 4294901760, %v12100_v29  ;;  %v45_v45 = vld [vmem:[%s16551_s2 + $0x80] sm:$0xff]  ;;  %259 = vmatpush.msrb.mxu1 %v12126_v38  ;;  %365 = vmatpush.msrb.mxu2 %v12084_v24  ;;  %v281_v47 = vsub.f32 %v12087_v25, %v12113_v33  ;;  %v12156_v48 = vsub.f32 %v57_v26, %v12121_v36  ;;  %v86_v34 = vld [vmem:[%s16551_s2 + $0x1c8] sm:$0xff] }
   0xe   :  { %17364 = vst [vmem:[#allocation12_spill] sm:$0xff] %v12073_v21  ;;  %v12151_v46 = vand.u32 4294901760, %v269_v39  ;;  %v12158_v49 = vand.u32 4294901760, %v53_v37  ;;  %v41_v50 = vld [vmem:[%s16551_s2 + $0x60] sm:$0xff]  ;;  %227 = vmatpush.msrb.mxu0 %v12055_v14  ;;  %415 = vmatpush.msrb.mxu3 %v12055_v14  ;;  %v287_v51 = vsub.f32 %v12097_v28, %v12119_v35  ;;  %v12167_v52 = vand.u32 4294901760, %v49_v42 }
   0xf   :  { %17365 = vst [vmem:[#allocation13_spill] sm:$0xff] %v12078_v22  ;;  %265 = vmatpush.msrb.mxu1 %v12140_v43  ;;  %368 = vmatpush.msrb.mxu2 %v12087_v25  ;;  %v12171_v53 = vand.u32 4294901760, %v275_v40  ;;  %v12174_v54 = vand.u32 4294901760, %v12135_v41  ;;  %v12179_v56 = vand.u32 4294901760, %v45_v45  ;;  %v37_v57 = vld [vmem:[%s16551_s2 + $0x40] sm:$0xff]  ;;  %v12186_v58 = vand.u32 4294901760, %v41_v50 }
  0x10   :  { %17366 = vst [vmem:[#allocation14_spill] sm:$0xff] %v12081_v23  ;;  %v12177_v55 = vsub.f32 %v53_v37, %v12158_v49  ;;  %229 = vmatpush.msrb.mxu0 %v12069_v19  ;;  %417 = vmatpush.msrb.mxu3 %v12069_v19  ;;  %v12190_v59 = vand.u32 4294901760, %v281_v47  ;;  %v293_v60 = vsub.f32 %v12100_v29, %v12144_v44  ;;  %v12195_v61 = vand.u32 4294901760, %v12156_v48  ;;  %v33_v0 = vld [vmem:[%s16551_s2 + $0x20] sm:$0xff]  ;;  %v82_v47 = vld [vmem:[%s16551_s2 + $0x1a8] sm:$0xff] }
  0x11   :  { %17367 = vst [vmem:[#allocation15_spill] sm:$0xff] %v12084_v24  ;;  %271 = vmatpush.msrb.mxu1 %v12151_v46  ;;  %371 = vmatpush.msrb.mxu2 %v12097_v28  ;;  %v12198_v62 = vsub.f32 %v49_v42, %v12167_v52  ;;  %v12202_v63 = vand.u32 4294901760, %v37_v57  ;;  %v12209_v1 = vand.u32 4294901760, %v287_v51  ;;  %v299_v2 = vsub.f32 %v12135_v41, %v12174_v54  ;;  %v29_v9 = vld [vmem:[%s16551_s2] sm:$0xff] }
  0x12   :  { %17368 = vst [vmem:[#allocation16_spill] sm:$0xff] %v12087_v25  ;;  %231 = vmatpush.msrb.mxu0 %v12071_v20  ;;  %419 = vmatpush.msrb.mxu3 %v12071_v20  ;;  %v12214_v4 = vand.u32 4294901760, %v12177_v55  ;;  %v12217_v5 = vsub.f32 %v45_v45, %v12179_v56  ;;  %v12225_v8 = vsub.f32 %v41_v50, %v12186_v58  ;;  %v12232_v10 = vand.u32 4294901760, %v293_v60 }
  0x13   :  { %17369 = vst [vmem:[#allocation17_spill] sm:$0xff] %v12094_v27  ;;  %277 = vmatpush.msrb.mxu1 %v12171_v53  ;;  %374 = vmatpush.msrb.mxu2 %v12100_v29  ;;  %v305_v15 = vsub.f32 %v12156_v48, %v12195_v61  ;;  %v12237_v16 = vand.u32 4294901760, %v12198_v62  ;;  %v12239_v17 = vand.u32 4294901760, %v33_v0  ;;  %v12244_v26 = vsub.f32 %v37_v57, %v12202_v63 }
  0x14   :  { %17370 = vst [vmem:[#allocation18_spill] sm:$0xff] %v12097_v28  ;;  %233 = vmatpush.msrb.mxu0 %v12073_v21  ;;  %421 = vmatpush.msrb.mxu3 %v12073_v21  ;;  %v12246_v30 = vand.u32 4294901760, %v90_v6  ;;  %v12253_v37 = vand.u32 4294901760, %v299_v2  ;;  %v311_v39 = vsub.f32 %v12177_v55, %v12214_v4  ;;  %v12258_v40 = vand.u32 4294901760, %v12217_v5 }
  0x15   :  { %17371 = vst [vmem:[#allocation19_spill] sm:$0xff] %v12100_v29  ;;  %283 = vmatpush.msrb.mxu1 %v12190_v59  ;;  %377 = vmatpush.msrb.mxu2 %v12135_v41  ;;  %v12260_v42 = vand.u32 4294901760, %v29_v9  ;;  %v12265_v45 = vand.u32 4294901760, %v12225_v8  ;;  %v12272_v50 = vand.u32 4294901760, %v305_v15  ;;  %v317_v51 = vsub.f32 %v12198_v62, %v12237_v16  ;;  %v78_v15 = vld [vmem:[%s16551_s2 + $0x188] sm:$0xff] }
  0x16   :  { %17372 = vst [vmem:[#allocation20_spill] sm:$0xff] %v12107_v31  ;;  %235 = vmatpush.msrb.mxu0 %v12121_v36  ;;  %423 = vmatpush.msrb.mxu3 %v12121_v36  ;;  %v12277_v57 = vsub.f32 %v33_v0, %v12239_v17  ;;  %v12279_v60 = vand.u32 4294901760, %v86_v34  ;;  %v12284_v2 = vand.u32 4294901760, %v12244_v26  ;;  %v12294_v0 = vand.u32 4294901760, %v311_v39  ;;  %v74_v39 = vld [vmem:[%s16551_s2 + $0x168] sm:$0xff] }
  0x17   :  { %17373 = vst [vmem:[#allocation21_spill] sm:$0xff] %v12110_v32  ;;  %289 = vmatpush.msrb.mxu1 %v12209_v1  ;;  %380 = vmatpush.msrb.mxu2 %v12156_v48  ;;  %v12342_v28 = vand.u32 4294901760, %v74_v39 }
  0x18   :  { %17374 = vst [vmem:[#allocation22_spill] sm:$0xff] %v12113_v33  ;;  %237 = vmatpush.msrb.mxu0 %v12158_v49  ;;  %425 = vmatpush.msrb.mxu3 %v12158_v49  ;;  %v335_v29 = vsub.f32 %v12244_v26, %v12284_v2 }
  0x19   :  { %17375 = vst [vmem:[#allocation23_spill] sm:$0xff] %v12119_v35  ;;  %295 = vmatpush.msrb.mxu1 %v12232_v10  ;;  %383 = vmatpush.msrb.mxu2 %v12177_v55  ;;  %v12380_v24 = vsub.f32 %v74_v39, %v12342_v28 }
  0x1a   :  { %17376 = vst [vmem:[#allocation24_spill] sm:$0xff] %v12121_v36  ;;  %239 = vmatpush.msrb.mxu0 %v12167_v52  ;;  %427 = vmatpush.msrb.mxu3 %v12167_v52 }
  0x1b   :  { %17377 = vst [vmem:[#allocation25_spill] sm:$0xff] %v12126_v38  ;;  %301 = vmatpush.msrb.mxu1 %v12253_v37  ;;  %386 = vmatpush.msrb.mxu2 %v12198_v62  ;;  %v12417_v18 = vand.u32 4294901760, %v12380_v24 }
  0x1c   :  { %17378 = vst [vmem:[#allocation26_spill] sm:$0xff] %v12135_v41  ;;  %v12301_v41 = vand.u32 4294901760, %v82_v47  ;;  %241 = vmatpush.msrb.mxu0 %v12179_v56  ;;  %429 = vmatpush.msrb.mxu3 %v12179_v56 }
  0x1d   :  { %17379 = vst [vmem:[#allocation27_spill] sm:$0xff] %v12140_v43  ;;  %307 = vmatpush.msrb.mxu1 %v12272_v50  ;;  %389 = vmatpush.msrb.mxu2 %v12217_v5  ;;  %v62_v43 = vld [vmem:[%s16551_s2 + $0x108] sm:$0xff] }
  0x1e   :  { %17380 = vst [vmem:[#allocation28_spill] sm:$0xff] %v12144_v44  ;;  %243 = vmatpush.msrb.mxu0 %v12186_v58  ;;  %431 = vmatpush.msrb.mxu3 %v12186_v58 }
  0x1f   :  { %17381 = vst [vmem:[#allocation29_spill] sm:$0xff] %v12151_v46  ;;  %313 = vmatpush.msrb.mxu1 %v12294_v0  ;;  %392 = vmatpush.msrb.mxu2 %v12225_v8 }
  0x20   :  { %17382 = vst [vmem:[#allocation30_spill] sm:$0xff] %v12156_v48  ;;  %v12287_v48 = vsub.f32 %v90_v6, %v12246_v30  ;;  %v329_v6 = vsub.f32 %v12225_v8, %v12265_v45  ;;  %245 = vmatpush.msrb.mxu0 %v12202_v63  ;;  %433 = vmatpush.msrb.mxu3 %v12202_v63 }
  0x21   :  { %17383 = vst [vmem:[#allocation31_spill] sm:$0xff] %v12158_v49  ;;  %395 = vmatpush.msrb.mxu2 %v12244_v26 }
  0x22   :  { %17384 = vst [vmem:[#allocation32_spill] sm:$0xff] %v12167_v52  ;;  %247 = vmatpush.msrb.mxu0 %v12239_v17  ;;  %435 = vmatpush.msrb.mxu3 %v12239_v17 }
  0x23   :  { %17385 = vst [vmem:[#allocation33_spill] sm:$0xff] %v12171_v53  ;;  %v12345_v53 = vand.u32 4294901760, %v329_v6  ;;  %398 = vmatpush.msrb.mxu2 %v12277_v57 }
  0x24   :  { %17386 = vst [vmem:[#allocation34_spill] sm:$0xff] %v12174_v54  ;;  %249 = vmatpush.msrb.mxu0 %v12260_v42  ;;  %437 = vmatpush.msrb.mxu3 %v12260_v42 }
  0x25   :  { %17387 = vst [vmem:[#allocation35_spill] sm:$0xff] %v12177_v55  ;;  %v323_v55 = vsub.f32 %v12217_v5, %v12258_v40 }
  0x26   :  { %17388 = vst [vmem:[#allocation36_spill] sm:$0xff] %v12179_v56 }
  0x27   :  { %17389 = vst [vmem:[#allocation37_spill] sm:$0xff] %v12186_v58 }
  0x28   :  { %17390 = vst [vmem:[#allocation38_spill] sm:$0xff] %v12190_v59  ;;  %v12340_v59 = vsub.f32 %v82_v47, %v12301_v41  ;;  %v95_v47 = vld [vmem:[%s16552_s0] sm:$0xff] }
  0x29   :  { %17391 = vst [vmem:[#allocation39_spill] sm:$0xff] %v12195_v61  ;;  %11811 = vmatmul.msk.f32.vlgmr.msra.gmra.mxu2 %vm106_vm1, %v95_v47  ;;  %11805 = vmatmul.msk.f32.vlgmr.msra.gmra.mxu0 %vm106_vm1, %v95_v47 }
  0x2a   :  { %17392 = vst [vmem:[#allocation40_spill] sm:$0xff] %v12198_v62  ;;  %v12312_v62 = vand.u32 4294901760, %v317_v51  ;;  %v70_v51 = vld [vmem:[%s16551_s2 + $0x148] sm:$0xff]  ;;  %445 = vmatpush.msra.mxu0 %v12078_v22  ;;  %11814 = vmatmul.msk.f32.vlgmr.msra.gmra.mxu3 %vm106_vm1, %v95_v47 }
  0x2b   :  { %17393 = vst [vmem:[#allocation41_spill] sm:$0xff] %v12202_v63  ;;  %v12364_v25 = vand.u32 4294901760, %v70_v51  ;;  %11808 = vmatmul.msk.f32.vlgmr.msra.gmra.mxu1 %vm106_vm1, %v95_v47  ;;  %v46_v47 = vld [vmem:[%s16551_s2 + $0x88] sm:$0xff] }
  0x2c   :  { %17394 = vst [vmem:[#allocation42_spill] sm:$0xff] %v12209_v1  ;;  %v12320_v1 = vand.u32 4294901760, %v78_v15  ;;  %319 = vmatpush.msrb.mxu1 %v12312_v62  ;;  %449 = vmatpush.msra.mxu0 %v12094_v27 }
  0x2d   :  { %17395 = vst [vmem:[#allocation43_spill] sm:$0xff] %v12214_v4  ;;  %v12399_v23 = vsub.f32 %v70_v51, %v12364_v25 }
  0x2e   :  { %17396 = vst [vmem:[#allocation44_spill] sm:$0xff] %v12217_v5  ;;  %453 = vmatpush.msra.mxu0 %v12107_v31 }
  0x2f   :  { %17397 = vst [vmem:[#allocation45_spill] sm:$0xff] %v12225_v8 }
  0x30   :  { %17398 = vst [vmem:[#allocation46_spill] sm:$0xff] %v12232_v10  ;;  %v12299_v10 = vsub.f32 %v29_v9, %v12260_v42  ;;  %v12315_v9 = vand.u32 4294901760, %v12277_v57  ;;  %457 = vmatpush.msra.mxu0 %v12110_v32  ;;  %v12489_v32 = vand.u32 4294901760, %v46_v47 }
  0x31   :  { %17399 = vst [vmem:[#allocation47_spill] sm:$0xff] %v12237_v16 }
  0x32   :  { %17400 = vst [vmem:[#allocation48_spill] sm:$0xff] %v12239_v17  ;;  %v12337_v5 = vand.u32 4294901760, %v12299_v10  ;;  %v341_v8 = vsub.f32 %v12277_v57, %v12315_v9  ;;  %401 = vmatpush.msrb.mxu2 %v12299_v10  ;;  %461 = vmatpush.msra.mxu0 %v12113_v33 }
  0x33   :  { %17401 = vst [vmem:[#allocation49_spill] sm:$0xff] %v12244_v26 }
  0x34   :  { %17402 = vst [vmem:[#allocation50_spill] sm:$0xff] %v12246_v30  ;;  %v347_v46 = vsub.f32 %v12299_v10, %v12337_v5  ;;  %547 = vmatpush.msra.mxu2 %v12246_v30  ;;  %465 = vmatpush.msra.mxu0 %v12119_v35  ;;  %v12523_v35 = vsub.f32 %v46_v47, %v12489_v32 }
  0x35   :  { %17403 = vst [vmem:[#allocation51_spill] sm:$0xff] %v12253_v37  ;;  %v12318_v37 = vsub.f32 %v86_v34, %v12279_v60  ;;  %v12334_v34 = vand.u32 4294901760, %v323_v55  ;;  %v66_v55 = vld [vmem:[%s16551_s2 + $0x128] sm:$0xff] }
  0x36   :  { %17404 = vst [vmem:[#allocation52_spill] sm:$0xff] %v12258_v40  ;;  %549 = vmatpush.msra.mxu2 %v12279_v60  ;;  %469 = vmatpush.msra.mxu0 %v12144_v44 }
  0x37   :  { %17405 = vst [vmem:[#allocation53_spill] sm:$0xff] %v12260_v42  ;;  %v12359_v6 = vand.u32 4294901760, %v12318_v37  ;;  %325 = vmatpush.msrb.mxu1 %v12334_v34 }
  0x38   :  { %17406 = vst [vmem:[#allocation54_spill] sm:$0xff] %v12265_v45  ;;  %551 = vmatpush.msra.mxu2 %v12301_v41  ;;  %473 = vmatpush.msra.mxu0 %v12174_v54 }
  0x39   :  { %17407 = vst [vmem:[#allocation55_spill] sm:$0xff] %v12272_v50  ;;  %v12327_v50 = vand.u32 4294901760, %v12287_v48  ;;  %331 = vmatpush.msrb.mxu1 %v12345_v53  ;;  %v591_v39 = vsub.f32 %v12318_v37, %v12359_v6 }
  0x3a   :  { %17408 = vst [vmem:[#allocation56_spill] sm:$0xff] %v12277_v57  ;;  %v12391_v57 = vand.u32 4294901760, %v341_v8  ;;  %v58_v8 = vld [vmem:[%s16551_s2 + $0xe8] sm:$0xff]  ;;  %553 = vmatpush.msra.mxu2 %v12320_v1  ;;  %477 = vmatpush.msra.mxu0 %v12195_v61 }
  0x3b   :  { %17409 = vst [vmem:[#allocation57_spill] sm:$0xff] %v12279_v60  ;;  %v585_v26 = vsub.f32 %v12287_v48, %v12327_v50  ;;  %v12436_v11 = vand.u32 4294901760, %v58_v8 }
  0x3c   :  { %17410 = vst [vmem:[#allocation58_spill] sm:$0xff] %v12284_v2  ;;  %555 = vmatpush.msra.mxu2 %v12342_v28  ;;  %481 = vmatpush.msra.mxu0 %v12214_v4 }
  0x3d   :  { %17411 = vst [vmem:[#allocation59_spill] sm:$0xff] %v12287_v48  ;;  %v12403_v38 = vand.u32 4294901760, %v585_v26 }
  0x3e   :  { %17412 = vst [vmem:[#allocation60_spill] sm:$0xff] %v12294_v0  ;;  %v12362_v0 = vsub.f32 %v78_v15, %v12320_v1  ;;  %v12377_v15 = vand.u32 4294901760, %v12340_v59  ;;  %557 = vmatpush.msra.mxu2 %v12364_v25  ;;  %485 = vmatpush.msra.mxu0 %v12237_v16 }
  0x3f   :  { %17413 = vst [vmem:[#allocation61_spill] sm:$0xff] %v12299_v10  ;;  %v12412_v10 = vand.u32 4294901760, %v347_v46  ;;  %v12429_v46 = vand.u32 4294901760, %v591_v39  ;;  %587 = vmatpush.msra.mxu3 %v12403_v38  ;;  %v50_v39 = vld [vmem:[%s16551_s2 + $0xa8] sm:$0xff] }
  0x40   :  { %17414 = vst [vmem:[#allocation62_spill] sm:$0xff] %v12301_v41  ;;  %v597_v51 = vsub.f32 %v12340_v59, %v12377_v15  ;;  %489 = vmatpush.msra.mxu0 %v12258_v40 }
  0x41   :  { %17415 = vst [vmem:[#allocation63_spill] sm:$0xff] %v12312_v62  ;;  %v12367_v62 = vand.u32 4294901760, %v335_v29  ;;  %v12382_v29 = vand.u32 4294901760, %v66_v55  ;;  %593 = vmatpush.msra.mxu3 %v12429_v46 }
  0x42   :  { %17416 = vst [vmem:[#allocation64_spill] sm:$0xff] %v12315_v9  ;;  %493 = vmatpush.msra.mxu0 %v12265_v45 }
  0x43   :  { %17417 = vst [vmem:[#allocation65_spill] sm:$0xff] %v12318_v37  ;;  %337 = vmatpush.msrb.mxu1 %v12367_v62  ;;  %v12420_v26 = vsub.f32 %v66_v55, %v12382_v29  ;;  %v12434_v55 = vand.u32 4294901760, %v12399_v23  ;;  %559 = vmatpush.msra.mxu2 %v12382_v29 }
  0x44   :  { %17418 = vst [vmem:[#allocation66_spill] sm:$0xff] %v12320_v1  ;;  %497 = vmatpush.msra.mxu0 %v12284_v2 }
  0x45   :  { %17419 = vst [vmem:[#allocation67_spill] sm:$0xff] %v12327_v50  ;;  %343 = vmatpush.msrb.mxu1 %v12391_v57  ;;  %v12453_v27 = vand.u32 4294901760, %v12420_v26 }
  0x46   :  { %17420 = vst [vmem:[#allocation68_spill] sm:$0xff] %v12334_v34  ;;  %v12396_v34 = vand.u32 4294901760, %v12362_v0  ;;  %501 = vmatpush.msra.mxu0 %v12315_v9 }
  0x47   :  { %17421 = vst [vmem:[#allocation69_spill] sm:$0xff] %v12337_v5  ;;  %349 = vmatpush.msrb.mxu1 %v12412_v10 }
  0x48   :  { %17422 = vst [vmem:[#allocation70_spill] sm:$0xff] %v12340_v59  ;;  %v603_v22 = vsub.f32 %v12362_v0, %v12396_v34  ;;  %505 = vmatpush.msra.mxu0 %v12337_v5 }
  0x49   :  { %17423 = vst [vmem:[#allocation71_spill] sm:$0xff] %v12342_v28  ;;  %511 = vmatpush.msra.mxu1 %v12024_v3 }
  0x4a   :  { %17424 = vst [vmem:[#allocation72_spill] sm:$0xff] %v12345_v53  ;;  %v12405_v53 = vand.u32 4294901760, %v62_v43 }
  0x4b   :  { %17425 = vst [vmem:[#allocation73_spill] sm:$0xff] %v12359_v6  ;;  %513 = vmatpush.msra.mxu1 %v12035_v7  ;;  %v42_v7 = vld [vmem:[%s16551_s2 + $0x68] sm:$0xff] }
  0x4c   :  { %17426 = vst [vmem:[#allocation74_spill] sm:$0xff] %v12362_v0  ;;  %v12441_v60 = vsub.f32 %v62_v43, %v12405_v53  ;;  %v12461_v43 = vand.u32 4294901760, %v603_v22  ;;  %561 = vmatpush.msra.mxu2 %v12405_v53 }
  0x4d   :  { %17427 = vst [vmem:[#allocation75_spill] sm:$0xff] %v12364_v25  ;;  %515 = vmatpush.msra.mxu1 %v12051_v12  ;;  %v38_v12 = vld [vmem:[%s16551_s2 + $0x48] sm:$0xff] }
  0x4e   :  { %17428 = vst [vmem:[#allocation76_spill] sm:$0xff] %v12367_v62  ;;  %v54_v62 = vld [vmem:[%s16551_s2 + $0xc8] sm:$0xff]  ;;  %v12476_v31 = vand.u32 4294901760, %v12441_v60  ;;  %v12538_v47 = vand.u32 4294901760, %v38_v12  ;;  %563 = vmatpush.msra.mxu2 %v12436_v11 }
  0x4f   :  { %17429 = vst [vmem:[#allocation77_spill] sm:$0xff] %v12377_v15  ;;  %517 = vmatpush.msra.mxu1 %v12053_v13  ;;  %v34_v13 = vld [vmem:[%s16551_s2 + $0x28] sm:$0xff] }
  0x50   :  { %17430 = vst [vmem:[#allocation78_spill] sm:$0xff] %v12380_v24  ;;  %v627_v33 = vsub.f32 %v12441_v60, %v12476_v31 }
  0x51   :  { %17431 = vst [vmem:[#allocation79_spill] sm:$0xff] %v12382_v29  ;;  %519 = vmatpush.msra.mxu1 %v12055_v14 }
  0x52   :  { %17432 = vst [vmem:[#allocation80_spill] sm:$0xff] %v12391_v57  ;;  %v12448_v57 = vand.u32 4294901760, %v597_v51  ;;  %v615_v51 = vsub.f32 %v12399_v23, %v12434_v55  ;;  %v12542_v3 = vand.u32 4294901760, %v627_v33  ;;  %v12559_v33 = vand.u32 4294901760, %v12523_v35 }
  0x53   :  { %17433 = vst [vmem:[#allocation81_spill] sm:$0xff] %v12396_v34  ;;  %v609_v34 = vsub.f32 %v12380_v24, %v12417_v18  ;;  %521 = vmatpush.msra.mxu1 %v12069_v19 }
  0x54   :  { %17434 = vst [vmem:[#allocation82_spill] sm:$0xff] %v12399_v23  ;;  %599 = vmatpush.msra.mxu3 %v12448_v57 }
  0x55   :  { %17435 = vst [vmem:[#allocation83_spill] sm:$0xff] %v12403_v38  ;;  %v12455_v38 = vand.u32 4294901760, %v54_v62  ;;  %v12480_v22 = vand.u32 4294901760, %v609_v34  ;;  %v12496_v34 = vand.u32 4294901760, %v615_v51  ;;  %523 = vmatpush.msra.mxu1 %v12071_v20 }
  0x56   :  { %17436 = vst [vmem:[#allocation84_spill] sm:$0xff] %v12405_v53  ;;  %605 = vmatpush.msra.mxu3 %v12461_v43 }
  0x57   :  { %17437 = vst [vmem:[#allocation85_spill] sm:$0xff] %v12412_v10  ;;  %v12466_v10 = vsub.f32 %v58_v8, %v12436_v11  ;;  %v621_v8 = vsub.f32 %v12420_v26, %v12453_v27  ;;  %525 = vmatpush.msra.mxu1 %v12073_v21  ;;  %565 = vmatpush.msra.mxu2 %v12455_v38 }
  0x58   :  { %17438 = vst [vmem:[#allocation86_spill] sm:$0xff] %v12417_v18  ;;  %v12468_v18 = vand.u32 4294901760, %v50_v39  ;;  %611 = vmatpush.msra.mxu3 %v12480_v22 }
  0x59   :  { %17439 = vst [vmem:[#allocation87_spill] sm:$0xff] %v12420_v26  ;;  %v12513_v51 = vand.u32 4294901760, %v621_v8  ;;  %v96_v8 = vld [vmem:[%s16552_s0 + $0x8] sm:$0xff]  ;;  %527 = vmatpush.msra.mxu1 %v12121_v36 }
  0x5a   :  { %17440 = vst [vmem:[#allocation88_spill] sm:$0xff] %v12429_v46  ;;  %v12485_v46 = vsub.f32 %v54_v62, %v12455_v38  ;;  %v12502_v62 = vsub.f32 %v50_v39, %v12468_v18  ;;  %617 = vmatpush.msra.mxu3 %v12496_v34  ;;  %11812 = vmatmul.msk.f32.gmra.mxu2 %vm106_vm1, %v96_v8 }
  0x5b   :  { %17441 = vst [vmem:[#allocation89_spill] sm:$0xff] %v12434_v55  ;;  %11806 = vmatmul.msk.f32.gmra.mxu0 %vm106_vm1, %v96_v8  ;;  %11815 = vmatmul.msk.f32.gmra.mxu3 %vm106_vm1, %v96_v8 }
  0x5c   :  { %17442 = vst [vmem:[#allocation90_spill] sm:$0xff] %v12436_v11  ;;  %v12516_v39 = vand.u32 4294901760, %v12485_v46  ;;  %623 = vmatpush.msra.mxu3 %v12513_v51  ;;  %11809 = vmatmul.msk.f32.gmra.mxu1 %vm106_vm1, %v96_v8 }
  0x5d   :  { %17443 = vst [vmem:[#allocation91_spill] sm:$0xff] %v12441_v60  ;;  %567 = vmatpush.msra.mxu2 %v12468_v18  ;;  %529 = vmatpush.msra.mxu1 %v12158_v49 }
  0x5e   :  { %17444 = vst [vmem:[#allocation92_spill] sm:$0xff] %v12448_v57  ;;  %v12499_v57 = vand.u32 4294901760, %v12466_v10  ;;  %v639_v14 = vsub.f32 %v12485_v46, %v12516_v39  ;;  %629 = vmatpush.msra.mxu3 %v12542_v3 }
  0x5f   :  { %17445 = vst [vmem:[#allocation93_spill] sm:$0xff] %v12453_v27  ;;  %569 = vmatpush.msra.mxu2 %v12489_v32  ;;  %531 = vmatpush.msra.mxu1 %v12167_v52 }
  0x60   :  { %17446 = vst [vmem:[#allocation94_spill] sm:$0xff] %v12455_v38  ;;  %v633_v44 = vsub.f32 %v12466_v10, %v12499_v57  ;;  %v12576_v61 = vand.u32 4294901760, %v639_v14 }
  0x61   :  { %17447 = vst [vmem:[#allocation95_spill] sm:$0xff] %v12461_v43  ;;  %v12518_v43 = vand.u32 4294901760, %v42_v7  ;;  %533 = vmatpush.msra.mxu1 %v12179_v56 }
  0x62   :  { %17448 = vst [vmem:[#allocation96_spill] sm:$0xff] %v12466_v10  ;;  %v12554_v10 = vand.u32 4294901760, %v34_v13  ;;  %v12563_v54 = vand.u32 4294901760, %v633_v44 }
  0x63   :  { %17449 = vst [vmem:[#allocation97_spill] sm:$0xff] %v12468_v18  ;;  %571 = vmatpush.msra.mxu2 %v12518_v43  ;;  %535 = vmatpush.msra.mxu1 %v12186_v58 }
  0x64   :  { %17450 = vst [vmem:[#allocation98_spill] sm:$0xff] %v12476_v31  ;;  %v12582_v20 = vsub.f32 %v34_v13, %v12554_v10  ;;  %635 = vmatpush.msra.mxu3 %v12563_v54 }
  0x65   :  { %17451 = vst [vmem:[#allocation99_spill] sm:$0xff] %v12480_v22  ;;  %v12536_v22 = vand.u32 4294901760, %v12502_v62  ;;  %573 = vmatpush.msra.mxu2 %v12538_v47  ;;  %537 = vmatpush.msra.mxu1 %v12202_v63 }
  0x66   :  { %17452 = vst [vmem:[#allocation100_spill] sm:$0xff] %v12485_v46  ;;  %641 = vmatpush.msra.mxu3 %v12576_v61 }
  0x67   :  { %17453 = vst [vmem:[#allocation101_spill] sm:$0xff] %v12489_v32  ;;  %575 = vmatpush.msra.mxu2 %v12554_v10  ;;  %539 = vmatpush.msra.mxu1 %v12239_v17 }
  0x68   :  { %17454 = vst [vmem:[#allocation102_spill] sm:$0xff] %v12496_v34  ;;  %v30_v34 = vld [vmem:[%s16551_s2 + $0x8] sm:$0xff] }
  0x69   :  { %17455 = vst [vmem:[#allocation103_spill] sm:$0xff] %v12499_v57  ;;  %v12552_v57 = vsub.f32 %v42_v7, %v12518_v43  ;;  %v12568_v7 = vsub.f32 %v38_v12, %v12538_v47  ;;  %v12570_v19 = vand.u32 4294901760, %v30_v34  ;;  %v651_v12 = vsub.f32 %v12523_v35, %v12559_v33  ;;  %541 = vmatpush.msra.mxu1 %v12260_v42 }
  0x6a   :  { %17456 = vst [vmem:[#allocation104_spill] sm:$0xff] %v12502_v62 }
  0x6b   :  { %17457 = vst [vmem:[#allocation105_spill] sm:$0xff] %v12513_v51  ;;  %v645_v51 = vsub.f32 %v12502_v62, %v12536_v22  ;;  %v12579_v44 = vand.u32 4294901760, %v12552_v57  ;;  %v12593_v14 = vand.u32 4294901760, %v12568_v7  ;;  %577 = vmatpush.msra.mxu2 %v12570_v19 }
  0x6c   :  { %17458 = vst [vmem:[#allocation106_spill] sm:$0xff] %v12516_v39 }
  0x6d   :  { %17459 = vst [vmem:[#allocation107_spill] sm:$0xff] %v12518_v43  ;;  %v12590_v4 = vand.u32 4294901760, %v645_v51  ;;  %v657_v13 = vsub.f32 %v12552_v57, %v12579_v44  ;;  %v12605_v51 = vand.u32 4294901760, %v12582_v20  ;;  %v663_v8 = vsub.f32 %v12568_v7, %v12593_v14 }
  0x6e   :  { %17460 = vst [vmem:[#allocation108_spill] sm:$0xff] %v12523_v35 }
  0x6f   :  { %17461 = vst [vmem:[#allocation109_spill] sm:$0xff] %v12536_v22  ;;  %647 = vmatpush.msra.mxu3 %v12590_v4  ;;  %v669_v40 = vsub.f32 %v12582_v20, %v12605_v51 }
  0x70   :  { %17462 = vst [vmem:[#allocation110_spill] sm:$0xff] %v12538_v47 }
  0x71   :  { %17463 = vst [vmem:[#allocation111_spill] sm:$0xff] %v12542_v3  ;;  %v12596_v3 = vsub.f32 %v30_v34, %v12570_v19  ;;  %v12609_v34 = vand.u32 4294901760, %v651_v12  ;;  %v12622_v12 = vand.u32 4294901760, %v657_v13  ;;  %v12638_v13 = vand.u32 4294901760, %v669_v40  ;;  %v17483_v40 = vld [vmem:[#allocation57_spill] sm:$0xff] }
  0x72   :  { %17464 = vst [vmem:[#allocation112_spill] sm:$0xff] %v12552_v57 }
  0x73   :  { %17465 = vst [vmem:[#allocation113_spill] sm:$0xff] %v12554_v10  ;;  %v12616_v16 = vand.u32 4294901760, %v12596_v3  ;;  %653 = vmatpush.msra.mxu3 %v12609_v34 }
  0x74   :  { %17466 = vst [vmem:[#allocation114_spill] sm:$0xff] %v12559_v33 }
  0x75   :  { %17467 = vst [vmem:[#allocation115_spill] sm:$0xff] %v12563_v54  ;;  %v675_v45 = vsub.f32 %v12596_v3, %v12616_v16  ;;  %659 = vmatpush.msra.mxu3 %v12622_v12 }
  0x76   :  { %17468 = vst [vmem:[#allocation116_spill] sm:$0xff] %v12568_v7 }
  0x77   :  { %17469 = vst [vmem:[#allocation117_spill] sm:$0xff] %v12570_v19 }
  0x78   :  { %17470 = vst [vmem:[#allocation118_spill] sm:$0xff] %v12576_v61  ;;  %v16693_v61 = vmov 0.0  }
  0x79   :  { %17471 = vst [vmem:[#allocation119_spill] sm:$0xff] %v12579_v44  ;;  %402 = vmatmul.f32.vlgmr.msrb.gmra.mxu2 %v16693_v61  ;;  %250 = vmatmul.f32.vlgmr.msrb.gmra.mxu0 %v16693_v61 }
  0x7a   :  { %17472 = vst [vmem:[#allocation120_spill] sm:$0xff] %v12582_v20  ;;  %438 = vmatmul.f32.vlgmr.msrb.gmra.mxu3 %v16693_v61  ;;  %350 = vmatmul.f32.vlgmr.msrb.gmra.mxu1 %v16693_v61 }
  0x7b   :  { %17473 = vst [vmem:[#allocation121_spill] sm:$0xff] %v12590_v4  ;;  %v12630_v4 = vand.u32 4294901760, %v663_v8  ;;  %v12644_v8 = vand.u32 4294901760, %v675_v45  ;;  %684 = vmatpush.msrb.mxu0 %v12287_v48  ;;  %773 = vmatpush.msrb.mxu2 %v12327_v50  ;;  %v17484_v45 = vld [vmem:[#allocation81_spill] sm:$0xff] }
  0x7c   :  { %17474 = vst [vmem:[#allocation122_spill] sm:$0xff] %v12593_v14  ;;  %735 = vmatpush.msrb.mxu1 %v12246_v30 }
  0x7d   :  { %17475 = vst [vmem:[#allocation123_spill] sm:$0xff] %v12596_v3  ;;  %665 = vmatpush.msra.mxu3 %v12630_v4  ;;  %777 = vmatpush.msrb.mxu2 %v12359_v6 }
  0x7e   :  { %17476 = vst [vmem:[#allocation124_spill] sm:$0xff] %v12605_v51  ;;  %687 = vmatpush.msrb.mxu0 %v12318_v37  ;;  %737 = vmatpush.msrb.mxu1 %v17483_v40  ;;  %v17485_v37 = vld [vmem:[#allocation86_spill] sm:$0xff] }
  0x7f   :  { %17477 = vst [vmem:[#allocation125_spill] sm:$0xff] %v12609_v34  ;;  %671 = vmatpush.msra.mxu3 %v12638_v13  ;;  %781 = vmatpush.msrb.mxu2 %v12377_v15 }
  0x80   :  { %17478 = vst [vmem:[#allocation126_spill] sm:$0xff] %v12616_v16  ;;  %690 = vmatpush.msrb.mxu0 %v12340_v59  ;;  %739 = vmatpush.msrb.mxu1 %v12301_v41 }
  0x81   :  { %17479 = vst [vmem:[#allocation127_spill] sm:$0xff] %v12622_v12  ;;  %677 = vmatpush.msra.mxu3 %v12644_v8  ;;  %506 = vmatmul.f32.vlgmr.msra.gmra.mxu0 %v16693_v61 }
  0x82   :  { %17480 = vst [vmem:[#allocation128_spill] sm:$0xff] %v12630_v4  ;;  %542 = vmatmul.f32.vlgmr.msra.gmra.mxu1 %v16693_v61  ;;  %693 = vmatpush.msrb.mxu0 %v12362_v0  ;;  %v17486_v61 = vld [vmem:[#allocation96_spill] sm:$0xff] }
  0x83   :  { %17481 = vst [vmem:[#allocation129_spill] sm:$0xff] %v12638_v13  ;;  %839 = vmatpush.msrb.mxu3 %v12246_v30  ;;  %785 = vmatpush.msrb.mxu2 %v17484_v45  ;;  %v63_v0 = vld [vmem:[%s16551_s2 + $0x110] sm:$0xff] }
  0x84   :  { %17482 = vst [vmem:[#allocation130_spill] sm:$0xff] %v12644_v8  ;;  %696 = vmatpush.msrb.mxu0 %v12380_v24  ;;  %741 = vmatpush.msrb.mxu1 %v12320_v1  ;;  %v67_v24 = vld [vmem:[%s16551_s2 + $0x130] sm:$0xff] }
  0x85   :  { %841 = vmatpush.msrb.mxu3 %v17483_v40  ;;  %789 = vmatpush.msrb.mxu2 %v17485_v37 }
  0x86   :  { %699 = vmatpush.msrb.mxu0 %v12399_v23  ;;  %743 = vmatpush.msrb.mxu1 %v12342_v28  ;;  %v17487_v23 = vld [vmem:[#allocation103_spill] sm:$0xff] }
  0x87   :  { %843 = vmatpush.msrb.mxu3 %v12301_v41  ;;  %793 = vmatpush.msrb.mxu2 %v12434_v55 }
  0x88   :  { %702 = vmatpush.msrb.mxu0 %v12420_v26  ;;  %745 = vmatpush.msrb.mxu1 %v12364_v25  ;;  %v91_v26 = vld [vmem:[%s16551_s2 + $0x1f0] sm:$0xff] }
  0x89   :  { %845 = vmatpush.msrb.mxu3 %v12320_v1  ;;  %797 = vmatpush.msrb.mxu2 %v12453_v27 }
  0x8a   :  { %705 = vmatpush.msrb.mxu0 %v12441_v60  ;;  %747 = vmatpush.msrb.mxu1 %v12382_v29  ;;  %v12700_v60 = vand.u32 4294901760, %v91_v26 }
  0x8b   :  { %847 = vmatpush.msrb.mxu3 %v12342_v28  ;;  %801 = vmatpush.msrb.mxu2 %v12476_v31 }
  0x8c   :  { %708 = vmatpush.msrb.mxu0 %v17486_v61  ;;  %749 = vmatpush.msrb.mxu1 %v12405_v53  ;;  %v87_v61 = vld [vmem:[%s16551_s2 + $0x1d0] sm:$0xff]  ;;  %17488 = vst [vmem:[#allocation131_spill] sm:$0xff] %v12700_v60 }
  0x8d   :  { %849 = vmatpush.msrb.mxu3 %v12364_v25  ;;  %805 = vmatpush.msrb.mxu2 %v17487_v23  ;;  %v12719_v23 = vsub.f32 %v91_v26, %v12700_v60  ;;  %v71_v26 = vld [vmem:[%s16551_s2 + $0x150] sm:$0xff] }
  0x8e   :  { %711 = vmatpush.msrb.mxu0 %v12485_v46  ;;  %751 = vmatpush.msrb.mxu1 %v12436_v11  ;;  %v83_v46 = vld [vmem:[%s16551_s2 + $0x1b0] sm:$0xff]  ;;  %v12763_v27 = vand.u32 4294901760, %v71_v26 }
  0x8f   :  { %851 = vmatpush.msrb.mxu3 %v12382_v29  ;;  %809 = vmatpush.msrb.mxu2 %v12516_v39  ;;  %v12709_v39 = vand.u32 4294901760, %v87_v61  ;;  %17491 = vst [vmem:[#allocation133_spill] sm:$0xff] %v12719_v23 }
  0x90   :  { %714 = vmatpush.msrb.mxu0 %v12502_v62  ;;  %753 = vmatpush.msrb.mxu1 %v12455_v38  ;;  %v79_v62 = vld [vmem:[%s16551_s2 + $0x190] sm:$0xff]  ;;  %17500 = vst [vmem:[#allocation142_spill] sm:$0xff] %v12763_v27  ;;  %v12797_v37 = vsub.f32 %v71_v26, %v12763_v27 }
  0x91   :  { %853 = vmatpush.msrb.mxu3 %v12405_v53  ;;  %813 = vmatpush.msrb.mxu2 %v12536_v22  ;;  %17489 = vst [vmem:[#allocation132_spill] sm:$0xff] %v12709_v39  ;;  %v17490_v22 = vmov 0.0   ;;  %v12731_v31 = vsub.f32 %v87_v61, %v12709_v39 }
  0x92   :  { %717 = vmatpush.msrb.mxu0 %v12523_v35  ;;  %578 = vmatmul.f32.vlgmr.msra.gmra.mxu2 %v17490_v22  ;;  %v12721_v35 = vand.u32 4294901760, %v83_v46  ;;  %17506 = vst [vmem:[#allocation148_spill] sm:$0xff] %v12797_v37 }
  0x93   :  { %855 = vmatpush.msrb.mxu3 %v12436_v11  ;;  %817 = vmatpush.msrb.mxu2 %v12559_v33  ;;  %v75_v33 = vld [vmem:[%s16551_s2 + $0x170] sm:$0xff]  ;;  %17493 = vst [vmem:[#allocation135_spill] sm:$0xff] %v12731_v31 }
  0x94   :  { %720 = vmatpush.msrb.mxu0 %v12552_v57  ;;  %17492 = vst [vmem:[#allocation134_spill] sm:$0xff] %v12721_v35  ;;  %755 = vmatpush.msrb.mxu1 %v12468_v18  ;;  %v12733_v57 = vand.u32 4294901760, %v79_v62  ;;  %v12746_v61 = vsub.f32 %v83_v46, %v12721_v35 }
  0x95   :  { %857 = vmatpush.msrb.mxu3 %v12455_v38  ;;  %821 = vmatpush.msrb.mxu2 %v12579_v44  ;;  %v12743_v44 = vand.u32 4294901760, %v12719_v23 }
  0x96   :  { %723 = vmatpush.msrb.mxu0 %v12568_v7  ;;  %17494 = vst [vmem:[#allocation136_spill] sm:$0xff] %v12733_v57  ;;  %678 = vmatmul.f32.vlgmr.msra.gmra.mxu3 %v17490_v22  ;;  %v12748_v7 = vand.u32 4294901760, %v75_v33  ;;  %v12761_v46 = vsub.f32 %v79_v62, %v12733_v57 }
  0x97   :  { %859 = vmatpush.msrb.mxu3 %v12468_v18  ;;  %757 = vmatpush.msrb.mxu1 %v12489_v32  ;;  %17495 = vst [vmem:[#allocation137_spill] sm:$0xff] %v12743_v44  ;;  %v913_v62 = vsub.f32 %v12719_v23, %v12743_v44 }
  0x98   :  { %825 = vmatpush.msrb.mxu2 %v12593_v14  ;;  %17496 = vst [vmem:[#allocation138_spill] sm:$0xff] %v12746_v61  ;;  %726 = vmatpush.msrb.mxu0 %v12582_v20  ;;  %v12758_v14 = vand.u32 4294901760, %v12731_v31  ;;  %v12770_v20 = vand.u32 4294901760, %v67_v24  ;;  %v12780_v55 = vsub.f32 %v75_v33, %v12748_v7  ;;  %v12794_v33 = vand.u32 4294901760, %v12761_v46 }
  0x99   :  { %861 = vmatpush.msrb.mxu3 %v12489_v32  ;;  %17497 = vst [vmem:[#allocation139_spill] sm:$0xff] %v12748_v7  ;;  %759 = vmatpush.msrb.mxu1 %v12518_v43  ;;  %v12809_v48 = vand.u32 4294901760, %v913_v62  ;;  %v51_v62 = vld [vmem:[%s16551_s2 + $0xb0] sm:$0xff] }
  0x9a   :  { %829 = vmatpush.msrb.mxu2 %v12605_v51  ;;  %17498 = vst [vmem:[#allocation140_spill] sm:$0xff] %v12758_v14  ;;  %729 = vmatpush.msrb.mxu0 %v12596_v3  ;;  %v12777_v51 = vand.u32 4294901760, %v12746_v61  ;;  %v12784_v3 = vand.u32 4294901760, %v63_v0  ;;  %v919_v59 = vsub.f32 %v12731_v31, %v12758_v14  ;;  %v12802_v45 = vsub.f32 %v67_v24, %v12770_v20 }
  0x9b   :  { %863 = vmatpush.msrb.mxu3 %v12518_v43  ;;  %17499 = vst [vmem:[#allocation141_spill] sm:$0xff] %v12761_v46  ;;  %761 = vmatpush.msrb.mxu1 %v12538_v47  ;;  %v12814_v15 = vand.u32 4294901760, %v12780_v55  ;;  %v931_v5 = vsub.f32 %v12761_v46, %v12794_v33  ;;  %v92_v43 = vld [vmem:[%s16551_s2 + $0x1f8] sm:$0xff] }
  0x9c   :  { %17501 = vst [vmem:[#allocation143_spill] sm:$0xff] %v12770_v20  ;;  %833 = vmatpush.msrb.mxu2 %v12616_v16  ;;  %875 = vmatpush.msra.mxu0 %v12700_v60  ;;  %v59_v16 = vld [vmem:[%s16551_s2 + $0xf0] sm:$0xff]  ;;  %v925_v26 = vsub.f32 %v12746_v61, %v12777_v51  ;;  %v12821_v24 = vsub.f32 %v63_v0, %v12784_v3  ;;  %v12828_v50 = vand.u32 4294901760, %v919_v59  ;;  %v12840_v0 = vand.u32 4294901760, %v12802_v45 }
  0x9d   :  { %865 = vmatpush.msrb.mxu3 %v12538_v47  ;;  %17502 = vst [vmem:[#allocation144_spill] sm:$0xff] %v12777_v51  ;;  %834 = vmatmul.f32.vlgmr.msrb.gmra.mxu2 %v17490_v22  ;;  %v12816_v6 = vand.u32 4294901760, %v59_v16  ;;  %v47_v59 = vld [vmem:[%s16551_s2 + $0x90] sm:$0xff]  ;;  %v937_v2 = vsub.f32 %v12780_v55, %v12814_v15  ;;  %v12942_v54 = vand.u32 4294901760, %v92_v43 }
  0x9e   :  { %17503 = vst [vmem:[#allocation145_spill] sm:$0xff] %v12780_v55  ;;  %1012 = vmatpush.msra.mxu2 %v12719_v23  ;;  %763 = vmatpush.msrb.mxu1 %v12554_v10  ;;  %v55_v23 = vld [vmem:[%s16551_s2 + $0xd0] sm:$0xff]  ;;  %v12847_v8 = vand.u32 4294901760, %v925_v26 }
  0x9f   :  { %867 = vmatpush.msrb.mxu3 %v12554_v10  ;;  %17504 = vst [vmem:[#allocation146_spill] sm:$0xff] %v12784_v3  ;;  %730 = vmatmul.f32.vlgmr.msrb.gmra.mxu0 %v17490_v22  ;;  %v12835_v9 = vand.u32 4294901760, %v55_v23  ;;  %v12852_v13 = vsub.f32 %v59_v16, %v12816_v6  ;;  %v43_v26 = vld [vmem:[%s16551_s2 + $0x70] sm:$0xff]  ;;  %v949_v10 = vsub.f32 %v12802_v45, %v12840_v0 }
  0xa0   :  { %17505 = vst [vmem:[#allocation147_spill] sm:$0xff] %v12794_v33  ;;  %877 = vmatpush.msra.mxu0 %v12709_v39  ;;  %1015 = vmatpush.msra.mxu2 %v12731_v31  ;;  %v12833_v31 = vand.u32 4294901760, %v12797_v37 }
  0xa1   :  { %869 = vmatpush.msrb.mxu3 %v12570_v19  ;;  %17507 = vst [vmem:[#allocation149_spill] sm:$0xff] %v12802_v45  ;;  %765 = vmatpush.msrb.mxu1 %v12570_v19  ;;  %v12859_v19 = vand.u32 4294901760, %v12821_v24  ;;  %v12871_v4 = vsub.f32 %v55_v23, %v12835_v9  ;;  %v12887_v23 = vand.u32 4294901760, %v12852_v13 }
  0xa2   :  { %870 = vmatmul.f32.vlgmr.msrb.gmra.mxu3 %v17490_v22  ;;  %17508 = vst [vmem:[#allocation150_spill] sm:$0xff] %v12809_v48  ;;  %879 = vmatpush.msra.mxu0 %v12721_v35  ;;  %v943_v16 = vsub.f32 %v12797_v37, %v12833_v31 }
  0xa3   :  { %17509 = vst [vmem:[#allocation151_spill] sm:$0xff] %v12814_v15  ;;  %1063 = vmatpush.msra.mxu3 %v12700_v60  ;;  %766 = vmatmul.f32.vlgmr.msrb.gmra.mxu1 %v17490_v22  ;;  %v955_v47 = vsub.f32 %v12821_v24, %v12859_v19 }
  0xa4   :  { %17510 = vst [vmem:[#allocation152_spill] sm:$0xff] %v12816_v6  ;;  %1018 = vmatpush.msra.mxu2 %v12746_v61  ;;  %915 = vmatpush.msra.mxu1 %v12809_v48  ;;  %v12854_v61 = vand.u32 4294901760, %v51_v62  ;;  %v12866_v48 = vand.u32 4294901760, %v931_v5  ;;  %v39_v5 = vld [vmem:[%s16551_s2 + $0x50] sm:$0xff] }
  0xa5   :  { %17511 = vst [vmem:[#allocation153_spill] sm:$0xff] %v12821_v24  ;;  %1065 = vmatpush.msra.mxu3 %v12709_v39  ;;  %881 = vmatpush.msra.mxu0 %v12733_v57 }
  0xa6   :  { %17512 = vst [vmem:[#allocation154_spill] sm:$0xff] %v12828_v50  ;;  %1021 = vmatpush.msra.mxu2 %v12761_v46  ;;  %921 = vmatpush.msra.mxu1 %v12828_v50  ;;  %v12873_v46 = vand.u32 4294901760, %v47_v59  ;;  %v12884_v50 = vand.u32 4294901760, %v937_v2  ;;  %v12890_v12 = vsub.f32 %v51_v62, %v12854_v61  ;;  %v35_v2 = vld [vmem:[%s16551_s2 + $0x30] sm:$0xff]  ;;  %v12906_v62 = vand.u32 4294901760, %v12871_v4 }
  0xa7   :  { %17513 = vst [vmem:[#allocation155_spill] sm:$0xff] %v12833_v31  ;;  %1067 = vmatpush.msra.mxu3 %v12721_v35  ;;  %883 = vmatpush.msra.mxu0 %v12748_v7 }
  0xa8   :  { %17514 = vst [vmem:[#allocation156_spill] sm:$0xff] %v12835_v9  ;;  %1024 = vmatpush.msra.mxu2 %v12780_v55  ;;  %927 = vmatpush.msra.mxu1 %v12847_v8  ;;  %v12892_v55 = vand.u32 4294901760, %v43_v26  ;;  %v12909_v34 = vsub.f32 %v47_v59, %v12873_v46  ;;  %v961_v59 = vsub.f32 %v12852_v13, %v12887_v23  ;;  %v12928_v32 = vand.u32 4294901760, %v12890_v12 }
  0xa9   :  { %17515 = vst [vmem:[#allocation157_spill] sm:$0xff] %v12840_v0  ;;  %1069 = vmatpush.msra.mxu3 %v12733_v57  ;;  %885 = vmatpush.msra.mxu0 %v12763_v27 }
  0xaa   :  { %17516 = vst [vmem:[#allocation158_spill] sm:$0xff] %v12847_v8  ;;  %1027 = vmatpush.msra.mxu2 %v12797_v37  ;;  %933 = vmatpush.msra.mxu1 %v12866_v48  ;;  %v12903_v8 = vand.u32 4294901760, %v943_v16  ;;  %v12911_v37 = vand.u32 4294901760, %v39_v5  ;;  %v31_v16 = vld [vmem:[%s16551_s2 + $0x10] sm:$0xff]  ;;  %v12931_v18 = vsub.f32 %v43_v26, %v12892_v55  ;;  %v967_v26 = vsub.f32 %v12871_v4, %v12906_v62 }
  0xab   :  { %17517 = vst [vmem:[#allocation159_spill] sm:$0xff] %v12852_v13  ;;  %1071 = vmatpush.msra.mxu3 %v12748_v7  ;;  %887 = vmatpush.msra.mxu0 %v12770_v20  ;;  %v12949_v38 = vand.u32 4294901760, %v12909_v34  ;;  %v12954_v53 = vand.u32 4294901760, %v31_v16 }
  0xac   :  { %17518 = vst [vmem:[#allocation160_spill] sm:$0xff] %v12854_v61  ;;  %1030 = vmatpush.msra.mxu2 %v12802_v45  ;;  %939 = vmatpush.msra.mxu1 %v12884_v50  ;;  %v12933_v45 = vand.u32 4294901760, %v35_v2  ;;  %v12952_v11 = vsub.f32 %v39_v5, %v12911_v37  ;;  %v973_v5 = vsub.f32 %v12890_v12, %v12928_v32  ;;  %v12970_v29 = vand.u32 4294901760, %v12931_v18 }
  0xad   :  { %17519 = vst [vmem:[#allocation161_spill] sm:$0xff] %v12859_v19  ;;  %1073 = vmatpush.msra.mxu3 %v12763_v27  ;;  %889 = vmatpush.msra.mxu0 %v12784_v3  ;;  %v12987_v28 = vand.u32 4294901760, %v967_v26  ;;  %v76_v26 = vld [vmem:[%s16551_s2 + $0x178] sm:$0xff] }
  0xae   :  { %17520 = vst [vmem:[#allocation162_spill] sm:$0xff] %v12866_v48  ;;  %v12918_v48 = vand.u32 4294901760, %v949_v10  ;;  %v88_v10 = vld [vmem:[%s16551_s2 + $0x1d8] sm:$0xff]  ;;  %1033 = vmatpush.msra.mxu2 %v12821_v24  ;;  %945 = vmatpush.msra.mxu1 %v12903_v8  ;;  %v12973_v25 = vsub.f32 %v35_v2, %v12933_v45  ;;  %v979_v2 = vsub.f32 %v12909_v34, %v12949_v38  ;;  %v13036_v30 = vand.u32 4294901760, %v76_v26 }
  0xaf   :  { %17521 = vst [vmem:[#allocation163_spill] sm:$0xff] %v12871_v4  ;;  %1075 = vmatpush.msra.mxu3 %v12770_v20  ;;  %891 = vmatpush.msra.mxu0 %v12816_v6  ;;  %v12961_v24 = vand.u32 4294901760, %v88_v10 }
  0xb0   :  { %17522 = vst [vmem:[#allocation164_spill] sm:$0xff] %v12873_v46  ;;  %1036 = vmatpush.msra.mxu2 %v12852_v13  ;;  %951 = vmatpush.msra.mxu1 %v12918_v48  ;;  %v12978_v13 = vsub.f32 %v92_v43, %v12942_v54  ;;  %v12995_v43 = vsub.f32 %v31_v16, %v12954_v53  ;;  %v13012_v41 = vand.u32 4294901760, %v12973_v25  ;;  %v13029_v40 = vand.u32 4294901760, %v979_v2  ;;  %v68_v2 = vld [vmem:[%s16551_s2 + $0x138] sm:$0xff] }
  0xb1   :  { %17523 = vst [vmem:[#allocation165_spill] sm:$0xff] %v12884_v50  ;;  %v12940_v50 = vand.u32 4294901760, %v955_v47  ;;  %v84_v47 = vld [vmem:[%s16551_s2 + $0x1b8] sm:$0xff]  ;;  %1077 = vmatpush.msra.mxu3 %v12784_v3  ;;  %893 = vmatpush.msra.mxu0 %v12835_v9  ;;  %v13000_v1 = vsub.f32 %v88_v10, %v12961_v24  ;;  %v985_v16 = vsub.f32 %v12931_v18, %v12970_v29  ;;  %v13076_v52 = vand.u32 4294901760, %v68_v2 }
  0xb2   :  { %17524 = vst [vmem:[#allocation166_spill] sm:$0xff] %v12887_v23  ;;  %1039 = vmatpush.msra.mxu2 %v12871_v4  ;;  %v12992_v4 = vand.u32 4294901760, %v12952_v11  ;;  %v13019_v10 = vand.u32 4294901760, %v12978_v13  ;;  %v997_v17 = vsub.f32 %v12973_v25, %v13012_v41 }
  0xb3   :  { %17525 = vst [vmem:[#allocation167_spill] sm:$0xff] %v12890_v12  ;;  %957 = vmatpush.msra.mxu1 %v12940_v50  ;;  %1079 = vmatpush.msra.mxu3 %v12816_v6 }
  0xb4   :  { %17526 = vst [vmem:[#allocation168_spill] sm:$0xff] %v12892_v55  ;;  %895 = vmatpush.msra.mxu0 %v12854_v61  ;;  %1042 = vmatpush.msra.mxu2 %v12890_v12  ;;  %v991_v42 = vsub.f32 %v12952_v11, %v12992_v4  ;;  %v1241_v58 = vsub.f32 %v12978_v13, %v13019_v10 }
  0xb5   :  { %17527 = vst [vmem:[#allocation169_spill] sm:$0xff] %v12903_v8  ;;  %v12965_v8 = vand.u32 4294901760, %v961_v59  ;;  %v80_v59 = vld [vmem:[%s16551_s2 + $0x198] sm:$0xff]  ;;  %1081 = vmatpush.msra.mxu3 %v12835_v9 }
  0xb6   :  { %17528 = vst [vmem:[#allocation170_spill] sm:$0xff] %v12906_v62  ;;  %v13014_v12 = vand.u32 4294901760, %v80_v59  ;;  %897 = vmatpush.msra.mxu0 %v12873_v46  ;;  %1045 = vmatpush.msra.mxu2 %v12909_v34  ;;  %v13099_v21 = vand.u32 4294901760, %v1241_v58 }
  0xb7   :  { %17529 = vst [vmem:[#allocation171_spill] sm:$0xff] %v12909_v34  ;;  %963 = vmatpush.msra.mxu1 %v12965_v8  ;;  %1083 = vmatpush.msra.mxu3 %v12854_v61  ;;  %v13034_v34 = vand.u32 4294901760, %v12995_v43 }
  0xb8   :  { %17530 = vst [vmem:[#allocation172_spill] sm:$0xff] %v12911_v37  ;;  %899 = vmatpush.msra.mxu0 %v12892_v55  ;;  %1048 = vmatpush.msra.mxu2 %v12931_v18  ;;  %v13053_v63 = vsub.f32 %v80_v59, %v13014_v12  ;;  %v13069_v59 = vand.u32 4294901760, %v991_v42  ;;  %v60_v42 = vld [vmem:[%s16551_s2 + $0xf8] sm:$0xff] }
  0xb9   :  { %17531 = vst [vmem:[#allocation173_spill] sm:$0xff] %v12918_v48  ;;  %v12980_v48 = vand.u32 4294901760, %v84_v47  ;;  %969 = vmatpush.msra.mxu1 %v12987_v28  ;;  %1085 = vmatpush.msra.mxu3 %v12873_v46  ;;  %v1003_v56 = vsub.f32 %v12995_v43, %v13034_v34  ;;  %v13116_v58 = vand.u32 4294901760, %v60_v42 }
  0xba   :  { %17532 = vst [vmem:[#allocation174_spill] sm:$0xff] %v12928_v32  ;;  %901 = vmatpush.msra.mxu0 %v12911_v37  ;;  %1051 = vmatpush.msra.mxu2 %v12952_v11 }
  0xbb   :  { %17533 = vst [vmem:[#allocation175_spill] sm:$0xff] %v12931_v18  ;;  %1087 = vmatpush.msra.mxu3 %v12892_v55 }
  0xbc   :  { %17534 = vst [vmem:[#allocation176_spill] sm:$0xff] %v12933_v45  ;;  %903 = vmatpush.msra.mxu0 %v12933_v45  ;;  %1054 = vmatpush.msra.mxu2 %v12973_v25 }
  0xbd   :  { %17535 = vst [vmem:[#allocation177_spill] sm:$0xff] %v12940_v50  ;;  %v13007_v50 = vand.u32 4294901760, %v973_v5  ;;  %v72_v5 = vld [vmem:[%s16551_s2 + $0x158] sm:$0xff]  ;;  %1089 = vmatpush.msra.mxu3 %v12911_v37 }
  0xbe   :  { %17536 = vst [vmem:[#allocation178_spill] sm:$0xff] %v12942_v54  ;;  %v13055_v18 = vand.u32 4294901760, %v72_v5  ;;  %905 = vmatpush.msra.mxu0 %v12954_v53  ;;  %1057 = vmatpush.msra.mxu2 %v12995_v43 }
  0xbf   :  { %17537 = vst [vmem:[#allocation179_spill] sm:$0xff] %v12949_v38  ;;  %975 = vmatpush.msra.mxu1 %v13007_v50  ;;  %1091 = vmatpush.msra.mxu3 %v12933_v45 }
  0xc0   :  { %17538 = vst [vmem:[#allocation180_spill] sm:$0xff] %v12952_v11  ;;  %v13074_v11 = vsub.f32 %v76_v26, %v13036_v30  ;;  %v13090_v26 = vand.u32 4294901760, %v13053_v63  ;;  %v13093_v36 = vsub.f32 %v72_v5, %v13055_v18  ;;  %v13108_v5 = vand.u32 4294901760, %v1003_v56  ;;  %1101 = vmatpush.msrb.mxu0 %v12743_v44  ;;  %1203 = vmatpush.msrb.mxu2 %v12942_v54 }
  0xc1   :  { %17539 = vst [vmem:[#allocation181_spill] sm:$0xff] %v12954_v53  ;;  %981 = vmatpush.msra.mxu1 %v13029_v40  ;;  %1093 = vmatpush.msra.mxu3 %v12954_v53 }
  0xc2   :  { %17540 = vst [vmem:[#allocation182_spill] sm:$0xff] %v12961_v24  ;;  %v1259_v56 = vsub.f32 %v13053_v63, %v13090_v26  ;;  %1105 = vmatpush.msrb.mxu0 %v12758_v14  ;;  %1205 = vmatpush.msrb.mxu2 %v12961_v24 }
  0xc3   :  { %17541 = vst [vmem:[#allocation183_spill] sm:$0xff] %v12965_v8  ;;  %v13022_v8 = vsub.f32 %v84_v47, %v12980_v48  ;;  %v13041_v47 = vand.u32 4294901760, %v13000_v1  ;;  %1243 = vmatpush.msrb.mxu3 %v13099_v21  ;;  %1058 = vmatmul.f32.vlgmr.msra.gmra.mxu2 %v17490_v22 }
  0xc4   :  { %17542 = vst [vmem:[#allocation184_spill] sm:$0xff] %v12970_v29  ;;  %1109 = vmatpush.msrb.mxu0 %v12777_v51  ;;  %1207 = vmatpush.msrb.mxu2 %v12980_v48  ;;  %v13160_v14 = vand.u32 4294901760, %v1259_v56  ;;  %v44_v56 = vld [vmem:[%s16551_s2 + $0x78] sm:$0xff] }
  0xc5   :  { %17543 = vst [vmem:[#allocation185_spill] sm:$0xff] %v12973_v25  ;;  %v1247_v49 = vsub.f32 %v13000_v1, %v13041_v47  ;;  %906 = vmatmul.f32.vlgmr.msra.gmra.mxu0 %v17490_v22  ;;  %1094 = vmatmul.f32.vlgmr.msra.gmra.mxu3 %v17490_v22 }
  0xc6   :  { %17544 = vst [vmem:[#allocation186_spill] sm:$0xff] %v12978_v13  ;;  %1113 = vmatpush.msrb.mxu0 %v12794_v33  ;;  %1209 = vmatpush.msrb.mxu2 %v13014_v12 }
  0xc7   :  { %17545 = vst [vmem:[#allocation187_spill] sm:$0xff] %v12980_v48 }
  0xc8   :  { %17546 = vst [vmem:[#allocation188_spill] sm:$0xff] %v12987_v28  ;;  %v13048_v28 = vand.u32 4294901760, %v985_v16  ;;  %v64_v16 = vld [vmem:[%s16551_s2 + $0x118] sm:$0xff]  ;;  %1117 = vmatpush.msrb.mxu0 %v12814_v15  ;;  %1211 = vmatpush.msrb.mxu2 %v13036_v30 }
  0xc9   :  { %17547 = vst [vmem:[#allocation189_spill] sm:$0xff] %v12992_v4  ;;  %v13095_v25 = vand.u32 4294901760, %v64_v16 }
  0xca   :  { %17548 = vst [vmem:[#allocation190_spill] sm:$0xff] %v12995_v43  ;;  %987 = vmatpush.msra.mxu1 %v13048_v28  ;;  %v13114_v43 = vsub.f32 %v68_v2, %v13076_v52  ;;  %v13130_v2 = vand.u32 4294901760, %v13093_v36  ;;  %1121 = vmatpush.msrb.mxu0 %v12833_v31 }
  0xcb   :  { %17549 = vst [vmem:[#allocation191_spill] sm:$0xff] %v13000_v1  ;;  %v13111_v1 = vand.u32 4294901760, %v13074_v11  ;;  %v13133_v44 = vsub.f32 %v64_v16, %v13095_v25  ;;  %v13149_v16 = vsub.f32 %v60_v42, %v13116_v58  ;;  %1213 = vmatpush.msrb.mxu2 %v13055_v18 }
  0xcc   :  { %17550 = vst [vmem:[#allocation192_spill] sm:$0xff] %v13007_v50  ;;  %v13062_v50 = vand.u32 4294901760, %v13022_v8  ;;  %993 = vmatpush.msra.mxu1 %v13069_v59  ;;  %v1271_v42 = vsub.f32 %v13093_v36, %v13130_v2  ;;  %1125 = vmatpush.msrb.mxu0 %v12840_v0 }
  0xcd   :  { %17551 = vst [vmem:[#allocation193_spill] sm:$0xff] %v13012_v41  ;;  %1215 = vmatpush.msrb.mxu2 %v13076_v52 }
  0xce   :  { %17552 = vst [vmem:[#allocation194_spill] sm:$0xff] %v13014_v12  ;;  %1129 = vmatpush.msrb.mxu0 %v12859_v19 }
  0xcf   :  { %17553 = vst [vmem:[#allocation195_spill] sm:$0xff] %v13019_v10  ;;  %1217 = vmatpush.msrb.mxu2 %v13095_v25 }
  0xd0   :  { %17554 = vst [vmem:[#allocation196_spill] sm:$0xff] %v13022_v8  ;;  %1133 = vmatpush.msrb.mxu0 %v12887_v23 }
  0xd1   :  { %17555 = vst [vmem:[#allocation197_spill] sm:$0xff] %v13029_v40  ;;  %v13087_v40 = vand.u32 4294901760, %v997_v17  ;;  %v56_v17 = vld [vmem:[%s16551_s2 + $0xd8] sm:$0xff]  ;;  %1219 = vmatpush.msrb.mxu2 %v13116_v58 }
  0xd2   :  { %17556 = vst [vmem:[#allocation198_spill] sm:$0xff] %v13034_v34  ;;  %1137 = vmatpush.msrb.mxu0 %v12906_v62 }
  0xd3   :  { %17557 = vst [vmem:[#allocation199_spill] sm:$0xff] %v13036_v30  ;;  %999 = vmatpush.msra.mxu1 %v13087_v40 }
  0xd4   :  { %17558 = vst [vmem:[#allocation200_spill] sm:$0xff] %v13041_v47  ;;  %1141 = vmatpush.msrb.mxu0 %v12928_v32 }
  0xd5   :  { %17559 = vst [vmem:[#allocation201_spill] sm:$0xff] %v13048_v28  ;;  %v1253_v28 = vsub.f32 %v13022_v8, %v13062_v50  ;;  %v13120_v8 = vand.u32 4294901760, %v1247_v49  ;;  %1005 = vmatpush.msra.mxu1 %v13108_v5 }
  0xd6   :  { %17560 = vst [vmem:[#allocation202_spill] sm:$0xff] %v13053_v63  ;;  %1145 = vmatpush.msrb.mxu0 %v12949_v38  ;;  %1006 = vmatmul.f32.vlgmr.msra.gmra.mxu1 %v17490_v22 }
  0xd7   :  { %17561 = vst [vmem:[#allocation203_spill] sm:$0xff] %v13055_v18  ;;  %v13139_v49 = vand.u32 4294901760, %v1253_v28  ;;  %v48_v28 = vld [vmem:[%s16551_s2 + $0x98] sm:$0xff]  ;;  %1167 = vmatpush.msrb.mxu1 %v12700_v60  ;;  %1249 = vmatpush.msrb.mxu3 %v13120_v8  ;;  %v13184_v60 = vand.u32 4294901760, %v13149_v16 }
  0xd8   :  { %17562 = vst [vmem:[#allocation204_spill] sm:$0xff] %v13062_v50  ;;  %v13135_v50 = vand.u32 4294901760, %v56_v17  ;;  %v13172_v51 = vand.u32 4294901760, %v48_v28  ;;  %1149 = vmatpush.msrb.mxu0 %v12970_v29 }
  0xd9   :  { %17563 = vst [vmem:[#allocation205_spill] sm:$0xff] %v13069_v59  ;;  %v52_v59 = vld [vmem:[%s16551_s2 + $0xb8] sm:$0xff]  ;;  %1169 = vmatpush.msrb.mxu1 %v12709_v39  ;;  %1255 = vmatpush.msrb.mxu3 %v13139_v49 }
  0xda   :  { %17564 = vst [vmem:[#allocation206_spill] sm:$0xff] %v13074_v11  ;;  %v13151_v63 = vand.u32 4294901760, %v52_v59  ;;  %v40_v39 = vld [vmem:[%s16551_s2 + $0x58] sm:$0xff]  ;;  %v13208_v15 = vsub.f32 %v48_v28, %v13172_v51  ;;  %1221 = vmatpush.msrb.mxu2 %v13135_v50  ;;  %1153 = vmatpush.msrb.mxu0 %v12992_v4 }
  0xdb   :  { %17565 = vst [vmem:[#allocation207_spill] sm:$0xff] %v13076_v52  ;;  %1171 = vmatpush.msrb.mxu1 %v12721_v35  ;;  %1261 = vmatpush.msrb.mxu3 %v13160_v14  ;;  %v1289_v35 = vsub.f32 %v13149_v16, %v13184_v60  ;;  %v32_v28 = vld [vmem:[%s16551_s2 + $0x18] sm:$0xff] }
  0xdc   :  { %17566 = vst [vmem:[#allocation208_spill] sm:$0xff] %v13087_v40  ;;  %v1265_v40 = vsub.f32 %v13074_v11, %v13111_v1  ;;  %v13187_v33 = vsub.f32 %v52_v59, %v13151_v63  ;;  %v13243_v0 = vand.u32 4294901760, %v13208_v15  ;;  %1223 = vmatpush.msrb.mxu2 %v13151_v63  ;;  %1157 = vmatpush.msrb.mxu0 %v13012_v41 }
  0xdd   :  { %17567 = vst [vmem:[#allocation209_spill] sm:$0xff] %v13090_v26  ;;  %v13146_v26 = vand.u32 4294901760, %v13114_v43  ;;  %1173 = vmatpush.msrb.mxu1 %v12733_v57  ;;  %v13222_v57 = vand.u32 4294901760, %v40_v39 }
  0xde   :  { %17568 = vst [vmem:[#allocation210_spill] sm:$0xff] %v13093_v36  ;;  %v13220_v31 = vand.u32 4294901760, %v13187_v33  ;;  %1225 = vmatpush.msrb.mxu2 %v13172_v51  ;;  %1161 = vmatpush.msrb.mxu0 %v13034_v34  ;;  %v17620_v34 = vld [vmem:[#allocation202_spill] sm:$0xff] }
  0xdf   :  { %17569 = vst [vmem:[#allocation211_spill] sm:$0xff] %v13095_v25  ;;  %1175 = vmatpush.msrb.mxu1 %v12748_v7  ;;  %v13254_v7 = vand.u32 4294901760, %v32_v28  ;;  %1162 = vmatmul.f32.vlgmr.msrb.gmra.mxu0 %v17490_v22 }
  0xe0   :  { %17570 = vst [vmem:[#allocation212_spill] sm:$0xff] %v13099_v21  ;;  %v13165_v21 = vand.u32 4294901760, %v13133_v44  ;;  %1340 = vmatpush.msra.mxu0 %v12978_v13  ;;  %v17619_v13 = vld [vmem:[#allocation196_spill] sm:$0xff] }
  0xe1   :  { %17571 = vst [vmem:[#allocation213_spill] sm:$0xff] %v13108_v5  ;;  %v13168_v5 = vsub.f32 %v56_v17, %v13135_v50  ;;  %v1277_v17 = vsub.f32 %v13114_v43, %v13146_v26  ;;  %1177 = vmatpush.msrb.mxu1 %v12763_v27 }
  0xe2   :  { %17572 = vst [vmem:[#allocation214_spill] sm:$0xff] %v13111_v1 }
  0xe3   :  { %17573 = vst [vmem:[#allocation215_spill] sm:$0xff] %v13114_v43  ;;  %v13201_v59 = vand.u32 4294901760, %v13168_v5  ;;  %1179 = vmatpush.msrb.mxu1 %v12770_v20 }
  0xe4   :  { %17574 = vst [vmem:[#allocation216_spill] sm:$0xff] %v13116_v58  ;;  %v17621_v41 = vld [vmem:[#allocation209_spill] sm:$0xff] }
  0xe5   :  { %17575 = vst [vmem:[#allocation217_spill] sm:$0xff] %v13120_v8  ;;  %v13179_v8 = vand.u32 4294901760, %v1265_v40  ;;  %v13196_v40 = vand.u32 4294901760, %v1271_v42  ;;  %v36_v42 = vld [vmem:[%s16551_s2 + $0x38] sm:$0xff]  ;;  %1181 = vmatpush.msrb.mxu1 %v12784_v3 }
  0xe6   :  { %17576 = vst [vmem:[#allocation218_spill] sm:$0xff] %v13130_v2 }
  0xe7   :  { %17577 = vst [vmem:[#allocation219_spill] sm:$0xff] %v13133_v44  ;;  %1267 = vmatpush.msrb.mxu3 %v13179_v8  ;;  %1183 = vmatpush.msrb.mxu1 %v12816_v6 }
  0xe8   :  { %17578 = vst [vmem:[#allocation220_spill] sm:$0xff] %v13135_v50 }
  0xe9   :  { %17579 = vst [vmem:[#allocation221_spill] sm:$0xff] %v13139_v49  ;;  %v1283_v49 = vsub.f32 %v13133_v44, %v13165_v21  ;;  %1273 = vmatpush.msrb.mxu3 %v13196_v40  ;;  %1185 = vmatpush.msrb.mxu1 %v12835_v9 }
  0xea   :  { %17580 = vst [vmem:[#allocation222_spill] sm:$0xff] %v13146_v26  ;;  %v13203_v26 = vand.u32 4294901760, %v44_v56 }
  0xeb   :  { %17581 = vst [vmem:[#allocation223_spill] sm:$0xff] %v13149_v16  ;;  %v13238_v16 = vand.u32 4294901760, %v36_v42  ;;  %1187 = vmatpush.msrb.mxu1 %v12854_v61 }
  0xec   :  { %17582 = vst [vmem:[#allocation224_spill] sm:$0xff] %v13151_v63  ;;  %1227 = vmatpush.msrb.mxu2 %v13203_v26 }
  0xed   :  { %17583 = vst [vmem:[#allocation225_spill] sm:$0xff] %v13160_v14  ;;  %v13215_v14 = vand.u32 4294901760, %v1277_v17  ;;  %v13231_v17 = vand.u32 4294901760, %v1283_v49  ;;  %v13247_v49 = vand.u32 4294901760, %v1289_v35  ;;  %1189 = vmatpush.msrb.mxu1 %v12873_v46 }
  0xee   :  { %17584 = vst [vmem:[#allocation226_spill] sm:$0xff] %v13165_v21  ;;  %1229 = vmatpush.msrb.mxu2 %v13222_v57 }
  0xef   :  { %17585 = vst [vmem:[#allocation227_spill] sm:$0xff] %v13168_v5  ;;  %1279 = vmatpush.msrb.mxu3 %v13215_v14  ;;  %1191 = vmatpush.msrb.mxu1 %v12892_v55 }
  0xf0   :  { %17586 = vst [vmem:[#allocation228_spill] sm:$0xff] %v13172_v51  ;;  %1231 = vmatpush.msrb.mxu2 %v13238_v16 }
  0xf1   :  { %17587 = vst [vmem:[#allocation229_spill] sm:$0xff] %v13179_v8  ;;  %v1295_v8 = vsub.f32 %v13168_v5, %v13201_v59  ;;  %1285 = vmatpush.msrb.mxu3 %v13231_v17  ;;  %1193 = vmatpush.msrb.mxu1 %v12911_v37 }
  0xf2   :  { %17588 = vst [vmem:[#allocation230_spill] sm:$0xff] %v13184_v60  ;;  %v13236_v60 = vsub.f32 %v44_v56, %v13203_v26  ;;  %v13252_v56 = vsub.f32 %v40_v39, %v13222_v57  ;;  %v1307_v39 = vsub.f32 %v13208_v15, %v13243_v0  ;;  %1233 = vmatpush.msrb.mxu2 %v13254_v7 }
  0xf3   :  { %17589 = vst [vmem:[#allocation231_spill] sm:$0xff] %v13187_v33  ;;  %v13260_v19 = vand.u32 4294901760, %v1295_v8  ;;  %1291 = vmatpush.msrb.mxu3 %v13247_v49  ;;  %1195 = vmatpush.msrb.mxu1 %v12933_v45 }
  0xf4   :  { %17590 = vst [vmem:[#allocation232_spill] sm:$0xff] %v13196_v40  ;;  %v1301_v40 = vsub.f32 %v13187_v33, %v13220_v31  ;;  %v13263_v35 = vand.u32 4294901760, %v13236_v60  ;;  %v13277_v8 = vand.u32 4294901760, %v13252_v56  ;;  %1429 = vmatpush.msra.mxu2 %v13019_v10 }
  0xf5   :  { %17591 = vst [vmem:[#allocation233_spill] sm:$0xff] %v13201_v59  ;;  %1297 = vmatpush.msrb.mxu3 %v13260_v19  ;;  %1197 = vmatpush.msrb.mxu1 %v12954_v53 }
  0xf6   :  { %17592 = vst [vmem:[#allocation234_spill] sm:$0xff] %v13203_v26  ;;  %v13274_v23 = vand.u32 4294901760, %v1301_v40  ;;  %v1319_v32 = vsub.f32 %v13252_v56, %v13277_v8  ;;  %1433 = vmatpush.msra.mxu2 %v13041_v47  ;;  %1198 = vmatmul.f32.vlgmr.msrb.gmra.mxu1 %v17490_v22  ;;  %v13516_v47 = vpop.f32.mrf.mxu2 }
  0xf7   :  { %17593 = vst [vmem:[#allocation235_spill] sm:$0xff] %v13208_v15  ;;  %1391 = vmatpush.msra.mxu1 %v12942_v54  ;;  %1234 = vmatmul.f32.vlgmr.msrb.gmra.mxu2 %v17490_v22 }
  0xf8   :  { %17594 = vst [vmem:[#allocation236_spill] sm:$0xff] %v13215_v14  ;;  %v13266_v14 = vsub.f32 %v36_v42, %v13238_v16  ;;  %v1313_v42 = vsub.f32 %v13236_v60, %v13263_v35  ;;  %1303 = vmatpush.msrb.mxu3 %v13274_v23 }
  0xf9   :  { %17595 = vst [vmem:[#allocation237_spill] sm:$0xff] %v13220_v31  ;;  %1393 = vmatpush.msra.mxu1 %v12961_v24 }
  0xfa   :  { %17596 = vst [vmem:[#allocation238_spill] sm:$0xff] %v13222_v57  ;;  %v13289_v40 = vand.u32 4294901760, %v13266_v14 }
  0xfb   :  { %17597 = vst [vmem:[#allocation239_spill] sm:$0xff] %v13231_v17  ;;  %v13280_v17 = vsub.f32 %v32_v28, %v13254_v7  ;;  %v13293_v28 = vand.u32 4294901760, %v1307_v39  ;;  %v13306_v39 = vand.u32 4294901760, %v1313_v42  ;;  %1395 = vmatpush.msra.mxu1 %v12980_v48 }
  0xfc   :  { %17598 = vst [vmem:[#allocation240_spill] sm:$0xff] %v13236_v60  ;;  %v1325_v38 = vsub.f32 %v13266_v14, %v13289_v40 }
  0xfd   :  { %17599 = vst [vmem:[#allocation241_spill] sm:$0xff] %v13238_v16  ;;  %v13300_v62 = vand.u32 4294901760, %v13280_v17  ;;  %1309 = vmatpush.msrb.mxu3 %v13293_v28  ;;  %1397 = vmatpush.msra.mxu1 %v13014_v12 }
  0xfe   :  { %17600 = vst [vmem:[#allocation242_spill] sm:$0xff] %v13243_v0  ;;  %v13322_v42 = vand.u32 4294901760, %v1325_v38  ;;  %v17617_v38 = vld [vmem:[#allocation191_spill] sm:$0xff]  ;;  %v13540_v10 = vpop.f32.mrf.mxu2 }
  0xff   :  { %17601 = vst [vmem:[#allocation243_spill] sm:$0xff] %v13247_v49  ;;  %v1331_v29 = vsub.f32 %v13280_v17, %v13300_v62  ;;  %1315 = vmatpush.msrb.mxu3 %v13306_v39  ;;  %1343 = vmatpush.msra.mxu0 %v17617_v38  ;;  %v17679_v38 = vld [vmem:[#allocation66_spill] sm:$0xff] }
 0x100   :  { %17602 = vst [vmem:[#allocation244_spill] sm:$0xff] %v13252_v56  ;;  %1399 = vmatpush.msra.mxu1 %v13036_v30 }
 0x101   :  { %17603 = vst [vmem:[#allocation245_spill] sm:$0xff] %v13254_v7  ;;  %1346 = vmatpush.msra.mxu0 %v17619_v13  ;;  %v17672_v13 = vld [vmem:[#allocation53_spill] sm:$0xff] }
 0x102   :  { %17604 = vst [vmem:[#allocation246_spill] sm:$0xff] %v13260_v19  ;;  %1401 = vmatpush.msra.mxu1 %v13055_v18 }
 0x103   :  { %17605 = vst [vmem:[#allocation247_spill] sm:$0xff] %v13263_v35  ;;  %1349 = vmatpush.msra.mxu0 %v17620_v34  ;;  %v17622_v34 = vld [vmem:[#allocation222_spill] sm:$0xff] }
 0x104   :  { %17606 = vst [vmem:[#allocation248_spill] sm:$0xff] %v13266_v14  ;;  %1403 = vmatpush.msra.mxu1 %v13076_v52 }
 0x105   :  { %17607 = vst [vmem:[#allocation249_spill] sm:$0xff] %v13274_v23  ;;  %v13314_v23 = vand.u32 4294901760, %v1319_v32  ;;  %v13328_v32 = vand.u32 4294901760, %v1331_v29  ;;  %v17618_v29 = vld [vmem:[#allocation204_spill] sm:$0xff]  ;;  %1352 = vmatpush.msra.mxu0 %v13074_v11  ;;  %v17624_v11 = vld [vmem:[#allocation230_spill] sm:$0xff] }
 0x106   :  { %17608 = vst [vmem:[#allocation250_spill] sm:$0xff] %v13277_v8  ;;  %1437 = vmatpush.msra.mxu2 %v17618_v29  ;;  %1405 = vmatpush.msra.mxu1 %v13095_v25  ;;  %v17695_v29 = vld [vmem:[#allocation111_spill] sm:$0xff] }
 0x107   :  { %17609 = vst [vmem:[#allocation251_spill] sm:$0xff] %v13280_v17  ;;  %1321 = vmatpush.msrb.mxu3 %v13314_v23  ;;  %1355 = vmatpush.msra.mxu0 %v13093_v36  ;;  %v17623_v36 = vld [vmem:[#allocation223_spill] sm:$0xff] }
 0x108   :  { %17610 = vst [vmem:[#allocation252_spill] sm:$0xff] %v13289_v40  ;;  %1441 = vmatpush.msra.mxu2 %v17621_v41  ;;  %1407 = vmatpush.msra.mxu1 %v13116_v58  ;;  %v17684_v41 = vld [vmem:[#allocation20_spill] sm:$0xff] }
 0x109   :  { %17611 = vst [vmem:[#allocation253_spill] sm:$0xff] %v13293_v28  ;;  %1327 = vmatpush.msrb.mxu3 %v13322_v42  ;;  %1358 = vmatpush.msra.mxu0 %v13114_v43  ;;  %v17657_v43 = vld [vmem:[#allocation44_spill] sm:$0xff] }
 0x10a   :  { %17612 = vst [vmem:[#allocation254_spill] sm:$0xff] %v13300_v62  ;;  %1445 = vmatpush.msra.mxu2 %v13111_v1  ;;  %1409 = vmatpush.msra.mxu1 %v13135_v50  ;;  %v17681_v1 = vld [vmem:[#allocation17_spill] sm:$0xff] }
 0x10b   :  { %17613 = vst [vmem:[#allocation255_spill] sm:$0xff] %v13306_v39  ;;  %1333 = vmatpush.msrb.mxu3 %v13328_v32  ;;  %1361 = vmatpush.msra.mxu0 %v13133_v44  ;;  %v17651_v44 = vld [vmem:[#allocation35_spill] sm:$0xff] }
 0x10c   :  { %17614 = vst [vmem:[#allocation256_spill] sm:$0xff] %v13314_v23  ;;  %1449 = vmatpush.msra.mxu2 %v13130_v2  ;;  %1334 = vmatmul.f32.vlgmr.msrb.gmra.mxu3 %v17490_v22  ;;  %v17676_v2 = vld [vmem:[#allocation62_spill] sm:$0xff] }
 0x10d   :  { %17615 = vst [vmem:[#allocation257_spill] sm:$0xff] %v13322_v42  ;;  %1495 = vmatpush.msra.mxu3 %v12942_v54  ;;  %1364 = vmatpush.msra.mxu0 %v17623_v36  ;;  %v17645_v36 = vld [vmem:[#allocation26_spill] sm:$0xff] }
 0x10e   :  { %17616 = vst [vmem:[#allocation258_spill] sm:$0xff] %v13328_v32  ;;  %1453 = vmatpush.msra.mxu2 %v17622_v34  ;;  %1411 = vmatpush.msra.mxu1 %v13151_v63  ;;  %v17669_v34 = vld [vmem:[#allocation61_spill] sm:$0xff] }
 0x10f   :  { %1497 = vmatpush.msra.mxu3 %v12961_v24  ;;  %1367 = vmatpush.msra.mxu0 %v13168_v5  ;;  %v17639_v5 = vld [vmem:[#allocation18_spill] sm:$0xff]  ;;  %17716 = vst [vmem:[#allocation66_spill] sm:$0xff] %v13540_v10  ;;  %v17723_v10 = vld [vmem:[#allocation64_spill] sm:$0xff] }
 0x110   :  { %1457 = vmatpush.msra.mxu2 %v13165_v21  ;;  %1413 = vmatpush.msra.mxu1 %v13172_v51  ;;  %v17666_v21 = vld [vmem:[#allocation56_spill] sm:$0xff] }
 0x111   :  { %1499 = vmatpush.msra.mxu3 %v12980_v48  ;;  %1370 = vmatpush.msra.mxu0 %v13187_v33  ;;  %v17632_v33 = vld [vmem:[#allocation6_spill] sm:$0xff] }
 0x112   :  { %1461 = vmatpush.msra.mxu2 %v17624_v11  ;;  %1415 = vmatpush.msra.mxu1 %v13203_v26  ;;  %v17663_v11 = vld [vmem:[#allocation49_spill] sm:$0xff] }
 0x113   :  { %1501 = vmatpush.msra.mxu3 %v13014_v12  ;;  %1373 = vmatpush.msra.mxu0 %v13208_v15  ;;  %v17630_v15 = vld [vmem:[#allocation14_spill] sm:$0xff] }
 0x114   :  { %1465 = vmatpush.msra.mxu2 %v13201_v59  ;;  %1417 = vmatpush.msra.mxu1 %v13222_v57  ;;  %v17660_v59 = vld [vmem:[#allocation45_spill] sm:$0xff] }
 0x115   :  { %1503 = vmatpush.msra.mxu3 %v13036_v30  ;;  %1376 = vmatpush.msra.mxu0 %v13236_v60  ;;  %v17628_v60 = vld [vmem:[#allocation25_spill] sm:$0xff] }
 0x116   :  { %1469 = vmatpush.msra.mxu2 %v13220_v31  ;;  %1419 = vmatpush.msra.mxu1 %v13238_v16  ;;  %v17654_v31 = vld [vmem:[#allocation40_spill] sm:$0xff] }
 0x117   :  { %1505 = vmatpush.msra.mxu3 %v13055_v18  ;;  %1379 = vmatpush.msra.mxu0 %v13252_v56  ;;  %v17627_v56 = vld [vmem:[#allocation9_spill] sm:$0xff] }
 0x118   :  { %1473 = vmatpush.msra.mxu2 %v13243_v0  ;;  %1421 = vmatpush.msra.mxu1 %v13254_v7  ;;  %v17648_v0 = vld [vmem:[#allocation30_spill] sm:$0xff] }
 0x119   :  { %1507 = vmatpush.msra.mxu3 %v13076_v52  ;;  %1382 = vmatpush.msra.mxu0 %v13266_v14  ;;  %v17625_v14 = vld [vmem:[#allocation5_spill] sm:$0xff] }
 0x11a   :  { %1477 = vmatpush.msra.mxu2 %v13263_v35  ;;  %1422 = vmatmul.f32.vlgmr.msra.gmra.mxu1 %v17490_v22  ;;  %v17642_v35 = vld [vmem:[#allocation19_spill] sm:$0xff] }
 0x11b   :  { %1509 = vmatpush.msra.mxu3 %v13095_v25  ;;  %1385 = vmatpush.msra.mxu0 %v13280_v17  ;;  %v17626_v17 = vld [vmem:[#allocation3_spill] sm:$0xff] }
 0x11c   :  { %1481 = vmatpush.msra.mxu2 %v13277_v8  ;;  %1386 = vmatmul.f32.vlgmr.msra.gmra.mxu0 %v17490_v22  ;;  %v17634_v8 = vld [vmem:[#allocation29_spill] sm:$0xff] }
 0x11d   :  { %1511 = vmatpush.msra.mxu3 %v13116_v58  ;;  %1651 = vmatpush.msrb.mxu1 %v17628_v60  ;;  %v17637_v60 = vld [vmem:[#allocation33_spill] sm:$0xff] }
 0x11e   :  { %1485 = vmatpush.msra.mxu2 %v13289_v40  ;;  %1606 = vmatpush.msrb.mxu0 %v17626_v17  ;;  %v17631_v40 = vld [vmem:[#allocation27_spill] sm:$0xff] }
 0x11f   :  { %1513 = vmatpush.msra.mxu3 %v13135_v50  ;;  %1657 = vmatpush.msrb.mxu1 %v17631_v40  ;;  %v17640_v40 = vld [vmem:[#allocation38_spill] sm:$0xff] }
 0x120   :  { %1489 = vmatpush.msra.mxu2 %v13300_v62  ;;  %v17629_v62 = vld [vmem:[#allocation4_spill] sm:$0xff] }
 0x121   :  { %1515 = vmatpush.msra.mxu3 %v13151_v63  ;;  %1490 = vmatmul.f32.vlgmr.msra.gmra.mxu2 %v17490_v22 }
 0x122   :  { %1749 = vmatpush.msrb.mxu2 %v17625_v14  ;;  %v17633_v14 = vld [vmem:[#allocation15_spill] sm:$0xff]  ;;  %1608 = vmatpush.msrb.mxu0 %v17629_v62 }
 0x123   :  { %1517 = vmatpush.msra.mxu3 %v13172_v51  ;;  %1663 = vmatpush.msrb.mxu1 %v17634_v8  ;;  %v17643_v8 = vld [vmem:[#allocation42_spill] sm:$0xff] }
 0x124   :  { %1752 = vmatpush.msrb.mxu2 %v17627_v56  ;;  %v17636_v56 = vld [vmem:[#allocation16_spill] sm:$0xff]  ;;  %1610 = vmatpush.msrb.mxu0 %v17632_v33 }
 0x125   :  { %1519 = vmatpush.msra.mxu3 %v13203_v26  ;;  %1669 = vmatpush.msrb.mxu1 %v17637_v60  ;;  %v17646_v60 = vld [vmem:[#allocation46_spill] sm:$0xff] }
 0x126   :  { %1755 = vmatpush.msrb.mxu2 %v17630_v15  ;;  %v17638_v15 = vld [vmem:[#allocation8_spill] sm:$0xff] }
 0x127   :  { %1521 = vmatpush.msra.mxu3 %v13222_v57  ;;  %1675 = vmatpush.msrb.mxu1 %v17640_v40  ;;  %v17649_v40 = vld [vmem:[#allocation51_spill] sm:$0xff] }
 0x128   :  { %1758 = vmatpush.msrb.mxu2 %v17633_v14  ;;  %v17641_v14 = vld [vmem:[#allocation10_spill] sm:$0xff] }
 0x129   :  { %1523 = vmatpush.msra.mxu3 %v13238_v16  ;;  %1681 = vmatpush.msrb.mxu1 %v17643_v8  ;;  %v17652_v8 = vld [vmem:[#allocation55_spill] sm:$0xff] }
 0x12a   :  { %1761 = vmatpush.msrb.mxu2 %v17636_v56  ;;  %v17644_v56 = vld [vmem:[#allocation11_spill] sm:$0xff] }
 0x12b   :  { %1525 = vmatpush.msra.mxu3 %v13254_v7  ;;  %1687 = vmatpush.msrb.mxu1 %v17646_v60  ;;  %v17655_v60 = vld [vmem:[#allocation60_spill] sm:$0xff] }
 0x12c   :  { %1526 = vmatmul.f32.vlgmr.msra.gmra.mxu3 %v17490_v22  ;;  %v17635_v22 = vld [vmem:[#allocation7_spill] sm:$0xff]  ;;  %1764 = vmatpush.msrb.mxu2 %v17639_v5  ;;  %v17647_v5 = vld [vmem:[#allocation12_spill] sm:$0xff] }
 0x12d   :  { %1802 = vmatpush.msrb.mxu3 %v17626_v17  ;;  %1612 = vmatpush.msrb.mxu0 %v17635_v22 }
 0x12e   :  { %1767 = vmatpush.msrb.mxu2 %v17642_v35  ;;  %1693 = vmatpush.msrb.mxu1 %v17649_v40  ;;  %v17650_v35 = vld [vmem:[#allocation24_spill] sm:$0xff]  ;;  %v17658_v40 = vld [vmem:[#allocation63_spill] sm:$0xff] }
 0x12f   :  { %1804 = vmatpush.msrb.mxu3 %v17629_v62  ;;  %1614 = vmatpush.msrb.mxu0 %v17638_v15 }
 0x130   :  { %1770 = vmatpush.msrb.mxu2 %v17645_v36  ;;  %1699 = vmatpush.msrb.mxu1 %v17652_v8  ;;  %v17653_v36 = vld [vmem:[#allocation31_spill] sm:$0xff]  ;;  %v17661_v8 = vld [vmem:[#allocation68_spill] sm:$0xff] }
 0x131   :  { %1806 = vmatpush.msrb.mxu3 %v17632_v33  ;;  %1616 = vmatpush.msrb.mxu0 %v17641_v14 }
 0x132   :  { %1773 = vmatpush.msrb.mxu2 %v17648_v0  ;;  %1705 = vmatpush.msrb.mxu1 %v17655_v60  ;;  %v17656_v0 = vld [vmem:[#allocation32_spill] sm:$0xff] }
 0x133   :  { %1808 = vmatpush.msrb.mxu3 %v17635_v22  ;;  %1618 = vmatpush.msrb.mxu0 %v17644_v56  ;;  %v17664_v60 = vld [vmem:[#allocation72_spill] sm:$0xff] }
 0x134   :  { %1776 = vmatpush.msrb.mxu2 %v17651_v44  ;;  %1711 = vmatpush.msrb.mxu1 %v17658_v40  ;;  %v17659_v44 = vld [vmem:[#allocation36_spill] sm:$0xff] }
 0x135   :  { %1810 = vmatpush.msrb.mxu3 %v17638_v15  ;;  %1620 = vmatpush.msrb.mxu0 %v17647_v5  ;;  %v17667_v40 = vld [vmem:[#allocation76_spill] sm:$0xff] }
 0x136   :  { %1779 = vmatpush.msrb.mxu2 %v17654_v31  ;;  %1717 = vmatpush.msrb.mxu1 %v17661_v8  ;;  %v17662_v31 = vld [vmem:[#allocation37_spill] sm:$0xff]  ;;  %v17670_v8 = vld [vmem:[#allocation80_spill] sm:$0xff] }
 0x137   :  { %1812 = vmatpush.msrb.mxu3 %v17641_v14  ;;  %1622 = vmatpush.msrb.mxu0 %v17650_v35 }
 0x138   :  { %1782 = vmatpush.msrb.mxu2 %v17657_v43  ;;  %1723 = vmatpush.msrb.mxu1 %v17664_v60  ;;  %v17665_v43 = vld [vmem:[#allocation41_spill] sm:$0xff] }
 0x139   :  { %1814 = vmatpush.msrb.mxu3 %v17644_v56  ;;  %1624 = vmatpush.msrb.mxu0 %v17653_v36  ;;  %v17673_v60 = vld [vmem:[#allocation85_spill] sm:$0xff] }
 0x13a   :  { %1785 = vmatpush.msrb.mxu2 %v17660_v59  ;;  %1729 = vmatpush.msrb.mxu1 %v17667_v40  ;;  %v17668_v59 = vld [vmem:[#allocation48_spill] sm:$0xff]  ;;  %v17675_v40 = vld [vmem:[#allocation83_spill] sm:$0xff] }
 0x13b   :  { %1816 = vmatpush.msrb.mxu3 %v17647_v5  ;;  %1626 = vmatpush.msrb.mxu0 %v17656_v0 }
 0x13c   :  { %1788 = vmatpush.msrb.mxu2 %v17663_v11  ;;  %1735 = vmatpush.msrb.mxu1 %v17670_v8  ;;  %v17671_v11 = vld [vmem:[#allocation50_spill] sm:$0xff]  ;;  %v17678_v8 = vld [vmem:[#allocation13_spill] sm:$0xff] }
 0x13d   :  { %1818 = vmatpush.msrb.mxu3 %v17650_v35  ;;  %1628 = vmatpush.msrb.mxu0 %v17659_v44 }
 0x13e   :  { %1791 = vmatpush.msrb.mxu2 %v17666_v21  ;;  %1741 = vmatpush.msrb.mxu1 %v17673_v60  ;;  %v17674_v21 = vld [vmem:[#allocation57_spill] sm:$0xff]  ;;  %v17680_v60 = vld [vmem:[#allocation92_spill] sm:$0xff] }
 0x13f   :  { %1820 = vmatpush.msrb.mxu3 %v17653_v36  ;;  %1630 = vmatpush.msrb.mxu0 %v17662_v31 }
 0x140   :  { %1794 = vmatpush.msrb.mxu2 %v17669_v34  ;;  %1910 = vmatpush.msra.mxu1 %v17626_v17  ;;  %v17677_v34 = vld [vmem:[#allocation88_spill] sm:$0xff]  ;;  %v17682_v17 = vld [vmem:[#allocation71_spill] sm:$0xff] }
 0x141   :  { %1822 = vmatpush.msrb.mxu3 %v17656_v0  ;;  %1632 = vmatpush.msrb.mxu0 %v17665_v43 }
 0x142   :  { %1947 = vmatpush.msra.mxu2 %v17671_v11  ;;  %1912 = vmatpush.msra.mxu1 %v17629_v62  ;;  %v17685_v62 = vld [vmem:[#allocation75_spill] sm:$0xff] }
 0x143   :  { %1824 = vmatpush.msrb.mxu3 %v17659_v44  ;;  %1634 = vmatpush.msrb.mxu0 %v17668_v59 }
 0x144   :  { %1949 = vmatpush.msra.mxu2 %v17674_v21  ;;  %1914 = vmatpush.msra.mxu1 %v17632_v33  ;;  %v17688_v33 = vld [vmem:[#allocation79_spill] sm:$0xff] }
 0x145   :  { %1826 = vmatpush.msrb.mxu3 %v17662_v31  ;;  %1636 = vmatpush.msrb.mxu0 %v17672_v13 }
 0x146   :  { %1951 = vmatpush.msra.mxu2 %v17676_v2  ;;  %1916 = vmatpush.msra.mxu1 %v17635_v22  ;;  %v17690_v22 = vld [vmem:[#allocation22_spill] sm:$0xff] }
 0x147   :  { %1828 = vmatpush.msrb.mxu3 %v17665_v43  ;;  %1843 = vmatpush.msra.mxu0 %v17678_v8  ;;  %v17686_v8 = vld [vmem:[#allocation99_spill] sm:$0xff] }
 0x148   :  { %1953 = vmatpush.msra.mxu2 %v17679_v38  ;;  %1918 = vmatpush.msra.mxu1 %v17638_v15  ;;  %v17693_v15 = vld [vmem:[#allocation23_spill] sm:$0xff] }
 0x149   :  { %1830 = vmatpush.msrb.mxu3 %v17668_v59  ;;  %1847 = vmatpush.msra.mxu0 %v17681_v1  ;;  %v17689_v1 = vld [vmem:[#allocation102_spill] sm:$0xff] }
 0x14a   :  { %1955 = vmatpush.msra.mxu2 %v17682_v17  ;;  %1920 = vmatpush.msra.mxu1 %v17641_v14  ;;  %v17696_v14 = vld [vmem:[#allocation28_spill] sm:$0xff] }
 0x14b   :  { %1832 = vmatpush.msrb.mxu3 %v17672_v13  ;;  %1851 = vmatpush.msra.mxu0 %v17684_v41  ;;  %v17692_v41 = vld [vmem:[#allocation105_spill] sm:$0xff] }
 0x14c   :  { %1957 = vmatpush.msra.mxu2 %v17685_v62  ;;  %1922 = vmatpush.msra.mxu1 %v17644_v56  ;;  %v17698_v56 = vld [vmem:[#allocation115_spill] sm:$0xff] }
 0x14d   :  { %1992 = vmatpush.msra.mxu3 %v17675_v40  ;;  %v17683_v40 = vld [vmem:[#allocation95_spill] sm:$0xff] }
 0x14e   :  { %1959 = vmatpush.msra.mxu2 %v17688_v33  ;;  %1924 = vmatpush.msra.mxu1 %v17647_v5  ;;  %v17704_v5 = vld [vmem:[#allocation101_spill] sm:$0xff] }
 0x14f   :  { %1998 = vmatpush.msra.mxu3 %v17677_v34  ;;  %v17687_v34 = vld [vmem:[#allocation21_spill] sm:$0xff] }
 0x150   :  { %1855 = vmatpush.msra.mxu0 %v17687_v34  ;;  %v13504_v34 = vpop.f32.mrf.mxu1  ;;  %1926 = vmatpush.msra.mxu1 %v17650_v35  ;;  %v17705_v35 = vld [vmem:[#allocation121_spill] sm:$0xff] }
 0x151   :  { %2004 = vmatpush.msra.mxu3 %v17680_v60  ;;  %v13494_v60 = vpop.f32.mrf.mxu0 }
 0x152   :  { %1859 = vmatpush.msra.mxu0 %v17690_v22  ;;  %v13510_v22 = vpop.f32.mrf.mxu3  ;;  %1928 = vmatpush.msra.mxu1 %v17653_v36  ;;  %v17710_v36 = vld [vmem:[#allocation47_spill] sm:$0xff] }
 0x153   :  { %2010 = vmatpush.msra.mxu3 %v17683_v40  ;;  %v17691_v40 = vld [vmem:[#allocation84_spill] sm:$0xff] }
 0x154   :  { %1961 = vmatpush.msra.mxu2 %v17691_v40  ;;  %1863 = vmatpush.msra.mxu0 %v17693_v15  ;;  %v17700_v15 = vld [vmem:[#allocation97_spill] sm:$0xff] }
 0x155   :  { %2016 = vmatpush.msra.mxu3 %v17686_v8  ;;  %v17694_v8 = vld [vmem:[#allocation90_spill] sm:$0xff]  ;;  %1930 = vmatpush.msra.mxu1 %v17656_v0  ;;  %v17713_v0 = vld [vmem:[#allocation127_spill] sm:$0xff] }
 0x156   :  { %1963 = vmatpush.msra.mxu2 %v17694_v8  ;;  %1867 = vmatpush.msra.mxu0 %v17696_v14  ;;  %v17703_v14 = vld [vmem:[#allocation39_spill] sm:$0xff] }
 0x157   :  { %2022 = vmatpush.msra.mxu3 %v17689_v1  ;;  %v17697_v1 = vld [vmem:[#allocation94_spill] sm:$0xff]  ;;  %1932 = vmatpush.msra.mxu1 %v17659_v44 }
 0x158   :  { %1965 = vmatpush.msra.mxu2 %v17697_v1  ;;  %v13528_v4 = vpop.f32.mrf.mxu1 }
 0x159   :  { %2028 = vmatpush.msra.mxu3 %v17692_v41  ;;  %v17699_v41 = vld [vmem:[#allocation34_spill] sm:$0xff]  ;;  %v13518_v32 = vpop.f32.mrf.mxu0  ;;  %17708 = vst [vmem:[#allocation57_spill] sm:$0xff] %v13528_v4  ;;  %1934 = vmatpush.msra.mxu1 %v17662_v31  ;;  %v17717_v4 = vld [vmem:[#allocation128_spill] sm:$0xff]  ;;  %v17724_v31 = vld [vmem:[#allocation69_spill] sm:$0xff] }
 0x15a   :  { %1871 = vmatpush.msra.mxu0 %v17699_v41  ;;  %1967 = vmatpush.msra.mxu2 %v17700_v15  ;;  %17701 = vst [vmem:[#allocation50_spill] sm:$0xff] %v13518_v32  ;;  %v17707_v41 = vld [vmem:[#allocation107_spill] sm:$0xff]  ;;  %v17709_v32 = vld [vmem:[#allocation125_spill] sm:$0xff] }
 0x15b   :  { %2034 = vmatpush.msra.mxu3 %v17695_v29  ;;  %v17702_v29 = vld [vmem:[#allocation118_spill] sm:$0xff]  ;;  %1936 = vmatpush.msra.mxu1 %v17665_v43 }
 0x15c   :  { %1875 = vmatpush.msra.mxu0 %v17703_v14  ;;  %1969 = vmatpush.msra.mxu2 %v17704_v5  ;;  %v13534_v14 = vpop.f32.mrf.mxu3 }
 0x15d   :  { %2040 = vmatpush.msra.mxu3 %v17698_v56  ;;  %v17706_v56 = vld [vmem:[#allocation43_spill] sm:$0xff]  ;;  %17712 = vst [vmem:[#allocation62_spill] sm:$0xff] %v13534_v14  ;;  %1938 = vmatpush.msra.mxu1 %v17668_v59  ;;  %v17720_v14 = vld [vmem:[#allocation129_spill] sm:$0xff] }
 0x15e   :  { %1879 = vmatpush.msra.mxu0 %v17706_v56  ;;  %1971 = vmatpush.msra.mxu2 %v17707_v41  ;;  %v17715_v56 = vld [vmem:[#allocation113_spill] sm:$0xff] }
 0x15f   :  { %2046 = vmatpush.msra.mxu3 %v17702_v29  ;;  %v17711_v29 = vld [vmem:[#allocation110_spill] sm:$0xff]  ;;  %1940 = vmatpush.msra.mxu1 %v17672_v13 }
 0x160   :  { %1883 = vmatpush.msra.mxu0 %v17710_v36  ;;  %1973 = vmatpush.msra.mxu2 %v17711_v29  ;;  %v17719_v36 = vld [vmem:[#allocation117_spill] sm:$0xff]  ;;  %v351_v43 = vpop.f32.mrf.mxu1 }
 0x161   :  { %2052 = vmatpush.msra.mxu3 %v17705_v35  ;;  %v17714_v35 = vld [vmem:[#allocation52_spill] sm:$0xff]  ;;  %v251_v44 = vpop.f32.mrf.mxu0 }
 0x162   :  { %1887 = vmatpush.msra.mxu0 %v17714_v35  ;;  %1975 = vmatpush.msra.mxu2 %v17715_v56  ;;  %v17722_v35 = vld [vmem:[#allocation130_spill] sm:$0xff]  ;;  %v352_v16 = vadd.f32 %v351_v43, %v251_v44 }
 0x163   :  { %2058 = vmatpush.msra.mxu3 %v17709_v32  ;;  %v17718_v32 = vld [vmem:[#allocation54_spill] sm:$0xff] }
 0x164   :  { %1891 = vmatpush.msra.mxu0 %v17718_v32  ;;  %1977 = vmatpush.msra.mxu2 %v17719_v36  ;;  %v403_v32 = vpop.f32.mrf.mxu2 }
 0x165   :  { %2064 = vmatpush.msra.mxu3 %v17713_v0  ;;  %v17721_v0 = vld [vmem:[#allocation58_spill] sm:$0xff]  ;;  %v404_v57 = vadd.f32 %v403_v32, %v352_v16 }
 0x166   :  { %1895 = vmatpush.msra.mxu0 %v17721_v0 }
 0x167   :  { %2070 = vmatpush.msra.mxu3 %v17717_v4  ;;  %v439_v4 = vpop.f32.mrf.mxu3 }
 0x168   :  { %1899 = vmatpush.msra.mxu0 %v17723_v10  ;;  %v543_v7 = vpop.f32.mrf.mxu1  ;;  %v440_v13 = vadd.f32 %v439_v4, %v404_v57  ;;  %v13556_v10 = vld [vmem:[%s16554_s3] sm:$0xf] }
 0x169   :  { %2076 = vmatpush.msra.mxu3 %v17720_v14  ;;  %v507_v42 = vpop.f32.mrf.mxu0  ;;  %17725 = vst [vmem:[#allocation71_spill] sm:$0xff] %v13556_v10  ;;  %v17045_v19 = vperm.slane %v13556_v10, 0  ;;  %v17044_v44 = vperm.slane %v13556_v10, 1 }
 0x16a   :  { %1903 = vmatpush.msra.mxu0 %v17724_v31  ;;  %v508_v31 = vadd.f32 %v507_v42, %v440_v13 }
 0x16b   :  { %2082 = vmatpush.msra.mxu3 %v17722_v35  ;;  %v13563_v4 = vadd.f32 %v13494_v60, %v17045_v19  ;;  %v13568_v57 = vadd.f32 %v13504_v34, %v17044_v44 }
 0x16c   :  { %v579_v59 = vpop.f32.mrf.mxu2 }
 0x16d   :  { %17726 = vst [vmem:[#allocation75_spill] sm:$0xff] %v13563_v4 }
 0x16e   :  { %17727 = vst [vmem:[#allocation79_spill] sm:$0xff] %v13568_v57 }
 0x16f   :  { %v679_v23 = vpop.f32.mrf.mxu3 }
 0x170   :  { %v680_v39 = vadd.f32 %v679_v23, %v579_v59  ;;  %v767_v28 = vpop.f32.mrf.mxu1  ;;  %v544_v23 = vadd.f32 %v543_v7, %v508_v31 }
 0x171   :  { %v731_v14 = vpop.f32.mrf.mxu0 }
 0x172   :  { %v732_v0 = vadd.f32 %v731_v14, %v680_v39  ;;  %v1530_v14 = vadd.f32 %v544_v23, %v13563_v4 }
 0x174   :  { %v768_v26 = vadd.f32 %v767_v28, %v732_v0  ;;  %v835_v35 = vpop.f32.mrf.mxu2  ;;  %v11816_v0 = vmul.f32 -1.442695, %v1530_v14 }
 0x176   :  { %v836_v51 = vadd.f32 %v835_v35, %v768_v26  ;;  %11843 = vpow2.f32 %v11816_v0 }
 0x177   :  { %v871_v63 = vpop.f32.mrf.mxu3 }
 0x178   :  { %v872_v43 = vadd.f32 %v871_v63, %v836_v51  ;;  %v1007_v31 = vpop.f32.mrf.mxu1 }
 0x179   :  { %v907_v16 = vpop.f32.mrf.mxu0 }
 0x17a   :  { %v1531_v13 = vadd.f32 %v872_v43, %v13568_v57  ;;  %v1008_v39 = vadd.f32 %v1007_v31, %v907_v16  ;;  %v17055_v57 = vperm.slane %v13556_v10, 3  ;;  %v17054_v31 = vperm.slane %v13556_v10, 2  ;;  %v17748_v10 = vld [vmem:[#allocation96_spill] sm:$0xff] }
 0x17c   :  { %v11817_v26 = vmul.f32 -1.442695, %v1531_v13  ;;  %v11844_v63 = vpop.eup %11843  ;;  %v1059_v7 = vpop.f32.mrf.mxu2 }
 0x17d   :  { %v1537_v59 = vadd.f32 1.0, %v11844_v63  ;;  %v1060_v42 = vadd.f32 %v1059_v7, %v1008_v39  ;;  %v13577_v39 = vadd.f32 %v13510_v22, %v17055_v57  ;;  %v17747_v57 = vld [vmem:[#allocation109_spill] sm:$0xff] }
 0x17e   :  { %11845 = vpow2.f32 %v11817_v26 }
 0x17f   :  { %v1095_v51 = vpop.f32.mrf.mxu3  ;;  %11847 = vrcp.f32 %v1537_v59  ;;  %vm1543_vm4 = vweird.f32 %v1537_v59 }
 0x180   :  { %v1199_v34 = vpop.f32.mrf.mxu1  ;;  %v1096_v13 = vadd.f32 %v1095_v51, %v1060_v42 }
 0x181   :  { %v1163_v35 = vpop.f32.mrf.mxu0 }
 0x182   :  { %v1164_v4 = vadd.f32 %v1163_v35, %v1096_v13 }
 0x184   :  { %v11846_v60 = vpop.eup %11845  ;;  %v1235_v32 = vpop.f32.mrf.mxu2  ;;  %v1200_v51 = vadd.f32 %v1199_v34, %v1164_v4 }
 0x185   :  { %v1556_v28 = vadd.f32 1.0, %v11846_v60  ;;  %v11848_v0 = vpop.eup %11847 }
 0x186   :  { %v1539_v49 = vmul.f32 %v11848_v0, %v1537_v59  ;;  %vm1544_vm2 = vweird.f32 %v11848_v0 }
 0x187   :  { %11849 = vrcp.f32 %v1556_v28  ;;  %vm1562_vm5 = vweird.f32 %v1556_v28  ;;  %vm1545_vm6 = vmor %vm1543_vm4, %vm1544_vm2  ;;  %v1566_v34 = vand.u32 2147483647, %v1556_v28 }
 0x189   :  { %vm1567_vm9 = vcmp.eq.f32.partialorder %v1566_v34, 8.507059e+37 }
 0x18d   :  { %v11850_v26 = vpop.eup %11849 }
 0x18e   :  { %v1558_v60 = vmul.f32 %v11850_v26, %v1556_v28  ;;  %vm1563_vm3 = vweird.f32 %v11850_v26 }
 0x18f   :  { %v1335_v23 = vpop.f32.mrf.mxu3  ;;  %vm1564_vm7 = vmor %vm1562_vm5, %vm1563_vm3 }
 0x190   :  { %v1336_v43 = vadd.f32 %v1335_v23, %v1235_v32  ;;  %v1540_v32 = vsub.f32 1.0, %v1539_v49  ;;  %v1559_v23 = vsub.f32 1.0, %v1558_v60  ;;  %v1549_v49 = vand.u32 2147483648, %v1537_v59 }
 0x192   :  { %v1541_v13 = vmul.f32 %v11848_v0, %v1540_v32  ;;  %v1550_v32 = vor.u32 1.1754944e-38, %v1549_v49 }
 0x194   :  { %v1542_v22 = vadd.f32 %v11848_v0, %v1541_v13 }
 0x196   :  { %v1546_v60 = vsel %vm1545_vm6, %v11848_v0, %v1542_v22 }
 0x197   :  { %v1423_v19 = vpop.f32.mrf.mxu1 }
 0x199   :  { %v1387_v14 = vpop.f32.mrf.mxu0 }
 0x19a   :  { %v1388_v44 = vadd.f32 %v1387_v14, %v1336_v43  ;;  %v1560_v14 = vmul.f32 %v11850_v26, %v1559_v23 }
 0x19c   :  { %v1424_v63 = vadd.f32 %v1423_v19, %v1388_v44  ;;  %v13582_v19 = vadd.f32 %v13516_v47, %v17054_v31  ;;  %v1561_v4 = vadd.f32 %v11850_v26, %v1560_v14  ;;  %v1547_v47 = vand.u32 2147483647, %v1537_v59  ;;  %v17746_v31 = vld [vmem:[#allocation91_spill] sm:$0xff] }
 0x19e   :  { %v1532_v35 = vadd.f32 %v1200_v51, %v13582_v19  ;;  %vm1548_vm8 = vcmp.eq.f32.partialorder %v1547_v47, 8.507059e+37 }
 0x19f   :  { %v1551_v23 = vsel %vm1548_vm8, %v1550_v32, %v1546_v60  ;;  %v17730_v32 = vld [vmem:[#allocation73_spill] sm:$0xff] }
 0x1a4   :  { %v1491_v16 = vpop.f32.mrf.mxu2 }
 0x1a5   :  { %v1492_v50 = vadd.f32 %v1491_v16, %v1424_v63  ;;  %v1565_v16 = vsel %vm1564_vm7, %v11850_v26, %v1561_v4 }
 0x1af   :  { %v1527_v7 = vpop.f32.mrf.mxu3 }
 0x1b0   :  { %v1528_v42 = vadd.f32 %v1527_v7, %v1492_v50  ;;  %v1568_v50 = vand.u32 2147483648, %v1556_v28 }
 0x1b2   :  { %v1533_v44 = vadd.f32 %v1528_v42, %v13577_v39  ;;  %v1569_v42 = vor.u32 1.1754944e-38, %v1568_v50 }
 0x1b4   :  { %v11818_v43 = vmul.f32 -1.442695, %v1533_v44  ;;  %v1570_v44 = vsel %vm1567_vm9, %v1569_v42, %v1565_v16 }
 0x1b6   :  { %11851 = vpow2.f32 %v11818_v43  ;;  %v1592_v43 = vmul.f32 0.0, %v1570_v44  ;;  %v17731_v44 = vld [vmem:[#allocation77_spill] sm:$0xff] }
 0x1b7   :  { %11853 = vtanh.f32 %v1532_v35 }
 0x1bc   :  { %v11852_v63 = vpop.eup %11851 }
 0x1bd   :  { %v1576_v7 = vadd.f32 1.0, %v11852_v63  ;;  %v11854_v51 = vpop.eup %11853 }
 0x1be   :  { %v1593_v35 = vmul.f32 %v11854_v51, %v1551_v23  ;;  %v17729_v51 = vld [vmem:[#allocation67_spill] sm:$0xff] }
 0x1bf   :  { %11855 = vrcp.f32 %v1576_v7  ;;  %v1588_v0 = vand.u32 2147483648, %v1576_v7  ;;  %v1586_v22 = vand.u32 2147483647, %v1576_v7  ;;  %vm1582_vm11 = vweird.f32 %v1576_v7 }
 0x1c0   :  { %v13586_v13 = vadd.f32 %v1593_v35, %v1592_v43  ;;  %v17732_v35 = vld [vmem:[#allocation59_spill] sm:$0xff]  ;;  %v17733_v43 = vld [vmem:[#allocation81_spill] sm:$0xff] }
 0x1c1   :  { %v1589_v50 = vor.u32 1.1754944e-38, %v1588_v0  ;;  %vm1587_vm13 = vcmp.eq.f32.partialorder %v1586_v22, 8.507059e+37  ;;  %v17737_v0 = vld [vmem:[#allocation89_spill] sm:$0xff] }
 0x1c2   :  { %11857 = vtanh.f32 %v13586_v13  ;;  %v17739_v22 = vld [vmem:[#allocation93_spill] sm:$0xff] }
 0x1c5   :  { %v11856_v14 = vpop.eup %11855 }
 0x1c6   :  { %v1578_v59 = vmul.f32 %v11856_v14, %v1576_v7  ;;  %vm1583_vm10 = vweird.f32 %v11856_v14 }
 0x1c7   :  { %vm1584_vm12 = vmor %vm1582_vm11, %vm1583_vm10  ;;  %vm3052_vm10 = vcmask 1043458   ;;  %vm11791_vm11 = vcmask 1024  }
 0x1c8   :  { %v1579_v28 = vsub.f32 1.0, %v1578_v59  ;;  %v11858_v47 = vpop.eup %11857  ;;  %v17735_v59 = vld [vmem:[#allocation86_spill] sm:$0xff] }
 0x1ca   :  { %v1580_v26 = vmul.f32 %v11856_v14, %v1579_v28  ;;  %v17736_v28 = vld [vmem:[#allocation70_spill] sm:$0xff] }
 0x1cc   :  { %v1581_v4 = vadd.f32 %v11856_v14, %v1580_v26  ;;  %v17738_v26 = vld [vmem:[#allocation74_spill] sm:$0xff] }
 0x1ce   :  { %v1585_v49 = vsel %vm1584_vm12, %v11856_v14, %v1581_v4  ;;  %v17734_v14 = vld [vmem:[#allocation65_spill] sm:$0xff]  ;;  %v17740_v4 = vld [vmem:[#allocation78_spill] sm:$0xff] }
 0x1cf   :  { %v1590_v34 = vsel %vm1587_vm13, %v1589_v50, %v1585_v49  ;;  %v17741_v50 = vld [vmem:[#allocation98_spill] sm:$0xff] }
 0x1d0   :  { %v13589_v63 = vmul.f32 %v11858_v47, %v1590_v34  ;;  %v17742_v49 = vld [vmem:[#allocation82_spill] sm:$0xff]  ;;  %v17743_v47 = vld [vmem:[#allocation103_spill] sm:$0xff] }
 0x1d1   :  { %v17744_v34 = vld [vmem:[#allocation87_spill] sm:$0xff] }
 0x1d2   :  { %17728 = vst [vmem:[#allocation84_spill] sm:$0xff] %v13589_v63  ;;  %v13592_v60 = vand.u32 4294901760, %v13589_v63 }
 0x1d4   :  { %1743 = vmatmul.f32.vlgmr.msrb.gmra.mxu1 %v13592_v60  ;;  %v13597_v16 = vsub.f32 %v13589_v63, %v13592_v60  ;;  %v17749_v63 = vld [vmem:[#allocation114_spill] sm:$0xff] }
 0x1d5   :  { %2143 = vmatpush.msrb.mxu1 %v17671_v11 }
 0x1d6   :  { %1797 = vmatmul.f32.vlgmr.msrb.gmra.mxu2 %v13597_v16  ;;  %v13602_v7 = vand.u32 4294901760, %v13597_v16 }
 0x1d7   :  { %2145 = vmatpush.msrb.mxu1 %v17674_v21  ;;  %2184 = vmatpush.msrb.mxu2 %v17729_v51 }
 0x1d8   :  { %1836 = vmatmul.f32.vlgmr.msrb.gmra.mxu3 %v13602_v7  ;;  %v1640_v42 = vsub.f32 %v13597_v16, %v13602_v7 }
 0x1d9   :  { %2147 = vmatpush.msrb.mxu1 %v17676_v2  ;;  %2188 = vmatpush.msrb.mxu2 %v17730_v32 }
 0x1da   :  { %2251 = vmatpush.msrb.mxu3 %v17671_v11  ;;  %v13612_v23 = vand.u32 4294901760, %v1640_v42  ;;  %v17745_v42 = vld [vmem:[#allocation106_spill] sm:$0xff] }
 0x1db   :  { %2149 = vmatpush.msrb.mxu1 %v17679_v38  ;;  %2192 = vmatpush.msrb.mxu2 %v17731_v44 }
 0x1dc   :  { %2253 = vmatpush.msrb.mxu3 %v17674_v21  ;;  %1642 = vmatmul.f32.vlgmr.msrb.gmra.mxu0 %v13612_v23 }
 0x1dd   :  { %1942 = vmatmul.f32.vlgmr.msra.gmra.mxu1 %v13592_v60  ;;  %2090 = vmatpush.msrb.mxu0 %v17732_v35 }
 0x1de   :  { %2151 = vmatpush.msrb.mxu1 %v17682_v17  ;;  %2196 = vmatpush.msrb.mxu2 %v17733_v43 }
 0x1df   :  { %2255 = vmatpush.msrb.mxu3 %v17676_v2  ;;  %1983 = vmatmul.f32.vlgmr.msra.gmra.mxu2 %v13612_v23 }
 0x1e0   :  { %2093 = vmatpush.msrb.mxu0 %v17734_v14  ;;  %2153 = vmatpush.msrb.mxu1 %v17685_v62 }
 0x1e1   :  { %2200 = vmatpush.msrb.mxu2 %v17735_v59  ;;  %2257 = vmatpush.msrb.mxu3 %v17679_v38 }
 0x1e2   :  { %2084 = vmatmul.f32.vlgmr.msra.gmra.mxu3 %v13592_v60  ;;  %2096 = vmatpush.msrb.mxu0 %v17736_v28 }
 0x1e3   :  { %2155 = vmatpush.msrb.mxu1 %v17688_v33  ;;  %2204 = vmatpush.msrb.mxu2 %v17737_v0 }
 0x1e4   :  { %2259 = vmatpush.msrb.mxu3 %v17682_v17  ;;  %2099 = vmatpush.msrb.mxu0 %v17738_v26 }
 0x1e5   :  { %2157 = vmatpush.msrb.mxu1 %v17691_v40  ;;  %2208 = vmatpush.msrb.mxu2 %v17739_v22  ;;  %v17780_v22 = vld [vmem:[#allocation149_spill] sm:$0xff] }
 0x1e6   :  { %2261 = vmatpush.msrb.mxu3 %v17685_v62  ;;  %1905 = vmatmul.f32.vlgmr.msra.gmra.mxu0 %v13592_v60 }
 0x1e7   :  { %2102 = vmatpush.msrb.mxu0 %v17740_v4  ;;  %2159 = vmatpush.msrb.mxu1 %v17694_v8  ;;  %v17771_v4 = vld [vmem:[#allocation141_spill] sm:$0xff] }
 0x1e8   :  { %2212 = vmatpush.msrb.mxu2 %v17741_v50  ;;  %2263 = vmatpush.msrb.mxu3 %v17688_v33  ;;  %v17767_v50 = vld [vmem:[#allocation138_spill] sm:$0xff] }
 0x1e9   :  { %2105 = vmatpush.msrb.mxu0 %v17742_v49  ;;  %2161 = vmatpush.msrb.mxu1 %v17697_v1  ;;  %v17766_v49 = vld [vmem:[#allocation162_spill] sm:$0xff] }
 0x1ea   :  { %2216 = vmatpush.msrb.mxu2 %v17743_v47  ;;  %2265 = vmatpush.msrb.mxu3 %v17691_v40  ;;  %v17761_v47 = vld [vmem:[#allocation116_spill] sm:$0xff] }
 0x1eb   :  { %2108 = vmatpush.msrb.mxu0 %v17744_v34  ;;  %2163 = vmatpush.msrb.mxu1 %v17700_v15  ;;  %v17750_v34 = vld [vmem:[#allocation100_spill] sm:$0xff] }
 0x1ec   :  { %2220 = vmatpush.msrb.mxu2 %v17745_v42  ;;  %2267 = vmatpush.msrb.mxu3 %v17694_v8  ;;  %v17751_v42 = vld [vmem:[#allocation119_spill] sm:$0xff] }
 0x1ed   :  { %2111 = vmatpush.msrb.mxu0 %v17746_v31  ;;  %2165 = vmatpush.msrb.mxu1 %v17704_v5  ;;  %v17752_v31 = vld [vmem:[#allocation104_spill] sm:$0xff] }
 0x1ee   :  { %2224 = vmatpush.msrb.mxu2 %v17747_v57  ;;  %2269 = vmatpush.msrb.mxu3 %v17697_v1  ;;  %v17753_v57 = vld [vmem:[#allocation122_spill] sm:$0xff] }
 0x1ef   :  { %2114 = vmatpush.msrb.mxu0 %v17748_v10  ;;  %2167 = vmatpush.msrb.mxu1 %v17707_v41  ;;  %v17754_v10 = vld [vmem:[#allocation108_spill] sm:$0xff] }
 0x1f0   :  { %2228 = vmatpush.msrb.mxu2 %v17749_v63  ;;  %2271 = vmatpush.msrb.mxu3 %v17700_v15  ;;  %v17755_v63 = vld [vmem:[#allocation124_spill] sm:$0xff] }
 0x1f1   :  { %2117 = vmatpush.msrb.mxu0 %v17750_v34  ;;  %2169 = vmatpush.msrb.mxu1 %v17711_v29  ;;  %v17757_v34 = vld [vmem:[#allocation150_spill] sm:$0xff] }
 0x1f2   :  { %2232 = vmatpush.msrb.mxu2 %v17751_v42  ;;  %2273 = vmatpush.msrb.mxu3 %v17704_v5  ;;  %v17756_v42 = vld [vmem:[#allocation112_spill] sm:$0xff] }
 0x1f3   :  { %2120 = vmatpush.msrb.mxu0 %v17752_v31  ;;  %2171 = vmatpush.msrb.mxu1 %v17715_v56  ;;  %v17758_v31 = vld [vmem:[#allocation126_spill] sm:$0xff] }
 0x1f4   :  { %2236 = vmatpush.msrb.mxu2 %v17753_v57  ;;  %2275 = vmatpush.msrb.mxu3 %v17707_v41  ;;  %v17759_v57 = vld [vmem:[#allocation154_spill] sm:$0xff] }
 0x1f5   :  { %2123 = vmatpush.msrb.mxu0 %v17754_v10  ;;  %2173 = vmatpush.msrb.mxu1 %v17719_v36  ;;  %v17760_v10 = vld [vmem:[#allocation133_spill] sm:$0xff] }
 0x1f6   :  { %2240 = vmatpush.msrb.mxu2 %v17755_v63  ;;  %2277 = vmatpush.msrb.mxu3 %v17711_v29  ;;  %v17762_v63 = vld [vmem:[#allocation158_spill] sm:$0xff] }
 0x1f7   :  { %2177 = vmatmul.f32.vlgmr.msrb.gmra.mxu1 %v13602_v7  ;;  %2126 = vmatpush.msrb.mxu0 %v17756_v42  ;;  %v17763_v42 = vld [vmem:[#allocation135_spill] sm:$0xff] }
 0x1f8   :  { %2333 = vmatpush.msra.mxu1 %v17757_v34  ;;  %2244 = vmatpush.msrb.mxu2 %v17758_v31  ;;  %v17764_v34 = vld [vmem:[#allocation131_spill] sm:$0xff]  ;;  %v17765_v31 = vld [vmem:[#allocation120_spill] sm:$0xff] }
 0x1f9   :  { %2279 = vmatpush.msrb.mxu3 %v17715_v56  ;;  %2246 = vmatmul.f32.vlgmr.msrb.gmra.mxu2 %v13592_v60 }
 0x1fa   :  { %2339 = vmatpush.msra.mxu1 %v17759_v57  ;;  %2431 = vmatpush.msra.mxu2 %v17760_v10  ;;  %v17768_v57 = vld [vmem:[#allocation132_spill] sm:$0xff]  ;;  %v17769_v10 = vld [vmem:[#allocation123_spill] sm:$0xff] }
 0x1fb   :  { %2129 = vmatpush.msrb.mxu0 %v17761_v47  ;;  %2281 = vmatpush.msrb.mxu3 %v17719_v36  ;;  %v17770_v47 = vld [vmem:[#allocation165_spill] sm:$0xff] }
 0x1fc   :  { %2283 = vmatmul.f32.vlgmr.msrb.gmra.mxu3 %v13592_v60  ;;  %2345 = vmatpush.msra.mxu1 %v17762_v63  ;;  %v17773_v63 = vld [vmem:[#allocation169_spill] sm:$0xff] }
 0x1fd   :  { %2434 = vmatpush.msra.mxu2 %v17763_v42  ;;  %2484 = vmatpush.msra.mxu3 %v17764_v34  ;;  %v17772_v42 = vld [vmem:[#allocation134_spill] sm:$0xff] }
 0x1fe   :  { %2132 = vmatpush.msrb.mxu0 %v17765_v31  ;;  %2351 = vmatpush.msra.mxu1 %v17766_v49  ;;  %v17774_v31 = vld [vmem:[#allocation145_spill] sm:$0xff] }
 0x1ff   :  { %2437 = vmatpush.msra.mxu2 %v17767_v50  ;;  %2486 = vmatpush.msra.mxu3 %v17768_v57  ;;  %v17775_v50 = vld [vmem:[#allocation136_spill] sm:$0xff]  ;;  %v17776_v49 = vld [vmem:[#allocation173_spill] sm:$0xff] }
 0x200   :  { %2135 = vmatpush.msrb.mxu0 %v17769_v10  ;;  %2357 = vmatpush.msra.mxu1 %v17770_v47  ;;  %v17777_v10 = vld [vmem:[#allocation148_spill] sm:$0xff]  ;;  %v17778_v47 = vld [vmem:[#allocation139_spill] sm:$0xff] }
 0x201   :  { %2138 = vmatmul.f32.vlgmr.msrb.gmra.mxu0 %v13597_v16  ;;  %2440 = vmatpush.msra.mxu2 %v17771_v4  ;;  %v17779_v4 = vld [vmem:[#allocation177_spill] sm:$0xff] }
 0x202   :  { %2288 = vmatpush.msra.mxu0 %v17764_v34  ;;  %2488 = vmatpush.msra.mxu3 %v17772_v42 }
 0x203   :  { %2363 = vmatpush.msra.mxu1 %v17773_v63  ;;  %2443 = vmatpush.msra.mxu2 %v17774_v31  ;;  %v17781_v31 = vld [vmem:[#allocation183_spill] sm:$0xff]  ;;  %v17782_v63 = vld [vmem:[#allocation153_spill] sm:$0xff] }
 0x204   :  { %2290 = vmatpush.msra.mxu0 %v17768_v57  ;;  %2490 = vmatpush.msra.mxu3 %v17775_v50 }
 0x205   :  { %2369 = vmatpush.msra.mxu1 %v17776_v49  ;;  %2446 = vmatpush.msra.mxu2 %v17777_v10  ;;  %v17783_v10 = vld [vmem:[#allocation188_spill] sm:$0xff]  ;;  %v17784_v49 = vld [vmem:[#allocation159_spill] sm:$0xff] }
 0x206   :  { %2292 = vmatpush.msra.mxu0 %v17772_v42  ;;  %2492 = vmatpush.msra.mxu3 %v17778_v47 }
 0x207   :  { %2375 = vmatpush.msra.mxu1 %v17779_v4  ;;  %2449 = vmatpush.msra.mxu2 %v17780_v22  ;;  %v17785_v22 = vld [vmem:[#allocation192_spill] sm:$0xff]  ;;  %v17786_v4 = vld [vmem:[#allocation163_spill] sm:$0xff] }
 0x208   :  { %2294 = vmatpush.msra.mxu0 %v17775_v50  ;;  %2494 = vmatpush.msra.mxu3 %v12763_v27 }
 0x209   :  { %2381 = vmatpush.msra.mxu1 %v17781_v31  ;;  %2452 = vmatpush.msra.mxu2 %v17782_v63  ;;  %v17787_v63 = vld [vmem:[#allocation197_spill] sm:$0xff]  ;;  %v17788_v31 = vld [vmem:[#allocation167_spill] sm:$0xff] }
 0x20a   :  { %2296 = vmatpush.msra.mxu0 %v17778_v47  ;;  %2496 = vmatpush.msra.mxu3 %v12770_v20 }
 0x20b   :  { %2387 = vmatpush.msra.mxu1 %v17783_v10  ;;  %2455 = vmatpush.msra.mxu2 %v17784_v49  ;;  %v17789_v49 = vld [vmem:[#allocation201_spill] sm:$0xff]  ;;  %v17790_v10 = vld [vmem:[#allocation171_spill] sm:$0xff] }
 0x20c   :  { %2298 = vmatpush.msra.mxu0 %v12763_v27  ;;  %2498 = vmatpush.msra.mxu3 %v12784_v3 }
 0x20d   :  { %2393 = vmatpush.msra.mxu1 %v17785_v22  ;;  %2458 = vmatpush.msra.mxu2 %v17786_v4  ;;  %v17791_v4 = vld [vmem:[#allocation205_spill] sm:$0xff]  ;;  %v17792_v22 = vld [vmem:[#allocation175_spill] sm:$0xff] }
 0x20e   :  { %2300 = vmatpush.msra.mxu0 %v12770_v20  ;;  %2500 = vmatpush.msra.mxu3 %v12816_v6 }
 0x20f   :  { %2399 = vmatpush.msra.mxu1 %v17787_v63  ;;  %2461 = vmatpush.msra.mxu2 %v17788_v31  ;;  %v17793_v31 = vld [vmem:[#allocation208_spill] sm:$0xff] }
 0x210   :  { %2302 = vmatpush.msra.mxu0 %v12784_v3  ;;  %2502 = vmatpush.msra.mxu3 %v12835_v9  ;;  %v17794_v63 = vld [vmem:[#allocation180_spill] sm:$0xff] }
 0x211   :  { %2405 = vmatpush.msra.mxu1 %v17789_v49  ;;  %2464 = vmatpush.msra.mxu2 %v17790_v10  ;;  %v17795_v10 = vld [vmem:[#allocation213_spill] sm:$0xff] }
 0x212   :  { %2304 = vmatpush.msra.mxu0 %v12816_v6  ;;  %2504 = vmatpush.msra.mxu3 %v12854_v61  ;;  %v17796_v49 = vld [vmem:[#allocation185_spill] sm:$0xff] }
 0x213   :  { %2411 = vmatpush.msra.mxu1 %v17791_v4  ;;  %2467 = vmatpush.msra.mxu2 %v17792_v22  ;;  %v17797_v22 = vld [vmem:[#allocation190_spill] sm:$0xff]  ;;  %v17805_v4 = vld [vmem:[#allocation229_spill] sm:$0xff] }
 0x214   :  { %2306 = vmatpush.msra.mxu0 %v12835_v9  ;;  %2506 = vmatpush.msra.mxu3 %v12873_v46 }
 0x215   :  { %2417 = vmatpush.msra.mxu1 %v17793_v31  ;;  %2470 = vmatpush.msra.mxu2 %v17794_v63  ;;  %v17801_v63 = vld [vmem:[#allocation221_spill] sm:$0xff] }
 0x216   :  { %2308 = vmatpush.msra.mxu0 %v12854_v61  ;;  %2508 = vmatpush.msra.mxu3 %v12892_v55  ;;  %v17803_v31 = vld [vmem:[#allocation225_spill] sm:$0xff] }
 0x217   :  { %2423 = vmatpush.msra.mxu1 %v17795_v10  ;;  %2473 = vmatpush.msra.mxu2 %v17796_v49  ;;  %v17799_v49 = vld [vmem:[#allocation217_spill] sm:$0xff] }
 0x218   :  { %2310 = vmatpush.msra.mxu0 %v12873_v46  ;;  %2510 = vmatpush.msra.mxu3 %v12911_v37  ;;  %v17800_v10 = vld [vmem:[#allocation137_spill] sm:$0xff] }
 0x219   :  { %2425 = vmatmul.f32.vlgmr.msra.gmra.mxu1 %v13592_v60  ;;  %2476 = vmatpush.msra.mxu2 %v17797_v22  ;;  %v17798_v22 = vld [vmem:[#allocation212_spill] sm:$0xff] }
 0x21a   :  { %2592 = vmatpush.msrb.mxu1 %v17764_v34  ;;  %2312 = vmatpush.msra.mxu0 %v12892_v55 }
 0x21b   :  { %2512 = vmatpush.msra.mxu3 %v12933_v45  ;;  %2479 = vmatmul.f32.vlgmr.msra.gmra.mxu2 %v13597_v16 }
 0x21c   :  { %2594 = vmatpush.msrb.mxu1 %v17768_v57  ;;  %2629 = vmatpush.msrb.mxu2 %v12942_v54 }
 0x21d   :  { %2314 = vmatpush.msra.mxu0 %v12911_v37  ;;  %2514 = vmatpush.msra.mxu3 %v12954_v53 }
 0x21e   :  { %2518 = vmatmul.f32.vlgmr.msra.gmra.mxu3 %v13602_v7  ;;  %2596 = vmatpush.msrb.mxu1 %v17772_v42 }
 0x21f   :  { %2631 = vmatpush.msrb.mxu2 %v12961_v24  ;;  %2674 = vmatpush.msrb.mxu3 %v17798_v22  ;;  %v17802_v22 = vld [vmem:[#allocation140_spill] sm:$0xff] }
 0x220   :  { %2316 = vmatpush.msra.mxu0 %v12933_v45  ;;  %2598 = vmatpush.msrb.mxu1 %v17775_v50 }
 0x221   :  { %2633 = vmatpush.msrb.mxu2 %v12980_v48  ;;  %2680 = vmatpush.msrb.mxu3 %v17799_v49  ;;  %v17804_v49 = vld [vmem:[#allocation144_spill] sm:$0xff] }
 0x222   :  { %2318 = vmatpush.msra.mxu0 %v12954_v53  ;;  %2600 = vmatpush.msrb.mxu1 %v17778_v47 }
 0x223   :  { %2324 = vmatmul.f32.vlgmr.msra.gmra.mxu0 %v13612_v23  ;;  %2635 = vmatpush.msrb.mxu2 %v13014_v12 }
 0x224   :  { %2525 = vmatpush.msrb.mxu0 %v17800_v10  ;;  %2686 = vmatpush.msrb.mxu3 %v17801_v63  ;;  %v17806_v63 = vld [vmem:[#allocation147_spill] sm:$0xff]  ;;  %v17807_v10 = vld [vmem:[#allocation232_spill] sm:$0xff] }
 0x225   :  { %2602 = vmatpush.msrb.mxu1 %v12763_v27  ;;  %2637 = vmatpush.msrb.mxu2 %v13036_v30 }
 0x226   :  { %2529 = vmatpush.msrb.mxu0 %v17802_v22  ;;  %2692 = vmatpush.msrb.mxu3 %v17803_v31  ;;  %v17808_v31 = vld [vmem:[#allocation151_spill] sm:$0xff]  ;;  %v17809_v22 = vld [vmem:[#allocation236_spill] sm:$0xff] }
 0x227   :  { %2604 = vmatpush.msrb.mxu1 %v12770_v20  ;;  %2639 = vmatpush.msrb.mxu2 %v13055_v18 }
 0x228   :  { %2533 = vmatpush.msrb.mxu0 %v17804_v49  ;;  %2698 = vmatpush.msrb.mxu3 %v17805_v4  ;;  %v17810_v4 = vld [vmem:[#allocation155_spill] sm:$0xff] }
 0x229   :  { %2606 = vmatpush.msrb.mxu1 %v12784_v3  ;;  %2641 = vmatpush.msrb.mxu2 %v13076_v52  ;;  %v17811_v49 = vld [vmem:[#allocation239_spill] sm:$0xff] }
 0x22a   :  { %2537 = vmatpush.msrb.mxu0 %v17806_v63  ;;  %2704 = vmatpush.msrb.mxu3 %v17807_v10  ;;  %v17812_v63 = vld [vmem:[#allocation220_spill] sm:$0xff]  ;;  %v17813_v10 = vld [vmem:[#allocation157_spill] sm:$0xff] }
 0x22b   :  { %2608 = vmatpush.msrb.mxu1 %v12816_v6  ;;  %2643 = vmatpush.msrb.mxu2 %v13095_v25  ;;  %v17814_v6 = vld [vmem:[#allocation243_spill] sm:$0xff] }
 0x22c   :  { %2541 = vmatpush.msrb.mxu0 %v17808_v31  ;;  %2710 = vmatpush.msrb.mxu3 %v17809_v22  ;;  %v17815_v31 = vld [vmem:[#allocation224_spill] sm:$0xff]  ;;  %v17816_v22 = vld [vmem:[#allocation161_spill] sm:$0xff] }
 0x22d   :  { %2610 = vmatpush.msrb.mxu1 %v12835_v9  ;;  %2645 = vmatpush.msrb.mxu2 %v13116_v58  ;;  %v17817_v9 = vld [vmem:[#allocation246_spill] sm:$0xff] }
 0x22e   :  { %2545 = vmatpush.msrb.mxu0 %v17810_v4  ;;  %2716 = vmatpush.msrb.mxu3 %v17811_v49  ;;  %v17818_v4 = vld [vmem:[#allocation228_spill] sm:$0xff]  ;;  %v17819_v49 = vld [vmem:[#allocation166_spill] sm:$0xff] }
 0x22f   :  { %2612 = vmatpush.msrb.mxu1 %v12854_v61  ;;  %2647 = vmatpush.msrb.mxu2 %v17812_v63  ;;  %v17820_v61 = vld [vmem:[#allocation249_spill] sm:$0xff] }
 0x230   :  { %2549 = vmatpush.msrb.mxu0 %v17813_v10  ;;  %2722 = vmatpush.msrb.mxu3 %v17814_v6  ;;  %v17821_v10 = vld [vmem:[#allocation234_spill] sm:$0xff] }
 0x231   :  { %2614 = vmatpush.msrb.mxu1 %v12873_v46  ;;  %2649 = vmatpush.msrb.mxu2 %v17815_v31  ;;  %v17822_v6 = vld [vmem:[#allocation170_spill] sm:$0xff]  ;;  %v17823_v46 = vld [vmem:[#allocation253_spill] sm:$0xff] }
 0x232   :  { %2553 = vmatpush.msrb.mxu0 %v17816_v22  ;;  %2728 = vmatpush.msrb.mxu3 %v17817_v9  ;;  %v17824_v22 = vld [vmem:[#allocation238_spill] sm:$0xff] }
 0x233   :  { %2616 = vmatpush.msrb.mxu1 %v12892_v55  ;;  %2651 = vmatpush.msrb.mxu2 %v17818_v4  ;;  %v17825_v9 = vld [vmem:[#allocation174_spill] sm:$0xff]  ;;  %v17826_v55 = vld [vmem:[#allocation255_spill] sm:$0xff] }
 0x234   :  { %2557 = vmatpush.msrb.mxu0 %v17819_v49  ;;  %2734 = vmatpush.msrb.mxu3 %v17820_v61  ;;  %v17827_v49 = vld [vmem:[#allocation241_spill] sm:$0xff]  ;;  %v17828_v61 = vld [vmem:[#allocation179_spill] sm:$0xff] }
 0x235   :  { %2618 = vmatpush.msrb.mxu1 %v12911_v37  ;;  %2653 = vmatpush.msrb.mxu2 %v17821_v10  ;;  %v17829_v37 = vld [vmem:[#allocation256_spill] sm:$0xff] }
 0x236   :  { %2561 = vmatpush.msrb.mxu0 %v17822_v6  ;;  %2740 = vmatpush.msrb.mxu3 %v17823_v46  ;;  %v17830_v6 = vld [vmem:[#allocation245_spill] sm:$0xff]  ;;  %v17831_v46 = vld [vmem:[#allocation184_spill] sm:$0xff] }
 0x237   :  { %2620 = vmatpush.msrb.mxu1 %v12933_v45  ;;  %2655 = vmatpush.msrb.mxu2 %v17824_v22  ;;  %v17832_v45 = vld [vmem:[#allocation257_spill] sm:$0xff] }
 0x238   :  { %2565 = vmatpush.msrb.mxu0 %v17825_v9  ;;  %2746 = vmatpush.msrb.mxu3 %v17826_v55  ;;  %v17833_v55 = vld [vmem:[#allocation195_spill] sm:$0xff]  ;;  %v17834_v9 = vld [vmem:[#allocation189_spill] sm:$0xff] }
 0x239   :  { %2622 = vmatpush.msrb.mxu1 %v12954_v53  ;;  %2657 = vmatpush.msrb.mxu2 %v17827_v49 }
 0x23a   :  { %2569 = vmatpush.msrb.mxu0 %v17828_v61  ;;  %2752 = vmatpush.msrb.mxu3 %v17829_v37  ;;  %v17835_v61 = vld [vmem:[#allocation258_spill] sm:$0xff]  ;;  %v17836_v37 = vld [vmem:[#allocation200_spill] sm:$0xff] }
 0x23b   :  { %2624 = vmatmul.f32.vlgmr.msrb.gmra.mxu1 %v13592_v60  ;;  %2659 = vmatpush.msrb.mxu2 %v17830_v6 }
 0x23c   :  { %2825 = vmatpush.msra.mxu1 %v12942_v54  ;;  %2573 = vmatpush.msrb.mxu0 %v17831_v46  ;;  %v17837_v46 = vld [vmem:[#allocation193_spill] sm:$0xff] }
 0x23d   :  { %2758 = vmatpush.msrb.mxu3 %v17832_v45  ;;  %2665 = vmatmul.f32.vlgmr.msrb.gmra.mxu2 %v13612_v23  ;;  %v17838_v23 = vld [vmem:[#allocation204_spill] sm:$0xff]  ;;  %v17873_v45 = vld [vmem:[#allocation251_spill] sm:$0xff] }
 0x23e   :  { %2827 = vmatpush.msra.mxu1 %v12961_v24  ;;  %2866 = vmatpush.msra.mxu2 %v17833_v55  ;;  %v17839_v55 = vld [vmem:[#allocation198_spill] sm:$0xff] }
 0x23f   :  { %2577 = vmatpush.msrb.mxu0 %v17834_v9  ;;  %2764 = vmatpush.msrb.mxu3 %v17835_v61  ;;  %v17840_v61 = vld [vmem:[#allocation209_spill] sm:$0xff]  ;;  %v17841_v9 = vld [vmem:[#allocation186_spill] sm:$0xff] }
 0x240   :  { %2766 = vmatmul.f32.vlgmr.msrb.gmra.mxu3 %v13592_v60  ;;  %2829 = vmatpush.msra.mxu1 %v12980_v48 }
 0x241   :  { %2870 = vmatpush.msra.mxu2 %v17836_v37  ;;  %2933 = vmatpush.msra.mxu3 %v12942_v54  ;;  %v17843_v37 = vld [vmem:[#allocation191_spill] sm:$0xff] }
 0x242   :  { %2581 = vmatpush.msrb.mxu0 %v17837_v46  ;;  %2831 = vmatpush.msra.mxu1 %v13014_v12  ;;  %v17842_v46 = vld [vmem:[#allocation214_spill] sm:$0xff]  ;;  %v17950_v54 = vld [vmem:[#allocation79_spill] sm:$0xff] }
 0x243   :  { %2874 = vmatpush.msra.mxu2 %v17838_v23  ;;  %2935 = vmatpush.msra.mxu3 %v12961_v24  ;;  %v17845_v23 = vld [vmem:[#allocation196_spill] sm:$0xff]  ;;  %v17949_v24 = vld [vmem:[#allocation75_spill] sm:$0xff] }
 0x244   :  { %2585 = vmatpush.msrb.mxu0 %v17839_v55  ;;  %2833 = vmatpush.msra.mxu1 %v13036_v30  ;;  %v17844_v55 = vld [vmem:[#allocation218_spill] sm:$0xff] }
 0x245   :  { %2587 = vmatmul.f32.vlgmr.msrb.gmra.mxu0 %v13592_v60  ;;  %2878 = vmatpush.msra.mxu2 %v17840_v61  ;;  %v17847_v61 = vld [vmem:[#allocation202_spill] sm:$0xff] }
 0x246   :  { %2772 = vmatpush.msra.mxu0 %v17841_v9  ;;  %2937 = vmatpush.msra.mxu3 %v12980_v48  ;;  %v17846_v9 = vld [vmem:[#allocation222_spill] sm:$0xff] }
 0x247   :  { %2835 = vmatpush.msra.mxu1 %v13055_v18  ;;  %2882 = vmatpush.msra.mxu2 %v17842_v46  ;;  %v17849_v46 = vld [vmem:[#allocation206_spill] sm:$0xff] }
 0x248   :  { %2775 = vmatpush.msra.mxu0 %v17843_v37  ;;  %2939 = vmatpush.msra.mxu3 %v13014_v12  ;;  %v17848_v37 = vld [vmem:[#allocation226_spill] sm:$0xff] }
 0x249   :  { %2837 = vmatpush.msra.mxu1 %v13076_v52  ;;  %2886 = vmatpush.msra.mxu2 %v17844_v55  ;;  %v17851_v55 = vld [vmem:[#allocation210_spill] sm:$0xff] }
 0x24a   :  { %2778 = vmatpush.msra.mxu0 %v17845_v23  ;;  %2941 = vmatpush.msra.mxu3 %v13036_v30  ;;  %v17850_v23 = vld [vmem:[#allocation230_spill] sm:$0xff] }
 0x24b   :  { %2839 = vmatpush.msra.mxu1 %v13095_v25  ;;  %2890 = vmatpush.msra.mxu2 %v17846_v9  ;;  %v17853_v9 = vld [vmem:[#allocation215_spill] sm:$0xff] }
 0x24c   :  { %2781 = vmatpush.msra.mxu0 %v17847_v61  ;;  %2943 = vmatpush.msra.mxu3 %v13055_v18  ;;  %v17852_v61 = vld [vmem:[#allocation233_spill] sm:$0xff] }
 0x24d   :  { %2841 = vmatpush.msra.mxu1 %v13116_v58  ;;  %2894 = vmatpush.msra.mxu2 %v17848_v37  ;;  %v17855_v37 = vld [vmem:[#allocation219_spill] sm:$0xff] }
 0x24e   :  { %2784 = vmatpush.msra.mxu0 %v17849_v46  ;;  %2945 = vmatpush.msra.mxu3 %v13076_v52  ;;  %v17854_v46 = vld [vmem:[#allocation237_spill] sm:$0xff] }
 0x24f   :  { %2843 = vmatpush.msra.mxu1 %v17812_v63  ;;  %2898 = vmatpush.msra.mxu2 %v17850_v23  ;;  %v17857_v23 = vld [vmem:[#allocation223_spill] sm:$0xff]  ;;  %v17913_v52 = vld [vmem:[#allocation41_spill] sm:$0xff] }
 0x250   :  { %2787 = vmatpush.msra.mxu0 %v17851_v55  ;;  %2947 = vmatpush.msra.mxu3 %v13095_v25  ;;  %v17856_v55 = vld [vmem:[#allocation242_spill] sm:$0xff]  ;;  %v17910_v25 = vld [vmem:[#allocation37_spill] sm:$0xff] }
 0x251   :  { %2845 = vmatpush.msra.mxu1 %v17815_v31  ;;  %2902 = vmatpush.msra.mxu2 %v17852_v61  ;;  %v17859_v61 = vld [vmem:[#allocation227_spill] sm:$0xff] }
 0x252   :  { %2790 = vmatpush.msra.mxu0 %v17853_v9  ;;  %2949 = vmatpush.msra.mxu3 %v13116_v58  ;;  %v17858_v9 = vld [vmem:[#allocation247_spill] sm:$0xff]  ;;  %v17907_v58 = vld [vmem:[#allocation36_spill] sm:$0xff] }
 0x253   :  { %2847 = vmatpush.msra.mxu1 %v17818_v4  ;;  %2906 = vmatpush.msra.mxu2 %v17854_v46  ;;  %v17861_v46 = vld [vmem:[#allocation231_spill] sm:$0xff] }
 0x254   :  { %2793 = vmatpush.msra.mxu0 %v17855_v37  ;;  %2951 = vmatpush.msra.mxu3 %v17812_v63  ;;  %v17860_v37 = vld [vmem:[#allocation250_spill] sm:$0xff]  ;;  %v17904_v63 = vld [vmem:[#allocation32_spill] sm:$0xff] }
 0x255   :  { %2849 = vmatpush.msra.mxu1 %v17821_v10  ;;  %2910 = vmatpush.msra.mxu2 %v17856_v55  ;;  %v17863_v55 = vld [vmem:[#allocation235_spill] sm:$0xff] }
 0x256   :  { %2796 = vmatpush.msra.mxu0 %v17857_v23  ;;  %2953 = vmatpush.msra.mxu3 %v17815_v31  ;;  %v17862_v23 = vld [vmem:[#allocation252_spill] sm:$0xff]  ;;  %v17901_v31 = vld [vmem:[#allocation31_spill] sm:$0xff] }
 0x257   :  { %2851 = vmatpush.msra.mxu1 %v17824_v22  ;;  %2914 = vmatpush.msra.mxu2 %v17858_v9  ;;  %v17865_v9 = vld [vmem:[#allocation240_spill] sm:$0xff] }
 0x258   :  { %2799 = vmatpush.msra.mxu0 %v17859_v61  ;;  %2955 = vmatpush.msra.mxu3 %v17818_v4  ;;  %v17864_v61 = vld [vmem:[#allocation254_spill] sm:$0xff]  ;;  %v17898_v4 = vld [vmem:[#allocation24_spill] sm:$0xff] }
 0x259   :  { %2853 = vmatpush.msra.mxu1 %v17827_v49  ;;  %2918 = vmatpush.msra.mxu2 %v17860_v37  ;;  %v17867_v37 = vld [vmem:[#allocation244_spill] sm:$0xff] }
 0x25a   :  { %2802 = vmatpush.msra.mxu0 %v17861_v46  ;;  %2957 = vmatpush.msra.mxu3 %v17821_v10  ;;  %v17866_v46 = vld [vmem:[#allocation25_spill] sm:$0xff]  ;;  %v17895_v10 = vld [vmem:[#allocation12_spill] sm:$0xff] }
 0x25b   :  { %2855 = vmatpush.msra.mxu1 %v17830_v6  ;;  %2922 = vmatpush.msra.mxu2 %v17862_v23  ;;  %v17869_v23 = vld [vmem:[#allocation248_spill] sm:$0xff] }
 0x25c   :  { %2805 = vmatpush.msra.mxu0 %v17863_v55  ;;  %2959 = vmatpush.msra.mxu3 %v17824_v22  ;;  %v17868_v55 = vld [vmem:[#allocation27_spill] sm:$0xff] }
 0x25d   :  { %2859 = vmatmul.f32.vlgmr.msra.gmra.mxu1 %v13602_v7  ;;  %2926 = vmatpush.msra.mxu2 %v17864_v61  ;;  %v17870_v7 = vld [vmem:[#allocation5_spill] sm:$0xff]  ;;  %v17892_v22 = vld [vmem:[#allocation11_spill] sm:$0xff] }
 0x25e   :  { %2808 = vmatpush.msra.mxu0 %v17865_v9  ;;  %2961 = vmatpush.msra.mxu3 %v17827_v49  ;;  %v17871_v61 = vld [vmem:[#allocation29_spill] sm:$0xff]  ;;  %v17872_v9 = vld [vmem:[#allocation3_spill] sm:$0xff] }
 0x25f   :  { %2928 = vmatmul.f32.vlgmr.msra.gmra.mxu2 %v13592_v60  ;;  %3105 = vmatpush.msrb.mxu1 %v17866_v46  ;;  %v17874_v49 = vld [vmem:[#allocation9_spill] sm:$0xff]  ;;  %v17876_v46 = vld [vmem:[#allocation14_spill] sm:$0xff] }
 0x260   :  { %2811 = vmatpush.msra.mxu0 %v17867_v37  ;;  %2963 = vmatpush.msra.mxu3 %v17830_v6  ;;  %v17875_v37 = vld [vmem:[#allocation33_spill] sm:$0xff]  ;;  %v17889_v6 = vld [vmem:[#allocation10_spill] sm:$0xff] }
 0x261   :  { %2965 = vmatmul.f32.vlgmr.msra.gmra.mxu3 %v13592_v60  ;;  %3111 = vmatpush.msrb.mxu1 %v17868_v55  ;;  %v17877_v60 = vld [vmem:[#allocation4_spill] sm:$0xff] }
 0x262   :  { %2814 = vmatpush.msra.mxu0 %v17869_v23  ;;  %3203 = vmatpush.msrb.mxu2 %v17870_v7  ;;  %v17878_v23 = vld [vmem:[#allocation38_spill] sm:$0xff]  ;;  %v17879_v7 = vld [vmem:[#allocation15_spill] sm:$0xff]  ;;  %v17886_v55 = vld [vmem:[#allocation8_spill] sm:$0xff] }
 0x263   :  { %3117 = vmatpush.msrb.mxu1 %v17871_v61  ;;  %3256 = vmatpush.msrb.mxu3 %v17872_v9  ;;  %v17880_v61 = vld [vmem:[#allocation6_spill] sm:$0xff] }
 0x264   :  { %2817 = vmatpush.msra.mxu0 %v17873_v45  ;;  %3206 = vmatpush.msrb.mxu2 %v17874_v49  ;;  %v17881_v45 = vld [vmem:[#allocation42_spill] sm:$0xff]  ;;  %v17882_v49 = vld [vmem:[#allocation16_spill] sm:$0xff] }
 0x265   :  { %2820 = vmatmul.f32.vlgmr.msra.gmra.mxu0 %v13597_v16  ;;  %3123 = vmatpush.msrb.mxu1 %v17875_v37  ;;  %v17883_v16 = vld [vmem:[#allocation7_spill] sm:$0xff]  ;;  %v17885_v37 = vld [vmem:[#allocation18_spill] sm:$0xff] }
 0x266   :  { %3209 = vmatpush.msrb.mxu2 %v17876_v46  ;;  %3258 = vmatpush.msrb.mxu3 %v17877_v60  ;;  %v17884_v46 = vld [vmem:[#allocation46_spill] sm:$0xff] }
 0x267   :  { %3060 = vmatpush.msrb.mxu0 %v17872_v9  ;;  %3129 = vmatpush.msrb.mxu1 %v17878_v23  ;;  %v17888_v23 = vld [vmem:[#allocation19_spill] sm:$0xff] }
 0x268   :  { %3212 = vmatpush.msrb.mxu2 %v17879_v7  ;;  %3260 = vmatpush.msrb.mxu3 %v17880_v61  ;;  %v17887_v7 = vld [vmem:[#allocation51_spill] sm:$0xff] }
 0x269   :  { %3062 = vmatpush.msrb.mxu0 %v17877_v60  ;;  %3135 = vmatpush.msrb.mxu1 %v17881_v45  ;;  %v17891_v45 = vld [vmem:[#allocation26_spill] sm:$0xff] }
 0x26a   :  { %3215 = vmatpush.msrb.mxu2 %v17882_v49  ;;  %3262 = vmatpush.msrb.mxu3 %v17883_v16  ;;  %v17890_v49 = vld [vmem:[#allocation55_spill] sm:$0xff] }
 0x26b   :  { %3064 = vmatpush.msrb.mxu0 %v17880_v61  ;;  %3141 = vmatpush.msrb.mxu1 %v17884_v46  ;;  %v17894_v46 = vld [vmem:[#allocation30_spill] sm:$0xff] }
 0x26c   :  { %3218 = vmatpush.msrb.mxu2 %v17885_v37  ;;  %3264 = vmatpush.msrb.mxu3 %v17886_v55  ;;  %v17893_v37 = vld [vmem:[#allocation60_spill] sm:$0xff] }
 0x26d   :  { %3066 = vmatpush.msrb.mxu0 %v17883_v16  ;;  %3147 = vmatpush.msrb.mxu1 %v17887_v7  ;;  %v17897_v7 = vld [vmem:[#allocation35_spill] sm:$0xff] }
 0x26e   :  { %3221 = vmatpush.msrb.mxu2 %v17888_v23  ;;  %3266 = vmatpush.msrb.mxu3 %v17889_v6  ;;  %v17896_v23 = vld [vmem:[#allocation63_spill] sm:$0xff] }
 0x26f   :  { %3068 = vmatpush.msrb.mxu0 %v17886_v55  ;;  %3153 = vmatpush.msrb.mxu1 %v17890_v49  ;;  %v17900_v49 = vld [vmem:[#allocation40_spill] sm:$0xff] }
 0x270   :  { %3224 = vmatpush.msrb.mxu2 %v17891_v45  ;;  %3268 = vmatpush.msrb.mxu3 %v17892_v22  ;;  %v17899_v45 = vld [vmem:[#allocation68_spill] sm:$0xff] }
 0x271   :  { %3070 = vmatpush.msrb.mxu0 %v17889_v6  ;;  %3159 = vmatpush.msrb.mxu1 %v17893_v37  ;;  %v17903_v37 = vld [vmem:[#allocation44_spill] sm:$0xff] }
 0x272   :  { %3227 = vmatpush.msrb.mxu2 %v17894_v46  ;;  %3270 = vmatpush.msrb.mxu3 %v17895_v10  ;;  %v17902_v46 = vld [vmem:[#allocation72_spill] sm:$0xff] }
 0x273   :  { %3072 = vmatpush.msrb.mxu0 %v17892_v22  ;;  %3165 = vmatpush.msrb.mxu1 %v17896_v23  ;;  %v17906_v23 = vld [vmem:[#allocation45_spill] sm:$0xff] }
 0x274   :  { %3230 = vmatpush.msrb.mxu2 %v17897_v7  ;;  %3272 = vmatpush.msrb.mxu3 %v17898_v4  ;;  %v17905_v7 = vld [vmem:[#allocation76_spill] sm:$0xff] }
 0x275   :  { %3074 = vmatpush.msrb.mxu0 %v17895_v10  ;;  %3171 = vmatpush.msrb.mxu1 %v17899_v45  ;;  %v17909_v45 = vld [vmem:[#allocation49_spill] sm:$0xff] }
 0x276   :  { %3233 = vmatpush.msrb.mxu2 %v17900_v49  ;;  %3274 = vmatpush.msrb.mxu3 %v17901_v31  ;;  %v17908_v49 = vld [vmem:[#allocation80_spill] sm:$0xff] }
 0x277   :  { %3076 = vmatpush.msrb.mxu0 %v17898_v4  ;;  %3177 = vmatpush.msrb.mxu1 %v17902_v46  ;;  %v17912_v46 = vld [vmem:[#allocation56_spill] sm:$0xff] }
 0x278   :  { %3236 = vmatpush.msrb.mxu2 %v17903_v37  ;;  %3276 = vmatpush.msrb.mxu3 %v17904_v63  ;;  %v17911_v37 = vld [vmem:[#allocation85_spill] sm:$0xff] }
 0x279   :  { %3078 = vmatpush.msrb.mxu0 %v17901_v31  ;;  %3183 = vmatpush.msrb.mxu1 %v17905_v7  ;;  %v17915_v7 = vld [vmem:[#allocation48_spill] sm:$0xff] }
 0x27a   :  { %3239 = vmatpush.msrb.mxu2 %v17906_v23  ;;  %3278 = vmatpush.msrb.mxu3 %v17907_v58  ;;  %v17914_v23 = vld [vmem:[#allocation61_spill] sm:$0xff] }
 0x27b   :  { %3080 = vmatpush.msrb.mxu0 %v17904_v63  ;;  %3189 = vmatpush.msrb.mxu1 %v17908_v49  ;;  %v17920_v49 = vld [vmem:[#allocation92_spill] sm:$0xff] }
 0x27c   :  { %3242 = vmatpush.msrb.mxu2 %v17909_v45  ;;  %3280 = vmatpush.msrb.mxu3 %v17910_v25  ;;  %v17916_v45 = vld [vmem:[#allocation53_spill] sm:$0xff] }
 0x27d   :  { %3082 = vmatpush.msrb.mxu0 %v17907_v58  ;;  %3195 = vmatpush.msrb.mxu1 %v17911_v37  ;;  %v17919_v37 = vld [vmem:[#allocation13_spill] sm:$0xff] }
 0x27e   :  { %3245 = vmatpush.msrb.mxu2 %v17912_v46  ;;  %3282 = vmatpush.msrb.mxu3 %v17913_v52  ;;  %v17917_v46 = vld [vmem:[#allocation83_spill] sm:$0xff] }
 0x27f   :  { %3364 = vmatpush.msra.mxu1 %v17872_v9  ;;  %3084 = vmatpush.msrb.mxu0 %v17910_v25 }
 0x280   :  { %3248 = vmatpush.msrb.mxu2 %v17914_v23  ;;  %3284 = vmatpush.msrb.mxu3 %v17915_v7  ;;  %v17918_v23 = vld [vmem:[#allocation88_spill] sm:$0xff] }
 0x281   :  { %3366 = vmatpush.msra.mxu1 %v17877_v60  ;;  %3086 = vmatpush.msrb.mxu0 %v17913_v52 }
 0x282   :  { %3401 = vmatpush.msra.mxu2 %v17671_v11  ;;  %3286 = vmatpush.msrb.mxu3 %v17916_v45 }
 0x283   :  { %3368 = vmatpush.msra.mxu1 %v17880_v61  ;;  %3088 = vmatpush.msrb.mxu0 %v17915_v7  ;;  %v17921_v61 = vld [vmem:[#allocation17_spill] sm:$0xff] }
 0x284   :  { %3403 = vmatpush.msra.mxu2 %v17674_v21  ;;  %3446 = vmatpush.msra.mxu3 %v17917_v46  ;;  %v17922_v46 = vld [vmem:[#allocation95_spill] sm:$0xff] }
 0x285   :  { %3370 = vmatpush.msra.mxu1 %v17883_v16  ;;  %3090 = vmatpush.msrb.mxu0 %v17916_v45  ;;  %v17923_v16 = vld [vmem:[#allocation20_spill] sm:$0xff] }
 0x286   :  { %3405 = vmatpush.msra.mxu2 %v17676_v2  ;;  %3452 = vmatpush.msra.mxu3 %v17918_v23  ;;  %v17925_v23 = vld [vmem:[#allocation21_spill] sm:$0xff] }
 0x287   :  { %3297 = vmatpush.msra.mxu0 %v17919_v37  ;;  %3372 = vmatpush.msra.mxu1 %v17886_v55  ;;  %v17924_v37 = vld [vmem:[#allocation99_spill] sm:$0xff] }
 0x288   :  { %3407 = vmatpush.msra.mxu2 %v17679_v38  ;;  %3458 = vmatpush.msra.mxu3 %v17920_v49  ;;  %v17927_v49 = vld [vmem:[#allocation22_spill] sm:$0xff] }
 0x289   :  { %3301 = vmatpush.msra.mxu0 %v17921_v61  ;;  %3374 = vmatpush.msra.mxu1 %v17889_v6  ;;  %v17926_v61 = vld [vmem:[#allocation102_spill] sm:$0xff] }
 0x28a   :  { %3409 = vmatpush.msra.mxu2 %v17682_v17  ;;  %3464 = vmatpush.msra.mxu3 %v17922_v46  ;;  %v17929_v46 = vld [vmem:[#allocation23_spill] sm:$0xff] }
 0x28b   :  { %3305 = vmatpush.msra.mxu0 %v17923_v16  ;;  %3376 = vmatpush.msra.mxu1 %v17892_v22  ;;  %v17928_v16 = vld [vmem:[#allocation105_spill] sm:$0xff] }
 0x28c   :  { %3411 = vmatpush.msra.mxu2 %v17685_v62  ;;  %3470 = vmatpush.msra.mxu3 %v17924_v37  ;;  %v17931_v37 = vld [vmem:[#allocation28_spill] sm:$0xff] }
 0x28d   :  { %3309 = vmatpush.msra.mxu0 %v17925_v23  ;;  %3378 = vmatpush.msra.mxu1 %v17895_v10  ;;  %v17930_v23 = vld [vmem:[#allocation111_spill] sm:$0xff] }
 0x28e   :  { %3413 = vmatpush.msra.mxu2 %v17688_v33  ;;  %3476 = vmatpush.msra.mxu3 %v17926_v61  ;;  %v17933_v61 = vld [vmem:[#allocation34_spill] sm:$0xff] }
 0x28f   :  { %3313 = vmatpush.msra.mxu0 %v17927_v49  ;;  %3380 = vmatpush.msra.mxu1 %v17898_v4  ;;  %v17932_v49 = vld [vmem:[#allocation115_spill] sm:$0xff] }
 0x290   :  { %3415 = vmatpush.msra.mxu2 %v17691_v40  ;;  %3482 = vmatpush.msra.mxu3 %v17928_v16  ;;  %v17935_v16 = vld [vmem:[#allocation39_spill] sm:$0xff] }
 0x291   :  { %3317 = vmatpush.msra.mxu0 %v17929_v46  ;;  %3382 = vmatpush.msra.mxu1 %v17901_v31  ;;  %v17934_v46 = vld [vmem:[#allocation118_spill] sm:$0xff] }
 0x292   :  { %3417 = vmatpush.msra.mxu2 %v17694_v8  ;;  %3488 = vmatpush.msra.mxu3 %v17930_v23  ;;  %v17937_v23 = vld [vmem:[#allocation43_spill] sm:$0xff] }
 0x293   :  { %3321 = vmatpush.msra.mxu0 %v17931_v37  ;;  %3384 = vmatpush.msra.mxu1 %v17904_v63  ;;  %v17936_v37 = vld [vmem:[#allocation121_spill] sm:$0xff] }
 0x294   :  { %3419 = vmatpush.msra.mxu2 %v17697_v1  ;;  %3494 = vmatpush.msra.mxu3 %v17932_v49  ;;  %v17939_v49 = vld [vmem:[#allocation47_spill] sm:$0xff] }
 0x295   :  { %3325 = vmatpush.msra.mxu0 %v17933_v61  ;;  %3386 = vmatpush.msra.mxu1 %v17907_v58  ;;  %v17938_v61 = vld [vmem:[#allocation125_spill] sm:$0xff]  ;;  %v1798_v58 = vpop.f32.mrf.mxu2 }
 0x296   :  { %3421 = vmatpush.msra.mxu2 %v17700_v15  ;;  %3500 = vmatpush.msra.mxu3 %v17934_v46  ;;  %v17941_v46 = vld [vmem:[#allocation52_spill] sm:$0xff] }
 0x297   :  { %3329 = vmatpush.msra.mxu0 %v17935_v16  ;;  %3388 = vmatpush.msra.mxu1 %v17910_v25  ;;  %v17940_v16 = vld [vmem:[#allocation127_spill] sm:$0xff]  ;;  %v1837_v25 = vpop.f32.mrf.mxu3 }
 0x298   :  { %3423 = vmatpush.msra.mxu2 %v17704_v5  ;;  %3506 = vmatpush.msra.mxu3 %v17936_v37  ;;  %v17943_v37 = vld [vmem:[#allocation54_spill] sm:$0xff] }
 0x299   :  { %3333 = vmatpush.msra.mxu0 %v17937_v23  ;;  %3390 = vmatpush.msra.mxu1 %v17913_v52  ;;  %v17942_v23 = vld [vmem:[#allocation128_spill] sm:$0xff]  ;;  %v17946_v52 = vld [vmem:[#allocation130_spill] sm:$0xff] }
 0x29a   :  { %3425 = vmatpush.msra.mxu2 %v17707_v41  ;;  %3512 = vmatpush.msra.mxu3 %v17938_v61  ;;  %v17944_v61 = vld [vmem:[#allocation129_spill] sm:$0xff] }
 0x29b   :  { %3337 = vmatpush.msra.mxu0 %v17939_v49  ;;  %3392 = vmatpush.msra.mxu1 %v17915_v7  ;;  %v1643_v49 = vpop.f32.mrf.mxu0  ;;  %v17945_v7 = vld [vmem:[#allocation58_spill] sm:$0xff] }
 0x29c   :  { %3427 = vmatpush.msra.mxu2 %v17711_v29  ;;  %3518 = vmatpush.msra.mxu3 %v17940_v16  ;;  %v17947_v16 = vld [vmem:[#allocation64_spill] sm:$0xff] }
 0x29d   :  { %3341 = vmatpush.msra.mxu0 %v17941_v46  ;;  %3394 = vmatpush.msra.mxu1 %v17916_v45  ;;  %v17948_v46 = vld [vmem:[#allocation69_spill] sm:$0xff]  ;;  %v1744_v45 = vpop.f32.mrf.mxu1  ;;  %v1984_v4 = vpop.f32.mrf.mxu2 }
 0x29e   :  { %3429 = vmatpush.msra.mxu2 %v17715_v56  ;;  %3524 = vmatpush.msra.mxu3 %v17942_v23 }
 0x29f   :  { %3345 = vmatpush.msra.mxu0 %v17943_v37  ;;  %v2085_v31 = vpop.f32.mrf.mxu3  ;;  %v1745_v37 = vadd.f32 %v1744_v45, %v1643_v49 }
 0x2a0   :  { %3431 = vmatpush.msra.mxu2 %v17719_v36  ;;  %3530 = vmatpush.msra.mxu3 %v17944_v61  ;;  %v2086_v22 = vadd.f32 %v2085_v31, %v1984_v4 }
 0x2a1   :  { %3349 = vmatpush.msra.mxu0 %v17945_v7  ;;  %v1799_v6 = vadd.f32 %v1798_v58, %v1745_v37 }
 0x2a2   :  { %3536 = vmatpush.msra.mxu3 %v17946_v52 }
 0x2a3   :  { %3353 = vmatpush.msra.mxu0 %v17947_v16  ;;  %v1906_v63 = vpop.f32.mrf.mxu0  ;;  %v1838_v60 = vadd.f32 %v1837_v25, %v1799_v6 }
 0x2a5   :  { %3357 = vmatpush.msra.mxu0 %v17948_v46  ;;  %v1943_v23 = vpop.f32.mrf.mxu1  ;;  %v1907_v52 = vadd.f32 %v1906_v63, %v1838_v60  ;;  %v2247_v9 = vpop.f32.mrf.mxu2 }
 0x2a7   :  { %v1944_v18 = vadd.f32 %v1943_v23, %v1907_v52  ;;  %v2284_v46 = vpop.f32.mrf.mxu3 }
 0x2a9   :  { %v2973_v12 = vrot.slane %v1944_v18, 6 }
 0x2ab   :  { %v2139_v10 = vpop.f32.mrf.mxu0  ;;  %v2981_v53 = vadd.f32 %v2973_v12, %v17949_v24 }
 0x2ac   :  { %v2140_v61 = vadd.f32 %v2139_v10, %v2086_v22 }
 0x2ad   :  { %v2178_v55 = vpop.f32.mrf.mxu1  ;;  %v11819_v49 = vmul.f32 -1.442695, %v2981_v53 }
 0x2ae   :  { %v2179_v7 = vadd.f32 %v2178_v55, %v2140_v61  ;;  %v2480_v55 = vpop.f32.mrf.mxu2 }
 0x2af   :  { %11859 = vpow2.f32 %v11819_v49  ;;  %v2519_v25 = vpop.f32.mrf.mxu3 }
 0x2b0   :  { %v2248_v16 = vadd.f32 %v2247_v9, %v2179_v7 }
 0x2b2   :  { %v2285_v30 = vadd.f32 %v2284_v46, %v2248_v16 }
 0x2b3   :  { %v2325_v37 = vpop.f32.mrf.mxu0 }
 0x2b4   :  { %v2974_v48 = vrot.slane %v2285_v30, 6 }
 0x2b5   :  { %v2426_v10 = vpop.f32.mrf.mxu1  ;;  %v11860_v6 = vpop.eup %11859 }
 0x2b6   :  { %v2982_v45 = vadd.f32 %v2974_v48, %v17950_v54  ;;  %v2427_v9 = vadd.f32 %v2426_v10, %v2325_v37  ;;  %v2988_v52 = vadd.f32 1.0, %v11860_v6 }
 0x2b8   :  { %v11820_v3 = vmul.f32 -1.442695, %v2982_v45  ;;  %v2481_v30 = vadd.f32 %v2480_v55, %v2427_v9  ;;  %vm2994_vm0 = vweird.f32 %v2988_v52 }
 0x2ba   :  { %11861 = vpow2.f32 %v11820_v3  ;;  %v2520_v48 = vadd.f32 %v2519_v25, %v2481_v30 }
 0x2bb   :  { %11863 = vrcp.f32 %v2988_v52 }
 0x2bd   :  { %v2625_v18 = vpop.f32.mrf.mxu1 }
 0x2c0   :  { %v11862_v61 = vpop.eup %11861  ;;  %v2666_v12 = vpop.f32.mrf.mxu2 }
 0x2c1   :  { %v3007_v46 = vadd.f32 1.0, %v11862_v61  ;;  %v11864_v4 = vpop.eup %11863 }
 0x2c2   :  { %v2588_v58 = vpop.f32.mrf.mxu0  ;;  %v2990_v37 = vmul.f32 %v11864_v4, %v2988_v52  ;;  %vm2995_vm14 = vweird.f32 %v11864_v4 }
 0x2c3   :  { %v2767_v31 = vpop.f32.mrf.mxu3  ;;  %11865 = vrcp.f32 %v3007_v46  ;;  %v2589_v3 = vadd.f32 %v2588_v58, %v2520_v48  ;;  %vm3013_vm1 = vweird.f32 %v3007_v46  ;;  %vm2996_vm2 = vmor %vm2994_vm0, %vm2995_vm14 }
 0x2c4   :  { %v2768_v53 = vadd.f32 %v2767_v31, %v2666_v12  ;;  %v2991_v54 = vsub.f32 1.0, %v2990_v37 }
 0x2c5   :  { %v2626_v45 = vadd.f32 %v2625_v18, %v2589_v3  ;;  %v2998_v3 = vand.u32 2147483647, %v2988_v52 }
 0x2c6   :  { %v2992_v31 = vmul.f32 %v11864_v4, %v2991_v54 }
 0x2c7   :  { %v2975_v61 = vrot.slane %v2626_v45, 6  ;;  %vm2999_vm4 = vcmp.eq.f32.partialorder %v2998_v3, 8.507059e+37 }
 0x2c8   :  { %v2993_v18 = vadd.f32 %v11864_v4, %v2992_v31 }
 0x2c9   :  { %v11866_v7 = vpop.eup %11865  ;;  %v2983_v58 = vadd.f32 %v2975_v61, %v13582_v19 }
 0x2ca   :  { %v3009_v10 = vmul.f32 %v11866_v7, %v3007_v46  ;;  %vm3014_vm15 = vweird.f32 %v11866_v7 }
 0x2cb   :  { %vm3015_vm3 = vmor %vm3013_vm1, %vm3014_vm15 }
 0x2cc   :  { %v3010_v24 = vsub.f32 1.0, %v3009_v10 }
 0x2ce   :  { %v3011_v12 = vmul.f32 %v11866_v7, %v3010_v24 }
 0x2d0   :  { %v3012_v48 = vadd.f32 %v11866_v7, %v3011_v12 }
 0x2d2   :  { %v3016_v45 = vsel %vm3015_vm3, %v11866_v7, %v3012_v48  ;;  %v11841_v48 = vld [vmem:[%s16553_s4] ss:$0 sm:$0xff] }
 0x2da   :  { %v2860_v23 = vpop.f32.mrf.mxu1 }
 0x2e2   :  { %v2821_v63 = vpop.f32.mrf.mxu0  ;;  %v2929_v16 = vpop.f32.mrf.mxu2 }
 0x2e3   :  { %v2822_v22 = vadd.f32 %v2821_v63, %v2768_v53  ;;  %v3019_v53 = vand.u32 2147483648, %v3007_v46  ;;  %v3000_v63 = vand.u32 2147483648, %v2988_v52 }
 0x2e4   :  { %v2966_v6 = vpop.f32.mrf.mxu3 }
 0x2e5   :  { %v2861_v60 = vadd.f32 %v2860_v23, %v2822_v22  ;;  %v3017_v22 = vand.u32 2147483647, %v3007_v46  ;;  %v3020_v54 = vor.u32 1.1754944e-38, %v3019_v53 }
 0x2e7   :  { %v2930_v49 = vadd.f32 %v2929_v16, %v2861_v60  ;;  %v2997_v60 = vsel %vm2996_vm2, %v11864_v4, %v2993_v18  ;;  %vm3018_vm5 = vcmp.eq.f32.partialorder %v3017_v22, 8.507059e+37 }
 0x2e8   :  { %v3021_v10 = vsel %vm3018_vm5, %v3020_v54, %v3016_v45  ;;  %v17951_v54 = vld [vmem:[#allocation93_spill] sm:$0xff] }
 0x2e9   :  { %v2967_v55 = vadd.f32 %v2966_v6, %v2930_v49  ;;  %v3001_v49 = vor.u32 1.1754944e-38, %v3000_v63  ;;  %v3044_v6 = vrot.slane %v13586_v13, 6 }
 0x2eb   :  { %v2976_v9 = vrot.slane %v2967_v55, 6  ;;  %v3002_v37 = vsel %vm2999_vm4, %v3001_v49, %v2997_v60  ;;  %v3046_v61 = vmul.f32 %v3044_v6, %v3021_v10  ;;  %v17952_v49 = vld [vmem:[#allocation78_spill] sm:$0xff]  ;;  %v17955_v6 = vld [vmem:[#allocation103_spill] sm:$0xff] }
 0x2ec   :  { %v17954_v10 = vld [vmem:[#allocation82_spill] sm:$0xff] }
 0x2ed   :  { %v2984_v25 = vadd.f32 %v2976_v9, %v13577_v39 }
 0x2ef   :  { %v11821_v30 = vmul.f32 -1.442695, %v2984_v25 }
 0x2f1   :  { %11867 = vpow2.f32 %v11821_v30 }
 0x2f2   :  { %11869 = vtanh.f32 %v2983_v58 }
 0x2f7   :  { %v11868_v23 = vpop.eup %11867 }
 0x2f8   :  { %v3027_v16 = vadd.f32 1.0, %v11868_v23  ;;  %v11870_v24 = vpop.eup %11869 }
 0x2f9   :  { %v3047_v55 = vmul.f32 %v11870_v24, %v3002_v37  ;;  %v17953_v37 = vld [vmem:[#allocation98_spill] sm:$0xff] }
 0x2fa   :  { %11871 = vrcp.f32 %v3027_v16  ;;  %v3039_v4 = vand.u32 2147483648, %v3027_v16  ;;  %v3037_v58 = vand.u32 2147483647, %v3027_v16  ;;  %vm3033_vm7 = vweird.f32 %v3027_v16 }
 0x2fb   :  { %v14018_v52 = vadd.f32 %v3047_v55, %v3046_v61  ;;  %v17956_v55 = vld [vmem:[#allocation87_spill] sm:$0xff]  ;;  %v17957_v61 = vld [vmem:[#allocation106_spill] sm:$0xff] }
 0x2fc   :  { %v3040_v12 = vor.u32 1.1754944e-38, %v3039_v4  ;;  %vm3038_vm9 = vcmp.eq.f32.partialorder %v3037_v58, 8.507059e+37  ;;  %v17961_v4 = vld [vmem:[#allocation114_spill] sm:$0xff]  ;;  %v17963_v58 = vld [vmem:[#allocation119_spill] sm:$0xff] }
 0x2fd   :  { %11873 = vtanh.f32 %v14018_v52 }
 0x300   :  { %v11872_v9 = vpop.eup %11871 }
 0x301   :  { %v3029_v46 = vmul.f32 %v11872_v9, %v3027_v16  ;;  %vm3034_vm6 = vweird.f32 %v11872_v9 }
 0x302   :  { %vm3035_vm8 = vmor %vm3033_vm7, %vm3034_vm6 }
 0x303   :  { %v3030_v25 = vsub.f32 1.0, %v3029_v46  ;;  %v11874_v13 = vpop.eup %11873  ;;  %v17959_v46 = vld [vmem:[#allocation109_spill] sm:$0xff] }
 0x305   :  { %v3031_v7 = vmul.f32 %v11872_v9, %v3030_v25  ;;  %v17960_v25 = vld [vmem:[#allocation96_spill] sm:$0xff] }
 0x307   :  { %v3032_v30 = vadd.f32 %v11872_v9, %v3031_v7  ;;  %v17962_v7 = vld [vmem:[#allocation100_spill] sm:$0xff] }
 0x309   :  { %v3036_v31 = vsel %vm3035_vm8, %v11872_v9, %v3032_v30  ;;  %v17958_v9 = vld [vmem:[#allocation91_spill] sm:$0xff]  ;;  %v17964_v30 = vld [vmem:[#allocation104_spill] sm:$0xff]  ;;  %vm4506_vm8 = vcmask 1045508  }
 0x30a   :  { %v3041_v18 = vsel %vm3038_vm9, %v3040_v12, %v3036_v31  ;;  %v17965_v12 = vld [vmem:[#allocation122_spill] sm:$0xff]  ;;  %v17966_v31 = vld [vmem:[#allocation108_spill] sm:$0xff]  ;;  %vm1601_vm9 = vcmask 1041408  }
 0x30b   :  { %v3050_v53 = vmul.f32 %v11874_v13, %v3041_v18  ;;  %v17967_v13 = vld [vmem:[#allocation124_spill] sm:$0xff] }
 0x30c   :  { %v17968_v18 = vld [vmem:[#allocation112_spill] sm:$0xff] }
 0x30d   :  { %v3051_v63 = vmul.f32 %v11841_v48, %v3050_v53  ;;  %v3057_v3 = vrot.slane %v3050_v53, 2  ;;  %v17969_v48 = vld [vmem:[#allocation150_spill] sm:$0xff] }
 0x30e   :  { %v17970_v53 = vld [vmem:[#allocation126_spill] sm:$0xff] }
 0x30f   :  { %v3053_v22 = vsel %vm3052_vm10, %v3051_v63, 0.0  ;;  %v14025_v23 = vand.u32 4294901760, %v3057_v3  ;;  %v17971_v63 = vld [vmem:[#allocation154_spill] sm:$0xff] }
 0x310   :  { %3054 = vadd.xlane.f32.xlu0 %v3053_v22  ;;  %v17973_v22 = vld [vmem:[#allocation116_spill] sm:$0xff] }
 0x311   :  { %v14028_v60 = vsub.f32 %v3057_v3, %v14025_v23  ;;  %3197 = vmatmul.f32.vlgmr.msrb.gmra.mxu1 %v14025_v23  ;;  %v17972_v3 = vld [vmem:[#allocation133_spill] sm:$0xff] }
 0x312   :  { %3597 = vmatpush.msrb.mxu1 %v17671_v11 }
 0x313   :  { %3251 = vmatmul.f32.vlgmr.msrb.gmra.mxu2 %v14028_v60  ;;  %v14034_v16 = vand.u32 4294901760, %v14028_v60 }
 0x314   :  { %3599 = vmatpush.msrb.mxu1 %v17674_v21  ;;  %3638 = vmatpush.msrb.mxu2 %v17729_v51 }
 0x315   :  { %3290 = vmatmul.f32.vlgmr.msrb.gmra.mxu3 %v14034_v16  ;;  %v3094_v45 = vsub.f32 %v14028_v60, %v14034_v16 }
 0x316   :  { %3601 = vmatpush.msrb.mxu1 %v17676_v2  ;;  %3642 = vmatpush.msrb.mxu2 %v17730_v32 }
 0x317   :  { %3705 = vmatpush.msrb.mxu3 %v17671_v11  ;;  %v14044_v24 = vand.u32 4294901760, %v3094_v45  ;;  %v17974_v45 = vld [vmem:[#allocation158_spill] sm:$0xff] }
 0x318   :  { %3603 = vmatpush.msrb.mxu1 %v17679_v38  ;;  %3646 = vmatpush.msrb.mxu2 %v17731_v44 }
 0x319   :  { %3707 = vmatpush.msrb.mxu3 %v17674_v21  ;;  %3096 = vmatmul.f32.vlgmr.msrb.gmra.mxu0 %v14044_v24 }
 0x31a   :  { %3396 = vmatmul.f32.vlgmr.msra.gmra.mxu1 %v14025_v23  ;;  %3544 = vmatpush.msrb.mxu0 %v17732_v35 }
 0x31b   :  { %3605 = vmatpush.msrb.mxu1 %v17682_v17  ;;  %3650 = vmatpush.msrb.mxu2 %v17733_v43 }
 0x31c   :  { %3709 = vmatpush.msrb.mxu3 %v17676_v2  ;;  %3437 = vmatmul.f32.vlgmr.msra.gmra.mxu2 %v14044_v24 }
 0x31d   :  { %3547 = vmatpush.msrb.mxu0 %v17734_v14  ;;  %3607 = vmatpush.msrb.mxu1 %v17685_v62 }
 0x31e   :  { %3654 = vmatpush.msrb.mxu2 %v17735_v59  ;;  %3711 = vmatpush.msrb.mxu3 %v17679_v38 }
 0x31f   :  { %3538 = vmatmul.f32.vlgmr.msra.gmra.mxu3 %v14025_v23  ;;  %3550 = vmatpush.msrb.mxu0 %v17736_v28 }
 0x320   :  { %3609 = vmatpush.msrb.mxu1 %v17688_v33  ;;  %3658 = vmatpush.msrb.mxu2 %v17737_v0 }
 0x321   :  { %3713 = vmatpush.msrb.mxu3 %v17682_v17  ;;  %3553 = vmatpush.msrb.mxu0 %v17738_v26 }
 0x322   :  { %3611 = vmatpush.msrb.mxu1 %v17691_v40  ;;  %3662 = vmatpush.msrb.mxu2 %v17951_v54 }
 0x323   :  { %3715 = vmatpush.msrb.mxu3 %v17685_v62  ;;  %3359 = vmatmul.f32.vlgmr.msra.gmra.mxu0 %v14025_v23 }
 0x324   :  { %3556 = vmatpush.msrb.mxu0 %v17952_v49  ;;  %3613 = vmatpush.msrb.mxu1 %v17694_v8 }
 0x325   :  { %3666 = vmatpush.msrb.mxu2 %v17953_v37  ;;  %3717 = vmatpush.msrb.mxu3 %v17688_v33 }
 0x326   :  { %3559 = vmatpush.msrb.mxu0 %v17954_v10  ;;  %3615 = vmatpush.msrb.mxu1 %v17697_v1 }
 0x327   :  { %3670 = vmatpush.msrb.mxu2 %v17955_v6  ;;  %3719 = vmatpush.msrb.mxu3 %v17691_v40 }
 0x328   :  { %3562 = vmatpush.msrb.mxu0 %v17956_v55  ;;  %3617 = vmatpush.msrb.mxu1 %v17700_v15 }
 0x329   :  { %3674 = vmatpush.msrb.mxu2 %v17957_v61  ;;  %3721 = vmatpush.msrb.mxu3 %v17694_v8 }
 0x32a   :  { %3565 = vmatpush.msrb.mxu0 %v17958_v9  ;;  %3619 = vmatpush.msrb.mxu1 %v17704_v5  ;;  %v18042_v9 = vld [vmem:[#allocation246_spill] sm:$0xff] }
 0x32b   :  { %3678 = vmatpush.msrb.mxu2 %v17959_v46  ;;  %3723 = vmatpush.msrb.mxu3 %v17697_v1  ;;  %v18027_v46 = vld [vmem:[#allocation229_spill] sm:$0xff] }
 0x32c   :  { %3568 = vmatpush.msrb.mxu0 %v17960_v25  ;;  %3621 = vmatpush.msrb.mxu1 %v17707_v41  ;;  %v18024_v25 = vld [vmem:[#allocation225_spill] sm:$0xff] }
 0x32d   :  { %3682 = vmatpush.msrb.mxu2 %v17961_v4  ;;  %3725 = vmatpush.msrb.mxu3 %v17700_v15  ;;  %v18021_v4 = vld [vmem:[#allocation221_spill] sm:$0xff] }
 0x32e   :  { %3571 = vmatpush.msrb.mxu0 %v17962_v7  ;;  %3623 = vmatpush.msrb.mxu1 %v17711_v29  ;;  %v18019_v7 = vld [vmem:[#allocation194_spill] sm:$0xff] }
 0x32f   :  { %3686 = vmatpush.msrb.mxu2 %v17963_v58  ;;  %3727 = vmatpush.msrb.mxu3 %v17704_v5  ;;  %v18009_v58 = vld [vmem:[#allocation185_spill] sm:$0xff] }
 0x330   :  { %3574 = vmatpush.msrb.mxu0 %v17964_v30  ;;  %3625 = vmatpush.msrb.mxu1 %v17715_v56  ;;  %v18006_v30 = vld [vmem:[#allocation180_spill] sm:$0xff] }
 0x331   :  { %3690 = vmatpush.msrb.mxu2 %v17965_v12  ;;  %3729 = vmatpush.msrb.mxu3 %v17707_v41  ;;  %v18003_v12 = vld [vmem:[#allocation175_spill] sm:$0xff] }
 0x332   :  { %3577 = vmatpush.msrb.mxu0 %v17966_v31  ;;  %3627 = vmatpush.msrb.mxu1 %v17719_v36  ;;  %v18000_v31 = vld [vmem:[#allocation171_spill] sm:$0xff] }
 0x333   :  { %3694 = vmatpush.msrb.mxu2 %v17967_v13  ;;  %3731 = vmatpush.msrb.mxu3 %v17711_v29  ;;  %v17978_v13 = vld [vmem:[#allocation138_spill] sm:$0xff] }
 0x334   :  { %3631 = vmatmul.f32.vlgmr.msrb.gmra.mxu1 %v14034_v16  ;;  %3580 = vmatpush.msrb.mxu0 %v17968_v18  ;;  %v17975_v18 = vld [vmem:[#allocation135_spill] sm:$0xff] }
 0x335   :  { %3787 = vmatpush.msra.mxu1 %v17969_v48  ;;  %3698 = vmatpush.msrb.mxu2 %v17970_v53  ;;  %v17976_v53 = vld [vmem:[#allocation120_spill] sm:$0xff]  ;;  %v17977_v48 = vld [vmem:[#allocation162_spill] sm:$0xff] }
 0x336   :  { %3733 = vmatpush.msrb.mxu3 %v17715_v56  ;;  %3700 = vmatmul.f32.vlgmr.msrb.gmra.mxu2 %v14025_v23 }
 0x337   :  { %3793 = vmatpush.msra.mxu1 %v17971_v63  ;;  %3885 = vmatpush.msra.mxu2 %v17972_v3  ;;  %v17979_v3 = vld [vmem:[#allocation123_spill] sm:$0xff]  ;;  %v17981_v63 = vld [vmem:[#allocation141_spill] sm:$0xff] }
 0x338   :  { %3583 = vmatpush.msrb.mxu0 %v17973_v22  ;;  %3735 = vmatpush.msrb.mxu3 %v17719_v36  ;;  %v17980_v22 = vld [vmem:[#allocation165_spill] sm:$0xff] }
 0x339   :  { %3737 = vmatmul.f32.vlgmr.msrb.gmra.mxu3 %v14025_v23  ;;  %3799 = vmatpush.msra.mxu1 %v17974_v45  ;;  %v17997_v45 = vld [vmem:[#allocation167_spill] sm:$0xff] }
 0x33a   :  { %3888 = vmatpush.msra.mxu2 %v17975_v18  ;;  %3938 = vmatpush.msra.mxu3 %v17764_v34  ;;  %v17982_v18 = vld [vmem:[#allocation169_spill] sm:$0xff] }
 0x33b   :  { %3586 = vmatpush.msrb.mxu0 %v17976_v53  ;;  %3805 = vmatpush.msra.mxu1 %v17977_v48  ;;  %v17983_v53 = vld [vmem:[#allocation145_spill] sm:$0xff]  ;;  %v17994_v48 = vld [vmem:[#allocation163_spill] sm:$0xff] }
 0x33c   :  { %3891 = vmatpush.msra.mxu2 %v17978_v13  ;;  %3940 = vmatpush.msra.mxu3 %v17768_v57  ;;  %v17984_v13 = vld [vmem:[#allocation173_spill] sm:$0xff] }
 0x33d   :  { %3589 = vmatpush.msrb.mxu0 %v17979_v3  ;;  %3811 = vmatpush.msra.mxu1 %v17980_v22  ;;  %v17985_v3 = vld [vmem:[#allocation148_spill] sm:$0xff]  ;;  %v17987_v22 = vld [vmem:[#allocation149_spill] sm:$0xff] }
 0x33e   :  { %3592 = vmatmul.f32.vlgmr.msrb.gmra.mxu0 %v14028_v60  ;;  %3894 = vmatpush.msra.mxu2 %v17981_v63  ;;  %v17986_v63 = vld [vmem:[#allocation177_spill] sm:$0xff] }
 0x33f   :  { %3742 = vmatpush.msra.mxu0 %v17764_v34  ;;  %3942 = vmatpush.msra.mxu3 %v17772_v42 }
 0x340   :  { %3817 = vmatpush.msra.mxu1 %v17982_v18  ;;  %3897 = vmatpush.msra.mxu2 %v17983_v53  ;;  %v17988_v53 = vld [vmem:[#allocation183_spill] sm:$0xff]  ;;  %v17989_v18 = vld [vmem:[#allocation153_spill] sm:$0xff] }
 0x341   :  { %3744 = vmatpush.msra.mxu0 %v17768_v57  ;;  %3944 = vmatpush.msra.mxu3 %v17775_v50 }
 0x342   :  { %3823 = vmatpush.msra.mxu1 %v17984_v13  ;;  %3900 = vmatpush.msra.mxu2 %v17985_v3  ;;  %v17990_v3 = vld [vmem:[#allocation188_spill] sm:$0xff]  ;;  %v17991_v13 = vld [vmem:[#allocation159_spill] sm:$0xff] }
 0x343   :  { %3746 = vmatpush.msra.mxu0 %v17772_v42  ;;  %3946 = vmatpush.msra.mxu3 %v17778_v47 }
 0x344   :  { %3829 = vmatpush.msra.mxu1 %v17986_v63  ;;  %3903 = vmatpush.msra.mxu2 %v17987_v22  ;;  %v17992_v63 = vld [vmem:[#allocation146_spill] sm:$0xff]  ;;  %v17993_v22 = vld [vmem:[#allocation192_spill] sm:$0xff] }
 0x345   :  { %3748 = vmatpush.msra.mxu0 %v17775_v50  ;;  %3948 = vmatpush.msra.mxu3 %v12763_v27 }
 0x346   :  { %3835 = vmatpush.msra.mxu1 %v17988_v53  ;;  %3906 = vmatpush.msra.mxu2 %v17989_v18  ;;  %v17995_v53 = vld [vmem:[#allocation152_spill] sm:$0xff]  ;;  %v17996_v18 = vld [vmem:[#allocation197_spill] sm:$0xff] }
 0x347   :  { %3750 = vmatpush.msra.mxu0 %v17778_v47  ;;  %3950 = vmatpush.msra.mxu3 %v12770_v20 }
 0x348   :  { %3841 = vmatpush.msra.mxu1 %v17990_v3  ;;  %3909 = vmatpush.msra.mxu2 %v17991_v13  ;;  %v17998_v3 = vld [vmem:[#allocation156_spill] sm:$0xff]  ;;  %v17999_v13 = vld [vmem:[#allocation201_spill] sm:$0xff] }
 0x349   :  { %3752 = vmatpush.msra.mxu0 %v12763_v27  ;;  %3952 = vmatpush.msra.mxu3 %v17992_v63 }
 0x34a   :  { %3847 = vmatpush.msra.mxu1 %v17993_v22  ;;  %3912 = vmatpush.msra.mxu2 %v17994_v48  ;;  %v18001_v22 = vld [vmem:[#allocation160_spill] sm:$0xff]  ;;  %v18002_v48 = vld [vmem:[#allocation205_spill] sm:$0xff] }
 0x34b   :  { %3754 = vmatpush.msra.mxu0 %v12770_v20  ;;  %3954 = vmatpush.msra.mxu3 %v17995_v53 }
 0x34c   :  { %3853 = vmatpush.msra.mxu1 %v17996_v18  ;;  %3915 = vmatpush.msra.mxu2 %v17997_v45  ;;  %v18004_v18 = vld [vmem:[#allocation164_spill] sm:$0xff] }
 0x34d   :  { %3756 = vmatpush.msra.mxu0 %v17992_v63  ;;  %3956 = vmatpush.msra.mxu3 %v17998_v3  ;;  %v18005_v45 = vld [vmem:[#allocation208_spill] sm:$0xff] }
 0x34e   :  { %3859 = vmatpush.msra.mxu1 %v17999_v13  ;;  %3918 = vmatpush.msra.mxu2 %v18000_v31  ;;  %v18007_v13 = vld [vmem:[#allocation168_spill] sm:$0xff]  ;;  %v18008_v31 = vld [vmem:[#allocation213_spill] sm:$0xff] }
 0x34f   :  { %3758 = vmatpush.msra.mxu0 %v17995_v53  ;;  %3958 = vmatpush.msra.mxu3 %v18001_v22 }
 0x350   :  { %3865 = vmatpush.msra.mxu1 %v18002_v48  ;;  %3921 = vmatpush.msra.mxu2 %v18003_v12  ;;  %v18010_v48 = vld [vmem:[#allocation172_spill] sm:$0xff]  ;;  %v18011_v12 = vld [vmem:[#allocation190_spill] sm:$0xff] }
 0x351   :  { %3760 = vmatpush.msra.mxu0 %v17998_v3  ;;  %3960 = vmatpush.msra.mxu3 %v18004_v18 }
 0x352   :  { %3871 = vmatpush.msra.mxu1 %v18005_v45  ;;  %3924 = vmatpush.msra.mxu2 %v18006_v30  ;;  %v18012_v30 = vld [vmem:[#allocation176_spill] sm:$0xff] }
 0x353   :  { %3762 = vmatpush.msra.mxu0 %v18001_v22  ;;  %3962 = vmatpush.msra.mxu3 %v18007_v13  ;;  %v18016_v45 = vld [vmem:[#allocation212_spill] sm:$0xff] }
 0x354   :  { %3877 = vmatpush.msra.mxu1 %v18008_v31  ;;  %3927 = vmatpush.msra.mxu2 %v18009_v58  ;;  %v18013_v31 = vld [vmem:[#allocation178_spill] sm:$0xff]  ;;  %v18014_v58 = vld [vmem:[#allocation181_spill] sm:$0xff] }
 0x355   :  { %3764 = vmatpush.msra.mxu0 %v18004_v18  ;;  %3964 = vmatpush.msra.mxu3 %v18010_v48 }
 0x356   :  { %3879 = vmatmul.f32.vlgmr.msra.gmra.mxu1 %v14025_v23  ;;  %3930 = vmatpush.msra.mxu2 %v18011_v12  ;;  %v18015_v12 = vld [vmem:[#allocation182_spill] sm:$0xff] }
 0x357   :  { %4046 = vmatpush.msrb.mxu1 %v17764_v34  ;;  %3766 = vmatpush.msra.mxu0 %v18007_v13  ;;  %v18017_v34 = vld [vmem:[#allocation187_spill] sm:$0xff] }
 0x358   :  { %3966 = vmatpush.msra.mxu3 %v18012_v30  ;;  %3933 = vmatmul.f32.vlgmr.msra.gmra.mxu2 %v14028_v60 }
 0x359   :  { %4048 = vmatpush.msrb.mxu1 %v17768_v57  ;;  %4083 = vmatpush.msrb.mxu2 %v18013_v31  ;;  %v18018_v57 = vld [vmem:[#allocation217_spill] sm:$0xff] }
 0x35a   :  { %3768 = vmatpush.msra.mxu0 %v18010_v48  ;;  %3968 = vmatpush.msra.mxu3 %v18014_v58 }
 0x35b   :  { %3972 = vmatmul.f32.vlgmr.msra.gmra.mxu3 %v14034_v16  ;;  %4050 = vmatpush.msrb.mxu1 %v17772_v42  ;;  %v18020_v42 = vld [vmem:[#allocation137_spill] sm:$0xff] }
 0x35c   :  { %4085 = vmatpush.msrb.mxu2 %v18015_v12  ;;  %4128 = vmatpush.msrb.mxu3 %v18016_v45  ;;  %v18022_v45 = vld [vmem:[#allocation199_spill] sm:$0xff] }
 0x35d   :  { %3770 = vmatpush.msra.mxu0 %v18012_v30  ;;  %4052 = vmatpush.msrb.mxu1 %v17775_v50  ;;  %v18023_v50 = vld [vmem:[#allocation140_spill] sm:$0xff] }
 0x35e   :  { %4087 = vmatpush.msrb.mxu2 %v18017_v34  ;;  %4134 = vmatpush.msrb.mxu3 %v18018_v57  ;;  %v18025_v57 = vld [vmem:[#allocation203_spill] sm:$0xff] }
 0x35f   :  { %3772 = vmatpush.msra.mxu0 %v18014_v58  ;;  %4054 = vmatpush.msrb.mxu1 %v17778_v47  ;;  %v18026_v47 = vld [vmem:[#allocation144_spill] sm:$0xff] }
 0x360   :  { %3778 = vmatmul.f32.vlgmr.msra.gmra.mxu0 %v14044_v24  ;;  %4089 = vmatpush.msrb.mxu2 %v18019_v7 }
 0x361   :  { %3979 = vmatpush.msrb.mxu0 %v18020_v42  ;;  %4140 = vmatpush.msrb.mxu3 %v18021_v4  ;;  %v18028_v42 = vld [vmem:[#allocation207_spill] sm:$0xff] }
 0x362   :  { %4056 = vmatpush.msrb.mxu1 %v12763_v27  ;;  %4091 = vmatpush.msrb.mxu2 %v18022_v45  ;;  %v18029_v4 = vld [vmem:[#allocation147_spill] sm:$0xff]  ;;  %v18030_v27 = vld [vmem:[#allocation232_spill] sm:$0xff] }
 0x363   :  { %3983 = vmatpush.msrb.mxu0 %v18023_v50  ;;  %4146 = vmatpush.msrb.mxu3 %v18024_v25  ;;  %v18031_v50 = vld [vmem:[#allocation211_spill] sm:$0xff] }
 0x364   :  { %4058 = vmatpush.msrb.mxu1 %v12770_v20  ;;  %4093 = vmatpush.msrb.mxu2 %v18025_v57  ;;  %v18032_v25 = vld [vmem:[#allocation151_spill] sm:$0xff]  ;;  %v18033_v20 = vld [vmem:[#allocation236_spill] sm:$0xff] }
 0x365   :  { %3987 = vmatpush.msrb.mxu0 %v18026_v47  ;;  %4152 = vmatpush.msrb.mxu3 %v18027_v46  ;;  %v11_v46 = vstv %s16555_s5  ;;  %v18034_v47 = vld [vmem:[#allocation216_spill] sm:$0xff] }
 0x366   :  { %4060 = vmatpush.msrb.mxu1 %v17992_v63  ;;  %4095 = vmatpush.msrb.mxu2 %v18028_v42  ;;  %12 = vst [vmem:[#allocation2] sm:$0x1] %v11_v46  ;;  %v18040_v63 = vld [vmem:[#allocation224_spill] sm:$0xff] }
 0x367   :  { %3991 = vmatpush.msrb.mxu0 %v18029_v4  ;;  %4158 = vmatpush.msrb.mxu3 %v18030_v27  ;;  %v18035_v4 = vld [vmem:[#allocation155_spill] sm:$0xff]  ;;  %v18043_v46 = vld [vmem:[#allocation228_spill] sm:$0xff] }
 0x368   :  { %4062 = vmatpush.msrb.mxu1 %v17995_v53  ;;  %4097 = vmatpush.msrb.mxu2 %v18031_v50  ;;  %v18036_v27 = vld [vmem:[#allocation239_spill] sm:$0xff]  ;;  %v18037_v53 = vld [vmem:[#allocation220_spill] sm:$0xff] }
 0x369   :  { %3995 = vmatpush.msrb.mxu0 %v18032_v25  ;;  %4164 = vmatpush.msrb.mxu3 %v18033_v20  ;;  %v18038_v25 = vld [vmem:[#allocation157_spill] sm:$0xff]  ;;  %v18039_v20 = vld [vmem:[#allocation243_spill] sm:$0xff] }
 0x36a   :  { %4064 = vmatpush.msrb.mxu1 %v17998_v3  ;;  %4099 = vmatpush.msrb.mxu2 %v18034_v47  ;;  %v18041_v3 = vld [vmem:[#allocation161_spill] sm:$0xff] }
 0x36b   :  { %3999 = vmatpush.msrb.mxu0 %v18035_v4  ;;  %4170 = vmatpush.msrb.mxu3 %v18036_v27  ;;  %v18044_v27 = vld [vmem:[#allocation166_spill] sm:$0xff]  ;;  %v18045_v4 = vld [vmem:[#allocation249_spill] sm:$0xff] }
 0x36c   :  { %4066 = vmatpush.msrb.mxu1 %v18001_v22  ;;  %4101 = vmatpush.msrb.mxu2 %v18037_v53 }
 0x36d   :  { %4003 = vmatpush.msrb.mxu0 %v18038_v25  ;;  %4176 = vmatpush.msrb.mxu3 %v18039_v20  ;;  %v18046_v25 = vld [vmem:[#allocation234_spill] sm:$0xff] }
 0x36e   :  { %4068 = vmatpush.msrb.mxu1 %v18004_v18  ;;  %4103 = vmatpush.msrb.mxu2 %v18040_v63  ;;  %v18047_v20 = vld [vmem:[#allocation170_spill] sm:$0xff]  ;;  %v18048_v18 = vld [vmem:[#allocation253_spill] sm:$0xff] }
 0x36f   :  { %4007 = vmatpush.msrb.mxu0 %v18041_v3  ;;  %4182 = vmatpush.msrb.mxu3 %v18042_v9  ;;  %v18049_v3 = vld [vmem:[#allocation238_spill] sm:$0xff] }
 0x370   :  { %4070 = vmatpush.msrb.mxu1 %v18007_v13  ;;  %4105 = vmatpush.msrb.mxu2 %v18043_v46  ;;  %v18050_v9 = vld [vmem:[#allocation174_spill] sm:$0xff]  ;;  %v18051_v13 = vld [vmem:[#allocation255_spill] sm:$0xff] }
 0x371   :  { %4011 = vmatpush.msrb.mxu0 %v18044_v27  ;;  %4188 = vmatpush.msrb.mxu3 %v18045_v4  ;;  %v18052_v27 = vld [vmem:[#allocation241_spill] sm:$0xff]  ;;  %v18053_v4 = vld [vmem:[#allocation179_spill] sm:$0xff] }
 0x372   :  { %4072 = vmatpush.msrb.mxu1 %v18010_v48  ;;  %4107 = vmatpush.msrb.mxu2 %v18046_v25  ;;  %v18054_v48 = vld [vmem:[#allocation256_spill] sm:$0xff] }
 0x373   :  { %4015 = vmatpush.msrb.mxu0 %v18047_v20  ;;  %4194 = vmatpush.msrb.mxu3 %v18048_v18  ;;  %v18055_v20 = vld [vmem:[#allocation245_spill] sm:$0xff]  ;;  %v18056_v18 = vld [vmem:[#allocation184_spill] sm:$0xff] }
 0x374   :  { %4074 = vmatpush.msrb.mxu1 %v18012_v30  ;;  %4109 = vmatpush.msrb.mxu2 %v18049_v3  ;;  %v18057_v30 = vld [vmem:[#allocation257_spill] sm:$0xff] }
 0x375   :  { %4019 = vmatpush.msrb.mxu0 %v18050_v9  ;;  %4200 = vmatpush.msrb.mxu3 %v18051_v13  ;;  %v18058_v13 = vld [vmem:[#allocation195_spill] sm:$0xff]  ;;  %v18059_v9 = vld [vmem:[#allocation189_spill] sm:$0xff] }
 0x376   :  { %4076 = vmatpush.msrb.mxu1 %v18014_v58  ;;  %4111 = vmatpush.msrb.mxu2 %v18052_v27  ;;  %v18070_v58 = vld [vmem:[#allocation196_spill] sm:$0xff] }
 0x377   :  { %4023 = vmatpush.msrb.mxu0 %v18053_v4  ;;  %4206 = vmatpush.msrb.mxu3 %v18054_v48  ;;  %v18060_v4 = vld [vmem:[#allocation258_spill] sm:$0xff]  ;;  %v18061_v48 = vld [vmem:[#allocation200_spill] sm:$0xff] }
 0x378   :  { %4078 = vmatmul.f32.vlgmr.msrb.gmra.mxu1 %v14025_v23  ;;  %4113 = vmatpush.msrb.mxu2 %v18055_v20 }
 0x379   :  { %4279 = vmatpush.msra.mxu1 %v18013_v31  ;;  %4027 = vmatpush.msrb.mxu0 %v18056_v18  ;;  %v18062_v18 = vld [vmem:[#allocation193_spill] sm:$0xff] }
 0x37a   :  { %4212 = vmatpush.msrb.mxu3 %v18057_v30  ;;  %4119 = vmatmul.f32.vlgmr.msrb.gmra.mxu2 %v14044_v24  ;;  %v18063_v24 = vld [vmem:[#allocation204_spill] sm:$0xff]  ;;  %v18067_v30 = vld [vmem:[#allocation214_spill] sm:$0xff] }
 0x37b   :  { %4281 = vmatpush.msra.mxu1 %v18015_v12  ;;  %4320 = vmatpush.msra.mxu2 %v18058_v13  ;;  %v18064_v13 = vld [vmem:[#allocation198_spill] sm:$0xff] }
 0x37c   :  { %4031 = vmatpush.msrb.mxu0 %v18059_v9  ;;  %4218 = vmatpush.msrb.mxu3 %v18060_v4  ;;  %v18065_v4 = vld [vmem:[#allocation209_spill] sm:$0xff]  ;;  %v11842_v9 = vld [vmem:[#allocation2] ss:$0 sm:$0xff] }
 0x37d   :  { %4220 = vmatmul.f32.vlgmr.msrb.gmra.mxu3 %v14025_v23  ;;  %4283 = vmatpush.msra.mxu1 %v18017_v34 }
 0x37e   :  { %4324 = vmatpush.msra.mxu2 %v18061_v48  ;;  %4387 = vmatpush.msra.mxu3 %v18013_v31  ;;  %v18066_v48 = vld [vmem:[#allocation186_spill] sm:$0xff]  ;;  %v18175_v31 = vld [vmem:[#allocation79_spill] sm:$0xff] }
 0x37f   :  { %4035 = vmatpush.msrb.mxu0 %v18062_v18  ;;  %4285 = vmatpush.msra.mxu1 %v18019_v7 }
 0x380   :  { %4328 = vmatpush.msra.mxu2 %v18063_v24  ;;  %4389 = vmatpush.msra.mxu3 %v18015_v12  ;;  %v18068_v12 = vld [vmem:[#allocation191_spill] sm:$0xff] }
 0x381   :  { %4039 = vmatpush.msrb.mxu0 %v18064_v13  ;;  %4287 = vmatpush.msra.mxu1 %v18022_v45  ;;  %v18069_v13 = vld [vmem:[#allocation218_spill] sm:$0xff] }
 0x382   :  { %4041 = vmatmul.f32.vlgmr.msrb.gmra.mxu0 %v14025_v23  ;;  %4332 = vmatpush.msra.mxu2 %v18065_v4 }
 0x383   :  { %4226 = vmatpush.msra.mxu0 %v18066_v48  ;;  %4391 = vmatpush.msra.mxu3 %v18017_v34  ;;  %v3055_v18 = vpop.xlane.xlu0 %3054  ;;  %v18071_v48 = vld [vmem:[#allocation222_spill] sm:$0xff] }
 0x384   :  { %4289 = vmatpush.msra.mxu1 %v18025_v57  ;;  %4336 = vmatpush.msra.mxu2 %v18067_v30  ;;  %v11762_v24 = vrot.slane %v3055_v18, 2  ;;  %v18072_v18 = vld [vmem:[#allocation202_spill] sm:$0xff]  ;;  %v18099_v30 = vld [vmem:[#allocation9_spill] sm:$0xff] }
 0x385   :  { %4229 = vmatpush.msra.mxu0 %v18068_v12  ;;  %4393 = vmatpush.msra.mxu3 %v18019_v7  ;;  %v18114_v12 = vld [vmem:[#allocation10_spill] sm:$0xff]  ;;  %v18174_v7 = vld [vmem:[#allocation75_spill] sm:$0xff] }
 0x386   :  { %4291 = vmatpush.msra.mxu1 %v18028_v42  ;;  %4340 = vmatpush.msra.mxu2 %v18069_v13  ;;  %v11784_v4 = vadd.f32 %v11842_v9, %v11762_v24  ;;  %v18073_v9 = vld [vmem:[#allocation226_spill] sm:$0xff] }
 0x387   :  { %4232 = vmatpush.msra.mxu0 %v18070_v58  ;;  %4395 = vmatpush.msra.mxu3 %v18022_v45  ;;  %v18074_v24 = vld [vmem:[#allocation206_spill] sm:$0xff]  ;;  %v18098_v58 = vld [vmem:[#allocation251_spill] sm:$0xff] }
 0x388   :  { %4293 = vmatpush.msra.mxu1 %v18031_v50  ;;  %4344 = vmatpush.msra.mxu2 %v18071_v48  ;;  %11793 = vst.msk [vmem:[%s16556_s6 + $0x2] sm:$0x3] %vm11791_vm11, %v11784_v4  ;;  %v18075_v48 = vld [vmem:[#allocation230_spill] sm:$0xff]  ;;  %v18077_v4 = vld [vmem:[#allocation233_spill] sm:$0xff] }
 0x389   :  { %4235 = vmatpush.msra.mxu0 %v18072_v18  ;;  %4397 = vmatpush.msra.mxu3 %v18025_v57  ;;  %v18076_v13 = vld [vmem:[#allocation210_spill] sm:$0xff]  ;;  %v18078_v18 = vld [vmem:[#allocation215_spill] sm:$0xff] }
 0x38a   :  { %4295 = vmatpush.msra.mxu1 %v18034_v47  ;;  %4348 = vmatpush.msra.mxu2 %v18073_v9  ;;  %v18079_v9 = vld [vmem:[#allocation237_spill] sm:$0xff] }
 0x38b   :  { %4238 = vmatpush.msra.mxu0 %v18074_v24  ;;  %4399 = vmatpush.msra.mxu3 %v18028_v42  ;;  %v18080_v24 = vld [vmem:[#allocation219_spill] sm:$0xff] }
 0x38c   :  { %4297 = vmatpush.msra.mxu1 %v18037_v53  ;;  %4352 = vmatpush.msra.mxu2 %v18075_v48  ;;  %v18081_v48 = vld [vmem:[#allocation242_spill] sm:$0xff] }
 0x38d   :  { %4241 = vmatpush.msra.mxu0 %v18076_v13  ;;  %4401 = vmatpush.msra.mxu3 %v18031_v50  ;;  %v18082_v13 = vld [vmem:[#allocation223_spill] sm:$0xff] }
 0x38e   :  { %4299 = vmatpush.msra.mxu1 %v18040_v63  ;;  %4356 = vmatpush.msra.mxu2 %v18077_v4  ;;  %v18083_v4 = vld [vmem:[#allocation247_spill] sm:$0xff] }
 0x38f   :  { %4244 = vmatpush.msra.mxu0 %v18078_v18  ;;  %4403 = vmatpush.msra.mxu3 %v18034_v47  ;;  %v18084_v18 = vld [vmem:[#allocation227_spill] sm:$0xff]  ;;  %v18138_v47 = vld [vmem:[#allocation41_spill] sm:$0xff] }
 0x390   :  { %4301 = vmatpush.msra.mxu1 %v18043_v46  ;;  %4360 = vmatpush.msra.mxu2 %v18079_v9  ;;  %v18085_v9 = vld [vmem:[#allocation250_spill] sm:$0xff] }
 0x391   :  { %4247 = vmatpush.msra.mxu0 %v18080_v24  ;;  %4405 = vmatpush.msra.mxu3 %v18037_v53  ;;  %v18086_v24 = vld [vmem:[#allocation231_spill] sm:$0xff]  ;;  %v18135_v53 = vld [vmem:[#allocation37_spill] sm:$0xff] }
 0x392   :  { %4303 = vmatpush.msra.mxu1 %v18046_v25  ;;  %4364 = vmatpush.msra.mxu2 %v18081_v48  ;;  %v18087_v48 = vld [vmem:[#allocation252_spill] sm:$0xff] }
 0x393   :  { %4250 = vmatpush.msra.mxu0 %v18082_v13  ;;  %4407 = vmatpush.msra.mxu3 %v18040_v63  ;;  %v18088_v13 = vld [vmem:[#allocation235_spill] sm:$0xff]  ;;  %v18132_v63 = vld [vmem:[#allocation36_spill] sm:$0xff] }
 0x394   :  { %4305 = vmatpush.msra.mxu1 %v18049_v3  ;;  %4368 = vmatpush.msra.mxu2 %v18083_v4  ;;  %v18089_v4 = vld [vmem:[#allocation254_spill] sm:$0xff] }
 0x395   :  { %4253 = vmatpush.msra.mxu0 %v18084_v18  ;;  %4409 = vmatpush.msra.mxu3 %v18043_v46  ;;  %v18090_v18 = vld [vmem:[#allocation240_spill] sm:$0xff] }
 0x396   :  { %4307 = vmatpush.msra.mxu1 %v18052_v27  ;;  %4372 = vmatpush.msra.mxu2 %v18085_v9  ;;  %v18091_v9 = vld [vmem:[#allocation25_spill] sm:$0xff]  ;;  %v18129_v46 = vld [vmem:[#allocation32_spill] sm:$0xff] }
 0x397   :  { %4256 = vmatpush.msra.mxu0 %v18086_v24  ;;  %4411 = vmatpush.msra.mxu3 %v18046_v25  ;;  %v18092_v24 = vld [vmem:[#allocation244_spill] sm:$0xff]  ;;  %v18126_v25 = vld [vmem:[#allocation31_spill] sm:$0xff] }
 0x398   :  { %4309 = vmatpush.msra.mxu1 %v18055_v20  ;;  %4376 = vmatpush.msra.mxu2 %v18087_v48  ;;  %v18093_v48 = vld [vmem:[#allocation27_spill] sm:$0xff] }
 0x399   :  { %4259 = vmatpush.msra.mxu0 %v18088_v13  ;;  %4413 = vmatpush.msra.mxu3 %v18049_v3  ;;  %v18094_v13 = vld [vmem:[#allocation248_spill] sm:$0xff] }
 0x39a   :  { %4313 = vmatmul.f32.vlgmr.msra.gmra.mxu1 %v14034_v16  ;;  %4380 = vmatpush.msra.mxu2 %v18089_v4  ;;  %v18095_v16 = vld [vmem:[#allocation5_spill] sm:$0xff]  ;;  %v18123_v3 = vld [vmem:[#allocation24_spill] sm:$0xff] }
 0x39b   :  { %4262 = vmatpush.msra.mxu0 %v18090_v18  ;;  %4415 = vmatpush.msra.mxu3 %v18052_v27  ;;  %v18096_v4 = vld [vmem:[#allocation29_spill] sm:$0xff]  ;;  %v18097_v18 = vld [vmem:[#allocation3_spill] sm:$0xff]  ;;  %v18120_v27 = vld [vmem:[#allocation12_spill] sm:$0xff] }
 0x39c   :  { %4382 = vmatmul.f32.vlgmr.msra.gmra.mxu2 %v14025_v23  ;;  %4559 = vmatpush.msrb.mxu1 %v18091_v9  ;;  %v18100_v9 = vld [vmem:[#allocation33_spill] sm:$0xff] }
 0x39d   :  { %4265 = vmatpush.msra.mxu0 %v18092_v24  ;;  %4417 = vmatpush.msra.mxu3 %v18055_v20  ;;  %v18101_v24 = vld [vmem:[#allocation14_spill] sm:$0xff]  ;;  %v18117_v20 = vld [vmem:[#allocation11_spill] sm:$0xff] }
 0x39e   :  { %4419 = vmatmul.f32.vlgmr.msra.gmra.mxu3 %v14025_v23  ;;  %4565 = vmatpush.msrb.mxu1 %v18093_v48  ;;  %v18102_v23 = vld [vmem:[#allocation4_spill] sm:$0xff]  ;;  %v18103_v48 = vld [vmem:[#allocation38_spill] sm:$0xff] }
 0x39f   :  { %4268 = vmatpush.msra.mxu0 %v18094_v13  ;;  %4657 = vmatpush.msrb.mxu2 %v18095_v16  ;;  %v18104_v13 = vld [vmem:[#allocation15_spill] sm:$0xff]  ;;  %v18111_v16 = vld [vmem:[#allocation8_spill] sm:$0xff] }
 0x3a0   :  { %4571 = vmatpush.msrb.mxu1 %v18096_v4  ;;  %4710 = vmatpush.msrb.mxu3 %v18097_v18  ;;  %v18105_v4 = vld [vmem:[#allocation6_spill] sm:$0xff] }
 0x3a1   :  { %4271 = vmatpush.msra.mxu0 %v18098_v58  ;;  %4660 = vmatpush.msrb.mxu2 %v18099_v30  ;;  %v18106_v58 = vld [vmem:[#allocation42_spill] sm:$0xff]  ;;  %v18107_v30 = vld [vmem:[#allocation16_spill] sm:$0xff] }
 0x3a2   :  { %4274 = vmatmul.f32.vlgmr.msra.gmra.mxu0 %v14028_v60  ;;  %4577 = vmatpush.msrb.mxu1 %v18100_v9  ;;  %v18108_v60 = vld [vmem:[#allocation7_spill] sm:$0xff]  ;;  %v18109_v9 = vld [vmem:[#allocation46_spill] sm:$0xff] }
 0x3a3   :  { %4663 = vmatpush.msrb.mxu2 %v18101_v24  ;;  %4712 = vmatpush.msrb.mxu3 %v18102_v23  ;;  %v18110_v24 = vld [vmem:[#allocation18_spill] sm:$0xff] }
 0x3a4   :  { %4514 = vmatpush.msrb.mxu0 %v18097_v18  ;;  %4583 = vmatpush.msrb.mxu1 %v18103_v48  ;;  %v18112_v48 = vld [vmem:[#allocation51_spill] sm:$0xff] }
 0x3a5   :  { %4666 = vmatpush.msrb.mxu2 %v18104_v13  ;;  %4714 = vmatpush.msrb.mxu3 %v18105_v4  ;;  %v18113_v13 = vld [vmem:[#allocation19_spill] sm:$0xff] }
 0x3a6   :  { %4516 = vmatpush.msrb.mxu0 %v18102_v23  ;;  %4589 = vmatpush.msrb.mxu1 %v18106_v58  ;;  %v18115_v58 = vld [vmem:[#allocation55_spill] sm:$0xff] }
 0x3a7   :  { %4669 = vmatpush.msrb.mxu2 %v18107_v30  ;;  %4716 = vmatpush.msrb.mxu3 %v18108_v60  ;;  %v18116_v30 = vld [vmem:[#allocation26_spill] sm:$0xff] }
 0x3a8   :  { %4518 = vmatpush.msrb.mxu0 %v18105_v4  ;;  %4595 = vmatpush.msrb.mxu1 %v18109_v9  ;;  %v18118_v9 = vld [vmem:[#allocation60_spill] sm:$0xff] }
 0x3a9   :  { %4672 = vmatpush.msrb.mxu2 %v18110_v24  ;;  %4718 = vmatpush.msrb.mxu3 %v18111_v16  ;;  %v18119_v24 = vld [vmem:[#allocation30_spill] sm:$0xff] }
 0x3aa   :  { %4520 = vmatpush.msrb.mxu0 %v18108_v60  ;;  %4601 = vmatpush.msrb.mxu1 %v18112_v48  ;;  %v18121_v48 = vld [vmem:[#allocation63_spill] sm:$0xff] }
 0x3ab   :  { %4675 = vmatpush.msrb.mxu2 %v18113_v13  ;;  %4720 = vmatpush.msrb.mxu3 %v18114_v12  ;;  %v18122_v13 = vld [vmem:[#allocation35_spill] sm:$0xff] }
 0x3ac   :  { %4522 = vmatpush.msrb.mxu0 %v18111_v16  ;;  %4607 = vmatpush.msrb.mxu1 %v18115_v58  ;;  %v18124_v58 = vld [vmem:[#allocation68_spill] sm:$0xff] }
 0x3ad   :  { %4678 = vmatpush.msrb.mxu2 %v18116_v30  ;;  %4722 = vmatpush.msrb.mxu3 %v18117_v20  ;;  %v18125_v30 = vld [vmem:[#allocation40_spill] sm:$0xff] }
 0x3ae   :  { %4524 = vmatpush.msrb.mxu0 %v18114_v12  ;;  %4613 = vmatpush.msrb.mxu1 %v18118_v9  ;;  %v18127_v9 = vld [vmem:[#allocation72_spill] sm:$0xff] }
 0x3af   :  { %4681 = vmatpush.msrb.mxu2 %v18119_v24  ;;  %4724 = vmatpush.msrb.mxu3 %v18120_v27  ;;  %v18128_v24 = vld [vmem:[#allocation44_spill] sm:$0xff] }
 0x3b0   :  { %4526 = vmatpush.msrb.mxu0 %v18117_v20  ;;  %4619 = vmatpush.msrb.mxu1 %v18121_v48  ;;  %v18130_v48 = vld [vmem:[#allocation76_spill] sm:$0xff] }
 0x3b1   :  { %4684 = vmatpush.msrb.mxu2 %v18122_v13  ;;  %4726 = vmatpush.msrb.mxu3 %v18123_v3  ;;  %v18131_v13 = vld [vmem:[#allocation45_spill] sm:$0xff] }
 0x3b2   :  { %4528 = vmatpush.msrb.mxu0 %v18120_v27  ;;  %4625 = vmatpush.msrb.mxu1 %v18124_v58  ;;  %v18133_v58 = vld [vmem:[#allocation80_spill] sm:$0xff] }
 0x3b3   :  { %4687 = vmatpush.msrb.mxu2 %v18125_v30  ;;  %4728 = vmatpush.msrb.mxu3 %v18126_v25  ;;  %v18134_v30 = vld [vmem:[#allocation49_spill] sm:$0xff] }
 0x3b4   :  { %4530 = vmatpush.msrb.mxu0 %v18123_v3  ;;  %4631 = vmatpush.msrb.mxu1 %v18127_v9  ;;  %v18136_v9 = vld [vmem:[#allocation85_spill] sm:$0xff] }
 0x3b5   :  { %4690 = vmatpush.msrb.mxu2 %v18128_v24  ;;  %4730 = vmatpush.msrb.mxu3 %v18129_v46  ;;  %v18137_v24 = vld [vmem:[#allocation56_spill] sm:$0xff] }
 0x3b6   :  { %4532 = vmatpush.msrb.mxu0 %v18126_v25  ;;  %4637 = vmatpush.msrb.mxu1 %v18130_v48  ;;  %v18139_v48 = vld [vmem:[#allocation61_spill] sm:$0xff] }
 0x3b7   :  { %4693 = vmatpush.msrb.mxu2 %v18131_v13  ;;  %4732 = vmatpush.msrb.mxu3 %v18132_v63  ;;  %v18140_v13 = vld [vmem:[#allocation48_spill] sm:$0xff] }
 0x3b8   :  { %4534 = vmatpush.msrb.mxu0 %v18129_v46  ;;  %4643 = vmatpush.msrb.mxu1 %v18133_v58  ;;  %v18141_v58 = vld [vmem:[#allocation53_spill] sm:$0xff] }
 0x3b9   :  { %4696 = vmatpush.msrb.mxu2 %v18134_v30  ;;  %4734 = vmatpush.msrb.mxu3 %v18135_v53  ;;  %v18145_v30 = vld [vmem:[#allocation92_spill] sm:$0xff] }
 0x3ba   :  { %4536 = vmatpush.msrb.mxu0 %v18132_v63  ;;  %4649 = vmatpush.msrb.mxu1 %v18136_v9  ;;  %v18142_v9 = vld [vmem:[#allocation83_spill] sm:$0xff] }
 0x3bb   :  { %4699 = vmatpush.msrb.mxu2 %v18137_v24  ;;  %4736 = vmatpush.msrb.mxu3 %v18138_v47  ;;  %v18144_v24 = vld [vmem:[#allocation13_spill] sm:$0xff] }
 0x3bc   :  { %4818 = vmatpush.msra.mxu1 %v18097_v18  ;;  %4538 = vmatpush.msrb.mxu0 %v18135_v53 }
 0x3bd   :  { %4702 = vmatpush.msrb.mxu2 %v18139_v48  ;;  %4738 = vmatpush.msrb.mxu3 %v18140_v13  ;;  %v18143_v48 = vld [vmem:[#allocation88_spill] sm:$0xff] }
 0x3be   :  { %4820 = vmatpush.msra.mxu1 %v18102_v23  ;;  %4540 = vmatpush.msrb.mxu0 %v18138_v47 }
 0x3bf   :  { %4855 = vmatpush.msra.mxu2 %v17671_v11  ;;  %4740 = vmatpush.msrb.mxu3 %v18141_v58 }
 0x3c0   :  { %4822 = vmatpush.msra.mxu1 %v18105_v4  ;;  %4542 = vmatpush.msrb.mxu0 %v18140_v13  ;;  %v18146_v4 = vld [vmem:[#allocation17_spill] sm:$0xff] }
 0x3c1   :  { %4857 = vmatpush.msra.mxu2 %v17674_v21  ;;  %4900 = vmatpush.msra.mxu3 %v18142_v9  ;;  %v18147_v9 = vld [vmem:[#allocation95_spill] sm:$0xff] }
 0x3c2   :  { %4824 = vmatpush.msra.mxu1 %v18108_v60  ;;  %4544 = vmatpush.msrb.mxu0 %v18141_v58  ;;  %v18148_v60 = vld [vmem:[#allocation20_spill] sm:$0xff] }
 0x3c3   :  { %4859 = vmatpush.msra.mxu2 %v17676_v2  ;;  %4906 = vmatpush.msra.mxu3 %v18143_v48  ;;  %v18150_v48 = vld [vmem:[#allocation21_spill] sm:$0xff] }
 0x3c4   :  { %4751 = vmatpush.msra.mxu0 %v18144_v24  ;;  %4826 = vmatpush.msra.mxu1 %v18111_v16  ;;  %v18149_v24 = vld [vmem:[#allocation99_spill] sm:$0xff] }
 0x3c5   :  { %4861 = vmatpush.msra.mxu2 %v17679_v38  ;;  %4912 = vmatpush.msra.mxu3 %v18145_v30  ;;  %v18152_v30 = vld [vmem:[#allocation22_spill] sm:$0xff] }
 0x3c6   :  { %4755 = vmatpush.msra.mxu0 %v18146_v4  ;;  %4828 = vmatpush.msra.mxu1 %v18114_v12  ;;  %v18151_v4 = vld [vmem:[#allocation102_spill] sm:$0xff] }
 0x3c7   :  { %4863 = vmatpush.msra.mxu2 %v17682_v17  ;;  %4918 = vmatpush.msra.mxu3 %v18147_v9  ;;  %v18154_v9 = vld [vmem:[#allocation23_spill] sm:$0xff] }
 0x3c8   :  { %4759 = vmatpush.msra.mxu0 %v18148_v60  ;;  %4830 = vmatpush.msra.mxu1 %v18117_v20  ;;  %v18153_v60 = vld [vmem:[#allocation105_spill] sm:$0xff] }
 0x3c9   :  { %4865 = vmatpush.msra.mxu2 %v17685_v62  ;;  %4924 = vmatpush.msra.mxu3 %v18149_v24  ;;  %v18156_v24 = vld [vmem:[#allocation28_spill] sm:$0xff] }
 0x3ca   :  { %4763 = vmatpush.msra.mxu0 %v18150_v48  ;;  %4832 = vmatpush.msra.mxu1 %v18120_v27  ;;  %v18155_v48 = vld [vmem:[#allocation111_spill] sm:$0xff] }
 0x3cb   :  { %4867 = vmatpush.msra.mxu2 %v17688_v33  ;;  %4930 = vmatpush.msra.mxu3 %v18151_v4  ;;  %v18158_v4 = vld [vmem:[#allocation34_spill] sm:$0xff] }
 0x3cc   :  { %4767 = vmatpush.msra.mxu0 %v18152_v30  ;;  %4834 = vmatpush.msra.mxu1 %v18123_v3  ;;  %v18157_v30 = vld [vmem:[#allocation115_spill] sm:$0xff] }
 0x3cd   :  { %4869 = vmatpush.msra.mxu2 %v17691_v40  ;;  %4936 = vmatpush.msra.mxu3 %v18153_v60  ;;  %v18160_v60 = vld [vmem:[#allocation39_spill] sm:$0xff] }
 0x3ce   :  { %4771 = vmatpush.msra.mxu0 %v18154_v9  ;;  %4836 = vmatpush.msra.mxu1 %v18126_v25  ;;  %v18159_v9 = vld [vmem:[#allocation118_spill] sm:$0xff] }
 0x3cf   :  { %4871 = vmatpush.msra.mxu2 %v17694_v8  ;;  %4942 = vmatpush.msra.mxu3 %v18155_v48  ;;  %v18162_v48 = vld [vmem:[#allocation43_spill] sm:$0xff] }
 0x3d0   :  { %4775 = vmatpush.msra.mxu0 %v18156_v24  ;;  %4838 = vmatpush.msra.mxu1 %v18129_v46  ;;  %v18161_v24 = vld [vmem:[#allocation121_spill] sm:$0xff] }
 0x3d1   :  { %4873 = vmatpush.msra.mxu2 %v17697_v1  ;;  %4948 = vmatpush.msra.mxu3 %v18157_v30  ;;  %v18164_v30 = vld [vmem:[#allocation47_spill] sm:$0xff] }
 0x3d2   :  { %4779 = vmatpush.msra.mxu0 %v18158_v4  ;;  %4840 = vmatpush.msra.mxu1 %v18132_v63  ;;  %v18163_v4 = vld [vmem:[#allocation125_spill] sm:$0xff]  ;;  %v3252_v63 = vpop.f32.mrf.mxu2 }
 0x3d3   :  { %4875 = vmatpush.msra.mxu2 %v17700_v15  ;;  %4954 = vmatpush.msra.mxu3 %v18159_v9  ;;  %v18166_v9 = vld [vmem:[#allocation52_spill] sm:$0xff] }
 0x3d4   :  { %4783 = vmatpush.msra.mxu0 %v18160_v60  ;;  %4842 = vmatpush.msra.mxu1 %v18135_v53  ;;  %v18165_v60 = vld [vmem:[#allocation127_spill] sm:$0xff]  ;;  %v3291_v53 = vpop.f32.mrf.mxu3 }
 0x3d5   :  { %4877 = vmatpush.msra.mxu2 %v17704_v5  ;;  %4960 = vmatpush.msra.mxu3 %v18161_v24  ;;  %v18168_v24 = vld [vmem:[#allocation54_spill] sm:$0xff] }
 0x3d6   :  { %4787 = vmatpush.msra.mxu0 %v18162_v48  ;;  %4844 = vmatpush.msra.mxu1 %v18138_v47  ;;  %v18167_v48 = vld [vmem:[#allocation128_spill] sm:$0xff]  ;;  %v18171_v47 = vld [vmem:[#allocation130_spill] sm:$0xff] }
 0x3d7   :  { %4879 = vmatpush.msra.mxu2 %v17707_v41  ;;  %4966 = vmatpush.msra.mxu3 %v18163_v4  ;;  %v18169_v4 = vld [vmem:[#allocation129_spill] sm:$0xff] }
 0x3d8   :  { %4791 = vmatpush.msra.mxu0 %v18164_v30  ;;  %4846 = vmatpush.msra.mxu1 %v18140_v13  ;;  %v3097_v30 = vpop.f32.mrf.mxu0  ;;  %v18170_v13 = vld [vmem:[#allocation58_spill] sm:$0xff] }
 0x3d9   :  { %4881 = vmatpush.msra.mxu2 %v17711_v29  ;;  %4972 = vmatpush.msra.mxu3 %v18165_v60  ;;  %v18172_v60 = vld [vmem:[#allocation64_spill] sm:$0xff] }
 0x3da   :  { %4795 = vmatpush.msra.mxu0 %v18166_v9  ;;  %4848 = vmatpush.msra.mxu1 %v18141_v58  ;;  %v18173_v9 = vld [vmem:[#allocation69_spill] sm:$0xff]  ;;  %v3198_v58 = vpop.f32.mrf.mxu1  ;;  %v3438_v3 = vpop.f32.mrf.mxu2 }
 0x3db   :  { %4883 = vmatpush.msra.mxu2 %v17715_v56  ;;  %4978 = vmatpush.msra.mxu3 %v18167_v48 }
 0x3dc   :  { %4799 = vmatpush.msra.mxu0 %v18168_v24  ;;  %v3539_v25 = vpop.f32.mrf.mxu3  ;;  %v3199_v24 = vadd.f32 %v3198_v58, %v3097_v30 }
 0x3dd   :  { %4885 = vmatpush.msra.mxu2 %v17719_v36  ;;  %4984 = vmatpush.msra.mxu3 %v18169_v4  ;;  %v3540_v20 = vadd.f32 %v3539_v25, %v3438_v3 }
 0x3de   :  { %4803 = vmatpush.msra.mxu0 %v18170_v13  ;;  %v3253_v12 = vadd.f32 %v3252_v63, %v3199_v24 }
 0x3df   :  { %4990 = vmatpush.msra.mxu3 %v18171_v47 }
 0x3e0   :  { %4807 = vmatpush.msra.mxu0 %v18172_v60  ;;  %v3360_v46 = vpop.f32.mrf.mxu0  ;;  %v3292_v23 = vadd.f32 %v3291_v53, %v3253_v12 }
 0x3e2   :  { %4811 = vmatpush.msra.mxu0 %v18173_v9  ;;  %v3397_v48 = vpop.f32.mrf.mxu1  ;;  %v3361_v47 = vadd.f32 %v3360_v46, %v3292_v23  ;;  %v3701_v18 = vpop.f32.mrf.mxu2 }
 0x3e4   :  { %v3398_v50 = vadd.f32 %v3397_v48, %v3361_v47  ;;  %v3738_v9 = vpop.f32.mrf.mxu3 }
 0x3e6   :  { %v4427_v57 = vrot.slane %v3398_v50, 4 }
 0x3e8   :  { %v3593_v27 = vpop.f32.mrf.mxu0  ;;  %v4435_v34 = vadd.f32 %v4427_v57, %v18174_v7 }
 0x3e9   :  { %v3594_v4 = vadd.f32 %v3593_v27, %v3540_v20 }
 0x3ea   :  { %v3632_v16 = vpop.f32.mrf.mxu1  ;;  %v11822_v30 = vmul.f32 -1.442695, %v4435_v34  ;;  %v3934_v25 = vpop.f32.mrf.mxu2 }
 0x3eb   :  { %v3633_v13 = vadd.f32 %v3632_v16, %v3594_v4 }
 0x3ec   :  { %11875 = vpow2.f32 %v11822_v30  ;;  %v3973_v12 = vpop.f32.mrf.mxu3 }
 0x3ed   :  { %v3702_v60 = vadd.f32 %v3701_v18, %v3633_v13 }
 0x3ef   :  { %v3739_v42 = vadd.f32 %v3738_v9, %v3702_v60 }
 0x3f0   :  { %v3779_v20 = vpop.f32.mrf.mxu0 }
 0x3f1   :  { %v4428_v45 = vrot.slane %v3739_v42, 4 }
 0x3f2   :  { %v3880_v27 = vpop.f32.mrf.mxu1  ;;  %v11876_v53 = vpop.eup %11875 }
 0x3f3   :  { %v4436_v58 = vadd.f32 %v4428_v45, %v18175_v31  ;;  %v3881_v13 = vadd.f32 %v3880_v27, %v3779_v20  ;;  %v4442_v47 = vadd.f32 1.0, %v11876_v53 }
 0x3f5   :  { %v11823_v22 = vmul.f32 -1.442695, %v4436_v58  ;;  %v3935_v42 = vadd.f32 %v3934_v25, %v3881_v13  ;;  %vm4448_vm14 = vweird.f32 %v4442_v47 }
 0x3f7   :  { %11877 = vpow2.f32 %v11823_v22  ;;  %v3974_v34 = vadd.f32 %v3973_v12, %v3935_v42 }
 0x3f8   :  { %11879 = vrcp.f32 %v4442_v47 }
 0x3fa   :  { %v4079_v50 = vpop.f32.mrf.mxu1 }
 0x3fd   :  { %v11878_v63 = vpop.eup %11877  ;;  %v4120_v57 = vpop.f32.mrf.mxu2 }
 0x3fe   :  { %v4461_v3 = vadd.f32 1.0, %v11878_v63  ;;  %v11880_v24 = vpop.eup %11879 }
 0x3ff   :  { %v4042_v48 = vpop.f32.mrf.mxu0  ;;  %v4444_v20 = vmul.f32 %v11880_v24, %v4442_v47  ;;  %vm4449_vm12 = vweird.f32 %v11880_v24 }
 0x400   :  { %v4221_v46 = vpop.f32.mrf.mxu3  ;;  %11881 = vrcp.f32 %v4461_v3  ;;  %v4043_v22 = vadd.f32 %v4042_v48, %v3974_v34  ;;  %vm4467_vm15 = vweird.f32 %v4461_v3  ;;  %vm4450_vm0 = vmor %vm4448_vm14, %vm4449_vm12 }
 0x401   :  { %v4222_v45 = vadd.f32 %v4221_v46, %v4120_v57  ;;  %v4445_v31 = vsub.f32 1.0, %v4444_v20 }
 0x402   :  { %v4080_v58 = vadd.f32 %v4079_v50, %v4043_v22  ;;  %v4452_v22 = vand.u32 2147483647, %v4442_v47 }
 0x403   :  { %v4446_v46 = vmul.f32 %v11880_v24, %v4445_v31 }
 0x404   :  { %v4429_v63 = vrot.slane %v4080_v58, 4  ;;  %vm4453_vm2 = vcmp.eq.f32.partialorder %v4452_v22, 8.507059e+37 }
 0x405   :  { %v4447_v50 = vadd.f32 %v11880_v24, %v4446_v46 }
 0x406   :  { %v11882_v16 = vpop.eup %11881  ;;  %v4437_v48 = vadd.f32 %v4429_v63, %v13582_v19 }
 0x407   :  { %v4463_v27 = vmul.f32 %v11882_v16, %v4461_v3  ;;  %vm4468_vm13 = vweird.f32 %v11882_v16 }
 0x408   :  { %vm4469_vm1 = vmor %vm4467_vm15, %vm4468_vm13 }
 0x409   :  { %v4464_v7 = vsub.f32 1.0, %v4463_v27 }
 0x40b   :  { %v4465_v57 = vmul.f32 %v11882_v16, %v4464_v7 }
 0x40d   :  { %v4466_v34 = vadd.f32 %v11882_v16, %v4465_v57 }
 0x40f   :  { %v4470_v58 = vsel %vm4469_vm1, %v11882_v16, %v4466_v34 }
 0x417   :  { %v4314_v4 = vpop.f32.mrf.mxu1 }
 0x41f   :  { %v4275_v18 = vpop.f32.mrf.mxu0  ;;  %v4383_v60 = vpop.f32.mrf.mxu2 }
 0x420   :  { %v4276_v9 = vadd.f32 %v4275_v18, %v4222_v45  ;;  %v4473_v45 = vand.u32 2147483648, %v4461_v3  ;;  %v4454_v18 = vand.u32 2147483648, %v4442_v47 }
 0x421   :  { %v4420_v53 = vpop.f32.mrf.mxu3 }
 0x422   :  { %v4315_v23 = vadd.f32 %v4314_v4, %v4276_v9  ;;  %v4471_v9 = vand.u32 2147483647, %v4461_v3  ;;  %v4474_v31 = vor.u32 1.1754944e-38, %v4473_v45  ;;  %v11971_v45 = vld [vmem:[%s16553_s4] ss:$0 sm:$0xff] }
 0x424   :  { %v4384_v30 = vadd.f32 %v4383_v60, %v4315_v23  ;;  %v4451_v23 = vsel %vm4450_vm0, %v11880_v24, %v4447_v50  ;;  %vm4472_vm3 = vcmp.eq.f32.partialorder %v4471_v9, 8.507059e+37 }
 0x425   :  { %v4475_v27 = vsel %vm4472_vm3, %v4474_v31, %v4470_v58  ;;  %v18176_v58 = vld [vmem:[#allocation84_spill] sm:$0xff] }
 0x426   :  { %v4421_v25 = vadd.f32 %v4420_v53, %v4384_v30  ;;  %v4455_v30 = vor.u32 1.1754944e-38, %v4454_v18  ;;  %v4498_v53 = vrot.slane %v14018_v52, 6 }
 0x428   :  { %v4430_v13 = vrot.slane %v4421_v25, 4  ;;  %v4456_v20 = vsel %vm4453_vm2, %v4455_v30, %v4451_v23  ;;  %v4500_v63 = vmul.f32 %v4498_v53, %v4475_v27  ;;  %v18177_v27 = vld [vmem:[#allocation91_spill] sm:$0xff]  ;;  %v18178_v53 = vld [vmem:[#allocation109_spill] sm:$0xff] }
 0x42a   :  { %v4438_v12 = vadd.f32 %v4430_v13, %v13577_v39 }
 0x42c   :  { %v11824_v42 = vmul.f32 -1.442695, %v4438_v12 }
 0x42e   :  { %11883 = vpow2.f32 %v11824_v42 }
 0x42f   :  { %11885 = vtanh.f32 %v4437_v48 }
 0x434   :  { %v11884_v4 = vpop.eup %11883 }
 0x435   :  { %v4481_v60 = vadd.f32 1.0, %v11884_v4  ;;  %v11886_v7 = vpop.eup %11885 }
 0x436   :  { %v4501_v25 = vmul.f32 %v11886_v7, %v4456_v20  ;;  %v1600_v7 = vmul.f32 %v11971_v45, %v18176_v58  ;;  %v18197_v58 = vld [vmem:[#allocation162_spill] sm:$0xff] }
 0x437   :  { %11887 = vrcp.f32 %v4481_v60  ;;  %v4493_v24 = vand.u32 2147483648, %v4481_v60  ;;  %v4491_v48 = vand.u32 2147483647, %v4481_v60  ;;  %vm4487_vm5 = vweird.f32 %v4481_v60 }
 0x438   :  { %v14457_v47 = vadd.f32 %v4501_v25, %v4500_v63  ;;  %v1602_v20 = vsel %vm1601_vm9, %v1600_v7, 0.0  ;;  %v18179_v25 = vld [vmem:[#allocation96_spill] sm:$0xff]  ;;  %v18180_v63 = vld [vmem:[#allocation114_spill] sm:$0xff] }
 0x439   :  { %v4494_v57 = vor.u32 1.1754944e-38, %v4493_v24  ;;  %vm4492_vm7 = vcmp.eq.f32.partialorder %v4491_v48, 8.507059e+37  ;;  %v18184_v24 = vld [vmem:[#allocation122_spill] sm:$0xff]  ;;  %v18186_v48 = vld [vmem:[#allocation124_spill] sm:$0xff] }
 0x43a   :  { %11889 = vtanh.f32 %v14457_v47  ;;  %v18198_v7 = vld [vmem:[#allocation138_spill] sm:$0xff] }
 0x43d   :  { %v11888_v13 = vpop.eup %11887 }
 0x43e   :  { %v4483_v3 = vmul.f32 %v11888_v13, %v4481_v60  ;;  %vm4488_vm4 = vweird.f32 %v11888_v13 }
 0x43f   :  { %vm4489_vm6 = vmor %vm4487_vm5, %vm4488_vm4 }
 0x440   :  { %v4484_v12 = vsub.f32 1.0, %v4483_v3  ;;  %v11890_v52 = vpop.eup %11889  ;;  %v18182_v3 = vld [vmem:[#allocation119_spill] sm:$0xff] }
 0x442   :  { %v4485_v16 = vmul.f32 %v11888_v13, %v4484_v12  ;;  %v18183_v12 = vld [vmem:[#allocation104_spill] sm:$0xff] }
 0x444   :  { %v4486_v42 = vadd.f32 %v11888_v13, %v4485_v16  ;;  %v18185_v16 = vld [vmem:[#allocation108_spill] sm:$0xff] }
 0x446   :  { %v4490_v46 = vsel %vm4489_vm6, %v11888_v13, %v4486_v42  ;;  %v18181_v13 = vld [vmem:[#allocation100_spill] sm:$0xff]  ;;  %v18187_v42 = vld [vmem:[#allocation150_spill] sm:$0xff] }
 0x447   :  { %v4495_v50 = vsel %vm4492_vm7, %v4494_v57, %v4490_v46  ;;  %v18188_v57 = vld [vmem:[#allocation112_spill] sm:$0xff]  ;;  %v18189_v46 = vld [vmem:[#allocation126_spill] sm:$0xff] }
 0x448   :  { %v4504_v34 = vmul.f32 %v11890_v52, %v4495_v50  ;;  %v18190_v52 = vld [vmem:[#allocation154_spill] sm:$0xff]  ;;  %v18191_v50 = vld [vmem:[#allocation133_spill] sm:$0xff] }
 0x44a   :  { %v4505_v18 = vmul.f32 %v11971_v45, %v4504_v34  ;;  %v4511_v22 = vrot.slane %v4504_v34, 4  ;;  %v18192_v34 = vld [vmem:[#allocation116_spill] sm:$0xff]  ;;  %v18193_v45 = vld [vmem:[#allocation158_spill] sm:$0xff] }
 0x44c   :  { %v4507_v9 = vsel %vm4506_vm8, %v4505_v18, 0.0  ;;  %v14464_v4 = vand.u32 4294901760, %v4511_v22  ;;  %v18194_v18 = vld [vmem:[#allocation135_spill] sm:$0xff] }
 0x44d   :  { %4508 = vadd.xlane.f32.xlu0 %v4507_v9  ;;  %v18196_v9 = vld [vmem:[#allocation120_spill] sm:$0xff] }
 0x44e   :  { %v14467_v23 = vsub.f32 %v4511_v22, %v14464_v4  ;;  %4651 = vmatmul.f32.vlgmr.msrb.gmra.mxu1 %v14464_v4  ;;  %v18195_v22 = vld [vmem:[#allocation131_spill] sm:$0xff] }
 0x44f   :  { %5051 = vmatpush.msrb.mxu1 %v17671_v11 }
 0x450   :  { %4705 = vmatmul.f32.vlgmr.msrb.gmra.mxu2 %v14467_v23  ;;  %v14473_v60 = vand.u32 4294901760, %v14467_v23 }
 0x451   :  { %5053 = vmatpush.msrb.mxu1 %v17674_v21  ;;  %5092 = vmatpush.msrb.mxu2 %v17729_v51 }
 0x452   :  { %4744 = vmatmul.f32.vlgmr.msrb.gmra.mxu3 %v14473_v60  ;;  %v4548_v31 = vsub.f32 %v14467_v23, %v14473_v60 }
 0x453   :  { %5055 = vmatpush.msrb.mxu1 %v17676_v2  ;;  %5096 = vmatpush.msrb.mxu2 %v17730_v32 }
 0x454   :  { %5159 = vmatpush.msrb.mxu3 %v17671_v11  ;;  %v14484_v30 = vand.u32 4294901760, %v4548_v31  ;;  %v18199_v31 = vld [vmem:[#allocation132_spill] sm:$0xff] }
 0x455   :  { %5057 = vmatpush.msrb.mxu1 %v17679_v38  ;;  %5100 = vmatpush.msrb.mxu2 %v17731_v44 }
 0x456   :  { %5161 = vmatpush.msrb.mxu3 %v17674_v21  ;;  %1603 = vadd.xlane.f32.xlu0 %v1602_v20  ;;  %v18200_v20 = vld [vmem:[#allocation123_spill] sm:$0xff] }
 0x457   :  { %4550 = vmatmul.f32.vlgmr.msrb.gmra.mxu0 %v14484_v30  ;;  %4850 = vmatmul.f32.vlgmr.msra.gmra.mxu1 %v14464_v4 }
 0x458   :  { %4998 = vmatpush.msrb.mxu0 %v17732_v35  ;;  %5059 = vmatpush.msrb.mxu1 %v17682_v17 }
 0x459   :  { %5104 = vmatpush.msrb.mxu2 %v17733_v43  ;;  %5163 = vmatpush.msrb.mxu3 %v17676_v2 }
 0x45a   :  { %4891 = vmatmul.f32.vlgmr.msra.gmra.mxu2 %v14484_v30  ;;  %5001 = vmatpush.msrb.mxu0 %v17734_v14 }
 0x45b   :  { %5061 = vmatpush.msrb.mxu1 %v17685_v62  ;;  %5108 = vmatpush.msrb.mxu2 %v17735_v59 }
 0x45c   :  { %5165 = vmatpush.msrb.mxu3 %v17679_v38  ;;  %5004 = vmatpush.msrb.mxu0 %v17736_v28 }
 0x45d   :  { %4992 = vmatmul.f32.vlgmr.msra.gmra.mxu3 %v14464_v4  ;;  %5063 = vmatpush.msrb.mxu1 %v17688_v33 }
 0x45e   :  { %5112 = vmatpush.msrb.mxu2 %v17737_v0  ;;  %5167 = vmatpush.msrb.mxu3 %v17682_v17 }
 0x45f   :  { %5007 = vmatpush.msrb.mxu0 %v17738_v26  ;;  %5065 = vmatpush.msrb.mxu1 %v17691_v40 }
 0x460   :  { %5116 = vmatpush.msrb.mxu2 %v17951_v54  ;;  %5169 = vmatpush.msrb.mxu3 %v17685_v62 }
 0x461   :  { %4813 = vmatmul.f32.vlgmr.msra.gmra.mxu0 %v14464_v4  ;;  %5067 = vmatpush.msrb.mxu1 %v17694_v8 }
 0x462   :  { %5010 = vmatpush.msrb.mxu0 %v17952_v49  ;;  %5120 = vmatpush.msrb.mxu2 %v17953_v37 }
 0x463   :  { %5171 = vmatpush.msrb.mxu3 %v17688_v33  ;;  %5069 = vmatpush.msrb.mxu1 %v17697_v1 }
 0x464   :  { %5013 = vmatpush.msrb.mxu0 %v17954_v10  ;;  %5124 = vmatpush.msrb.mxu2 %v17955_v6 }
 0x465   :  { %5173 = vmatpush.msrb.mxu3 %v17691_v40  ;;  %5071 = vmatpush.msrb.mxu1 %v17700_v15 }
 0x466   :  { %5016 = vmatpush.msrb.mxu0 %v17956_v55  ;;  %5128 = vmatpush.msrb.mxu2 %v17957_v61 }
 0x467   :  { %5175 = vmatpush.msrb.mxu3 %v17694_v8  ;;  %5073 = vmatpush.msrb.mxu1 %v17704_v5 }
 0x468   :  { %5019 = vmatpush.msrb.mxu0 %v18177_v27  ;;  %5132 = vmatpush.msrb.mxu2 %v18178_v53  ;;  %v18252_v53 = vld [vmem:[#allocation203_spill] sm:$0xff] }
 0x469   :  { %5177 = vmatpush.msrb.mxu3 %v17697_v1  ;;  %5075 = vmatpush.msrb.mxu1 %v17707_v41 }
 0x46a   :  { %5022 = vmatpush.msrb.mxu0 %v18179_v25  ;;  %5136 = vmatpush.msrb.mxu2 %v18180_v63  ;;  %v18247_v63 = vld [vmem:[#allocation221_spill] sm:$0xff] }
 0x46b   :  { %5179 = vmatpush.msrb.mxu3 %v17700_v15  ;;  %5077 = vmatpush.msrb.mxu1 %v17711_v29  ;;  %v18250_v25 = vld [vmem:[#allocation225_spill] sm:$0xff] }
 0x46c   :  { %5025 = vmatpush.msrb.mxu0 %v18181_v13  ;;  %5140 = vmatpush.msrb.mxu2 %v18182_v3  ;;  %v18234_v3 = vld [vmem:[#allocation213_spill] sm:$0xff]  ;;  %v18246_v13 = vld [vmem:[#allocation194_spill] sm:$0xff] }
 0x46d   :  { %5181 = vmatpush.msrb.mxu3 %v17704_v5  ;;  %5079 = vmatpush.msrb.mxu1 %v17715_v56 }
 0x46e   :  { %5028 = vmatpush.msrb.mxu0 %v18183_v12  ;;  %5144 = vmatpush.msrb.mxu2 %v18184_v24  ;;  %v18228_v24 = vld [vmem:[#allocation205_spill] sm:$0xff]  ;;  %v18231_v12 = vld [vmem:[#allocation208_spill] sm:$0xff] }
 0x46f   :  { %5183 = vmatpush.msrb.mxu3 %v17707_v41  ;;  %5081 = vmatpush.msrb.mxu1 %v17719_v36 }
 0x470   :  { %5031 = vmatpush.msrb.mxu0 %v18185_v16  ;;  %5148 = vmatpush.msrb.mxu2 %v18186_v48  ;;  %v18222_v48 = vld [vmem:[#allocation197_spill] sm:$0xff] }
 0x471   :  { %5185 = vmatpush.msrb.mxu3 %v17711_v29  ;;  %5085 = vmatmul.f32.vlgmr.msrb.gmra.mxu1 %v14473_v60  ;;  %v18225_v16 = vld [vmem:[#allocation201_spill] sm:$0xff] }
 0x472   :  { %5241 = vmatpush.msra.mxu1 %v18187_v42  ;;  %5034 = vmatpush.msrb.mxu0 %v18188_v57  ;;  %v18216_v42 = vld [vmem:[#allocation188_spill] sm:$0xff] }
 0x473   :  { %5152 = vmatpush.msrb.mxu2 %v18189_v46  ;;  %5187 = vmatpush.msrb.mxu3 %v17715_v56  ;;  %v18213_v46 = vld [vmem:[#allocation183_spill] sm:$0xff]  ;;  %v18219_v57 = vld [vmem:[#allocation192_spill] sm:$0xff] }
 0x474   :  { %5154 = vmatmul.f32.vlgmr.msrb.gmra.mxu2 %v14464_v4  ;;  %5247 = vmatpush.msra.mxu1 %v18190_v52  ;;  %v18210_v52 = vld [vmem:[#allocation177_spill] sm:$0xff] }
 0x475   :  { %5339 = vmatpush.msra.mxu2 %v18191_v50  ;;  %5037 = vmatpush.msrb.mxu0 %v18192_v34  ;;  %v18201_v34 = vld [vmem:[#allocation165_spill] sm:$0xff] }
 0x476   :  { %5189 = vmatpush.msrb.mxu3 %v17719_v36  ;;  %5253 = vmatpush.msra.mxu1 %v18193_v45  ;;  %v18202_v45 = vld [vmem:[#allocation141_spill] sm:$0xff] }
 0x477   :  { %5191 = vmatmul.f32.vlgmr.msrb.gmra.mxu3 %v14464_v4  ;;  %5342 = vmatpush.msra.mxu2 %v18194_v18  ;;  %v18203_v18 = vld [vmem:[#allocation134_spill] sm:$0xff]  ;;  %v18204_v50 = vld [vmem:[#allocation169_spill] sm:$0xff] }
 0x478   :  { %5392 = vmatpush.msra.mxu3 %v18195_v22  ;;  %5040 = vmatpush.msrb.mxu0 %v18196_v9  ;;  %v18207_v9 = vld [vmem:[#allocation173_spill] sm:$0xff] }
 0x479   :  { %5259 = vmatpush.msra.mxu1 %v18197_v58  ;;  %5345 = vmatpush.msra.mxu2 %v18198_v7  ;;  %v18205_v58 = vld [vmem:[#allocation145_spill] sm:$0xff]  ;;  %v18206_v7 = vld [vmem:[#allocation136_spill] sm:$0xff] }
 0x47a   :  { %5394 = vmatpush.msra.mxu3 %v18199_v31  ;;  %5043 = vmatpush.msrb.mxu0 %v18200_v20  ;;  %v18208_v20 = vld [vmem:[#allocation148_spill] sm:$0xff] }
 0x47b   :  { %5046 = vmatmul.f32.vlgmr.msrb.gmra.mxu0 %v14467_v23  ;;  %5265 = vmatpush.msra.mxu1 %v18201_v34  ;;  %v18209_v34 = vld [vmem:[#allocation139_spill] sm:$0xff] }
 0x47c   :  { %5196 = vmatpush.msra.mxu0 %v18195_v22  ;;  %5348 = vmatpush.msra.mxu2 %v18202_v45  ;;  %v18211_v45 = vld [vmem:[#allocation149_spill] sm:$0xff] }
 0x47d   :  { %5396 = vmatpush.msra.mxu3 %v18203_v18  ;;  %5271 = vmatpush.msra.mxu1 %v18204_v50  ;;  %v18212_v50 = vld [vmem:[#allocation142_spill] sm:$0xff] }
 0x47e   :  { %5198 = vmatpush.msra.mxu0 %v18199_v31  ;;  %5351 = vmatpush.msra.mxu2 %v18205_v58  ;;  %v18214_v58 = vld [vmem:[#allocation153_spill] sm:$0xff] }
 0x47f   :  { %5398 = vmatpush.msra.mxu3 %v18206_v7  ;;  %5277 = vmatpush.msra.mxu1 %v18207_v9  ;;  %v18215_v9 = vld [vmem:[#allocation143_spill] sm:$0xff] }
 0x480   :  { %5200 = vmatpush.msra.mxu0 %v18203_v18  ;;  %5354 = vmatpush.msra.mxu2 %v18208_v20  ;;  %v18217_v20 = vld [vmem:[#allocation159_spill] sm:$0xff] }
 0x481   :  { %5400 = vmatpush.msra.mxu3 %v18209_v34  ;;  %5283 = vmatpush.msra.mxu1 %v18210_v52  ;;  %v18218_v52 = vld [vmem:[#allocation146_spill] sm:$0xff] }
 0x482   :  { %5202 = vmatpush.msra.mxu0 %v18206_v7  ;;  %5357 = vmatpush.msra.mxu2 %v18211_v45  ;;  %v18220_v45 = vld [vmem:[#allocation163_spill] sm:$0xff] }
 0x483   :  { %5402 = vmatpush.msra.mxu3 %v18212_v50  ;;  %5289 = vmatpush.msra.mxu1 %v18213_v46  ;;  %v18221_v46 = vld [vmem:[#allocation152_spill] sm:$0xff] }
 0x484   :  { %5204 = vmatpush.msra.mxu0 %v18209_v34  ;;  %5360 = vmatpush.msra.mxu2 %v18214_v58  ;;  %v18223_v58 = vld [vmem:[#allocation167_spill] sm:$0xff] }
 0x485   :  { %5404 = vmatpush.msra.mxu3 %v18215_v9  ;;  %5295 = vmatpush.msra.mxu1 %v18216_v42  ;;  %v18224_v42 = vld [vmem:[#allocation156_spill] sm:$0xff] }
 0x486   :  { %5206 = vmatpush.msra.mxu0 %v18212_v50  ;;  %5363 = vmatpush.msra.mxu2 %v18217_v20  ;;  %v18226_v20 = vld [vmem:[#allocation171_spill] sm:$0xff] }
 0x487   :  { %5406 = vmatpush.msra.mxu3 %v18218_v52  ;;  %5301 = vmatpush.msra.mxu1 %v18219_v57  ;;  %v18227_v57 = vld [vmem:[#allocation160_spill] sm:$0xff] }
 0x488   :  { %5208 = vmatpush.msra.mxu0 %v18215_v9  ;;  %5366 = vmatpush.msra.mxu2 %v18220_v45  ;;  %v18229_v45 = vld [vmem:[#allocation175_spill] sm:$0xff] }
 0x489   :  { %5408 = vmatpush.msra.mxu3 %v18221_v46  ;;  %5307 = vmatpush.msra.mxu1 %v18222_v48  ;;  %v18230_v48 = vld [vmem:[#allocation164_spill] sm:$0xff] }
 0x48a   :  { %5210 = vmatpush.msra.mxu0 %v18218_v52  ;;  %5369 = vmatpush.msra.mxu2 %v18223_v58  ;;  %v18232_v58 = vld [vmem:[#allocation180_spill] sm:$0xff] }
 0x48b   :  { %5410 = vmatpush.msra.mxu3 %v18224_v42  ;;  %5313 = vmatpush.msra.mxu1 %v18225_v16  ;;  %v18233_v16 = vld [vmem:[#allocation168_spill] sm:$0xff] }
 0x48c   :  { %5212 = vmatpush.msra.mxu0 %v18221_v46  ;;  %5372 = vmatpush.msra.mxu2 %v18226_v20  ;;  %v18235_v20 = vld [vmem:[#allocation185_spill] sm:$0xff] }
 0x48d   :  { %5412 = vmatpush.msra.mxu3 %v18227_v57  ;;  %5319 = vmatpush.msra.mxu1 %v18228_v24  ;;  %v18236_v24 = vld [vmem:[#allocation172_spill] sm:$0xff] }
 0x48e   :  { %5214 = vmatpush.msra.mxu0 %v18224_v42  ;;  %5375 = vmatpush.msra.mxu2 %v18229_v45  ;;  %v18238_v45 = vld [vmem:[#allocation176_spill] sm:$0xff] }
 0x48f   :  { %5414 = vmatpush.msra.mxu3 %v18230_v48  ;;  %5325 = vmatpush.msra.mxu1 %v18231_v12  ;;  %v18237_v12 = vld [vmem:[#allocation190_spill] sm:$0xff] }
 0x490   :  { %5216 = vmatpush.msra.mxu0 %v18227_v57  ;;  %5378 = vmatpush.msra.mxu2 %v18232_v58  ;;  %v18241_v58 = vld [vmem:[#allocation182_spill] sm:$0xff] }
 0x491   :  { %5416 = vmatpush.msra.mxu3 %v18233_v16  ;;  %5331 = vmatpush.msra.mxu1 %v18234_v3  ;;  %v18239_v3 = vld [vmem:[#allocation178_spill] sm:$0xff] }
 0x492   :  { %5218 = vmatpush.msra.mxu0 %v18230_v48  ;;  %5381 = vmatpush.msra.mxu2 %v18235_v20  ;;  %v18240_v20 = vld [vmem:[#allocation181_spill] sm:$0xff] }
 0x493   :  { %5418 = vmatpush.msra.mxu3 %v18236_v24  ;;  %5333 = vmatmul.f32.vlgmr.msra.gmra.mxu1 %v14464_v4 }
 0x494   :  { %5500 = vmatpush.msrb.mxu1 %v18195_v22  ;;  %5220 = vmatpush.msra.mxu0 %v18233_v16  ;;  %v18242_v22 = vld [vmem:[#allocation212_spill] sm:$0xff] }
 0x495   :  { %5384 = vmatpush.msra.mxu2 %v18237_v12  ;;  %5420 = vmatpush.msra.mxu3 %v18238_v45  ;;  %v18243_v12 = vld [vmem:[#allocation187_spill] sm:$0xff] }
 0x496   :  { %5387 = vmatmul.f32.vlgmr.msra.gmra.mxu2 %v14467_v23  ;;  %5502 = vmatpush.msrb.mxu1 %v18199_v31  ;;  %v18244_v31 = vld [vmem:[#allocation217_spill] sm:$0xff] }
 0x497   :  { %5537 = vmatpush.msrb.mxu2 %v18239_v3  ;;  %5222 = vmatpush.msra.mxu0 %v18236_v24 }
 0x498   :  { %5422 = vmatpush.msra.mxu3 %v18240_v20  ;;  %5504 = vmatpush.msrb.mxu1 %v18203_v18  ;;  %v18245_v18 = vld [vmem:[#allocation137_spill] sm:$0xff] }
 0x499   :  { %5426 = vmatmul.f32.vlgmr.msra.gmra.mxu3 %v14473_v60  ;;  %5539 = vmatpush.msrb.mxu2 %v18241_v58 }
 0x49a   :  { %5582 = vmatpush.msrb.mxu3 %v18242_v22  ;;  %5224 = vmatpush.msra.mxu0 %v18238_v45  ;;  %v18248_v22 = vld [vmem:[#allocation140_spill] sm:$0xff] }
 0x49b   :  { %5506 = vmatpush.msrb.mxu1 %v18206_v7  ;;  %5541 = vmatpush.msrb.mxu2 %v18243_v12  ;;  %v18249_v7 = vld [vmem:[#allocation199_spill] sm:$0xff] }
 0x49c   :  { %5588 = vmatpush.msrb.mxu3 %v18244_v31  ;;  %5226 = vmatpush.msra.mxu0 %v18240_v20  ;;  %v18251_v31 = vld [vmem:[#allocation144_spill] sm:$0xff] }
 0x49d   :  { %5232 = vmatmul.f32.vlgmr.msra.gmra.mxu0 %v14484_v30  ;;  %5508 = vmatpush.msrb.mxu1 %v18209_v34  ;;  %v18253_v34 = vld [vmem:[#allocation229_spill] sm:$0xff] }
 0x49e   :  { %5433 = vmatpush.msrb.mxu0 %v18245_v18  ;;  %5543 = vmatpush.msrb.mxu2 %v18246_v13  ;;  %v18254_v18 = vld [vmem:[#allocation147_spill] sm:$0xff] }
 0x49f   :  { %5594 = vmatpush.msrb.mxu3 %v18247_v63  ;;  %5510 = vmatpush.msrb.mxu1 %v18212_v50  ;;  %v18255_v63 = vld [vmem:[#allocation207_spill] sm:$0xff]  ;;  %v18256_v50 = vld [vmem:[#allocation232_spill] sm:$0xff] }
 0x4a0   :  { %5437 = vmatpush.msrb.mxu0 %v18248_v22  ;;  %5545 = vmatpush.msrb.mxu2 %v18249_v7  ;;  %v18257_v22 = vld [vmem:[#allocation151_spill] sm:$0xff] }
 0x4a1   :  { %5600 = vmatpush.msrb.mxu3 %v18250_v25  ;;  %5512 = vmatpush.msrb.mxu1 %v18215_v9  ;;  %v18258_v25 = vld [vmem:[#allocation211_spill] sm:$0xff]  ;;  %v18259_v9 = vld [vmem:[#allocation236_spill] sm:$0xff] }
 0x4a2   :  { %5441 = vmatpush.msrb.mxu0 %v18251_v31  ;;  %5547 = vmatpush.msrb.mxu2 %v18252_v53  ;;  %v18260_v31 = vld [vmem:[#allocation155_spill] sm:$0xff] }
 0x4a3   :  { %5606 = vmatpush.msrb.mxu3 %v18253_v34  ;;  %5514 = vmatpush.msrb.mxu1 %v18218_v52  ;;  %v18261_v34 = vld [vmem:[#allocation216_spill] sm:$0xff]  ;;  %v18262_v52 = vld [vmem:[#allocation239_spill] sm:$0xff] }
 0x4a4   :  { %5445 = vmatpush.msrb.mxu0 %v18254_v18  ;;  %5549 = vmatpush.msrb.mxu2 %v18255_v63  ;;  %v18263_v18 = vld [vmem:[#allocation157_spill] sm:$0xff] }
 0x4a5   :  { %5612 = vmatpush.msrb.mxu3 %v18256_v50  ;;  %5516 = vmatpush.msrb.mxu1 %v18221_v46  ;;  %v18264_v50 = vld [vmem:[#allocation220_spill] sm:$0xff]  ;;  %v18265_v46 = vld [vmem:[#allocation243_spill] sm:$0xff] }
 0x4a6   :  { %5449 = vmatpush.msrb.mxu0 %v18257_v22  ;;  %5551 = vmatpush.msrb.mxu2 %v18258_v25  ;;  %v18266_v22 = vld [vmem:[#allocation161_spill] sm:$0xff] }
 0x4a7   :  { %5618 = vmatpush.msrb.mxu3 %v18259_v9  ;;  %5518 = vmatpush.msrb.mxu1 %v18224_v42  ;;  %v18267_v9 = vld [vmem:[#allocation224_spill] sm:$0xff]  ;;  %v18268_v42 = vld [vmem:[#allocation246_spill] sm:$0xff] }
 0x4a8   :  { %5453 = vmatpush.msrb.mxu0 %v18260_v31  ;;  %5553 = vmatpush.msrb.mxu2 %v18261_v34  ;;  %v18269_v31 = vld [vmem:[#allocation166_spill] sm:$0xff] }
 0x4a9   :  { %5624 = vmatpush.msrb.mxu3 %v18262_v52  ;;  %5520 = vmatpush.msrb.mxu1 %v18227_v57  ;;  %v18270_v52 = vld [vmem:[#allocation228_spill] sm:$0xff]  ;;  %v18271_v57 = vld [vmem:[#allocation249_spill] sm:$0xff] }
 0x4aa   :  { %5457 = vmatpush.msrb.mxu0 %v18263_v18  ;;  %5555 = vmatpush.msrb.mxu2 %v18264_v50  ;;  %v18272_v18 = vld [vmem:[#allocation170_spill] sm:$0xff] }
 0x4ab   :  { %5630 = vmatpush.msrb.mxu3 %v18265_v46  ;;  %5522 = vmatpush.msrb.mxu1 %v18230_v48  ;;  %v18273_v46 = vld [vmem:[#allocation234_spill] sm:$0xff]  ;;  %v18274_v48 = vld [vmem:[#allocation253_spill] sm:$0xff] }
 0x4ac   :  { %5461 = vmatpush.msrb.mxu0 %v18266_v22  ;;  %5557 = vmatpush.msrb.mxu2 %v18267_v9  ;;  %v18275_v22 = vld [vmem:[#allocation174_spill] sm:$0xff] }
 0x4ad   :  { %5636 = vmatpush.msrb.mxu3 %v18268_v42  ;;  %5524 = vmatpush.msrb.mxu1 %v18233_v16  ;;  %v18276_v42 = vld [vmem:[#allocation238_spill] sm:$0xff]  ;;  %v18277_v16 = vld [vmem:[#allocation255_spill] sm:$0xff] }
 0x4ae   :  { %5465 = vmatpush.msrb.mxu0 %v18269_v31  ;;  %5559 = vmatpush.msrb.mxu2 %v18270_v52  ;;  %v18278_v31 = vld [vmem:[#allocation179_spill] sm:$0xff] }
 0x4af   :  { %5642 = vmatpush.msrb.mxu3 %v18271_v57  ;;  %5526 = vmatpush.msrb.mxu1 %v18236_v24  ;;  %v18279_v57 = vld [vmem:[#allocation241_spill] sm:$0xff]  ;;  %v18280_v24 = vld [vmem:[#allocation256_spill] sm:$0xff] }
 0x4b0   :  { %5469 = vmatpush.msrb.mxu0 %v18272_v18  ;;  %5561 = vmatpush.msrb.mxu2 %v18273_v46  ;;  %v18282_v18 = vld [vmem:[#allocation245_spill] sm:$0xff] }
 0x4b1   :  { %5648 = vmatpush.msrb.mxu3 %v18274_v48  ;;  %5528 = vmatpush.msrb.mxu1 %v18238_v45  ;;  %v18281_v48 = vld [vmem:[#allocation184_spill] sm:$0xff]  ;;  %v18401_v45 = vld [vmem:[#allocation79_spill] sm:$0xff] }
 0x4b2   :  { %5473 = vmatpush.msrb.mxu0 %v18275_v22  ;;  %5563 = vmatpush.msrb.mxu2 %v18276_v42  ;;  %v18283_v22 = vld [vmem:[#allocation257_spill] sm:$0xff] }
 0x4b3   :  { %5654 = vmatpush.msrb.mxu3 %v18277_v16  ;;  %5530 = vmatpush.msrb.mxu1 %v18240_v20  ;;  %v18284_v16 = vld [vmem:[#allocation195_spill] sm:$0xff]  ;;  %v18286_v20 = vld [vmem:[#allocation258_spill] sm:$0xff] }
 0x4b4   :  { %5477 = vmatpush.msrb.mxu0 %v18278_v31  ;;  %5565 = vmatpush.msrb.mxu2 %v18279_v57  ;;  %v18285_v31 = vld [vmem:[#allocation189_spill] sm:$0xff] }
 0x4b5   :  { %5660 = vmatpush.msrb.mxu3 %v18280_v24  ;;  %5532 = vmatmul.f32.vlgmr.msrb.gmra.mxu1 %v14464_v4  ;;  %v18287_v24 = vld [vmem:[#allocation200_spill] sm:$0xff] }
 0x4b6   :  { %5733 = vmatpush.msra.mxu1 %v18239_v3  ;;  %5481 = vmatpush.msrb.mxu0 %v18281_v48  ;;  %v18288_v48 = vld [vmem:[#allocation193_spill] sm:$0xff] }
 0x4b7   :  { %5567 = vmatpush.msrb.mxu2 %v18282_v18  ;;  %5666 = vmatpush.msrb.mxu3 %v18283_v22  ;;  %v18293_v22 = vld [vmem:[#allocation191_spill] sm:$0xff] }
 0x4b8   :  { %5573 = vmatmul.f32.vlgmr.msrb.gmra.mxu2 %v14484_v30  ;;  %5735 = vmatpush.msra.mxu1 %v18241_v58  ;;  %v18289_v30 = vld [vmem:[#allocation204_spill] sm:$0xff] }
 0x4b9   :  { %5774 = vmatpush.msra.mxu2 %v18284_v16  ;;  %5485 = vmatpush.msrb.mxu0 %v18285_v31  ;;  %v18290_v16 = vld [vmem:[#allocation198_spill] sm:$0xff]  ;;  %v18292_v31 = vld [vmem:[#allocation209_spill] sm:$0xff] }
 0x4ba   :  { %5672 = vmatpush.msrb.mxu3 %v18286_v20  ;;  %5737 = vmatpush.msra.mxu1 %v18243_v12  ;;  %v18291_v20 = vld [vmem:[#allocation186_spill] sm:$0xff] }
 0x4bb   :  { %5674 = vmatmul.f32.vlgmr.msrb.gmra.mxu3 %v14464_v4  ;;  %5778 = vmatpush.msra.mxu2 %v18287_v24 }
 0x4bc   :  { %5841 = vmatpush.msra.mxu3 %v18239_v3  ;;  %5489 = vmatpush.msrb.mxu0 %v18288_v48  ;;  %v18295_v3 = vld [vmem:[#allocation196_spill] sm:$0xff] }
 0x4bd   :  { %5739 = vmatpush.msra.mxu1 %v18246_v13  ;;  %5782 = vmatpush.msra.mxu2 %v18289_v30  ;;  %v18294_v30 = vld [vmem:[#allocation214_spill] sm:$0xff] }
 0x4be   :  { %5843 = vmatpush.msra.mxu3 %v18241_v58  ;;  %5493 = vmatpush.msrb.mxu0 %v18290_v16  ;;  %v11972_v16 = vld [vmem:[#allocation2] ss:$0 sm:$0xff] }
 0x4bf   :  { %5495 = vmatmul.f32.vlgmr.msrb.gmra.mxu0 %v14464_v4  ;;  %5741 = vmatpush.msra.mxu1 %v18249_v7 }
 0x4c0   :  { %5680 = vmatpush.msra.mxu0 %v18291_v20  ;;  %5786 = vmatpush.msra.mxu2 %v18292_v31  ;;  %v4509_v24 = vpop.xlane.xlu0 %4508  ;;  %v18296_v20 = vld [vmem:[#allocation218_spill] sm:$0xff]  ;;  %v18304_v31 = vld [vmem:[#allocation233_spill] sm:$0xff] }
 0x4c1   :  { %5845 = vmatpush.msra.mxu3 %v18243_v12  ;;  %5743 = vmatpush.msra.mxu1 %v18252_v53  ;;  %v11765_v48 = vrot.slane %v4509_v24, 4  ;;  %v18297_v24 = vld [vmem:[#allocation202_spill] sm:$0xff] }
 0x4c2   :  { %5683 = vmatpush.msra.mxu0 %v18293_v22  ;;  %5790 = vmatpush.msra.mxu2 %v18294_v30  ;;  %v18298_v22 = vld [vmem:[#allocation222_spill] sm:$0xff] }
 0x4c3   :  { %5847 = vmatpush.msra.mxu3 %v18246_v13  ;;  %5745 = vmatpush.msra.mxu1 %v18255_v63  ;;  %v11785_v58 = vadd.f32 %v11972_v16, %v11765_v48  ;;  %v18299_v48 = vld [vmem:[#allocation206_spill] sm:$0xff]  ;;  %v18400_v13 = vld [vmem:[#allocation75_spill] sm:$0xff] }
 0x4c4   :  { %5686 = vmatpush.msra.mxu0 %v18295_v3  ;;  %5794 = vmatpush.msra.mxu2 %v18296_v20  ;;  %v18300_v3 = vld [vmem:[#allocation226_spill] sm:$0xff] }
 0x4c5   :  { %5849 = vmatpush.msra.mxu3 %v18249_v7  ;;  %5747 = vmatpush.msra.mxu1 %v18258_v25  ;;  %11794 = vst.msk [vmem:[%s16556_s6 + $0x4] sm:$0x3] %vm11791_vm11, %v11785_v58  ;;  %v18301_v30 = vld [vmem:[#allocation210_spill] sm:$0xff] }
 0x4c6   :  { %5689 = vmatpush.msra.mxu0 %v18297_v24  ;;  %5798 = vmatpush.msra.mxu2 %v18298_v22  ;;  %v18302_v58 = vld [vmem:[#allocation230_spill] sm:$0xff]  ;;  %v18303_v22 = vld [vmem:[#allocation215_spill] sm:$0xff] }
 0x4c7   :  { %5851 = vmatpush.msra.mxu3 %v18252_v53  ;;  %5749 = vmatpush.msra.mxu1 %v18261_v34 }
 0x4c8   :  { %5692 = vmatpush.msra.mxu0 %v18299_v48  ;;  %5802 = vmatpush.msra.mxu2 %v18300_v3  ;;  %v18327_v48 = vld [vmem:[#allocation4_spill] sm:$0xff]  ;;  %v18340_v3 = vld [vmem:[#allocation51_spill] sm:$0xff] }
 0x4c9   :  { %5853 = vmatpush.msra.mxu3 %v18255_v63  ;;  %5751 = vmatpush.msra.mxu1 %v18264_v50  ;;  %v1604_v20 = vpop.xlane.xlu0 %1603 }
 0x4ca   :  { %5695 = vmatpush.msra.mxu0 %v18301_v30  ;;  %5806 = vmatpush.msra.mxu2 %v18302_v58  ;;  %v11783_v24 = vadd.f32 %v11972_v16, %v1604_v20  ;;  %v18305_v30 = vld [vmem:[#allocation219_spill] sm:$0xff]  ;;  %v18306_v16 = vld [vmem:[#allocation237_spill] sm:$0xff] }
 0x4cb   :  { %5855 = vmatpush.msra.mxu3 %v18258_v25  ;;  %5753 = vmatpush.msra.mxu1 %v18267_v9  ;;  %v18307_v20 = vld [vmem:[#allocation223_spill] sm:$0xff] }
 0x4cc   :  { %5698 = vmatpush.msra.mxu0 %v18303_v22  ;;  %5810 = vmatpush.msra.mxu2 %v18304_v31  ;;  %11792 = vst.msk [vmem:[%s16556_s6] sm:$0x3] %vm11791_vm11, %v11783_v24  ;;  %v18308_v22 = vld [vmem:[#allocation242_spill] sm:$0xff]  ;;  %v18309_v24 = vld [vmem:[#allocation227_spill] sm:$0xff] }
 0x4cd   :  { %5857 = vmatpush.msra.mxu3 %v18261_v34  ;;  %5755 = vmatpush.msra.mxu1 %v18270_v52  ;;  %v18310_v31 = vld [vmem:[#allocation247_spill] sm:$0xff]  ;;  %v18364_v34 = vld [vmem:[#allocation85_spill] sm:$0xff] }
 0x4ce   :  { %5701 = vmatpush.msra.mxu0 %v18305_v30  ;;  %5814 = vmatpush.msra.mxu2 %v18306_v16  ;;  %v18311_v30 = vld [vmem:[#allocation231_spill] sm:$0xff]  ;;  %v18312_v16 = vld [vmem:[#allocation250_spill] sm:$0xff] }
 0x4cf   :  { %5859 = vmatpush.msra.mxu3 %v18264_v50  ;;  %5757 = vmatpush.msra.mxu1 %v18273_v46  ;;  %v18324_v58 = vld [vmem:[#allocation3_spill] sm:$0xff]  ;;  %v18361_v50 = vld [vmem:[#allocation80_spill] sm:$0xff] }
 0x4d0   :  { %5704 = vmatpush.msra.mxu0 %v18307_v20  ;;  %5818 = vmatpush.msra.mxu2 %v18308_v22  ;;  %v18313_v20 = vld [vmem:[#allocation235_spill] sm:$0xff]  ;;  %v18314_v22 = vld [vmem:[#allocation252_spill] sm:$0xff] }
 0x4d1   :  { %5861 = vmatpush.msra.mxu3 %v18267_v9  ;;  %5759 = vmatpush.msra.mxu1 %v18276_v42  ;;  %v18358_v9 = vld [vmem:[#allocation76_spill] sm:$0xff] }
 0x4d2   :  { %5707 = vmatpush.msra.mxu0 %v18309_v24  ;;  %5822 = vmatpush.msra.mxu2 %v18310_v31  ;;  %v18315_v24 = vld [vmem:[#allocation240_spill] sm:$0xff]  ;;  %v18316_v31 = vld [vmem:[#allocation254_spill] sm:$0xff] }
 0x4d3   :  { %5863 = vmatpush.msra.mxu3 %v18270_v52  ;;  %5761 = vmatpush.msra.mxu1 %v18279_v57  ;;  %v18355_v52 = vld [vmem:[#allocation72_spill] sm:$0xff] }
 0x4d4   :  { %5710 = vmatpush.msra.mxu0 %v18311_v30  ;;  %5826 = vmatpush.msra.mxu2 %v18312_v16  ;;  %v18317_v30 = vld [vmem:[#allocation244_spill] sm:$0xff]  ;;  %v18318_v16 = vld [vmem:[#allocation25_spill] sm:$0xff] }
 0x4d5   :  { %5865 = vmatpush.msra.mxu3 %v18273_v46  ;;  %5763 = vmatpush.msra.mxu1 %v18282_v18  ;;  %v18352_v46 = vld [vmem:[#allocation68_spill] sm:$0xff] }
 0x4d6   :  { %5713 = vmatpush.msra.mxu0 %v18313_v20  ;;  %5830 = vmatpush.msra.mxu2 %v18314_v22  ;;  %v18319_v20 = vld [vmem:[#allocation5_spill] sm:$0xff]  ;;  %v18320_v22 = vld [vmem:[#allocation248_spill] sm:$0xff] }
 0x4d7   :  { %5867 = vmatpush.msra.mxu3 %v18276_v42  ;;  %5767 = vmatmul.f32.vlgmr.msra.gmra.mxu1 %v14473_v60  ;;  %v18321_v60 = vld [vmem:[#allocation27_spill] sm:$0xff] }
 0x4d8   :  { %5716 = vmatpush.msra.mxu0 %v18315_v24  ;;  %5834 = vmatpush.msra.mxu2 %v18316_v31  ;;  %v18322_v24 = vld [vmem:[#allocation9_spill] sm:$0xff]  ;;  %v18323_v31 = vld [vmem:[#allocation251_spill] sm:$0xff] }
 0x4d9   :  { %5869 = vmatpush.msra.mxu3 %v18279_v57  ;;  %5836 = vmatmul.f32.vlgmr.msra.gmra.mxu2 %v14464_v4  ;;  %v18346_v57 = vld [vmem:[#allocation60_spill] sm:$0xff]  ;;  %v18349_v42 = vld [vmem:[#allocation63_spill] sm:$0xff] }
 0x4da   :  { %5719 = vmatpush.msra.mxu0 %v18317_v30  ;;  %6013 = vmatpush.msrb.mxu1 %v18318_v16  ;;  %v18325_v30 = vld [vmem:[#allocation29_spill] sm:$0xff]  ;;  %v18326_v16 = vld [vmem:[#allocation14_spill] sm:$0xff] }
 0x4db   :  { %5871 = vmatpush.msra.mxu3 %v18282_v18  ;;  %6111 = vmatpush.msrb.mxu2 %v18319_v20  ;;  %v18328_v20 = vld [vmem:[#allocation33_spill] sm:$0xff]  ;;  %v18343_v18 = vld [vmem:[#allocation55_spill] sm:$0xff] }
 0x4dc   :  { %5873 = vmatmul.f32.vlgmr.msra.gmra.mxu3 %v14464_v4  ;;  %5722 = vmatpush.msra.mxu0 %v18320_v22  ;;  %v18329_v4 = vld [vmem:[#allocation15_spill] sm:$0xff]  ;;  %v18330_v22 = vld [vmem:[#allocation6_spill] sm:$0xff] }
 0x4dd   :  { %6019 = vmatpush.msrb.mxu1 %v18321_v60  ;;  %6114 = vmatpush.msrb.mxu2 %v18322_v24  ;;  %v18331_v24 = vld [vmem:[#allocation38_spill] sm:$0xff] }
 0x4de   :  { %5725 = vmatpush.msra.mxu0 %v18323_v31  ;;  %6164 = vmatpush.msrb.mxu3 %v18324_v58  ;;  %v18332_v31 = vld [vmem:[#allocation16_spill] sm:$0xff]  ;;  %v18337_v60 = vld [vmem:[#allocation46_spill] sm:$0xff] }
 0x4df   :  { %5728 = vmatmul.f32.vlgmr.msra.gmra.mxu0 %v14467_v23  ;;  %6025 = vmatpush.msrb.mxu1 %v18325_v30  ;;  %v18333_v23 = vld [vmem:[#allocation7_spill] sm:$0xff]  ;;  %v18334_v30 = vld [vmem:[#allocation42_spill] sm:$0xff] }
 0x4e0   :  { %6117 = vmatpush.msrb.mxu2 %v18326_v16  ;;  %6166 = vmatpush.msrb.mxu3 %v18327_v48  ;;  %v18335_v16 = vld [vmem:[#allocation18_spill] sm:$0xff] }
 0x4e1   :  { %6031 = vmatpush.msrb.mxu1 %v18328_v20  ;;  %5968 = vmatpush.msrb.mxu0 %v18324_v58  ;;  %v18336_v20 = vld [vmem:[#allocation8_spill] sm:$0xff] }
 0x4e2   :  { %6120 = vmatpush.msrb.mxu2 %v18329_v4  ;;  %6168 = vmatpush.msrb.mxu3 %v18330_v22  ;;  %v18338_v4 = vld [vmem:[#allocation19_spill] sm:$0xff] }
 0x4e3   :  { %6037 = vmatpush.msrb.mxu1 %v18331_v24  ;;  %5970 = vmatpush.msrb.mxu0 %v18327_v48  ;;  %v18339_v24 = vld [vmem:[#allocation10_spill] sm:$0xff] }
 0x4e4   :  { %6123 = vmatpush.msrb.mxu2 %v18332_v31  ;;  %6170 = vmatpush.msrb.mxu3 %v18333_v23  ;;  %v18341_v31 = vld [vmem:[#allocation26_spill] sm:$0xff] }
 0x4e5   :  { %6043 = vmatpush.msrb.mxu1 %v18334_v30  ;;  %5972 = vmatpush.msrb.mxu0 %v18330_v22  ;;  %v18342_v30 = vld [vmem:[#allocation11_spill] sm:$0xff] }
 0x4e6   :  { %6126 = vmatpush.msrb.mxu2 %v18335_v16  ;;  %6172 = vmatpush.msrb.mxu3 %v18336_v20  ;;  %v18344_v16 = vld [vmem:[#allocation30_spill] sm:$0xff] }
 0x4e7   :  { %6049 = vmatpush.msrb.mxu1 %v18337_v60  ;;  %5974 = vmatpush.msrb.mxu0 %v18333_v23  ;;  %v18345_v60 = vld [vmem:[#allocation12_spill] sm:$0xff] }
 0x4e8   :  { %6129 = vmatpush.msrb.mxu2 %v18338_v4  ;;  %6174 = vmatpush.msrb.mxu3 %v18339_v24  ;;  %v18347_v4 = vld [vmem:[#allocation35_spill] sm:$0xff] }
 0x4e9   :  { %6055 = vmatpush.msrb.mxu1 %v18340_v3  ;;  %5976 = vmatpush.msrb.mxu0 %v18336_v20  ;;  %v18348_v3 = vld [vmem:[#allocation24_spill] sm:$0xff] }
 0x4ea   :  { %6132 = vmatpush.msrb.mxu2 %v18341_v31  ;;  %6176 = vmatpush.msrb.mxu3 %v18342_v30  ;;  %v18350_v31 = vld [vmem:[#allocation40_spill] sm:$0xff] }
 0x4eb   :  { %6061 = vmatpush.msrb.mxu1 %v18343_v18  ;;  %5978 = vmatpush.msrb.mxu0 %v18339_v24  ;;  %v18351_v18 = vld [vmem:[#allocation31_spill] sm:$0xff] }
 0x4ec   :  { %6135 = vmatpush.msrb.mxu2 %v18344_v16  ;;  %6178 = vmatpush.msrb.mxu3 %v18345_v60  ;;  %v18353_v16 = vld [vmem:[#allocation44_spill] sm:$0xff] }
 0x4ed   :  { %6067 = vmatpush.msrb.mxu1 %v18346_v57  ;;  %5980 = vmatpush.msrb.mxu0 %v18342_v30  ;;  %v18354_v57 = vld [vmem:[#allocation32_spill] sm:$0xff] }
 0x4ee   :  { %6138 = vmatpush.msrb.mxu2 %v18347_v4  ;;  %6180 = vmatpush.msrb.mxu3 %v18348_v3  ;;  %v18356_v4 = vld [vmem:[#allocation45_spill] sm:$0xff] }
 0x4ef   :  { %6073 = vmatpush.msrb.mxu1 %v18349_v42  ;;  %5982 = vmatpush.msrb.mxu0 %v18345_v60  ;;  %v18357_v42 = vld [vmem:[#allocation36_spill] sm:$0xff] }
 0x4f0   :  { %6141 = vmatpush.msrb.mxu2 %v18350_v31  ;;  %6182 = vmatpush.msrb.mxu3 %v18351_v18  ;;  %v18359_v31 = vld [vmem:[#allocation49_spill] sm:$0xff] }
 0x4f1   :  { %6079 = vmatpush.msrb.mxu1 %v18352_v46  ;;  %5984 = vmatpush.msrb.mxu0 %v18348_v3  ;;  %v18360_v46 = vld [vmem:[#allocation37_spill] sm:$0xff] }
 0x4f2   :  { %6144 = vmatpush.msrb.mxu2 %v18353_v16  ;;  %6184 = vmatpush.msrb.mxu3 %v18354_v57  ;;  %v18362_v16 = vld [vmem:[#allocation56_spill] sm:$0xff] }
 0x4f3   :  { %6085 = vmatpush.msrb.mxu1 %v18355_v52  ;;  %5986 = vmatpush.msrb.mxu0 %v18351_v18  ;;  %v18363_v52 = vld [vmem:[#allocation41_spill] sm:$0xff] }
 0x4f4   :  { %6147 = vmatpush.msrb.mxu2 %v18356_v4  ;;  %6186 = vmatpush.msrb.mxu3 %v18357_v42  ;;  %v18365_v4 = vld [vmem:[#allocation61_spill] sm:$0xff] }
 0x4f5   :  { %6091 = vmatpush.msrb.mxu1 %v18358_v9  ;;  %5988 = vmatpush.msrb.mxu0 %v18354_v57  ;;  %v18366_v9 = vld [vmem:[#allocation48_spill] sm:$0xff] }
 0x4f6   :  { %6150 = vmatpush.msrb.mxu2 %v18359_v31  ;;  %6188 = vmatpush.msrb.mxu3 %v18360_v46  ;;  %v18367_v31 = vld [vmem:[#allocation53_spill] sm:$0xff] }
 0x4f7   :  { %6097 = vmatpush.msrb.mxu1 %v18361_v50  ;;  %5990 = vmatpush.msrb.mxu0 %v18357_v42  ;;  %v18371_v50 = vld [vmem:[#allocation92_spill] sm:$0xff] }
 0x4f8   :  { %6153 = vmatpush.msrb.mxu2 %v18362_v16  ;;  %6190 = vmatpush.msrb.mxu3 %v18363_v52  ;;  %v18368_v16 = vld [vmem:[#allocation83_spill] sm:$0xff] }
 0x4f9   :  { %6103 = vmatpush.msrb.mxu1 %v18364_v34  ;;  %5992 = vmatpush.msrb.mxu0 %v18360_v46  ;;  %v18370_v34 = vld [vmem:[#allocation13_spill] sm:$0xff] }
 0x4fa   :  { %6156 = vmatpush.msrb.mxu2 %v18365_v4  ;;  %6192 = vmatpush.msrb.mxu3 %v18366_v9  ;;  %v18369_v4 = vld [vmem:[#allocation88_spill] sm:$0xff] }
 0x4fb   :  { %6272 = vmatpush.msra.mxu1 %v18324_v58  ;;  %5994 = vmatpush.msrb.mxu0 %v18363_v52 }
 0x4fc   :  { %6309 = vmatpush.msra.mxu2 %v17671_v11  ;;  %6194 = vmatpush.msrb.mxu3 %v18367_v31 }
 0x4fd   :  { %6274 = vmatpush.msra.mxu1 %v18327_v48  ;;  %5996 = vmatpush.msrb.mxu0 %v18366_v9 }
 0x4fe   :  { %6311 = vmatpush.msra.mxu2 %v17674_v21  ;;  %6354 = vmatpush.msra.mxu3 %v18368_v16  ;;  %v18372_v16 = vld [vmem:[#allocation17_spill] sm:$0xff] }
 0x4ff   :  { %6276 = vmatpush.msra.mxu1 %v18330_v22  ;;  %5998 = vmatpush.msrb.mxu0 %v18367_v31  ;;  %v18373_v22 = vld [vmem:[#allocation95_spill] sm:$0xff] }
 0x500   :  { %6313 = vmatpush.msra.mxu2 %v17676_v2  ;;  %6360 = vmatpush.msra.mxu3 %v18369_v4  ;;  %v18374_v4 = vld [vmem:[#allocation20_spill] sm:$0xff] }
 0x501   :  { %6278 = vmatpush.msra.mxu1 %v18333_v23  ;;  %6205 = vmatpush.msra.mxu0 %v18370_v34  ;;  %v18375_v23 = vld [vmem:[#allocation99_spill] sm:$0xff]  ;;  %v18376_v34 = vld [vmem:[#allocation21_spill] sm:$0xff] }
 0x502   :  { %6315 = vmatpush.msra.mxu2 %v17679_v38  ;;  %6366 = vmatpush.msra.mxu3 %v18371_v50  ;;  %v18377_v50 = vld [vmem:[#allocation102_spill] sm:$0xff] }
 0x503   :  { %6280 = vmatpush.msra.mxu1 %v18336_v20  ;;  %6209 = vmatpush.msra.mxu0 %v18372_v16  ;;  %v18378_v16 = vld [vmem:[#allocation22_spill] sm:$0xff] }
 0x504   :  { %6317 = vmatpush.msra.mxu2 %v17682_v17  ;;  %6372 = vmatpush.msra.mxu3 %v18373_v22  ;;  %v18379_v22 = vld [vmem:[#allocation105_spill] sm:$0xff] }
 0x505   :  { %6282 = vmatpush.msra.mxu1 %v18339_v24  ;;  %6213 = vmatpush.msra.mxu0 %v18374_v4  ;;  %v18380_v4 = vld [vmem:[#allocation23_spill] sm:$0xff] }
 0x506   :  { %6319 = vmatpush.msra.mxu2 %v17685_v62  ;;  %6378 = vmatpush.msra.mxu3 %v18375_v23  ;;  %v18381_v23 = vld [vmem:[#allocation111_spill] sm:$0xff] }
 0x507   :  { %6284 = vmatpush.msra.mxu1 %v18342_v30  ;;  %6217 = vmatpush.msra.mxu0 %v18376_v34  ;;  %v18382_v34 = vld [vmem:[#allocation28_spill] sm:$0xff] }
 0x508   :  { %6321 = vmatpush.msra.mxu2 %v17688_v33  ;;  %6384 = vmatpush.msra.mxu3 %v18377_v50  ;;  %v18383_v50 = vld [vmem:[#allocation115_spill] sm:$0xff] }
 0x509   :  { %6286 = vmatpush.msra.mxu1 %v18345_v60  ;;  %6221 = vmatpush.msra.mxu0 %v18378_v16  ;;  %v18384_v16 = vld [vmem:[#allocation34_spill] sm:$0xff] }
 0x50a   :  { %6323 = vmatpush.msra.mxu2 %v17691_v40  ;;  %6390 = vmatpush.msra.mxu3 %v18379_v22  ;;  %v18385_v22 = vld [vmem:[#allocation118_spill] sm:$0xff] }
 0x50b   :  { %6288 = vmatpush.msra.mxu1 %v18348_v3  ;;  %6225 = vmatpush.msra.mxu0 %v18380_v4  ;;  %v18386_v4 = vld [vmem:[#allocation39_spill] sm:$0xff] }
 0x50c   :  { %6325 = vmatpush.msra.mxu2 %v17694_v8  ;;  %6396 = vmatpush.msra.mxu3 %v18381_v23  ;;  %v18387_v23 = vld [vmem:[#allocation121_spill] sm:$0xff] }
 0x50d   :  { %6290 = vmatpush.msra.mxu1 %v18351_v18  ;;  %6229 = vmatpush.msra.mxu0 %v18382_v34  ;;  %v18388_v34 = vld [vmem:[#allocation43_spill] sm:$0xff] }
 0x50e   :  { %6327 = vmatpush.msra.mxu2 %v17697_v1  ;;  %6402 = vmatpush.msra.mxu3 %v18383_v50  ;;  %v18389_v50 = vld [vmem:[#allocation125_spill] sm:$0xff] }
 0x50f   :  { %6292 = vmatpush.msra.mxu1 %v18354_v57  ;;  %6233 = vmatpush.msra.mxu0 %v18384_v16  ;;  %v18390_v16 = vld [vmem:[#allocation47_spill] sm:$0xff] }
 0x510   :  { %6329 = vmatpush.msra.mxu2 %v17700_v15  ;;  %6408 = vmatpush.msra.mxu3 %v18385_v22  ;;  %v18391_v22 = vld [vmem:[#allocation127_spill] sm:$0xff] }
 0x511   :  { %6294 = vmatpush.msra.mxu1 %v18357_v42  ;;  %6237 = vmatpush.msra.mxu0 %v18386_v4  ;;  %v18392_v4 = vld [vmem:[#allocation52_spill] sm:$0xff]  ;;  %v4745_v42 = vpop.f32.mrf.mxu3 }
 0x512   :  { %6331 = vmatpush.msra.mxu2 %v17704_v5  ;;  %6414 = vmatpush.msra.mxu3 %v18387_v23  ;;  %v18393_v23 = vld [vmem:[#allocation128_spill] sm:$0xff] }
 0x513   :  { %6296 = vmatpush.msra.mxu1 %v18360_v46  ;;  %6241 = vmatpush.msra.mxu0 %v18388_v34  ;;  %v18394_v34 = vld [vmem:[#allocation54_spill] sm:$0xff]  ;;  %v18399_v46 = vld [vmem:[#allocation69_spill] sm:$0xff] }
 0x514   :  { %6333 = vmatpush.msra.mxu2 %v17707_v41  ;;  %6420 = vmatpush.msra.mxu3 %v18389_v50  ;;  %v4551_v50 = vpop.f32.mrf.mxu0 }
 0x515   :  { %6298 = vmatpush.msra.mxu1 %v18363_v52  ;;  %6245 = vmatpush.msra.mxu0 %v18390_v16  ;;  %v18395_v52 = vld [vmem:[#allocation129_spill] sm:$0xff]  ;;  %v18396_v16 = vld [vmem:[#allocation58_spill] sm:$0xff] }
 0x516   :  { %6335 = vmatpush.msra.mxu2 %v17711_v29  ;;  %6426 = vmatpush.msra.mxu3 %v18391_v22  ;;  %v18398_v22 = vld [vmem:[#allocation64_spill] sm:$0xff] }
 0x517   :  { %6300 = vmatpush.msra.mxu1 %v18366_v9  ;;  %6249 = vmatpush.msra.mxu0 %v18392_v4  ;;  %v18397_v9 = vld [vmem:[#allocation130_spill] sm:$0xff]  ;;  %v4652_v4 = vpop.f32.mrf.mxu1 }
 0x518   :  { %6337 = vmatpush.msra.mxu2 %v17715_v56  ;;  %6432 = vmatpush.msra.mxu3 %v18393_v23  ;;  %v4653_v3 = vadd.f32 %v4652_v4, %v4551_v50 }
 0x519   :  { %6302 = vmatpush.msra.mxu1 %v18367_v31  ;;  %6253 = vmatpush.msra.mxu0 %v18394_v34  ;;  %v4706_v31 = vpop.f32.mrf.mxu2  ;;  %v4993_v18 = vpop.f32.mrf.mxu3 }
 0x51a   :  { %6339 = vmatpush.msra.mxu2 %v17719_v36  ;;  %6438 = vmatpush.msra.mxu3 %v18395_v52  ;;  %v4707_v52 = vadd.f32 %v4706_v31, %v4653_v3 }
 0x51b   :  { %6257 = vmatpush.msra.mxu0 %v18396_v16 }
 0x51c   :  { %6444 = vmatpush.msra.mxu3 %v18397_v9  ;;  %v4814_v57 = vpop.f32.mrf.mxu0  ;;  %v4746_v48 = vadd.f32 %v4745_v42, %v4707_v52 }
 0x51d   :  { %6261 = vmatpush.msra.mxu0 %v18398_v22 }
 0x51e   :  { %v4815_v9 = vadd.f32 %v4814_v57, %v4746_v48 }
 0x51f   :  { %6265 = vmatpush.msra.mxu0 %v18399_v46  ;;  %v4851_v23 = vpop.f32.mrf.mxu1 }
 0x520   :  { %v4852_v25 = vadd.f32 %v4851_v23, %v4815_v9 }
 0x521   :  { %v4892_v60 = vpop.f32.mrf.mxu2  ;;  %v5192_v46 = vpop.f32.mrf.mxu3 }
 0x522   :  { %v4994_v30 = vadd.f32 %v4993_v18, %v4892_v60  ;;  %v5881_v53 = vrot.slane %v4852_v25, 2 }
 0x524   :  { %v5047_v34 = vpop.f32.mrf.mxu0  ;;  %v5889_v12 = vadd.f32 %v5881_v53, %v18400_v13 }
 0x525   :  { %v5048_v24 = vadd.f32 %v5047_v34, %v4994_v30 }
 0x526   :  { %v11825_v4 = vmul.f32 -1.442695, %v5889_v12 }
 0x527   :  { %v5086_v20 = vpop.f32.mrf.mxu1 }
 0x528   :  { %v5087_v16 = vadd.f32 %v5086_v20, %v5048_v24  ;;  %11891 = vpow2.f32 %v11825_v4 }
 0x529   :  { %v5155_v58 = vpop.f32.mrf.mxu2  ;;  %v5427_v42 = vpop.f32.mrf.mxu3 }
 0x52a   :  { %v5156_v22 = vadd.f32 %v5155_v58, %v5087_v16 }
 0x52c   :  { %v5193_v63 = vadd.f32 %v5192_v46, %v5156_v22  ;;  %v5233_v3 = vpop.f32.mrf.mxu0 }
 0x52e   :  { %v5882_v7 = vrot.slane %v5193_v63, 2  ;;  %v11892_v57 = vpop.eup %11891 }
 0x52f   :  { %v5334_v34 = vpop.f32.mrf.mxu1  ;;  %v5896_v9 = vadd.f32 1.0, %v11892_v57 }
 0x530   :  { %v5890_v50 = vadd.f32 %v5882_v7, %v18401_v45  ;;  %v5335_v31 = vadd.f32 %v5334_v34, %v5233_v3 }
 0x531   :  { %v5388_v18 = vpop.f32.mrf.mxu2  ;;  %vm5902_vm14 = vweird.f32 %v5896_v9 }
 0x532   :  { %v11826_v36 = vmul.f32 -1.442695, %v5890_v50  ;;  %v5389_v63 = vadd.f32 %v5388_v18, %v5335_v31 }
 0x534   :  { %11893 = vpow2.f32 %v11826_v36  ;;  %v5428_v12 = vadd.f32 %v5427_v42, %v5389_v63 }
 0x535   :  { %11895 = vrcp.f32 %v5896_v9 }
 0x537   :  { %v5533_v25 = vpop.f32.mrf.mxu1 }
 0x53a   :  { %v11894_v52 = vpop.eup %11893 }
 0x53b   :  { %v5915_v46 = vadd.f32 1.0, %v11894_v52  ;;  %v5574_v53 = vpop.f32.mrf.mxu2  ;;  %v11896_v48 = vpop.eup %11895 }
 0x53c   :  { %v5496_v30 = vpop.f32.mrf.mxu0  ;;  %v5898_v50 = vmul.f32 %v11896_v48, %v5896_v9  ;;  %vm5903_vm12 = vweird.f32 %v11896_v48 }
 0x53d   :  { %11897 = vrcp.f32 %v5915_v46  ;;  %v5497_v36 = vadd.f32 %v5496_v30, %v5428_v12  ;;  %vm5921_vm15 = vweird.f32 %v5915_v46  ;;  %vm5904_vm0 = vmor %vm5902_vm14, %vm5903_vm12  ;;  %vm5960_vm12 = vcmask 1047558  }
 0x53e   :  { %v5675_v13 = vpop.f32.mrf.mxu3  ;;  %v5899_v52 = vsub.f32 1.0, %v5898_v50 }
 0x53f   :  { %v5676_v45 = vadd.f32 %v5675_v13, %v5574_v53  ;;  %v5534_v60 = vadd.f32 %v5533_v25, %v5497_v36  ;;  %v5906_v36 = vand.u32 2147483647, %v5896_v9 }
 0x540   :  { %v5900_v13 = vmul.f32 %v11896_v48, %v5899_v52 }
 0x541   :  { %v5883_v18 = vrot.slane %v5534_v60, 2  ;;  %vm5907_vm2 = vcmp.eq.f32.partialorder %v5906_v36, 8.507059e+37 }
 0x542   :  { %v5901_v25 = vadd.f32 %v11896_v48, %v5900_v13 }
 0x543   :  { %v11898_v16 = vpop.eup %11897  ;;  %v5891_v30 = vadd.f32 %v5883_v18, %v13582_v19 }
 0x544   :  { %v5917_v4 = vmul.f32 %v11898_v16, %v5915_v46  ;;  %vm5922_vm13 = vweird.f32 %v11898_v16 }
 0x545   :  { %vm5923_vm1 = vmor %vm5921_vm15, %vm5922_vm13 }
 0x546   :  { %v5918_v31 = vsub.f32 1.0, %v5917_v4 }
 0x548   :  { %v5919_v53 = vmul.f32 %v11898_v16, %v5918_v31 }
 0x54a   :  { %v5920_v12 = vadd.f32 %v11898_v16, %v5919_v53 }
 0x554   :  { %v5768_v58 = vpop.f32.mrf.mxu1 }
 0x55c   :  { %v5729_v22 = vpop.f32.mrf.mxu0  ;;  %v5837_v24 = vpop.f32.mrf.mxu2 }
 0x55d   :  { %v5730_v7 = vadd.f32 %v5729_v22, %v5676_v45  ;;  %v5927_v45 = vand.u32 2147483648, %v5915_v46  ;;  %v5908_v22 = vand.u32 2147483648, %v5896_v9 }
 0x55f   :  { %v5769_v20 = vadd.f32 %v5768_v58, %v5730_v7  ;;  %v5874_v3 = vpop.f32.mrf.mxu3  ;;  %v5925_v7 = vand.u32 2147483647, %v5915_v46  ;;  %v5928_v60 = vor.u32 1.1754944e-38, %v5927_v45 }
 0x561   :  { %v5838_v23 = vadd.f32 %v5837_v24, %v5769_v20  ;;  %v5924_v20 = vsel %vm5923_vm1, %v11898_v16, %v5920_v12  ;;  %vm5926_vm3 = vcmp.eq.f32.partialorder %v5925_v7, 8.507059e+37 }
 0x562   :  { %v5929_v4 = vsel %vm5926_vm3, %v5928_v60, %v5924_v20  ;;  %v18402_v20 = vld [vmem:[#allocation109_spill] sm:$0xff]  ;;  %v18404_v60 = vld [vmem:[#allocation114_spill] sm:$0xff] }
 0x563   :  { %v5875_v34 = vadd.f32 %v5874_v3, %v5838_v23  ;;  %v5909_v23 = vor.u32 1.1754944e-38, %v5908_v22  ;;  %v5952_v3 = vrot.slane %v14457_v47, 6 }
 0x565   :  { %v5884_v57 = vrot.slane %v5875_v34, 2  ;;  %v5954_v18 = vmul.f32 %v5952_v3, %v5929_v4  ;;  %v18407_v4 = vld [vmem:[#allocation104_spill] sm:$0xff]  ;;  %v18408_v3 = vld [vmem:[#allocation122_spill] sm:$0xff] }
 0x567   :  { %v5892_v42 = vadd.f32 %v5884_v57, %v13577_v39  ;;  %v5905_v39 = vsel %vm5904_vm0, %v11896_v48, %v5901_v25  ;;  %v11973_v25 = vld [vmem:[%s16553_s4] ss:$0 sm:$0xff] }
 0x568   :  { %v5910_v50 = vsel %vm5907_vm2, %v5909_v23, %v5905_v39  ;;  %v18405_v23 = vld [vmem:[#allocation100_spill] sm:$0xff] }
 0x569   :  { %v11827_v63 = vmul.f32 -1.442695, %v5892_v42 }
 0x56b   :  { %11899 = vpow2.f32 %v11827_v63 }
 0x56c   :  { %11901 = vtanh.f32 %v5891_v30 }
 0x571   :  { %v11900_v58 = vpop.eup %11899 }
 0x572   :  { %v5935_v19 = vadd.f32 1.0, %v11900_v58  ;;  %v11902_v24 = vpop.eup %11901 }
 0x573   :  { %v5955_v34 = vmul.f32 %v11902_v24, %v5910_v50  ;;  %v18403_v24 = vld [vmem:[#allocation96_spill] sm:$0xff]  ;;  %v18406_v50 = vld [vmem:[#allocation119_spill] sm:$0xff] }
 0x574   :  { %11903 = vrcp.f32 %v5935_v19  ;;  %v5947_v48 = vand.u32 2147483648, %v5935_v19  ;;  %v5945_v31 = vand.u32 2147483647, %v5935_v19  ;;  %vm5941_vm5 = vweird.f32 %v5935_v19 }
 0x575   :  { %v14899_v9 = vadd.f32 %v5955_v34, %v5954_v18  ;;  %v18409_v34 = vld [vmem:[#allocation108_spill] sm:$0xff]  ;;  %v18410_v18 = vld [vmem:[#allocation117_spill] sm:$0xff] }
 0x576   :  { %v5948_v30 = vor.u32 1.1754944e-38, %v5947_v48  ;;  %vm5946_vm7 = vcmp.eq.f32.partialorder %v5945_v31, 8.507059e+37  ;;  %v18414_v48 = vld [vmem:[#allocation126_spill] sm:$0xff]  ;;  %v18416_v31 = vld [vmem:[#allocation133_spill] sm:$0xff] }
 0x577   :  { %11905 = vtanh.f32 %v14899_v9 }
 0x57a   :  { %v11904_v57 = vpop.eup %11903 }
 0x57b   :  { %v5937_v46 = vmul.f32 %v11904_v57, %v5935_v19  ;;  %vm5942_vm4 = vweird.f32 %v11904_v57 }
 0x57c   :  { %vm5943_vm6 = vmor %vm5941_vm5, %vm5942_vm4 }
 0x57d   :  { %v5938_v52 = vsub.f32 1.0, %v5937_v46  ;;  %v11906_v47 = vpop.eup %11905  ;;  %v18412_v46 = vld [vmem:[#allocation112_spill] sm:$0xff] }
 0x57f   :  { %v5939_v16 = vmul.f32 %v11904_v57, %v5938_v52  ;;  %v18413_v52 = vld [vmem:[#allocation150_spill] sm:$0xff] }
 0x581   :  { %v5940_v42 = vadd.f32 %v11904_v57, %v5939_v16  ;;  %v18415_v16 = vld [vmem:[#allocation154_spill] sm:$0xff] }
 0x583   :  { %v5944_v63 = vsel %vm5943_vm6, %v11904_v57, %v5940_v42  ;;  %v18411_v57 = vld [vmem:[#allocation124_spill] sm:$0xff] }
 0x584   :  { %v5949_v53 = vsel %vm5946_vm7, %v5948_v30, %v5944_v63  ;;  %v18417_v42 = vld [vmem:[#allocation116_spill] sm:$0xff]  ;;  %v18418_v30 = vld [vmem:[#allocation158_spill] sm:$0xff]  ;;  %v18419_v63 = vld [vmem:[#allocation135_spill] sm:$0xff] }
 0x585   :  { %v5958_v13 = vmul.f32 %v11906_v47, %v5949_v53  ;;  %v18420_v47 = vld [vmem:[#allocation131_spill] sm:$0xff]  ;;  %v18421_v53 = vld [vmem:[#allocation120_spill] sm:$0xff] }
 0x587   :  { %v5959_v12 = vmul.f32 %v11973_v25, %v5958_v13  ;;  %v5965_v45 = vrot.slane %v5958_v13, 6  ;;  %v18422_v13 = vld [vmem:[#allocation162_spill] sm:$0xff] }
 0x588   :  { %v18423_v25 = vld [vmem:[#allocation138_spill] sm:$0xff] }
 0x589   :  { %v5961_v22 = vsel %vm5960_vm12, %v5959_v12, 0.0  ;;  %v14906_v36 = vand.u32 4294901760, %v5965_v45  ;;  %v18424_v12 = vld [vmem:[#allocation132_spill] sm:$0xff] }
 0x58a   :  { %5962 = vadd.xlane.f32.xlu1 %v5961_v22  ;;  %v18426_v22 = vld [vmem:[#allocation165_spill] sm:$0xff] }
 0x58b   :  { %v14909_v7 = vsub.f32 %v5965_v45, %v14906_v36  ;;  %6105 = vmatmul.f32.vlgmr.msrb.gmra.mxu1 %v14906_v36  ;;  %v18425_v45 = vld [vmem:[#allocation123_spill] sm:$0xff] }
 0x58c   :  { %6505 = vmatpush.msrb.mxu1 %v17671_v11 }
 0x58d   :  { %6159 = vmatmul.f32.vlgmr.msrb.gmra.mxu2 %v14909_v7  ;;  %v14915_v58 = vand.u32 4294901760, %v14909_v7 }
 0x58e   :  { %6507 = vmatpush.msrb.mxu1 %v17674_v21  ;;  %6546 = vmatpush.msrb.mxu2 %v17729_v51 }
 0x58f   :  { %6198 = vmatmul.f32.vlgmr.msrb.gmra.mxu3 %v14915_v58  ;;  %v6002_v39 = vsub.f32 %v14909_v7, %v14915_v58 }
 0x590   :  { %6509 = vmatpush.msrb.mxu1 %v17676_v2  ;;  %6550 = vmatpush.msrb.mxu2 %v17730_v32 }
 0x591   :  { %6613 = vmatpush.msrb.mxu3 %v17671_v11  ;;  %v14925_v19 = vand.u32 4294901760, %v6002_v39  ;;  %v18427_v39 = vld [vmem:[#allocation141_spill] sm:$0xff] }
 0x592   :  { %6511 = vmatpush.msrb.mxu1 %v17679_v38  ;;  %6554 = vmatpush.msrb.mxu2 %v17731_v44 }
 0x593   :  { %6615 = vmatpush.msrb.mxu3 %v17674_v21  ;;  %6004 = vmatmul.f32.vlgmr.msrb.gmra.mxu0 %v14925_v19 }
 0x594   :  { %6304 = vmatmul.f32.vlgmr.msra.gmra.mxu1 %v14906_v36  ;;  %6452 = vmatpush.msrb.mxu0 %v17732_v35 }
 0x595   :  { %6513 = vmatpush.msrb.mxu1 %v17682_v17  ;;  %6558 = vmatpush.msrb.mxu2 %v17733_v43 }
 0x596   :  { %6617 = vmatpush.msrb.mxu3 %v17676_v2  ;;  %6345 = vmatmul.f32.vlgmr.msra.gmra.mxu2 %v14925_v19 }
 0x597   :  { %6455 = vmatpush.msrb.mxu0 %v17734_v14  ;;  %6515 = vmatpush.msrb.mxu1 %v17685_v62 }
 0x598   :  { %6562 = vmatpush.msrb.mxu2 %v17735_v59  ;;  %6619 = vmatpush.msrb.mxu3 %v17679_v38 }
 0x599   :  { %6446 = vmatmul.f32.vlgmr.msra.gmra.mxu3 %v14906_v36  ;;  %6458 = vmatpush.msrb.mxu0 %v17736_v28 }
 0x59a   :  { %6517 = vmatpush.msrb.mxu1 %v17688_v33  ;;  %6566 = vmatpush.msrb.mxu2 %v17737_v0 }
 0x59b   :  { %6621 = vmatpush.msrb.mxu3 %v17682_v17  ;;  %6461 = vmatpush.msrb.mxu0 %v17738_v26 }
 0x59c   :  { %6519 = vmatpush.msrb.mxu1 %v17691_v40  ;;  %6570 = vmatpush.msrb.mxu2 %v17951_v54 }
 0x59d   :  { %6623 = vmatpush.msrb.mxu3 %v17685_v62  ;;  %6267 = vmatmul.f32.vlgmr.msra.gmra.mxu0 %v14906_v36 }
 0x59e   :  { %6464 = vmatpush.msrb.mxu0 %v17952_v49  ;;  %6521 = vmatpush.msrb.mxu1 %v17694_v8 }
 0x59f   :  { %6574 = vmatpush.msrb.mxu2 %v17953_v37  ;;  %6625 = vmatpush.msrb.mxu3 %v17688_v33 }
 0x5a0   :  { %6467 = vmatpush.msrb.mxu0 %v17954_v10  ;;  %6523 = vmatpush.msrb.mxu1 %v17697_v1 }
 0x5a1   :  { %6578 = vmatpush.msrb.mxu2 %v17955_v6  ;;  %6627 = vmatpush.msrb.mxu3 %v17691_v40 }
 0x5a2   :  { %6470 = vmatpush.msrb.mxu0 %v17956_v55  ;;  %6525 = vmatpush.msrb.mxu1 %v17700_v15 }
 0x5a3   :  { %6582 = vmatpush.msrb.mxu2 %v17957_v61  ;;  %6629 = vmatpush.msrb.mxu3 %v17694_v8 }
 0x5a4   :  { %6473 = vmatpush.msrb.mxu0 %v18177_v27  ;;  %6527 = vmatpush.msrb.mxu1 %v17704_v5 }
 0x5a5   :  { %6586 = vmatpush.msrb.mxu2 %v18402_v20  ;;  %6631 = vmatpush.msrb.mxu3 %v17697_v1 }
 0x5a6   :  { %6476 = vmatpush.msrb.mxu0 %v18403_v24  ;;  %6529 = vmatpush.msrb.mxu1 %v17707_v41 }
 0x5a7   :  { %6590 = vmatpush.msrb.mxu2 %v18404_v60  ;;  %6633 = vmatpush.msrb.mxu3 %v17700_v15  ;;  %v18478_v60 = vld [vmem:[#allocation229_spill] sm:$0xff] }
 0x5a8   :  { %6479 = vmatpush.msrb.mxu0 %v18405_v23  ;;  %6531 = vmatpush.msrb.mxu1 %v17711_v29  ;;  %v18475_v23 = vld [vmem:[#allocation225_spill] sm:$0xff] }
 0x5a9   :  { %6594 = vmatpush.msrb.mxu2 %v18406_v50  ;;  %6635 = vmatpush.msrb.mxu3 %v17704_v5  ;;  %v18472_v50 = vld [vmem:[#allocation221_spill] sm:$0xff] }
 0x5aa   :  { %6482 = vmatpush.msrb.mxu0 %v18407_v4  ;;  %6533 = vmatpush.msrb.mxu1 %v17715_v56  ;;  %v18470_v4 = vld [vmem:[#allocation194_spill] sm:$0xff] }
 0x5ab   :  { %6598 = vmatpush.msrb.mxu2 %v18408_v3  ;;  %6637 = vmatpush.msrb.mxu3 %v17707_v41  ;;  %v18460_v3 = vld [vmem:[#allocation185_spill] sm:$0xff] }
 0x5ac   :  { %6485 = vmatpush.msrb.mxu0 %v18409_v34  ;;  %6535 = vmatpush.msrb.mxu1 %v18410_v18  ;;  %v18457_v34 = vld [vmem:[#allocation180_spill] sm:$0xff] }
 0x5ad   :  { %6602 = vmatpush.msrb.mxu2 %v18411_v57  ;;  %6639 = vmatpush.msrb.mxu3 %v17711_v29  ;;  %v18454_v57 = vld [vmem:[#allocation175_spill] sm:$0xff] }
 0x5ae   :  { %6539 = vmatmul.f32.vlgmr.msrb.gmra.mxu1 %v14915_v58  ;;  %6488 = vmatpush.msrb.mxu0 %v18412_v46  ;;  %v18451_v46 = vld [vmem:[#allocation171_spill] sm:$0xff] }
 0x5af   :  { %6695 = vmatpush.msra.mxu1 %v18413_v52  ;;  %6606 = vmatpush.msrb.mxu2 %v18414_v48  ;;  %v18445_v48 = vld [vmem:[#allocation163_spill] sm:$0xff] }
 0x5b0   :  { %6641 = vmatpush.msrb.mxu3 %v17715_v56  ;;  %6608 = vmatmul.f32.vlgmr.msrb.gmra.mxu2 %v14906_v36  ;;  %v18448_v52 = vld [vmem:[#allocation167_spill] sm:$0xff] }
 0x5b1   :  { %6701 = vmatpush.msra.mxu1 %v18415_v16  ;;  %6793 = vmatpush.msra.mxu2 %v18416_v31  ;;  %v18439_v31 = vld [vmem:[#allocation153_spill] sm:$0xff]  ;;  %v18442_v16 = vld [vmem:[#allocation159_spill] sm:$0xff] }
 0x5b2   :  { %6491 = vmatpush.msrb.mxu0 %v18417_v42  ;;  %6643 = vmatpush.msrb.mxu3 %v18410_v18  ;;  %v18436_v42 = vld [vmem:[#allocation149_spill] sm:$0xff] }
 0x5b3   :  { %6645 = vmatmul.f32.vlgmr.msrb.gmra.mxu3 %v14906_v36  ;;  %6707 = vmatpush.msra.mxu1 %v18418_v30  ;;  %v18429_v30 = vld [vmem:[#allocation169_spill] sm:$0xff] }
 0x5b4   :  { %6796 = vmatpush.msra.mxu2 %v18419_v63  ;;  %6846 = vmatpush.msra.mxu3 %v18420_v47  ;;  %v18428_v63 = vld [vmem:[#allocation134_spill] sm:$0xff] }
 0x5b5   :  { %6494 = vmatpush.msrb.mxu0 %v18421_v53  ;;  %6713 = vmatpush.msra.mxu1 %v18422_v13  ;;  %v18430_v53 = vld [vmem:[#allocation145_spill] sm:$0xff] }
 0x5b6   :  { %6799 = vmatpush.msra.mxu2 %v18423_v25  ;;  %6848 = vmatpush.msra.mxu3 %v18424_v12  ;;  %v18431_v25 = vld [vmem:[#allocation136_spill] sm:$0xff]  ;;  %v18432_v13 = vld [vmem:[#allocation173_spill] sm:$0xff] }
 0x5b7   :  { %6497 = vmatpush.msrb.mxu0 %v18425_v45  ;;  %6719 = vmatpush.msra.mxu1 %v18426_v22  ;;  %v18433_v45 = vld [vmem:[#allocation148_spill] sm:$0xff]  ;;  %v18434_v22 = vld [vmem:[#allocation139_spill] sm:$0xff] }
 0x5b8   :  { %6500 = vmatmul.f32.vlgmr.msrb.gmra.mxu0 %v14909_v7  ;;  %6802 = vmatpush.msra.mxu2 %v18427_v39  ;;  %v18435_v39 = vld [vmem:[#allocation177_spill] sm:$0xff] }
 0x5b9   :  { %6650 = vmatpush.msra.mxu0 %v18420_v47  ;;  %6850 = vmatpush.msra.mxu3 %v18428_v63 }
 0x5ba   :  { %6725 = vmatpush.msra.mxu1 %v18429_v30  ;;  %6805 = vmatpush.msra.mxu2 %v18430_v53  ;;  %v18437_v30 = vld [vmem:[#allocation142_spill] sm:$0xff]  ;;  %v18438_v53 = vld [vmem:[#allocation183_spill] sm:$0xff] }
 0x5bb   :  { %6652 = vmatpush.msra.mxu0 %v18424_v12  ;;  %6852 = vmatpush.msra.mxu3 %v18431_v25 }
 0x5bc   :  { %6731 = vmatpush.msra.mxu1 %v18432_v13  ;;  %6808 = vmatpush.msra.mxu2 %v18433_v45  ;;  %v18440_v13 = vld [vmem:[#allocation143_spill] sm:$0xff]  ;;  %v18441_v45 = vld [vmem:[#allocation188_spill] sm:$0xff] }
 0x5bd   :  { %6654 = vmatpush.msra.mxu0 %v18428_v63  ;;  %6854 = vmatpush.msra.mxu3 %v18434_v22 }
 0x5be   :  { %6737 = vmatpush.msra.mxu1 %v18435_v39  ;;  %6811 = vmatpush.msra.mxu2 %v18436_v42  ;;  %v18443_v39 = vld [vmem:[#allocation146_spill] sm:$0xff]  ;;  %v18444_v42 = vld [vmem:[#allocation192_spill] sm:$0xff] }
 0x5bf   :  { %6656 = vmatpush.msra.mxu0 %v18431_v25  ;;  %6856 = vmatpush.msra.mxu3 %v18437_v30 }
 0x5c0   :  { %6743 = vmatpush.msra.mxu1 %v18438_v53  ;;  %6814 = vmatpush.msra.mxu2 %v18439_v31  ;;  %v18446_v53 = vld [vmem:[#allocation152_spill] sm:$0xff]  ;;  %v18447_v31 = vld [vmem:[#allocation197_spill] sm:$0xff] }
 0x5c1   :  { %6658 = vmatpush.msra.mxu0 %v18434_v22  ;;  %6858 = vmatpush.msra.mxu3 %v18440_v13 }
 0x5c2   :  { %6749 = vmatpush.msra.mxu1 %v18441_v45  ;;  %6817 = vmatpush.msra.mxu2 %v18442_v16  ;;  %v18449_v45 = vld [vmem:[#allocation156_spill] sm:$0xff]  ;;  %v18450_v16 = vld [vmem:[#allocation201_spill] sm:$0xff] }
 0x5c3   :  { %6660 = vmatpush.msra.mxu0 %v18437_v30  ;;  %6860 = vmatpush.msra.mxu3 %v18443_v39 }
 0x5c4   :  { %6755 = vmatpush.msra.mxu1 %v18444_v42  ;;  %6820 = vmatpush.msra.mxu2 %v18445_v48  ;;  %v18452_v42 = vld [vmem:[#allocation160_spill] sm:$0xff]  ;;  %v18453_v48 = vld [vmem:[#allocation205_spill] sm:$0xff] }
 0x5c5   :  { %6662 = vmatpush.msra.mxu0 %v18440_v13  ;;  %6862 = vmatpush.msra.mxu3 %v18446_v53 }
 0x5c6   :  { %6761 = vmatpush.msra.mxu1 %v18447_v31  ;;  %6823 = vmatpush.msra.mxu2 %v18448_v52  ;;  %v18455_v31 = vld [vmem:[#allocation164_spill] sm:$0xff] }
 0x5c7   :  { %6664 = vmatpush.msra.mxu0 %v18443_v39  ;;  %6864 = vmatpush.msra.mxu3 %v18449_v45  ;;  %v18456_v52 = vld [vmem:[#allocation208_spill] sm:$0xff] }
 0x5c8   :  { %6767 = vmatpush.msra.mxu1 %v18450_v16  ;;  %6826 = vmatpush.msra.mxu2 %v18451_v46  ;;  %v18458_v16 = vld [vmem:[#allocation168_spill] sm:$0xff]  ;;  %v18459_v46 = vld [vmem:[#allocation213_spill] sm:$0xff] }
 0x5c9   :  { %6666 = vmatpush.msra.mxu0 %v18446_v53  ;;  %6866 = vmatpush.msra.mxu3 %v18452_v42 }
 0x5ca   :  { %6773 = vmatpush.msra.mxu1 %v18453_v48  ;;  %6829 = vmatpush.msra.mxu2 %v18454_v57  ;;  %v18461_v48 = vld [vmem:[#allocation172_spill] sm:$0xff]  ;;  %v18462_v57 = vld [vmem:[#allocation190_spill] sm:$0xff] }
 0x5cb   :  { %6668 = vmatpush.msra.mxu0 %v18449_v45  ;;  %6868 = vmatpush.msra.mxu3 %v18455_v31 }
 0x5cc   :  { %6779 = vmatpush.msra.mxu1 %v18456_v52  ;;  %6832 = vmatpush.msra.mxu2 %v18457_v34  ;;  %v18463_v34 = vld [vmem:[#allocation176_spill] sm:$0xff] }
 0x5cd   :  { %6670 = vmatpush.msra.mxu0 %v18452_v42  ;;  %6870 = vmatpush.msra.mxu3 %v18458_v16  ;;  %v18467_v52 = vld [vmem:[#allocation212_spill] sm:$0xff] }
 0x5ce   :  { %6785 = vmatpush.msra.mxu1 %v18459_v46  ;;  %6835 = vmatpush.msra.mxu2 %v18460_v3  ;;  %v18464_v46 = vld [vmem:[#allocation178_spill] sm:$0xff]  ;;  %v18465_v3 = vld [vmem:[#allocation181_spill] sm:$0xff] }
 0x5cf   :  { %6672 = vmatpush.msra.mxu0 %v18455_v31  ;;  %6872 = vmatpush.msra.mxu3 %v18461_v48 }
 0x5d0   :  { %6787 = vmatmul.f32.vlgmr.msra.gmra.mxu1 %v14906_v36  ;;  %6838 = vmatpush.msra.mxu2 %v18462_v57  ;;  %v18466_v57 = vld [vmem:[#allocation182_spill] sm:$0xff] }
 0x5d1   :  { %6954 = vmatpush.msrb.mxu1 %v18420_v47  ;;  %6674 = vmatpush.msra.mxu0 %v18458_v16  ;;  %v18468_v47 = vld [vmem:[#allocation187_spill] sm:$0xff] }
 0x5d2   :  { %6874 = vmatpush.msra.mxu3 %v18463_v34  ;;  %6841 = vmatmul.f32.vlgmr.msra.gmra.mxu2 %v14909_v7 }
 0x5d3   :  { %6956 = vmatpush.msrb.mxu1 %v18424_v12  ;;  %6991 = vmatpush.msrb.mxu2 %v18464_v46  ;;  %v18469_v12 = vld [vmem:[#allocation217_spill] sm:$0xff] }
 0x5d4   :  { %6676 = vmatpush.msra.mxu0 %v18461_v48  ;;  %6876 = vmatpush.msra.mxu3 %v18465_v3 }
 0x5d5   :  { %6880 = vmatmul.f32.vlgmr.msra.gmra.mxu3 %v14915_v58  ;;  %6958 = vmatpush.msrb.mxu1 %v18428_v63  ;;  %v18471_v63 = vld [vmem:[#allocation137_spill] sm:$0xff] }
 0x5d6   :  { %6993 = vmatpush.msrb.mxu2 %v18466_v57  ;;  %7036 = vmatpush.msrb.mxu3 %v18467_v52  ;;  %v18473_v52 = vld [vmem:[#allocation199_spill] sm:$0xff] }
 0x5d7   :  { %6678 = vmatpush.msra.mxu0 %v18463_v34  ;;  %6960 = vmatpush.msrb.mxu1 %v18431_v25  ;;  %v18474_v25 = vld [vmem:[#allocation140_spill] sm:$0xff] }
 0x5d8   :  { %6995 = vmatpush.msrb.mxu2 %v18468_v47  ;;  %7042 = vmatpush.msrb.mxu3 %v18469_v12  ;;  %v18476_v12 = vld [vmem:[#allocation203_spill] sm:$0xff] }
 0x5d9   :  { %6680 = vmatpush.msra.mxu0 %v18465_v3  ;;  %6962 = vmatpush.msrb.mxu1 %v18434_v22  ;;  %v18477_v22 = vld [vmem:[#allocation144_spill] sm:$0xff] }
 0x5da   :  { %6686 = vmatmul.f32.vlgmr.msra.gmra.mxu0 %v14925_v19  ;;  %6997 = vmatpush.msrb.mxu2 %v18470_v4 }
 0x5db   :  { %6887 = vmatpush.msrb.mxu0 %v18471_v63  ;;  %7048 = vmatpush.msrb.mxu3 %v18472_v50  ;;  %v18479_v63 = vld [vmem:[#allocation207_spill] sm:$0xff] }
 0x5dc   :  { %6964 = vmatpush.msrb.mxu1 %v18437_v30  ;;  %6999 = vmatpush.msrb.mxu2 %v18473_v52  ;;  %v18480_v50 = vld [vmem:[#allocation147_spill] sm:$0xff]  ;;  %v18481_v30 = vld [vmem:[#allocation232_spill] sm:$0xff] }
 0x5dd   :  { %6891 = vmatpush.msrb.mxu0 %v18474_v25  ;;  %7054 = vmatpush.msrb.mxu3 %v18475_v23  ;;  %v18482_v25 = vld [vmem:[#allocation211_spill] sm:$0xff] }
 0x5de   :  { %6966 = vmatpush.msrb.mxu1 %v18440_v13  ;;  %7001 = vmatpush.msrb.mxu2 %v18476_v12  ;;  %v18483_v23 = vld [vmem:[#allocation151_spill] sm:$0xff]  ;;  %v18484_v13 = vld [vmem:[#allocation236_spill] sm:$0xff] }
 0x5df   :  { %6895 = vmatpush.msrb.mxu0 %v18477_v22  ;;  %7060 = vmatpush.msrb.mxu3 %v18478_v60  ;;  %v18485_v22 = vld [vmem:[#allocation216_spill] sm:$0xff]  ;;  %v18486_v60 = vld [vmem:[#allocation155_spill] sm:$0xff] }
 0x5e0   :  { %6968 = vmatpush.msrb.mxu1 %v18443_v39  ;;  %7003 = vmatpush.msrb.mxu2 %v18479_v63  ;;  %v18487_v39 = vld [vmem:[#allocation239_spill] sm:$0xff] }
 0x5e1   :  { %6899 = vmatpush.msrb.mxu0 %v18480_v50  ;;  %7066 = vmatpush.msrb.mxu3 %v18481_v30  ;;  %v18488_v50 = vld [vmem:[#allocation220_spill] sm:$0xff]  ;;  %v18489_v30 = vld [vmem:[#allocation157_spill] sm:$0xff] }
 0x5e2   :  { %6970 = vmatpush.msrb.mxu1 %v18446_v53  ;;  %7005 = vmatpush.msrb.mxu2 %v18482_v25  ;;  %v18490_v53 = vld [vmem:[#allocation243_spill] sm:$0xff] }
 0x5e3   :  { %6903 = vmatpush.msrb.mxu0 %v18483_v23  ;;  %7072 = vmatpush.msrb.mxu3 %v18484_v13  ;;  %v18491_v23 = vld [vmem:[#allocation224_spill] sm:$0xff]  ;;  %v18492_v13 = vld [vmem:[#allocation161_spill] sm:$0xff] }
 0x5e4   :  { %6972 = vmatpush.msrb.mxu1 %v18449_v45  ;;  %7007 = vmatpush.msrb.mxu2 %v18485_v22  ;;  %v18493_v45 = vld [vmem:[#allocation246_spill] sm:$0xff] }
 0x5e5   :  { %6907 = vmatpush.msrb.mxu0 %v18486_v60  ;;  %7078 = vmatpush.msrb.mxu3 %v18487_v39  ;;  %v18494_v60 = vld [vmem:[#allocation228_spill] sm:$0xff]  ;;  %v18495_v39 = vld [vmem:[#allocation166_spill] sm:$0xff] }
 0x5e6   :  { %6974 = vmatpush.msrb.mxu1 %v18452_v42  ;;  %7009 = vmatpush.msrb.mxu2 %v18488_v50  ;;  %v18496_v42 = vld [vmem:[#allocation249_spill] sm:$0xff] }
 0x5e7   :  { %6911 = vmatpush.msrb.mxu0 %v18489_v30  ;;  %7084 = vmatpush.msrb.mxu3 %v18490_v53  ;;  %v18497_v30 = vld [vmem:[#allocation234_spill] sm:$0xff] }
 0x5e8   :  { %6976 = vmatpush.msrb.mxu1 %v18455_v31  ;;  %7011 = vmatpush.msrb.mxu2 %v18491_v23  ;;  %v18498_v53 = vld [vmem:[#allocation170_spill] sm:$0xff]  ;;  %v18499_v31 = vld [vmem:[#allocation253_spill] sm:$0xff] }
 0x5e9   :  { %6915 = vmatpush.msrb.mxu0 %v18492_v13  ;;  %7090 = vmatpush.msrb.mxu3 %v18493_v45  ;;  %v18500_v13 = vld [vmem:[#allocation238_spill] sm:$0xff] }
 0x5ea   :  { %6978 = vmatpush.msrb.mxu1 %v18458_v16  ;;  %7013 = vmatpush.msrb.mxu2 %v18494_v60  ;;  %v18501_v45 = vld [vmem:[#allocation174_spill] sm:$0xff]  ;;  %v18502_v16 = vld [vmem:[#allocation255_spill] sm:$0xff] }
 0x5eb   :  { %6919 = vmatpush.msrb.mxu0 %v18495_v39  ;;  %7096 = vmatpush.msrb.mxu3 %v18496_v42  ;;  %v18503_v39 = vld [vmem:[#allocation241_spill] sm:$0xff]  ;;  %v18504_v42 = vld [vmem:[#allocation179_spill] sm:$0xff] }
 0x5ec   :  { %6980 = vmatpush.msrb.mxu1 %v18461_v48  ;;  %7015 = vmatpush.msrb.mxu2 %v18497_v30  ;;  %v18505_v48 = vld [vmem:[#allocation256_spill] sm:$0xff] }
 0x5ed   :  { %6923 = vmatpush.msrb.mxu0 %v18498_v53  ;;  %7102 = vmatpush.msrb.mxu3 %v18499_v31  ;;  %v18506_v53 = vld [vmem:[#allocation245_spill] sm:$0xff]  ;;  %v18507_v31 = vld [vmem:[#allocation184_spill] sm:$0xff] }
 0x5ee   :  { %6982 = vmatpush.msrb.mxu1 %v18463_v34  ;;  %7017 = vmatpush.msrb.mxu2 %v18500_v13  ;;  %v18508_v34 = vld [vmem:[#allocation257_spill] sm:$0xff] }
 0x5ef   :  { %6927 = vmatpush.msrb.mxu0 %v18501_v45  ;;  %7108 = vmatpush.msrb.mxu3 %v18502_v16  ;;  %v18509_v16 = vld [vmem:[#allocation195_spill] sm:$0xff]  ;;  %v18510_v45 = vld [vmem:[#allocation189_spill] sm:$0xff] }
 0x5f0   :  { %6984 = vmatpush.msrb.mxu1 %v18465_v3  ;;  %7019 = vmatpush.msrb.mxu2 %v18503_v39  ;;  %v18521_v3 = vld [vmem:[#allocation196_spill] sm:$0xff] }
 0x5f1   :  { %6931 = vmatpush.msrb.mxu0 %v18504_v42  ;;  %7114 = vmatpush.msrb.mxu3 %v18505_v48  ;;  %v18511_v42 = vld [vmem:[#allocation258_spill] sm:$0xff]  ;;  %v18512_v48 = vld [vmem:[#allocation200_spill] sm:$0xff] }
 0x5f2   :  { %6986 = vmatmul.f32.vlgmr.msrb.gmra.mxu1 %v14906_v36  ;;  %7021 = vmatpush.msrb.mxu2 %v18506_v53 }
 0x5f3   :  { %7187 = vmatpush.msra.mxu1 %v18464_v46  ;;  %6935 = vmatpush.msrb.mxu0 %v18507_v31  ;;  %v18513_v31 = vld [vmem:[#allocation193_spill] sm:$0xff] }
 0x5f4   :  { %7120 = vmatpush.msrb.mxu3 %v18508_v34  ;;  %7027 = vmatmul.f32.vlgmr.msrb.gmra.mxu2 %v14925_v19  ;;  %v18514_v19 = vld [vmem:[#allocation204_spill] sm:$0xff]  ;;  %v18519_v34 = vld [vmem:[#allocation191_spill] sm:$0xff] }
 0x5f5   :  { %7189 = vmatpush.msra.mxu1 %v18466_v57  ;;  %7228 = vmatpush.msra.mxu2 %v18509_v16  ;;  %v18515_v16 = vld [vmem:[#allocation198_spill] sm:$0xff] }
 0x5f6   :  { %6939 = vmatpush.msrb.mxu0 %v18510_v45  ;;  %7126 = vmatpush.msrb.mxu3 %v18511_v42  ;;  %v18516_v42 = vld [vmem:[#allocation209_spill] sm:$0xff]  ;;  %v18517_v45 = vld [vmem:[#allocation186_spill] sm:$0xff] }
 0x5f7   :  { %7128 = vmatmul.f32.vlgmr.msrb.gmra.mxu3 %v14906_v36  ;;  %7191 = vmatpush.msra.mxu1 %v18468_v47 }
 0x5f8   :  { %7232 = vmatpush.msra.mxu2 %v18512_v48  ;;  %7295 = vmatpush.msra.mxu3 %v18464_v46  ;;  %v18633_v46 = vld [vmem:[#allocation62_spill] sm:$0xff] }
 0x5f9   :  { %6943 = vmatpush.msrb.mxu0 %v18513_v31  ;;  %7193 = vmatpush.msra.mxu1 %v18470_v4  ;;  %v18518_v31 = vld [vmem:[#allocation214_spill] sm:$0xff] }
 0x5fa   :  { %7236 = vmatpush.msra.mxu2 %v18514_v19  ;;  %7297 = vmatpush.msra.mxu3 %v18466_v57  ;;  %v11974_v57 = vld [vmem:[#allocation2] ss:$0 sm:$0xff] }
 0x5fb   :  { %6947 = vmatpush.msrb.mxu0 %v18515_v16  ;;  %7195 = vmatpush.msra.mxu1 %v18473_v52  ;;  %v18520_v16 = vld [vmem:[#allocation218_spill] sm:$0xff] }
 0x5fc   :  { %6949 = vmatmul.f32.vlgmr.msrb.gmra.mxu0 %v14906_v36  ;;  %7240 = vmatpush.msra.mxu2 %v18516_v42 }
 0x5fd   :  { %7134 = vmatpush.msra.mxu0 %v18517_v45  ;;  %7299 = vmatpush.msra.mxu3 %v18468_v47  ;;  %v5963_v48 = vpop.xlane.xlu1 %5962  ;;  %v18522_v45 = vld [vmem:[#allocation222_spill] sm:$0xff] }
 0x5fe   :  { %7197 = vmatpush.msra.mxu1 %v18476_v12  ;;  %7244 = vmatpush.msra.mxu2 %v18518_v31  ;;  %v11768_v19 = vrot.slane %v5963_v48, 6  ;;  %v18523_v48 = vld [vmem:[#allocation202_spill] sm:$0xff] }
 0x5ff   :  { %7137 = vmatpush.msra.mxu0 %v18519_v34  ;;  %7301 = vmatpush.msra.mxu3 %v18470_v4  ;;  %v18550_v34 = vld [vmem:[#allocation9_spill] sm:$0xff]  ;;  %v18565_v31 = vld [vmem:[#allocation10_spill] sm:$0xff] }
 0x600   :  { %7199 = vmatpush.msra.mxu1 %v18479_v63  ;;  %7248 = vmatpush.msra.mxu2 %v18520_v16  ;;  %v11786_v42 = vadd.f32 %v11974_v57, %v11768_v19  ;;  %v18524_v57 = vld [vmem:[#allocation226_spill] sm:$0xff]  ;;  %v18549_v16 = vld [vmem:[#allocation251_spill] sm:$0xff] }
 0x601   :  { %7140 = vmatpush.msra.mxu0 %v18521_v3  ;;  %7303 = vmatpush.msra.mxu3 %v18473_v52  ;;  %v18525_v19 = vld [vmem:[#allocation206_spill] sm:$0xff] }
 0x602   :  { %7201 = vmatpush.msra.mxu1 %v18482_v25  ;;  %7252 = vmatpush.msra.mxu2 %v18522_v45  ;;  %11795 = vst.msk [vmem:[%s16556_s6 + $0x6] sm:$0x3] %vm11791_vm11, %v11786_v42  ;;  %v18526_v45 = vld [vmem:[#allocation230_spill] sm:$0xff]  ;;  %v18528_v42 = vld [vmem:[#allocation233_spill] sm:$0xff] }
 0x603   :  { %7143 = vmatpush.msra.mxu0 %v18523_v48  ;;  %7305 = vmatpush.msra.mxu3 %v18476_v12  ;;  %v18527_v3 = vld [vmem:[#allocation210_spill] sm:$0xff]  ;;  %v18529_v48 = vld [vmem:[#allocation215_spill] sm:$0xff] }
 0x604   :  { %7203 = vmatpush.msra.mxu1 %v18485_v22  ;;  %7256 = vmatpush.msra.mxu2 %v18524_v57  ;;  %v18531_v57 = vld [vmem:[#allocation219_spill] sm:$0xff]  ;;  %v18627_v4 = vld [vmem:[#allocation50_spill] sm:$0xff] }
 0x605   :  { %7146 = vmatpush.msra.mxu0 %v18525_v19  ;;  %7307 = vmatpush.msra.mxu3 %v18479_v63  ;;  %v18530_v19 = vld [vmem:[#allocation237_spill] sm:$0xff]  ;;  %v18625_v12 = vld [vmem:[#allocation71_spill] sm:$0xff] }
 0x606   :  { %7205 = vmatpush.msra.mxu1 %v18488_v50  ;;  %7260 = vmatpush.msra.mxu2 %v18526_v45  ;;  %v18533_v45 = vld [vmem:[#allocation223_spill] sm:$0xff]  ;;  %v18626_v52 = vperm.slane %v18625_v12, 0 }
 0x607   :  { %7149 = vmatpush.msra.mxu0 %v18527_v3  ;;  %7309 = vmatpush.msra.mxu3 %v18482_v25  ;;  %v18532_v3 = vld [vmem:[#allocation242_spill] sm:$0xff] }
 0x608   :  { %7207 = vmatpush.msra.mxu1 %v18491_v23  ;;  %7264 = vmatpush.msra.mxu2 %v18528_v42  ;;  %v18535_v42 = vld [vmem:[#allocation227_spill] sm:$0xff]  ;;  %v15333_v47 = vadd.f32 %v18627_v4, %v18626_v52 }
 0x609   :  { %7152 = vmatpush.msra.mxu0 %v18529_v48  ;;  %7311 = vmatpush.msra.mxu3 %v18485_v22  ;;  %v18534_v48 = vld [vmem:[#allocation247_spill] sm:$0xff]  ;;  %v18589_v22 = vld [vmem:[#allocation41_spill] sm:$0xff] }
 0x60a   :  { %7209 = vmatpush.msra.mxu1 %v18494_v60  ;;  %7268 = vmatpush.msra.mxu2 %v18530_v19  ;;  %v18537_v19 = vld [vmem:[#allocation231_spill] sm:$0xff]  ;;  %18628 = vst [vmem:[#allocation90_spill] sm:$0xff] %v15333_v47 }
 0x60b   :  { %7155 = vmatpush.msra.mxu0 %v18531_v57  ;;  %7313 = vmatpush.msra.mxu3 %v18488_v50  ;;  %v18536_v57 = vld [vmem:[#allocation250_spill] sm:$0xff]  ;;  %v18586_v50 = vld [vmem:[#allocation37_spill] sm:$0xff] }
 0x60c   :  { %7211 = vmatpush.msra.mxu1 %v18497_v30  ;;  %7272 = vmatpush.msra.mxu2 %v18532_v3  ;;  %v18539_v3 = vld [vmem:[#allocation235_spill] sm:$0xff] }
 0x60d   :  { %7158 = vmatpush.msra.mxu0 %v18533_v45  ;;  %7315 = vmatpush.msra.mxu3 %v18491_v23  ;;  %v18538_v45 = vld [vmem:[#allocation252_spill] sm:$0xff] }
 0x60e   :  { %7213 = vmatpush.msra.mxu1 %v18500_v13  ;;  %7276 = vmatpush.msra.mxu2 %v18534_v48  ;;  %v18541_v48 = vld [vmem:[#allocation240_spill] sm:$0xff] }
 0x60f   :  { %7161 = vmatpush.msra.mxu0 %v18535_v42  ;;  %7317 = vmatpush.msra.mxu3 %v18494_v60  ;;  %v18540_v42 = vld [vmem:[#allocation254_spill] sm:$0xff]  ;;  %v18580_v60 = vld [vmem:[#allocation32_spill] sm:$0xff] }
 0x610   :  { %7215 = vmatpush.msra.mxu1 %v18503_v39  ;;  %7280 = vmatpush.msra.mxu2 %v18536_v57  ;;  %v18543_v57 = vld [vmem:[#allocation244_spill] sm:$0xff] }
 0x611   :  { %7164 = vmatpush.msra.mxu0 %v18537_v19  ;;  %7319 = vmatpush.msra.mxu3 %v18497_v30  ;;  %v18542_v19 = vld [vmem:[#allocation25_spill] sm:$0xff]  ;;  %v18577_v30 = vld [vmem:[#allocation31_spill] sm:$0xff]  ;;  %v18583_v23 = vld [vmem:[#allocation36_spill] sm:$0xff] }
 0x612   :  { %7217 = vmatpush.msra.mxu1 %v18506_v53  ;;  %7284 = vmatpush.msra.mxu2 %v18538_v45  ;;  %v18545_v45 = vld [vmem:[#allocation248_spill] sm:$0xff] }
 0x613   :  { %7167 = vmatpush.msra.mxu0 %v18539_v3  ;;  %7321 = vmatpush.msra.mxu3 %v18500_v13  ;;  %v18544_v3 = vld [vmem:[#allocation27_spill] sm:$0xff]  ;;  %v18574_v13 = vld [vmem:[#allocation24_spill] sm:$0xff] }
 0x614   :  { %7221 = vmatmul.f32.vlgmr.msra.gmra.mxu1 %v14915_v58  ;;  %7288 = vmatpush.msra.mxu2 %v18540_v42  ;;  %v18546_v58 = vld [vmem:[#allocation5_spill] sm:$0xff] }
 0x615   :  { %7170 = vmatpush.msra.mxu0 %v18541_v48  ;;  %7323 = vmatpush.msra.mxu3 %v18503_v39  ;;  %v18547_v42 = vld [vmem:[#allocation29_spill] sm:$0xff]  ;;  %v18548_v48 = vld [vmem:[#allocation3_spill] sm:$0xff]  ;;  %v18571_v39 = vld [vmem:[#allocation12_spill] sm:$0xff] }
 0x616   :  { %7290 = vmatmul.f32.vlgmr.msra.gmra.mxu2 %v14906_v36  ;;  %7451 = vmatpush.msrb.mxu1 %v18542_v19  ;;  %v18552_v19 = vld [vmem:[#allocation14_spill] sm:$0xff] }
 0x617   :  { %7173 = vmatpush.msra.mxu0 %v18543_v57  ;;  %7325 = vmatpush.msra.mxu3 %v18506_v53  ;;  %v18551_v57 = vld [vmem:[#allocation33_spill] sm:$0xff]  ;;  %v18568_v53 = vld [vmem:[#allocation11_spill] sm:$0xff] }
 0x618   :  { %7327 = vmatmul.f32.vlgmr.msra.gmra.mxu3 %v14906_v36  ;;  %7457 = vmatpush.msrb.mxu1 %v18544_v3  ;;  %v18553_v36 = vld [vmem:[#allocation4_spill] sm:$0xff] }
 0x619   :  { %7176 = vmatpush.msra.mxu0 %v18545_v45  ;;  %7549 = vmatpush.msrb.mxu2 %v18546_v58  ;;  %v18554_v45 = vld [vmem:[#allocation38_spill] sm:$0xff]  ;;  %v18555_v58 = vld [vmem:[#allocation15_spill] sm:$0xff]  ;;  %v18562_v3 = vld [vmem:[#allocation8_spill] sm:$0xff] }
 0x61a   :  { %7463 = vmatpush.msrb.mxu1 %v18547_v42  ;;  %7602 = vmatpush.msrb.mxu3 %v18548_v48  ;;  %v18556_v42 = vld [vmem:[#allocation6_spill] sm:$0xff] }
 0x61b   :  { %7179 = vmatpush.msra.mxu0 %v18549_v16  ;;  %7552 = vmatpush.msrb.mxu2 %v18550_v34  ;;  %v18557_v16 = vld [vmem:[#allocation42_spill] sm:$0xff]  ;;  %v18558_v34 = vld [vmem:[#allocation16_spill] sm:$0xff] }
 0x61c   :  { %7182 = vmatmul.f32.vlgmr.msra.gmra.mxu0 %v14909_v7  ;;  %7469 = vmatpush.msrb.mxu1 %v18551_v57  ;;  %v18559_v7 = vld [vmem:[#allocation7_spill] sm:$0xff]  ;;  %v18561_v57 = vld [vmem:[#allocation18_spill] sm:$0xff] }
 0x61d   :  { %7555 = vmatpush.msrb.mxu2 %v18552_v19  ;;  %7604 = vmatpush.msrb.mxu3 %v18553_v36  ;;  %v18560_v19 = vld [vmem:[#allocation46_spill] sm:$0xff] }
 0x61e   :  { %7406 = vmatpush.msrb.mxu0 %v18548_v48  ;;  %7475 = vmatpush.msrb.mxu1 %v18554_v45  ;;  %v18564_v45 = vld [vmem:[#allocation19_spill] sm:$0xff] }
 0x61f   :  { %7558 = vmatpush.msrb.mxu2 %v18555_v58  ;;  %7606 = vmatpush.msrb.mxu3 %v18556_v42  ;;  %v18563_v58 = vld [vmem:[#allocation51_spill] sm:$0xff] }
 0x620   :  { %7408 = vmatpush.msrb.mxu0 %v18553_v36  ;;  %7481 = vmatpush.msrb.mxu1 %v18557_v16  ;;  %v18567_v16 = vld [vmem:[#allocation26_spill] sm:$0xff] }
 0x621   :  { %7561 = vmatpush.msrb.mxu2 %v18558_v34  ;;  %7608 = vmatpush.msrb.mxu3 %v18559_v7  ;;  %v18566_v34 = vld [vmem:[#allocation55_spill] sm:$0xff] }
 0x622   :  { %7410 = vmatpush.msrb.mxu0 %v18556_v42  ;;  %7487 = vmatpush.msrb.mxu1 %v18560_v19  ;;  %v18570_v19 = vld [vmem:[#allocation30_spill] sm:$0xff] }
 0x623   :  { %7564 = vmatpush.msrb.mxu2 %v18561_v57  ;;  %7610 = vmatpush.msrb.mxu3 %v18562_v3  ;;  %v18569_v57 = vld [vmem:[#allocation60_spill] sm:$0xff] }
 0x624   :  { %7412 = vmatpush.msrb.mxu0 %v18559_v7  ;;  %7493 = vmatpush.msrb.mxu1 %v18563_v58  ;;  %v18573_v58 = vld [vmem:[#allocation35_spill] sm:$0xff] }
 0x625   :  { %7567 = vmatpush.msrb.mxu2 %v18564_v45  ;;  %7612 = vmatpush.msrb.mxu3 %v18565_v31  ;;  %v18572_v45 = vld [vmem:[#allocation63_spill] sm:$0xff] }
 0x626   :  { %7414 = vmatpush.msrb.mxu0 %v18562_v3  ;;  %7499 = vmatpush.msrb.mxu1 %v18566_v34  ;;  %v18576_v34 = vld [vmem:[#allocation40_spill] sm:$0xff] }
 0x627   :  { %7570 = vmatpush.msrb.mxu2 %v18567_v16  ;;  %7614 = vmatpush.msrb.mxu3 %v18568_v53  ;;  %v18575_v16 = vld [vmem:[#allocation68_spill] sm:$0xff] }
 0x628   :  { %7416 = vmatpush.msrb.mxu0 %v18565_v31  ;;  %7505 = vmatpush.msrb.mxu1 %v18569_v57  ;;  %v18579_v57 = vld [vmem:[#allocation44_spill] sm:$0xff] }
 0x629   :  { %7573 = vmatpush.msrb.mxu2 %v18570_v19  ;;  %7616 = vmatpush.msrb.mxu3 %v18571_v39  ;;  %v18578_v19 = vld [vmem:[#allocation72_spill] sm:$0xff] }
 0x62a   :  { %7418 = vmatpush.msrb.mxu0 %v18568_v53  ;;  %7511 = vmatpush.msrb.mxu1 %v18572_v45  ;;  %v18582_v45 = vld [vmem:[#allocation45_spill] sm:$0xff] }
 0x62b   :  { %7576 = vmatpush.msrb.mxu2 %v18573_v58  ;;  %7618 = vmatpush.msrb.mxu3 %v18574_v13  ;;  %v18581_v58 = vld [vmem:[#allocation76_spill] sm:$0xff] }
 0x62c   :  { %7420 = vmatpush.msrb.mxu0 %v18571_v39  ;;  %7517 = vmatpush.msrb.mxu1 %v18575_v16  ;;  %v18585_v16 = vld [vmem:[#allocation49_spill] sm:$0xff] }
 0x62d   :  { %7579 = vmatpush.msrb.mxu2 %v18576_v34  ;;  %7620 = vmatpush.msrb.mxu3 %v18577_v30  ;;  %v18584_v34 = vld [vmem:[#allocation80_spill] sm:$0xff] }
 0x62e   :  { %7422 = vmatpush.msrb.mxu0 %v18574_v13  ;;  %7523 = vmatpush.msrb.mxu1 %v18578_v19  ;;  %v18588_v19 = vld [vmem:[#allocation56_spill] sm:$0xff] }
 0x62f   :  { %7582 = vmatpush.msrb.mxu2 %v18579_v57  ;;  %7622 = vmatpush.msrb.mxu3 %v18580_v60  ;;  %v18587_v57 = vld [vmem:[#allocation85_spill] sm:$0xff] }
 0x630   :  { %7424 = vmatpush.msrb.mxu0 %v18577_v30  ;;  %7529 = vmatpush.msrb.mxu1 %v18581_v58  ;;  %v18591_v58 = vld [vmem:[#allocation48_spill] sm:$0xff] }
 0x631   :  { %7585 = vmatpush.msrb.mxu2 %v18582_v45  ;;  %7624 = vmatpush.msrb.mxu3 %v18583_v23  ;;  %v18590_v45 = vld [vmem:[#allocation61_spill] sm:$0xff] }
 0x632   :  { %7426 = vmatpush.msrb.mxu0 %v18580_v60  ;;  %7535 = vmatpush.msrb.mxu1 %v18584_v34  ;;  %v18596_v34 = vld [vmem:[#allocation92_spill] sm:$0xff] }
 0x633   :  { %7588 = vmatpush.msrb.mxu2 %v18585_v16  ;;  %7626 = vmatpush.msrb.mxu3 %v18586_v50  ;;  %v18592_v16 = vld [vmem:[#allocation53_spill] sm:$0xff] }
 0x634   :  { %7428 = vmatpush.msrb.mxu0 %v18583_v23  ;;  %7541 = vmatpush.msrb.mxu1 %v18587_v57  ;;  %v18595_v57 = vld [vmem:[#allocation13_spill] sm:$0xff] }
 0x635   :  { %7591 = vmatpush.msrb.mxu2 %v18588_v19  ;;  %7628 = vmatpush.msrb.mxu3 %v18589_v22  ;;  %v18593_v19 = vld [vmem:[#allocation83_spill] sm:$0xff] }
 0x636   :  { %7710 = vmatpush.msra.mxu1 %v18548_v48  ;;  %7430 = vmatpush.msrb.mxu0 %v18586_v50 }
 0x637   :  { %7594 = vmatpush.msrb.mxu2 %v18590_v45  ;;  %7630 = vmatpush.msrb.mxu3 %v18591_v58  ;;  %v18594_v45 = vld [vmem:[#allocation88_spill] sm:$0xff] }
 0x638   :  { %7712 = vmatpush.msra.mxu1 %v18553_v36  ;;  %7432 = vmatpush.msrb.mxu0 %v18589_v22 }
 0x639   :  { %7747 = vmatpush.msra.mxu2 %v17671_v11  ;;  %7632 = vmatpush.msrb.mxu3 %v18592_v16 }
 0x63a   :  { %7714 = vmatpush.msra.mxu1 %v18556_v42  ;;  %7434 = vmatpush.msrb.mxu0 %v18591_v58  ;;  %v18597_v42 = vld [vmem:[#allocation17_spill] sm:$0xff] }
 0x63b   :  { %7749 = vmatpush.msra.mxu2 %v17674_v21  ;;  %7792 = vmatpush.msra.mxu3 %v18593_v19  ;;  %v18598_v19 = vld [vmem:[#allocation95_spill] sm:$0xff] }
 0x63c   :  { %7716 = vmatpush.msra.mxu1 %v18559_v7  ;;  %7436 = vmatpush.msrb.mxu0 %v18592_v16  ;;  %v18599_v7 = vld [vmem:[#allocation20_spill] sm:$0xff] }
 0x63d   :  { %7751 = vmatpush.msra.mxu2 %v17676_v2  ;;  %7798 = vmatpush.msra.mxu3 %v18594_v45  ;;  %v18601_v45 = vld [vmem:[#allocation21_spill] sm:$0xff] }
 0x63e   :  { %7643 = vmatpush.msra.mxu0 %v18595_v57  ;;  %7718 = vmatpush.msra.mxu1 %v18562_v3  ;;  %v18600_v57 = vld [vmem:[#allocation99_spill] sm:$0xff] }
 0x63f   :  { %7753 = vmatpush.msra.mxu2 %v17679_v38  ;;  %7804 = vmatpush.msra.mxu3 %v18596_v34  ;;  %v18603_v34 = vld [vmem:[#allocation22_spill] sm:$0xff] }
 0x640   :  { %7647 = vmatpush.msra.mxu0 %v18597_v42  ;;  %7720 = vmatpush.msra.mxu1 %v18565_v31  ;;  %v18602_v42 = vld [vmem:[#allocation102_spill] sm:$0xff] }
 0x641   :  { %7755 = vmatpush.msra.mxu2 %v17682_v17  ;;  %7810 = vmatpush.msra.mxu3 %v18598_v19  ;;  %v18605_v19 = vld [vmem:[#allocation23_spill] sm:$0xff] }
 0x642   :  { %7651 = vmatpush.msra.mxu0 %v18599_v7  ;;  %7722 = vmatpush.msra.mxu1 %v18568_v53  ;;  %v18604_v7 = vld [vmem:[#allocation105_spill] sm:$0xff] }
 0x643   :  { %7757 = vmatpush.msra.mxu2 %v17685_v62  ;;  %7816 = vmatpush.msra.mxu3 %v18600_v57  ;;  %v18607_v57 = vld [vmem:[#allocation28_spill] sm:$0xff] }
 0x644   :  { %7655 = vmatpush.msra.mxu0 %v18601_v45  ;;  %7724 = vmatpush.msra.mxu1 %v18571_v39  ;;  %v18606_v45 = vld [vmem:[#allocation111_spill] sm:$0xff] }
 0x645   :  { %7759 = vmatpush.msra.mxu2 %v17688_v33  ;;  %7822 = vmatpush.msra.mxu3 %v18602_v42  ;;  %v18609_v42 = vld [vmem:[#allocation34_spill] sm:$0xff] }
 0x646   :  { %7659 = vmatpush.msra.mxu0 %v18603_v34  ;;  %7726 = vmatpush.msra.mxu1 %v18574_v13  ;;  %v18608_v34 = vld [vmem:[#allocation115_spill] sm:$0xff] }
 0x647   :  { %7761 = vmatpush.msra.mxu2 %v17691_v40  ;;  %7828 = vmatpush.msra.mxu3 %v18604_v7  ;;  %v18611_v7 = vld [vmem:[#allocation39_spill] sm:$0xff] }
 0x648   :  { %7663 = vmatpush.msra.mxu0 %v18605_v19  ;;  %7728 = vmatpush.msra.mxu1 %v18577_v30  ;;  %v18610_v19 = vld [vmem:[#allocation118_spill] sm:$0xff] }
 0x649   :  { %7763 = vmatpush.msra.mxu2 %v17694_v8  ;;  %7834 = vmatpush.msra.mxu3 %v18606_v45  ;;  %v18613_v45 = vld [vmem:[#allocation43_spill] sm:$0xff] }
 0x64a   :  { %7667 = vmatpush.msra.mxu0 %v18607_v57  ;;  %7730 = vmatpush.msra.mxu1 %v18580_v60  ;;  %v18612_v57 = vld [vmem:[#allocation121_spill] sm:$0xff] }
 0x64b   :  { %7765 = vmatpush.msra.mxu2 %v17697_v1  ;;  %7840 = vmatpush.msra.mxu3 %v18608_v34  ;;  %v18615_v34 = vld [vmem:[#allocation47_spill] sm:$0xff] }
 0x64c   :  { %7671 = vmatpush.msra.mxu0 %v18609_v42  ;;  %7732 = vmatpush.msra.mxu1 %v18583_v23  ;;  %v18614_v42 = vld [vmem:[#allocation125_spill] sm:$0xff]  ;;  %v6160_v23 = vpop.f32.mrf.mxu2 }
 0x64d   :  { %7767 = vmatpush.msra.mxu2 %v17700_v15  ;;  %7846 = vmatpush.msra.mxu3 %v18610_v19  ;;  %v18617_v19 = vld [vmem:[#allocation52_spill] sm:$0xff] }
 0x64e   :  { %7675 = vmatpush.msra.mxu0 %v18611_v7  ;;  %7734 = vmatpush.msra.mxu1 %v18586_v50  ;;  %v18616_v7 = vld [vmem:[#allocation127_spill] sm:$0xff]  ;;  %v6199_v50 = vpop.f32.mrf.mxu3 }
 0x64f   :  { %7769 = vmatpush.msra.mxu2 %v17704_v5  ;;  %7852 = vmatpush.msra.mxu3 %v18612_v57  ;;  %v18619_v57 = vld [vmem:[#allocation54_spill] sm:$0xff] }
 0x650   :  { %7679 = vmatpush.msra.mxu0 %v18613_v45  ;;  %7736 = vmatpush.msra.mxu1 %v18589_v22  ;;  %v18618_v45 = vld [vmem:[#allocation128_spill] sm:$0xff]  ;;  %v6005_v22 = vpop.f32.mrf.mxu0 }
 0x651   :  { %7771 = vmatpush.msra.mxu2 %v17707_v41  ;;  %7858 = vmatpush.msra.mxu3 %v18614_v42  ;;  %v18620_v42 = vld [vmem:[#allocation129_spill] sm:$0xff] }
 0x652   :  { %7683 = vmatpush.msra.mxu0 %v18615_v34  ;;  %7738 = vmatpush.msra.mxu1 %v18591_v58  ;;  %v18621_v34 = vld [vmem:[#allocation58_spill] sm:$0xff] }
 0x653   :  { %7773 = vmatpush.msra.mxu2 %v17711_v29  ;;  %7864 = vmatpush.msra.mxu3 %v18616_v7  ;;  %v18622_v58 = vld [vmem:[#allocation130_spill] sm:$0xff]  ;;  %v18623_v7 = vld [vmem:[#allocation64_spill] sm:$0xff] }
 0x654   :  { %7687 = vmatpush.msra.mxu0 %v18617_v19  ;;  %7740 = vmatpush.msra.mxu1 %v18592_v16  ;;  %v18624_v19 = vld [vmem:[#allocation69_spill] sm:$0xff]  ;;  %v6106_v16 = vpop.f32.mrf.mxu1  ;;  %v6346_v13 = vpop.f32.mrf.mxu2 }
 0x655   :  { %7775 = vmatpush.msra.mxu2 %v17715_v56  ;;  %7870 = vmatpush.msra.mxu3 %v18618_v45 }
 0x656   :  { %7691 = vmatpush.msra.mxu0 %v18619_v57  ;;  %v6447_v30 = vpop.f32.mrf.mxu3  ;;  %v6107_v57 = vadd.f32 %v6106_v16, %v6005_v22  ;;  %v18629_v16 = vperm.slane %v18625_v12, 1  ;;  %v18630_v22 = vld [vmem:[#allocation57_spill] sm:$0xff] }
 0x657   :  { %7777 = vmatpush.msra.mxu2 %v18410_v18  ;;  %7876 = vmatpush.msra.mxu3 %v18620_v42  ;;  %v6448_v53 = vadd.f32 %v6447_v30, %v6346_v13 }
 0x658   :  { %7695 = vmatpush.msra.mxu0 %v18621_v34  ;;  %v6268_v60 = vpop.f32.mrf.mxu0  ;;  %v6161_v31 = vadd.f32 %v6160_v23, %v6107_v57  ;;  %v15338_v30 = vadd.f32 %v18630_v22, %v18629_v16 }
 0x659   :  { %7882 = vmatpush.msra.mxu3 %v18622_v58 }
 0x65a   :  { %7699 = vmatpush.msra.mxu0 %v18623_v7  ;;  %v6200_v58 = vadd.f32 %v6199_v50, %v6161_v31  ;;  %18631 = vst [vmem:[#allocation94_spill] sm:$0xff] %v15338_v30 }
 0x65c   :  { %7703 = vmatpush.msra.mxu0 %v18624_v19  ;;  %v6305_v45 = vpop.f32.mrf.mxu1  ;;  %v6269_v36 = vadd.f32 %v6268_v60, %v6200_v58  ;;  %v6609_v48 = vpop.f32.mrf.mxu2 }
 0x65e   :  { %v6306_v25 = vadd.f32 %v6305_v45, %v6269_v36  ;;  %v6646_v19 = vpop.f32.mrf.mxu3 }
 0x660   :  { %v6501_v39 = vpop.f32.mrf.mxu0  ;;  %v7331_v23 = vadd.f32 %v6306_v25, %v15333_v47 }
 0x661   :  { %v6502_v42 = vadd.f32 %v6501_v39, %v6448_v53 }
 0x662   :  { %v11828_v60 = vmul.f32 -1.442695, %v7331_v23 }
 0x664   :  { %v6540_v34 = vpop.f32.mrf.mxu1  ;;  %11907 = vpow2.f32 %v11828_v60  ;;  %v6842_v45 = vpop.f32.mrf.mxu2 }
 0x665   :  { %v6541_v3 = vadd.f32 %v6540_v34, %v6502_v42 }
 0x666   :  { %v6881_v4 = vpop.f32.mrf.mxu3 }
 0x667   :  { %v6610_v7 = vadd.f32 %v6609_v48, %v6541_v3 }
 0x668   :  { %v6687_v3 = vpop.f32.mrf.mxu0 }
 0x669   :  { %v6647_v63 = vadd.f32 %v6646_v19, %v6610_v7 }
 0x66a   :  { %v11908_v53 = vpop.eup %11907 }
 0x66b   :  { %v7332_v50 = vadd.f32 %v6647_v63, %v15338_v30  ;;  %v7338_v52 = vadd.f32 1.0, %v11908_v53 }
 0x66c   :  { %v6788_v31 = vpop.f32.mrf.mxu1 }
 0x66d   :  { %v11829_v34 = vmul.f32 -1.442695, %v7332_v50  ;;  %v6789_v57 = vadd.f32 %v6788_v31, %v6687_v3  ;;  %v18632_v31 = vperm.slane %v18625_v12, 3  ;;  %vm7344_vm15 = vweird.f32 %v7338_v52 }
 0x66f   :  { %11909 = vpow2.f32 %v11829_v34  ;;  %v6843_v63 = vadd.f32 %v6842_v45, %v6789_v57  ;;  %v15345_v18 = vadd.f32 %v18633_v46, %v18632_v31 }
 0x670   :  { %11911 = vrcp.f32 %v7338_v52 }
 0x671   :  { %v6882_v22 = vadd.f32 %v6881_v4, %v6843_v63  ;;  %v18634_v4 = vperm.slane %v18625_v12, 2  ;;  %v18635_v63 = vld [vmem:[#allocation66_spill] sm:$0xff] }
 0x674   :  { %v6987_v19 = vpop.f32.mrf.mxu1 }
 0x675   :  { %v11910_v13 = vpop.eup %11909 }
 0x676   :  { %v7357_v39 = vadd.f32 1.0, %v11910_v13  ;;  %v11912_v36 = vpop.eup %11911 }
 0x677   :  { %v7028_v25 = vpop.f32.mrf.mxu2  ;;  %v7340_v30 = vmul.f32 %v11912_v36, %v7338_v52  ;;  %vm7345_vm13 = vweird.f32 %v11912_v36 }
 0x678   :  { %11913 = vrcp.f32 %v7357_v39  ;;  %vm7363_vm0 = vweird.f32 %v7357_v39  ;;  %v7367_v12 = vand.u32 2147483647, %v7357_v39  ;;  %vm7346_vm1 = vmor %vm7344_vm15, %vm7345_vm13 }
 0x679   :  { %v6950_v48 = vpop.f32.mrf.mxu0 }
 0x67a   :  { %v7129_v42 = vpop.f32.mrf.mxu3  ;;  %v6951_v60 = vadd.f32 %v6950_v48, %v6882_v22  ;;  %vm7368_vm3 = vcmp.eq.f32.partialorder %v7367_v12, 8.507059e+37 }
 0x67b   :  { %v7130_v58 = vadd.f32 %v7129_v42, %v7028_v25  ;;  %v7341_v25 = vsub.f32 1.0, %v7340_v30  ;;  %v7369_v30 = vand.u32 2147483648, %v7357_v39 }
 0x67c   :  { %v6988_v45 = vadd.f32 %v6987_v19, %v6951_v60  ;;  %v7350_v19 = vand.u32 2147483648, %v7338_v52  ;;  %v7348_v60 = vand.u32 2147483647, %v7338_v52 }
 0x67e   :  { %v11914_v16 = vpop.eup %11913  ;;  %vm7349_vm4 = vcmp.eq.f32.partialorder %v7348_v60, 8.507059e+37 }
 0x67f   :  { %v7359_v53 = vmul.f32 %v11914_v16, %v7357_v39  ;;  %vm7364_vm14 = vweird.f32 %v11914_v16 }
 0x680   :  { %vm7365_vm2 = vmor %vm7363_vm0, %vm7364_vm14 }
 0x681   :  { %v7360_v42 = vsub.f32 1.0, %v7359_v53 }
 0x691   :  { %v7222_v50 = vpop.f32.mrf.mxu1 }
 0x699   :  { %v7183_v7 = vpop.f32.mrf.mxu0  ;;  %v7291_v13 = vpop.f32.mrf.mxu2 }
 0x69a   :  { %v7184_v23 = vadd.f32 %v7183_v7, %v7130_v58  ;;  %v15350_v58 = vadd.f32 %v18635_v63, %v18634_v4  ;;  %v7394_v4 = vrot.slane %v14899_v9, 6 }
 0x69b   :  { %v7328_v3 = vpop.f32.mrf.mxu3 }
 0x69c   :  { %v7223_v34 = vadd.f32 %v7222_v50, %v7184_v23  ;;  %v7333_v7 = vadd.f32 %v6988_v45, %v15350_v58  ;;  %v7361_v23 = vmul.f32 %v11914_v16, %v7360_v42  ;;  %v7342_v50 = vmul.f32 %v11912_v36, %v7341_v25 }
 0x69d   :  { %v7370_v45 = vor.u32 1.1754944e-38, %v7369_v30 }
 0x69e   :  { %v7292_v47 = vadd.f32 %v7291_v13, %v7223_v34  ;;  %v7362_v46 = vadd.f32 %v11914_v16, %v7361_v23 }
 0x6a0   :  { %v7329_v57 = vadd.f32 %v7328_v3, %v7292_v47  ;;  %v7343_v47 = vadd.f32 %v11912_v36, %v7342_v50  ;;  %v7366_v13 = vsel %vm7365_vm2, %v11914_v16, %v7362_v46 }
 0x6a1   :  { %v7371_v42 = vsel %vm7368_vm3, %v7370_v45, %v7366_v13  ;;  %v18638_v45 = vld [vmem:[#allocation119_spill] sm:$0xff] }
 0x6a2   :  { %v7334_v48 = vadd.f32 %v7329_v57, %v15345_v18  ;;  %v7347_v53 = vsel %vm7346_vm1, %v11912_v36, %v7343_v47  ;;  %v7351_v57 = vor.u32 1.1754944e-38, %v7350_v19 }
 0x6a4   :  { %v11830_v22 = vmul.f32 -1.442695, %v7334_v48  ;;  %v7352_v25 = vsel %vm7349_vm4, %v7351_v57, %v7347_v53  ;;  %v7396_v48 = vmul.f32 %v7394_v4, %v7371_v42  ;;  %v18639_v57 = vld [vmem:[#allocation104_spill] sm:$0xff]  ;;  %v18642_v4 = vld [vmem:[#allocation117_spill] sm:$0xff] }
 0x6a5   :  { %v18641_v42 = vld [vmem:[#allocation108_spill] sm:$0xff] }
 0x6a6   :  { %11915 = vpow2.f32 %v11830_v22 }
 0x6a7   :  { %11917 = vtanh.f32 %v7333_v7 }
 0x6ac   :  { %v11916_v34 = vpop.eup %11915 }
 0x6ad   :  { %v7377_v3 = vadd.f32 1.0, %v11916_v34  ;;  %v11918_v31 = vpop.eup %11917 }
 0x6ae   :  { %v7397_v63 = vmul.f32 %v11918_v31, %v7352_v25  ;;  %v18637_v31 = vld [vmem:[#allocation100_spill] sm:$0xff]  ;;  %v18640_v25 = vld [vmem:[#allocation122_spill] sm:$0xff] }
 0x6af   :  { %11919 = vrcp.f32 %v7377_v3  ;;  %v7389_v36 = vand.u32 2147483648, %v7377_v3  ;;  %v7387_v23 = vand.u32 2147483647, %v7377_v3  ;;  %vm7383_vm6 = vweird.f32 %v7377_v3 }
 0x6b0   :  { %v15355_v7 = vadd.f32 %v7397_v63, %v7396_v48  ;;  %v18643_v63 = vld [vmem:[#allocation124_spill] sm:$0xff] }
 0x6b1   :  { %v7390_v46 = vor.u32 1.1754944e-38, %v7389_v36  ;;  %vm7388_vm13 = vcmp.eq.f32.partialorder %v7387_v23, 8.507059e+37  ;;  %v18644_v48 = vld [vmem:[#allocation112_spill] sm:$0xff]  ;;  %v18648_v36 = vld [vmem:[#allocation133_spill] sm:$0xff]  ;;  %v18650_v23 = vld [vmem:[#allocation158_spill] sm:$0xff] }
 0x6b2   :  { %11921 = vtanh.f32 %v15355_v7 }
 0x6b5   :  { %v11920_v39 = vpop.eup %11919 }
 0x6b6   :  { %v7379_v52 = vmul.f32 %v11920_v39, %v7377_v3  ;;  %vm7384_vm5 = vweird.f32 %v11920_v39  ;;  %v18636_v3 = vld [vmem:[#allocation114_spill] sm:$0xff] }
 0x6b7   :  { %vm7385_vm7 = vmor %vm7383_vm6, %vm7384_vm5 }
 0x6b8   :  { %v7380_v22 = vsub.f32 1.0, %v7379_v52  ;;  %v11922_v9 = vpop.eup %11921  ;;  %v18646_v52 = vld [vmem:[#allocation126_spill] sm:$0xff] }
 0x6ba   :  { %v7381_v16 = vmul.f32 %v11920_v39, %v7380_v22  ;;  %v18647_v22 = vld [vmem:[#allocation154_spill] sm:$0xff] }
 0x6bc   :  { %v7382_v50 = vadd.f32 %v11920_v39, %v7381_v16  ;;  %v18649_v16 = vld [vmem:[#allocation116_spill] sm:$0xff] }
 0x6be   :  { %v7386_v47 = vsel %vm7385_vm7, %v11920_v39, %v7382_v50  ;;  %v18645_v39 = vld [vmem:[#allocation150_spill] sm:$0xff]  ;;  %v18651_v50 = vld [vmem:[#allocation135_spill] sm:$0xff] }
 0x6bf   :  { %v7391_v30 = vsel %vm7388_vm13, %v7390_v46, %v7386_v47  ;;  %v18652_v46 = vld [vmem:[#allocation131_spill] sm:$0xff]  ;;  %v18653_v47 = vld [vmem:[#allocation120_spill] sm:$0xff] }
 0x6c0   :  { %v15358_v19 = vmul.f32 %v11922_v9, %v7391_v30  ;;  %v18654_v9 = vld [vmem:[#allocation162_spill] sm:$0xff] }
 0x6c1   :  { %v18655_v30 = vld [vmem:[#allocation138_spill] sm:$0xff] }
 0x6c2   :  { %v15361_v12 = vand.u32 4294901760, %v15358_v19 }
 0x6c4   :  { %7543 = vmatmul.f32.vlgmr.msrb.gmra.mxu1 %v15361_v12  ;;  %v15366_v60 = vsub.f32 %v15358_v19, %v15361_v12 }
 0x6c5   :  { %7943 = vmatpush.msrb.mxu1 %v17671_v11 }
 0x6c6   :  { %7597 = vmatmul.f32.vlgmr.msrb.gmra.mxu2 %v15366_v60  ;;  %v15371_v34 = vand.u32 4294901760, %v15366_v60 }
 0x6c7   :  { %7945 = vmatpush.msrb.mxu1 %v17674_v21  ;;  %7984 = vmatpush.msrb.mxu2 %v17729_v51 }
 0x6c8   :  { %7636 = vmatmul.f32.vlgmr.msrb.gmra.mxu3 %v15371_v34  ;;  %v7440_v53 = vsub.f32 %v15366_v60, %v15371_v34 }
 0x6c9   :  { %7947 = vmatpush.msrb.mxu1 %v17676_v2  ;;  %7988 = vmatpush.msrb.mxu2 %v17730_v32 }
 0x6ca   :  { %8051 = vmatpush.msrb.mxu3 %v17671_v11  ;;  %v15381_v13 = vand.u32 4294901760, %v7440_v53  ;;  %v18656_v53 = vld [vmem:[#allocation132_spill] sm:$0xff] }
 0x6cb   :  { %7949 = vmatpush.msrb.mxu1 %v17679_v38  ;;  %7992 = vmatpush.msrb.mxu2 %v17731_v44 }
 0x6cc   :  { %8053 = vmatpush.msrb.mxu3 %v17674_v21  ;;  %7442 = vmatmul.f32.vlgmr.msrb.gmra.mxu0 %v15381_v13 }
 0x6cd   :  { %7742 = vmatmul.f32.vlgmr.msra.gmra.mxu1 %v15361_v12  ;;  %7890 = vmatpush.msrb.mxu0 %v17732_v35 }
 0x6ce   :  { %7951 = vmatpush.msrb.mxu1 %v17682_v17  ;;  %7996 = vmatpush.msrb.mxu2 %v17733_v43 }
 0x6cf   :  { %8055 = vmatpush.msrb.mxu3 %v17676_v2  ;;  %7783 = vmatmul.f32.vlgmr.msra.gmra.mxu2 %v15381_v13 }
 0x6d0   :  { %7893 = vmatpush.msrb.mxu0 %v17734_v14  ;;  %7953 = vmatpush.msrb.mxu1 %v17685_v62 }
 0x6d1   :  { %8000 = vmatpush.msrb.mxu2 %v17735_v59  ;;  %8057 = vmatpush.msrb.mxu3 %v17679_v38 }
 0x6d2   :  { %7884 = vmatmul.f32.vlgmr.msra.gmra.mxu3 %v15361_v12  ;;  %7896 = vmatpush.msrb.mxu0 %v17736_v28 }
 0x6d3   :  { %7955 = vmatpush.msrb.mxu1 %v17688_v33  ;;  %8004 = vmatpush.msrb.mxu2 %v17737_v0 }
 0x6d4   :  { %8059 = vmatpush.msrb.mxu3 %v17682_v17  ;;  %7899 = vmatpush.msrb.mxu0 %v17738_v26 }
 0x6d5   :  { %7957 = vmatpush.msrb.mxu1 %v17691_v40  ;;  %8008 = vmatpush.msrb.mxu2 %v17951_v54 }
 0x6d6   :  { %8061 = vmatpush.msrb.mxu3 %v17685_v62  ;;  %7705 = vmatmul.f32.vlgmr.msra.gmra.mxu0 %v15361_v12 }
 0x6d7   :  { %7902 = vmatpush.msrb.mxu0 %v17952_v49  ;;  %7959 = vmatpush.msrb.mxu1 %v17694_v8 }
 0x6d8   :  { %8012 = vmatpush.msrb.mxu2 %v17953_v37  ;;  %8063 = vmatpush.msrb.mxu3 %v17688_v33 }
 0x6d9   :  { %7905 = vmatpush.msrb.mxu0 %v17954_v10  ;;  %7961 = vmatpush.msrb.mxu1 %v17697_v1 }
 0x6da   :  { %8016 = vmatpush.msrb.mxu2 %v17955_v6  ;;  %8065 = vmatpush.msrb.mxu3 %v17691_v40 }
 0x6db   :  { %7908 = vmatpush.msrb.mxu0 %v17956_v55  ;;  %7963 = vmatpush.msrb.mxu1 %v17700_v15 }
 0x6dc   :  { %8020 = vmatpush.msrb.mxu2 %v17957_v61  ;;  %8067 = vmatpush.msrb.mxu3 %v17694_v8 }
 0x6dd   :  { %7911 = vmatpush.msrb.mxu0 %v18177_v27  ;;  %7965 = vmatpush.msrb.mxu1 %v17704_v5  ;;  %v18710_v27 = vld [vmem:[#allocation229_spill] sm:$0xff] }
 0x6de   :  { %8024 = vmatpush.msrb.mxu2 %v18402_v20  ;;  %8069 = vmatpush.msrb.mxu3 %v17697_v1  ;;  %v18707_v20 = vld [vmem:[#allocation225_spill] sm:$0xff] }
 0x6df   :  { %7914 = vmatpush.msrb.mxu0 %v18403_v24  ;;  %7967 = vmatpush.msrb.mxu1 %v17707_v41  ;;  %v18704_v24 = vld [vmem:[#allocation221_spill] sm:$0xff] }
 0x6e0   :  { %8028 = vmatpush.msrb.mxu2 %v18636_v3  ;;  %8071 = vmatpush.msrb.mxu3 %v17700_v15  ;;  %v18702_v3 = vld [vmem:[#allocation194_spill] sm:$0xff] }
 0x6e1   :  { %7917 = vmatpush.msrb.mxu0 %v18637_v31  ;;  %7969 = vmatpush.msrb.mxu1 %v17711_v29  ;;  %v18692_v31 = vld [vmem:[#allocation185_spill] sm:$0xff] }
 0x6e2   :  { %8032 = vmatpush.msrb.mxu2 %v18638_v45  ;;  %8073 = vmatpush.msrb.mxu3 %v17704_v5  ;;  %v18689_v45 = vld [vmem:[#allocation180_spill] sm:$0xff] }
 0x6e3   :  { %7920 = vmatpush.msrb.mxu0 %v18639_v57  ;;  %7971 = vmatpush.msrb.mxu1 %v17715_v56  ;;  %v18686_v57 = vld [vmem:[#allocation175_spill] sm:$0xff] }
 0x6e4   :  { %8036 = vmatpush.msrb.mxu2 %v18640_v25  ;;  %8075 = vmatpush.msrb.mxu3 %v17707_v41  ;;  %v18683_v25 = vld [vmem:[#allocation171_spill] sm:$0xff] }
 0x6e5   :  { %7923 = vmatpush.msrb.mxu0 %v18641_v42  ;;  %7973 = vmatpush.msrb.mxu1 %v18642_v4  ;;  %v18680_v42 = vld [vmem:[#allocation167_spill] sm:$0xff] }
 0x6e6   :  { %8040 = vmatpush.msrb.mxu2 %v18643_v63  ;;  %8077 = vmatpush.msrb.mxu3 %v17711_v29  ;;  %v18677_v63 = vld [vmem:[#allocation163_spill] sm:$0xff] }
 0x6e7   :  { %7977 = vmatmul.f32.vlgmr.msrb.gmra.mxu1 %v15371_v34  ;;  %7926 = vmatpush.msrb.mxu0 %v18644_v48  ;;  %v18671_v48 = vld [vmem:[#allocation153_spill] sm:$0xff] }
 0x6e8   :  { %8133 = vmatpush.msra.mxu1 %v18645_v39  ;;  %8044 = vmatpush.msrb.mxu2 %v18646_v52  ;;  %v18668_v52 = vld [vmem:[#allocation149_spill] sm:$0xff]  ;;  %v18674_v39 = vld [vmem:[#allocation159_spill] sm:$0xff] }
 0x6e9   :  { %8079 = vmatpush.msrb.mxu3 %v17715_v56  ;;  %8046 = vmatmul.f32.vlgmr.msrb.gmra.mxu2 %v15361_v12 }
 0x6ea   :  { %8139 = vmatpush.msra.mxu1 %v18647_v22  ;;  %8231 = vmatpush.msra.mxu2 %v18648_v36  ;;  %v18657_v36 = vld [vmem:[#allocation123_spill] sm:$0xff]  ;;  %v18659_v22 = vld [vmem:[#allocation141_spill] sm:$0xff] }
 0x6eb   :  { %7929 = vmatpush.msrb.mxu0 %v18649_v16  ;;  %8081 = vmatpush.msrb.mxu3 %v18642_v4  ;;  %v18658_v16 = vld [vmem:[#allocation165_spill] sm:$0xff] }
 0x6ec   :  { %8083 = vmatmul.f32.vlgmr.msrb.gmra.mxu3 %v15361_v12  ;;  %8145 = vmatpush.msra.mxu1 %v18650_v23  ;;  %v18661_v23 = vld [vmem:[#allocation169_spill] sm:$0xff] }
 0x6ed   :  { %8234 = vmatpush.msra.mxu2 %v18651_v50  ;;  %8284 = vmatpush.msra.mxu3 %v18652_v46  ;;  %v18660_v50 = vld [vmem:[#allocation134_spill] sm:$0xff] }
 0x6ee   :  { %7932 = vmatpush.msrb.mxu0 %v18653_v47  ;;  %8151 = vmatpush.msra.mxu1 %v18654_v9  ;;  %v18662_v47 = vld [vmem:[#allocation145_spill] sm:$0xff] }
 0x6ef   :  { %8237 = vmatpush.msra.mxu2 %v18655_v30  ;;  %8286 = vmatpush.msra.mxu3 %v18656_v53  ;;  %v18663_v30 = vld [vmem:[#allocation136_spill] sm:$0xff]  ;;  %v18664_v9 = vld [vmem:[#allocation173_spill] sm:$0xff] }
 0x6f0   :  { %7935 = vmatpush.msrb.mxu0 %v18657_v36  ;;  %8157 = vmatpush.msra.mxu1 %v18658_v16  ;;  %v18665_v36 = vld [vmem:[#allocation148_spill] sm:$0xff]  ;;  %v18666_v16 = vld [vmem:[#allocation139_spill] sm:$0xff] }
 0x6f1   :  { %7938 = vmatmul.f32.vlgmr.msrb.gmra.mxu0 %v15366_v60  ;;  %8240 = vmatpush.msra.mxu2 %v18659_v22  ;;  %v18667_v22 = vld [vmem:[#allocation177_spill] sm:$0xff] }
 0x6f2   :  { %8088 = vmatpush.msra.mxu0 %v18652_v46  ;;  %8288 = vmatpush.msra.mxu3 %v18660_v50 }
 0x6f3   :  { %8163 = vmatpush.msra.mxu1 %v18661_v23  ;;  %8243 = vmatpush.msra.mxu2 %v18662_v47  ;;  %v18669_v23 = vld [vmem:[#allocation142_spill] sm:$0xff]  ;;  %v18670_v47 = vld [vmem:[#allocation183_spill] sm:$0xff] }
 0x6f4   :  { %8090 = vmatpush.msra.mxu0 %v18656_v53  ;;  %8290 = vmatpush.msra.mxu3 %v18663_v30 }
 0x6f5   :  { %8169 = vmatpush.msra.mxu1 %v18664_v9  ;;  %8246 = vmatpush.msra.mxu2 %v18665_v36  ;;  %v18672_v9 = vld [vmem:[#allocation143_spill] sm:$0xff]  ;;  %v18673_v36 = vld [vmem:[#allocation188_spill] sm:$0xff] }
 0x6f6   :  { %8092 = vmatpush.msra.mxu0 %v18660_v50  ;;  %8292 = vmatpush.msra.mxu3 %v18666_v16 }
 0x6f7   :  { %8175 = vmatpush.msra.mxu1 %v18667_v22  ;;  %8249 = vmatpush.msra.mxu2 %v18668_v52  ;;  %v18675_v22 = vld [vmem:[#allocation146_spill] sm:$0xff]  ;;  %v18676_v52 = vld [vmem:[#allocation192_spill] sm:$0xff] }
 0x6f8   :  { %8094 = vmatpush.msra.mxu0 %v18663_v30  ;;  %8294 = vmatpush.msra.mxu3 %v18669_v23 }
 0x6f9   :  { %8181 = vmatpush.msra.mxu1 %v18670_v47  ;;  %8252 = vmatpush.msra.mxu2 %v18671_v48  ;;  %v18678_v47 = vld [vmem:[#allocation152_spill] sm:$0xff]  ;;  %v18679_v48 = vld [vmem:[#allocation197_spill] sm:$0xff] }
 0x6fa   :  { %8096 = vmatpush.msra.mxu0 %v18666_v16  ;;  %8296 = vmatpush.msra.mxu3 %v18672_v9 }
 0x6fb   :  { %8187 = vmatpush.msra.mxu1 %v18673_v36  ;;  %8255 = vmatpush.msra.mxu2 %v18674_v39  ;;  %v18681_v36 = vld [vmem:[#allocation156_spill] sm:$0xff]  ;;  %v18682_v39 = vld [vmem:[#allocation201_spill] sm:$0xff] }
 0x6fc   :  { %8098 = vmatpush.msra.mxu0 %v18669_v23  ;;  %8298 = vmatpush.msra.mxu3 %v18675_v22 }
 0x6fd   :  { %8193 = vmatpush.msra.mxu1 %v18676_v52  ;;  %8258 = vmatpush.msra.mxu2 %v18677_v63  ;;  %v18684_v52 = vld [vmem:[#allocation160_spill] sm:$0xff]  ;;  %v18685_v63 = vld [vmem:[#allocation205_spill] sm:$0xff] }
 0x6fe   :  { %8100 = vmatpush.msra.mxu0 %v18672_v9  ;;  %8300 = vmatpush.msra.mxu3 %v18678_v47 }
 0x6ff   :  { %8199 = vmatpush.msra.mxu1 %v18679_v48  ;;  %8261 = vmatpush.msra.mxu2 %v18680_v42  ;;  %v18687_v48 = vld [vmem:[#allocation164_spill] sm:$0xff] }
 0x700   :  { %8102 = vmatpush.msra.mxu0 %v18675_v22  ;;  %8302 = vmatpush.msra.mxu3 %v18681_v36  ;;  %v18688_v42 = vld [vmem:[#allocation208_spill] sm:$0xff] }
 0x701   :  { %8205 = vmatpush.msra.mxu1 %v18682_v39  ;;  %8264 = vmatpush.msra.mxu2 %v18683_v25  ;;  %v18690_v39 = vld [vmem:[#allocation168_spill] sm:$0xff]  ;;  %v18691_v25 = vld [vmem:[#allocation213_spill] sm:$0xff] }
 0x702   :  { %8104 = vmatpush.msra.mxu0 %v18678_v47  ;;  %8304 = vmatpush.msra.mxu3 %v18684_v52 }
 0x703   :  { %8211 = vmatpush.msra.mxu1 %v18685_v63  ;;  %8267 = vmatpush.msra.mxu2 %v18686_v57  ;;  %v18693_v63 = vld [vmem:[#allocation172_spill] sm:$0xff]  ;;  %v18694_v57 = vld [vmem:[#allocation190_spill] sm:$0xff] }
 0x704   :  { %8106 = vmatpush.msra.mxu0 %v18681_v36  ;;  %8306 = vmatpush.msra.mxu3 %v18687_v48 }
 0x705   :  { %8217 = vmatpush.msra.mxu1 %v18688_v42  ;;  %8270 = vmatpush.msra.mxu2 %v18689_v45  ;;  %v18695_v45 = vld [vmem:[#allocation176_spill] sm:$0xff] }
 0x706   :  { %8108 = vmatpush.msra.mxu0 %v18684_v52  ;;  %8308 = vmatpush.msra.mxu3 %v18690_v39  ;;  %v18699_v42 = vld [vmem:[#allocation212_spill] sm:$0xff] }
 0x707   :  { %8223 = vmatpush.msra.mxu1 %v18691_v25  ;;  %8273 = vmatpush.msra.mxu2 %v18692_v31  ;;  %v18696_v25 = vld [vmem:[#allocation178_spill] sm:$0xff]  ;;  %v18697_v31 = vld [vmem:[#allocation181_spill] sm:$0xff] }
 0x708   :  { %8110 = vmatpush.msra.mxu0 %v18687_v48  ;;  %8310 = vmatpush.msra.mxu3 %v18693_v63 }
 0x709   :  { %8225 = vmatmul.f32.vlgmr.msra.gmra.mxu1 %v15361_v12  ;;  %8276 = vmatpush.msra.mxu2 %v18694_v57  ;;  %v18698_v57 = vld [vmem:[#allocation182_spill] sm:$0xff] }
 0x70a   :  { %8392 = vmatpush.msrb.mxu1 %v18652_v46  ;;  %8112 = vmatpush.msra.mxu0 %v18690_v39  ;;  %v18700_v46 = vld [vmem:[#allocation187_spill] sm:$0xff] }
 0x70b   :  { %8312 = vmatpush.msra.mxu3 %v18695_v45  ;;  %8279 = vmatmul.f32.vlgmr.msra.gmra.mxu2 %v15366_v60 }
 0x70c   :  { %8394 = vmatpush.msrb.mxu1 %v18656_v53  ;;  %8429 = vmatpush.msrb.mxu2 %v18696_v25  ;;  %v18701_v53 = vld [vmem:[#allocation217_spill] sm:$0xff] }
 0x70d   :  { %8114 = vmatpush.msra.mxu0 %v18693_v63  ;;  %8314 = vmatpush.msra.mxu3 %v18697_v31 }
 0x70e   :  { %8318 = vmatmul.f32.vlgmr.msra.gmra.mxu3 %v15371_v34  ;;  %8396 = vmatpush.msrb.mxu1 %v18660_v50  ;;  %v18703_v50 = vld [vmem:[#allocation137_spill] sm:$0xff] }
 0x70f   :  { %8431 = vmatpush.msrb.mxu2 %v18698_v57  ;;  %8474 = vmatpush.msrb.mxu3 %v18699_v42  ;;  %v18705_v42 = vld [vmem:[#allocation199_spill] sm:$0xff] }
 0x710   :  { %8116 = vmatpush.msra.mxu0 %v18695_v45  ;;  %8398 = vmatpush.msrb.mxu1 %v18663_v30  ;;  %v18706_v30 = vld [vmem:[#allocation140_spill] sm:$0xff] }
 0x711   :  { %8433 = vmatpush.msrb.mxu2 %v18700_v46  ;;  %8480 = vmatpush.msrb.mxu3 %v18701_v53  ;;  %v18708_v53 = vld [vmem:[#allocation203_spill] sm:$0xff] }
 0x712   :  { %8118 = vmatpush.msra.mxu0 %v18697_v31  ;;  %8400 = vmatpush.msrb.mxu1 %v18666_v16  ;;  %v18709_v16 = vld [vmem:[#allocation144_spill] sm:$0xff] }
 0x713   :  { %8124 = vmatmul.f32.vlgmr.msra.gmra.mxu0 %v15381_v13  ;;  %8435 = vmatpush.msrb.mxu2 %v18702_v3 }
 0x714   :  { %8325 = vmatpush.msrb.mxu0 %v18703_v50  ;;  %8486 = vmatpush.msrb.mxu3 %v18704_v24  ;;  %v18711_v50 = vld [vmem:[#allocation207_spill] sm:$0xff] }
 0x715   :  { %8402 = vmatpush.msrb.mxu1 %v18669_v23  ;;  %8437 = vmatpush.msrb.mxu2 %v18705_v42  ;;  %v18712_v24 = vld [vmem:[#allocation147_spill] sm:$0xff]  ;;  %v18713_v23 = vld [vmem:[#allocation232_spill] sm:$0xff] }
 0x716   :  { %8329 = vmatpush.msrb.mxu0 %v18706_v30  ;;  %8492 = vmatpush.msrb.mxu3 %v18707_v20  ;;  %v18714_v30 = vld [vmem:[#allocation211_spill] sm:$0xff] }
 0x717   :  { %8404 = vmatpush.msrb.mxu1 %v18672_v9  ;;  %8439 = vmatpush.msrb.mxu2 %v18708_v53  ;;  %v18715_v20 = vld [vmem:[#allocation151_spill] sm:$0xff]  ;;  %v18716_v9 = vld [vmem:[#allocation236_spill] sm:$0xff] }
 0x718   :  { %8333 = vmatpush.msrb.mxu0 %v18709_v16  ;;  %8498 = vmatpush.msrb.mxu3 %v18710_v27  ;;  %v18717_v16 = vld [vmem:[#allocation216_spill] sm:$0xff]  ;;  %v18718_v27 = vld [vmem:[#allocation155_spill] sm:$0xff] }
 0x719   :  { %8406 = vmatpush.msrb.mxu1 %v18675_v22  ;;  %8441 = vmatpush.msrb.mxu2 %v18711_v50  ;;  %v18719_v22 = vld [vmem:[#allocation239_spill] sm:$0xff] }
 0x71a   :  { %8337 = vmatpush.msrb.mxu0 %v18712_v24  ;;  %8504 = vmatpush.msrb.mxu3 %v18713_v23  ;;  %v18720_v24 = vld [vmem:[#allocation220_spill] sm:$0xff]  ;;  %v18721_v23 = vld [vmem:[#allocation157_spill] sm:$0xff] }
 0x71b   :  { %8408 = vmatpush.msrb.mxu1 %v18678_v47  ;;  %8443 = vmatpush.msrb.mxu2 %v18714_v30  ;;  %v18722_v47 = vld [vmem:[#allocation243_spill] sm:$0xff] }
 0x71c   :  { %8341 = vmatpush.msrb.mxu0 %v18715_v20  ;;  %8510 = vmatpush.msrb.mxu3 %v18716_v9  ;;  %v18723_v20 = vld [vmem:[#allocation224_spill] sm:$0xff]  ;;  %v18724_v9 = vld [vmem:[#allocation161_spill] sm:$0xff] }
 0x71d   :  { %8410 = vmatpush.msrb.mxu1 %v18681_v36  ;;  %8445 = vmatpush.msrb.mxu2 %v18717_v16  ;;  %v18725_v36 = vld [vmem:[#allocation246_spill] sm:$0xff] }
 0x71e   :  { %8345 = vmatpush.msrb.mxu0 %v18718_v27  ;;  %8516 = vmatpush.msrb.mxu3 %v18719_v22  ;;  %v18726_v27 = vld [vmem:[#allocation228_spill] sm:$0xff]  ;;  %v18727_v22 = vld [vmem:[#allocation166_spill] sm:$0xff] }
 0x71f   :  { %8412 = vmatpush.msrb.mxu1 %v18684_v52  ;;  %8447 = vmatpush.msrb.mxu2 %v18720_v24  ;;  %v18728_v52 = vld [vmem:[#allocation249_spill] sm:$0xff] }
 0x720   :  { %8349 = vmatpush.msrb.mxu0 %v18721_v23  ;;  %8522 = vmatpush.msrb.mxu3 %v18722_v47  ;;  %v18729_v23 = vld [vmem:[#allocation234_spill] sm:$0xff] }
 0x721   :  { %8414 = vmatpush.msrb.mxu1 %v18687_v48  ;;  %8449 = vmatpush.msrb.mxu2 %v18723_v20  ;;  %v18730_v47 = vld [vmem:[#allocation170_spill] sm:$0xff]  ;;  %v18731_v48 = vld [vmem:[#allocation253_spill] sm:$0xff] }
 0x722   :  { %8353 = vmatpush.msrb.mxu0 %v18724_v9  ;;  %8528 = vmatpush.msrb.mxu3 %v18725_v36  ;;  %v18732_v9 = vld [vmem:[#allocation238_spill] sm:$0xff] }
 0x723   :  { %8416 = vmatpush.msrb.mxu1 %v18690_v39  ;;  %8451 = vmatpush.msrb.mxu2 %v18726_v27  ;;  %v18733_v36 = vld [vmem:[#allocation174_spill] sm:$0xff]  ;;  %v18734_v39 = vld [vmem:[#allocation255_spill] sm:$0xff] }
 0x724   :  { %8357 = vmatpush.msrb.mxu0 %v18727_v22  ;;  %8534 = vmatpush.msrb.mxu3 %v18728_v52  ;;  %v18735_v22 = vld [vmem:[#allocation241_spill] sm:$0xff]  ;;  %v18736_v52 = vld [vmem:[#allocation179_spill] sm:$0xff] }
 0x725   :  { %8418 = vmatpush.msrb.mxu1 %v18693_v63  ;;  %8453 = vmatpush.msrb.mxu2 %v18729_v23  ;;  %v18737_v63 = vld [vmem:[#allocation256_spill] sm:$0xff] }
 0x726   :  { %8361 = vmatpush.msrb.mxu0 %v18730_v47  ;;  %8540 = vmatpush.msrb.mxu3 %v18731_v48  ;;  %v18738_v47 = vld [vmem:[#allocation245_spill] sm:$0xff]  ;;  %v18739_v48 = vld [vmem:[#allocation184_spill] sm:$0xff] }
 0x727   :  { %8420 = vmatpush.msrb.mxu1 %v18695_v45  ;;  %8455 = vmatpush.msrb.mxu2 %v18732_v9  ;;  %v18740_v45 = vld [vmem:[#allocation257_spill] sm:$0xff] }
 0x728   :  { %8365 = vmatpush.msrb.mxu0 %v18733_v36  ;;  %8546 = vmatpush.msrb.mxu3 %v18734_v39  ;;  %v18741_v39 = vld [vmem:[#allocation195_spill] sm:$0xff]  ;;  %v18742_v36 = vld [vmem:[#allocation189_spill] sm:$0xff] }
 0x729   :  { %8422 = vmatpush.msrb.mxu1 %v18697_v31  ;;  %8457 = vmatpush.msrb.mxu2 %v18735_v22 }
 0x72a   :  { %8369 = vmatpush.msrb.mxu0 %v18736_v52  ;;  %8552 = vmatpush.msrb.mxu3 %v18737_v63  ;;  %v18743_v52 = vld [vmem:[#allocation258_spill] sm:$0xff]  ;;  %v18744_v63 = vld [vmem:[#allocation200_spill] sm:$0xff] }
 0x72b   :  { %8424 = vmatmul.f32.vlgmr.msrb.gmra.mxu1 %v15361_v12  ;;  %8459 = vmatpush.msrb.mxu2 %v18738_v47 }
 0x72c   :  { %8625 = vmatpush.msra.mxu1 %v18696_v25  ;;  %8373 = vmatpush.msrb.mxu0 %v18739_v48  ;;  %v18745_v48 = vld [vmem:[#allocation193_spill] sm:$0xff] }
 0x72d   :  { %8558 = vmatpush.msrb.mxu3 %v18740_v45  ;;  %8465 = vmatmul.f32.vlgmr.msrb.gmra.mxu2 %v15381_v13  ;;  %v18746_v13 = vld [vmem:[#allocation204_spill] sm:$0xff]  ;;  %v18781_v45 = vld [vmem:[#allocation251_spill] sm:$0xff] }
 0x72e   :  { %8627 = vmatpush.msra.mxu1 %v18698_v57  ;;  %8666 = vmatpush.msra.mxu2 %v18741_v39  ;;  %v18747_v39 = vld [vmem:[#allocation198_spill] sm:$0xff] }
 0x72f   :  { %8377 = vmatpush.msrb.mxu0 %v18742_v36  ;;  %8564 = vmatpush.msrb.mxu3 %v18743_v52  ;;  %v18748_v52 = vld [vmem:[#allocation209_spill] sm:$0xff]  ;;  %v18749_v36 = vld [vmem:[#allocation186_spill] sm:$0xff] }
 0x730   :  { %8566 = vmatmul.f32.vlgmr.msrb.gmra.mxu3 %v15361_v12  ;;  %8629 = vmatpush.msra.mxu1 %v18700_v46 }
 0x731   :  { %8670 = vmatpush.msra.mxu2 %v18744_v63  ;;  %8733 = vmatpush.msra.mxu3 %v18696_v25  ;;  %v18751_v63 = vld [vmem:[#allocation191_spill] sm:$0xff]  ;;  %v18858_v25 = vld [vmem:[#allocation94_spill] sm:$0xff] }
 0x732   :  { %8381 = vmatpush.msrb.mxu0 %v18745_v48  ;;  %8631 = vmatpush.msra.mxu1 %v18702_v3  ;;  %v18750_v48 = vld [vmem:[#allocation214_spill] sm:$0xff] }
 0x733   :  { %8674 = vmatpush.msra.mxu2 %v18746_v13  ;;  %8735 = vmatpush.msra.mxu3 %v18698_v57  ;;  %v18753_v13 = vld [vmem:[#allocation196_spill] sm:$0xff]  ;;  %v18857_v57 = vld [vmem:[#allocation90_spill] sm:$0xff] }
 0x734   :  { %8385 = vmatpush.msrb.mxu0 %v18747_v39  ;;  %8633 = vmatpush.msra.mxu1 %v18705_v42  ;;  %v18752_v39 = vld [vmem:[#allocation218_spill] sm:$0xff] }
 0x735   :  { %8387 = vmatmul.f32.vlgmr.msrb.gmra.mxu0 %v15361_v12  ;;  %8678 = vmatpush.msra.mxu2 %v18748_v52  ;;  %v18754_v52 = vld [vmem:[#allocation222_spill] sm:$0xff] }
 0x736   :  { %8572 = vmatpush.msra.mxu0 %v18749_v36  ;;  %8737 = vmatpush.msra.mxu3 %v18700_v46  ;;  %v18755_v36 = vld [vmem:[#allocation202_spill] sm:$0xff] }
 0x737   :  { %8635 = vmatpush.msra.mxu1 %v18708_v53  ;;  %8682 = vmatpush.msra.mxu2 %v18750_v48  ;;  %v18756_v48 = vld [vmem:[#allocation226_spill] sm:$0xff] }
 0x738   :  { %8575 = vmatpush.msra.mxu0 %v18751_v63  ;;  %8739 = vmatpush.msra.mxu3 %v18702_v3  ;;  %v18757_v63 = vld [vmem:[#allocation206_spill] sm:$0xff] }
 0x739   :  { %8637 = vmatpush.msra.mxu1 %v18711_v50  ;;  %8686 = vmatpush.msra.mxu2 %v18752_v39  ;;  %v18758_v39 = vld [vmem:[#allocation230_spill] sm:$0xff] }
 0x73a   :  { %8578 = vmatpush.msra.mxu0 %v18753_v13  ;;  %8741 = vmatpush.msra.mxu3 %v18705_v42  ;;  %v18759_v13 = vld [vmem:[#allocation210_spill] sm:$0xff] }
 0x73b   :  { %8639 = vmatpush.msra.mxu1 %v18714_v30  ;;  %8690 = vmatpush.msra.mxu2 %v18754_v52  ;;  %v18760_v52 = vld [vmem:[#allocation233_spill] sm:$0xff] }
 0x73c   :  { %8581 = vmatpush.msra.mxu0 %v18755_v36  ;;  %8743 = vmatpush.msra.mxu3 %v18708_v53  ;;  %v18761_v36 = vld [vmem:[#allocation215_spill] sm:$0xff] }
 0x73d   :  { %8641 = vmatpush.msra.mxu1 %v18717_v16  ;;  %8694 = vmatpush.msra.mxu2 %v18756_v48  ;;  %v18762_v48 = vld [vmem:[#allocation237_spill] sm:$0xff] }
 0x73e   :  { %8584 = vmatpush.msra.mxu0 %v18757_v63  ;;  %8745 = vmatpush.msra.mxu3 %v18711_v50  ;;  %v18763_v63 = vld [vmem:[#allocation219_spill] sm:$0xff]  ;;  %v18821_v50 = vld [vmem:[#allocation41_spill] sm:$0xff] }
 0x73f   :  { %8643 = vmatpush.msra.mxu1 %v18720_v24  ;;  %8698 = vmatpush.msra.mxu2 %v18758_v39  ;;  %v18764_v39 = vld [vmem:[#allocation242_spill] sm:$0xff] }
 0x740   :  { %8587 = vmatpush.msra.mxu0 %v18759_v13  ;;  %8747 = vmatpush.msra.mxu3 %v18714_v30  ;;  %v18765_v13 = vld [vmem:[#allocation223_spill] sm:$0xff]  ;;  %v18818_v30 = vld [vmem:[#allocation37_spill] sm:$0xff] }
 0x741   :  { %8645 = vmatpush.msra.mxu1 %v18723_v20  ;;  %8702 = vmatpush.msra.mxu2 %v18760_v52  ;;  %v18766_v52 = vld [vmem:[#allocation247_spill] sm:$0xff] }
 0x742   :  { %8590 = vmatpush.msra.mxu0 %v18761_v36  ;;  %8749 = vmatpush.msra.mxu3 %v18717_v16  ;;  %v18767_v36 = vld [vmem:[#allocation227_spill] sm:$0xff]  ;;  %v18815_v16 = vld [vmem:[#allocation36_spill] sm:$0xff] }
 0x743   :  { %8647 = vmatpush.msra.mxu1 %v18726_v27  ;;  %8706 = vmatpush.msra.mxu2 %v18762_v48  ;;  %v18768_v48 = vld [vmem:[#allocation250_spill] sm:$0xff] }
 0x744   :  { %8593 = vmatpush.msra.mxu0 %v18763_v63  ;;  %8751 = vmatpush.msra.mxu3 %v18720_v24  ;;  %v18769_v63 = vld [vmem:[#allocation231_spill] sm:$0xff]  ;;  %v18812_v24 = vld [vmem:[#allocation32_spill] sm:$0xff] }
 0x745   :  { %8649 = vmatpush.msra.mxu1 %v18729_v23  ;;  %8710 = vmatpush.msra.mxu2 %v18764_v39  ;;  %v18770_v39 = vld [vmem:[#allocation252_spill] sm:$0xff] }
 0x746   :  { %8596 = vmatpush.msra.mxu0 %v18765_v13  ;;  %8753 = vmatpush.msra.mxu3 %v18723_v20  ;;  %v18771_v13 = vld [vmem:[#allocation235_spill] sm:$0xff] }
 0x747   :  { %8651 = vmatpush.msra.mxu1 %v18732_v9  ;;  %8714 = vmatpush.msra.mxu2 %v18766_v52  ;;  %v18772_v52 = vld [vmem:[#allocation254_spill] sm:$0xff]  ;;  %v18809_v20 = vld [vmem:[#allocation31_spill] sm:$0xff] }
 0x748   :  { %8599 = vmatpush.msra.mxu0 %v18767_v36  ;;  %8755 = vmatpush.msra.mxu3 %v18726_v27  ;;  %v18773_v36 = vld [vmem:[#allocation240_spill] sm:$0xff] }
 0x749   :  { %8653 = vmatpush.msra.mxu1 %v18735_v22  ;;  %8718 = vmatpush.msra.mxu2 %v18768_v48  ;;  %v18774_v48 = vld [vmem:[#allocation25_spill] sm:$0xff]  ;;  %v18806_v27 = vld [vmem:[#allocation24_spill] sm:$0xff] }
 0x74a   :  { %8602 = vmatpush.msra.mxu0 %v18769_v63  ;;  %8757 = vmatpush.msra.mxu3 %v18729_v23  ;;  %v18775_v63 = vld [vmem:[#allocation244_spill] sm:$0xff] }
 0x74b   :  { %8655 = vmatpush.msra.mxu1 %v18738_v47  ;;  %8722 = vmatpush.msra.mxu2 %v18770_v39  ;;  %v18776_v39 = vld [vmem:[#allocation27_spill] sm:$0xff]  ;;  %v18803_v23 = vld [vmem:[#allocation12_spill] sm:$0xff] }
 0x74c   :  { %8605 = vmatpush.msra.mxu0 %v18771_v13  ;;  %8759 = vmatpush.msra.mxu3 %v18732_v9  ;;  %v18777_v13 = vld [vmem:[#allocation248_spill] sm:$0xff]  ;;  %v18800_v9 = vld [vmem:[#allocation11_spill] sm:$0xff] }
 0x74d   :  { %8659 = vmatmul.f32.vlgmr.msra.gmra.mxu1 %v15371_v34  ;;  %8726 = vmatpush.msra.mxu2 %v18772_v52  ;;  %v18778_v34 = vld [vmem:[#allocation5_spill] sm:$0xff] }
 0x74e   :  { %8608 = vmatpush.msra.mxu0 %v18773_v36  ;;  %8761 = vmatpush.msra.mxu3 %v18735_v22  ;;  %v18779_v52 = vld [vmem:[#allocation29_spill] sm:$0xff]  ;;  %v18780_v36 = vld [vmem:[#allocation3_spill] sm:$0xff] }
 0x74f   :  { %8728 = vmatmul.f32.vlgmr.msra.gmra.mxu2 %v15361_v12  ;;  %8904 = vmatpush.msrb.mxu1 %v18774_v48  ;;  %v18782_v22 = vld [vmem:[#allocation9_spill] sm:$0xff] }
 0x750   :  { %8611 = vmatpush.msra.mxu0 %v18775_v63  ;;  %8763 = vmatpush.msra.mxu3 %v18738_v47  ;;  %v18783_v48 = vld [vmem:[#allocation33_spill] sm:$0xff]  ;;  %v18784_v63 = vld [vmem:[#allocation14_spill] sm:$0xff] }
 0x751   :  { %8765 = vmatmul.f32.vlgmr.msra.gmra.mxu3 %v15361_v12  ;;  %8910 = vmatpush.msrb.mxu1 %v18776_v39  ;;  %v18785_v12 = vld [vmem:[#allocation4_spill] sm:$0xff]  ;;  %v18786_v39 = vld [vmem:[#allocation38_spill] sm:$0xff] }
 0x752   :  { %8614 = vmatpush.msra.mxu0 %v18777_v13  ;;  %9002 = vmatpush.msrb.mxu2 %v18778_v34  ;;  %v18787_v13 = vld [vmem:[#allocation15_spill] sm:$0xff]  ;;  %v18794_v34 = vld [vmem:[#allocation8_spill] sm:$0xff]  ;;  %v18797_v47 = vld [vmem:[#allocation10_spill] sm:$0xff] }
 0x753   :  { %8916 = vmatpush.msrb.mxu1 %v18779_v52  ;;  %9055 = vmatpush.msrb.mxu3 %v18780_v36  ;;  %v18788_v52 = vld [vmem:[#allocation6_spill] sm:$0xff] }
 0x754   :  { %8617 = vmatpush.msra.mxu0 %v18781_v45  ;;  %9005 = vmatpush.msrb.mxu2 %v18782_v22  ;;  %v18789_v45 = vld [vmem:[#allocation42_spill] sm:$0xff]  ;;  %v18790_v22 = vld [vmem:[#allocation16_spill] sm:$0xff] }
 0x755   :  { %8620 = vmatmul.f32.vlgmr.msra.gmra.mxu0 %v15366_v60  ;;  %8922 = vmatpush.msrb.mxu1 %v18783_v48  ;;  %v18791_v60 = vld [vmem:[#allocation7_spill] sm:$0xff]  ;;  %v18792_v48 = vld [vmem:[#allocation46_spill] sm:$0xff] }
 0x756   :  { %9008 = vmatpush.msrb.mxu2 %v18784_v63  ;;  %9057 = vmatpush.msrb.mxu3 %v18785_v12  ;;  %v18793_v63 = vld [vmem:[#allocation18_spill] sm:$0xff] }
 0x757   :  { %8859 = vmatpush.msrb.mxu0 %v18780_v36  ;;  %8928 = vmatpush.msrb.mxu1 %v18786_v39  ;;  %v18795_v39 = vld [vmem:[#allocation51_spill] sm:$0xff] }
 0x758   :  { %9011 = vmatpush.msrb.mxu2 %v18787_v13  ;;  %9059 = vmatpush.msrb.mxu3 %v18788_v52  ;;  %v18796_v13 = vld [vmem:[#allocation19_spill] sm:$0xff] }
 0x759   :  { %8861 = vmatpush.msrb.mxu0 %v18785_v12  ;;  %8934 = vmatpush.msrb.mxu1 %v18789_v45  ;;  %v18798_v45 = vld [vmem:[#allocation55_spill] sm:$0xff] }
 0x75a   :  { %9014 = vmatpush.msrb.mxu2 %v18790_v22  ;;  %9061 = vmatpush.msrb.mxu3 %v18791_v60  ;;  %v18799_v22 = vld [vmem:[#allocation26_spill] sm:$0xff] }
 0x75b   :  { %8863 = vmatpush.msrb.mxu0 %v18788_v52  ;;  %8940 = vmatpush.msrb.mxu1 %v18792_v48  ;;  %v18801_v48 = vld [vmem:[#allocation60_spill] sm:$0xff] }
 0x75c   :  { %9017 = vmatpush.msrb.mxu2 %v18793_v63  ;;  %9063 = vmatpush.msrb.mxu3 %v18794_v34  ;;  %v18802_v63 = vld [vmem:[#allocation30_spill] sm:$0xff] }
 0x75d   :  { %8865 = vmatpush.msrb.mxu0 %v18791_v60  ;;  %8946 = vmatpush.msrb.mxu1 %v18795_v39  ;;  %v18804_v39 = vld [vmem:[#allocation63_spill] sm:$0xff] }
 0x75e   :  { %9020 = vmatpush.msrb.mxu2 %v18796_v13  ;;  %9065 = vmatpush.msrb.mxu3 %v18797_v47  ;;  %v18805_v13 = vld [vmem:[#allocation35_spill] sm:$0xff] }
 0x75f   :  { %8867 = vmatpush.msrb.mxu0 %v18794_v34  ;;  %8952 = vmatpush.msrb.mxu1 %v18798_v45  ;;  %v18807_v45 = vld [vmem:[#allocation68_spill] sm:$0xff] }
 0x760   :  { %9023 = vmatpush.msrb.mxu2 %v18799_v22  ;;  %9067 = vmatpush.msrb.mxu3 %v18800_v9  ;;  %v18808_v22 = vld [vmem:[#allocation40_spill] sm:$0xff] }
 0x761   :  { %8869 = vmatpush.msrb.mxu0 %v18797_v47  ;;  %8958 = vmatpush.msrb.mxu1 %v18801_v48  ;;  %v18810_v48 = vld [vmem:[#allocation72_spill] sm:$0xff] }
 0x762   :  { %9026 = vmatpush.msrb.mxu2 %v18802_v63  ;;  %9069 = vmatpush.msrb.mxu3 %v18803_v23  ;;  %v18811_v63 = vld [vmem:[#allocation44_spill] sm:$0xff] }
 0x763   :  { %8871 = vmatpush.msrb.mxu0 %v18800_v9  ;;  %8964 = vmatpush.msrb.mxu1 %v18804_v39  ;;  %v18813_v39 = vld [vmem:[#allocation76_spill] sm:$0xff] }
 0x764   :  { %9029 = vmatpush.msrb.mxu2 %v18805_v13  ;;  %9071 = vmatpush.msrb.mxu3 %v18806_v27  ;;  %v18814_v13 = vld [vmem:[#allocation45_spill] sm:$0xff] }
 0x765   :  { %8873 = vmatpush.msrb.mxu0 %v18803_v23  ;;  %8970 = vmatpush.msrb.mxu1 %v18807_v45  ;;  %v18816_v45 = vld [vmem:[#allocation80_spill] sm:$0xff] }
 0x766   :  { %9032 = vmatpush.msrb.mxu2 %v18808_v22  ;;  %9073 = vmatpush.msrb.mxu3 %v18809_v20  ;;  %v18817_v22 = vld [vmem:[#allocation49_spill] sm:$0xff] }
 0x767   :  { %8875 = vmatpush.msrb.mxu0 %v18806_v27  ;;  %8976 = vmatpush.msrb.mxu1 %v18810_v48  ;;  %v18819_v48 = vld [vmem:[#allocation85_spill] sm:$0xff] }
 0x768   :  { %9035 = vmatpush.msrb.mxu2 %v18811_v63  ;;  %9075 = vmatpush.msrb.mxu3 %v18812_v24  ;;  %v18820_v63 = vld [vmem:[#allocation56_spill] sm:$0xff] }
 0x769   :  { %8877 = vmatpush.msrb.mxu0 %v18809_v20  ;;  %8982 = vmatpush.msrb.mxu1 %v18813_v39  ;;  %v18822_v39 = vld [vmem:[#allocation61_spill] sm:$0xff] }
 0x76a   :  { %9038 = vmatpush.msrb.mxu2 %v18814_v13  ;;  %9077 = vmatpush.msrb.mxu3 %v18815_v16  ;;  %v18823_v13 = vld [vmem:[#allocation48_spill] sm:$0xff] }
 0x76b   :  { %8879 = vmatpush.msrb.mxu0 %v18812_v24  ;;  %8988 = vmatpush.msrb.mxu1 %v18816_v45  ;;  %v18824_v45 = vld [vmem:[#allocation53_spill] sm:$0xff] }
 0x76c   :  { %9041 = vmatpush.msrb.mxu2 %v18817_v22  ;;  %9079 = vmatpush.msrb.mxu3 %v18818_v30  ;;  %v18828_v22 = vld [vmem:[#allocation92_spill] sm:$0xff] }
 0x76d   :  { %8881 = vmatpush.msrb.mxu0 %v18815_v16  ;;  %8994 = vmatpush.msrb.mxu1 %v18819_v48  ;;  %v18825_v48 = vld [vmem:[#allocation83_spill] sm:$0xff] }
 0x76e   :  { %9044 = vmatpush.msrb.mxu2 %v18820_v63  ;;  %9081 = vmatpush.msrb.mxu3 %v18821_v50  ;;  %v18827_v63 = vld [vmem:[#allocation13_spill] sm:$0xff] }
 0x76f   :  { %9163 = vmatpush.msra.mxu1 %v18780_v36  ;;  %8883 = vmatpush.msrb.mxu0 %v18818_v30 }
 0x770   :  { %9047 = vmatpush.msrb.mxu2 %v18822_v39  ;;  %9083 = vmatpush.msrb.mxu3 %v18823_v13  ;;  %v18826_v39 = vld [vmem:[#allocation88_spill] sm:$0xff] }
 0x771   :  { %9165 = vmatpush.msra.mxu1 %v18785_v12  ;;  %8885 = vmatpush.msrb.mxu0 %v18821_v50 }
 0x772   :  { %9200 = vmatpush.msra.mxu2 %v17671_v11  ;;  %9085 = vmatpush.msrb.mxu3 %v18824_v45 }
 0x773   :  { %9167 = vmatpush.msra.mxu1 %v18788_v52  ;;  %8887 = vmatpush.msrb.mxu0 %v18823_v13  ;;  %v18829_v52 = vld [vmem:[#allocation17_spill] sm:$0xff] }
 0x774   :  { %9202 = vmatpush.msra.mxu2 %v17674_v21  ;;  %9245 = vmatpush.msra.mxu3 %v18825_v48  ;;  %v18830_v48 = vld [vmem:[#allocation95_spill] sm:$0xff] }
 0x775   :  { %9169 = vmatpush.msra.mxu1 %v18791_v60  ;;  %8889 = vmatpush.msrb.mxu0 %v18824_v45  ;;  %v18831_v60 = vld [vmem:[#allocation20_spill] sm:$0xff] }
 0x776   :  { %9204 = vmatpush.msra.mxu2 %v17676_v2  ;;  %9251 = vmatpush.msra.mxu3 %v18826_v39  ;;  %v18833_v39 = vld [vmem:[#allocation21_spill] sm:$0xff] }
 0x777   :  { %9096 = vmatpush.msra.mxu0 %v18827_v63  ;;  %9171 = vmatpush.msra.mxu1 %v18794_v34  ;;  %v18832_v63 = vld [vmem:[#allocation99_spill] sm:$0xff] }
 0x778   :  { %9206 = vmatpush.msra.mxu2 %v17679_v38  ;;  %9257 = vmatpush.msra.mxu3 %v18828_v22  ;;  %v18835_v22 = vld [vmem:[#allocation22_spill] sm:$0xff] }
 0x779   :  { %9100 = vmatpush.msra.mxu0 %v18829_v52  ;;  %9173 = vmatpush.msra.mxu1 %v18797_v47  ;;  %v18834_v52 = vld [vmem:[#allocation102_spill] sm:$0xff] }
 0x77a   :  { %9208 = vmatpush.msra.mxu2 %v17682_v17  ;;  %9263 = vmatpush.msra.mxu3 %v18830_v48  ;;  %v18837_v48 = vld [vmem:[#allocation23_spill] sm:$0xff] }
 0x77b   :  { %9104 = vmatpush.msra.mxu0 %v18831_v60  ;;  %9175 = vmatpush.msra.mxu1 %v18800_v9  ;;  %v18836_v60 = vld [vmem:[#allocation105_spill] sm:$0xff] }
 0x77c   :  { %9210 = vmatpush.msra.mxu2 %v17685_v62  ;;  %9269 = vmatpush.msra.mxu3 %v18832_v63  ;;  %v18839_v63 = vld [vmem:[#allocation28_spill] sm:$0xff] }
 0x77d   :  { %9108 = vmatpush.msra.mxu0 %v18833_v39  ;;  %9177 = vmatpush.msra.mxu1 %v18803_v23  ;;  %v18838_v39 = vld [vmem:[#allocation111_spill] sm:$0xff] }
 0x77e   :  { %9212 = vmatpush.msra.mxu2 %v17688_v33  ;;  %9275 = vmatpush.msra.mxu3 %v18834_v52  ;;  %v18841_v52 = vld [vmem:[#allocation34_spill] sm:$0xff] }
 0x77f   :  { %9112 = vmatpush.msra.mxu0 %v18835_v22  ;;  %9179 = vmatpush.msra.mxu1 %v18806_v27  ;;  %v18840_v22 = vld [vmem:[#allocation115_spill] sm:$0xff] }
 0x780   :  { %9214 = vmatpush.msra.mxu2 %v17691_v40  ;;  %9281 = vmatpush.msra.mxu3 %v18836_v60  ;;  %v18843_v60 = vld [vmem:[#allocation39_spill] sm:$0xff] }
 0x781   :  { %9116 = vmatpush.msra.mxu0 %v18837_v48  ;;  %9181 = vmatpush.msra.mxu1 %v18809_v20  ;;  %v18842_v48 = vld [vmem:[#allocation118_spill] sm:$0xff] }
 0x782   :  { %9216 = vmatpush.msra.mxu2 %v17694_v8  ;;  %9287 = vmatpush.msra.mxu3 %v18838_v39  ;;  %v18845_v39 = vld [vmem:[#allocation43_spill] sm:$0xff] }
 0x783   :  { %9120 = vmatpush.msra.mxu0 %v18839_v63  ;;  %9183 = vmatpush.msra.mxu1 %v18812_v24  ;;  %v18844_v63 = vld [vmem:[#allocation121_spill] sm:$0xff] }
 0x784   :  { %9218 = vmatpush.msra.mxu2 %v17697_v1  ;;  %9293 = vmatpush.msra.mxu3 %v18840_v22  ;;  %v18847_v22 = vld [vmem:[#allocation47_spill] sm:$0xff] }
 0x785   :  { %9124 = vmatpush.msra.mxu0 %v18841_v52  ;;  %9185 = vmatpush.msra.mxu1 %v18815_v16  ;;  %v18846_v52 = vld [vmem:[#allocation125_spill] sm:$0xff]  ;;  %v7598_v16 = vpop.f32.mrf.mxu2 }
 0x786   :  { %9220 = vmatpush.msra.mxu2 %v17700_v15  ;;  %9299 = vmatpush.msra.mxu3 %v18842_v48  ;;  %v18849_v48 = vld [vmem:[#allocation52_spill] sm:$0xff] }
 0x787   :  { %9128 = vmatpush.msra.mxu0 %v18843_v60  ;;  %9187 = vmatpush.msra.mxu1 %v18818_v30  ;;  %v18848_v60 = vld [vmem:[#allocation127_spill] sm:$0xff]  ;;  %v7637_v30 = vpop.f32.mrf.mxu3 }
 0x788   :  { %9222 = vmatpush.msra.mxu2 %v17704_v5  ;;  %9305 = vmatpush.msra.mxu3 %v18844_v63  ;;  %v18851_v63 = vld [vmem:[#allocation54_spill] sm:$0xff] }
 0x789   :  { %9132 = vmatpush.msra.mxu0 %v18845_v39  ;;  %9189 = vmatpush.msra.mxu1 %v18821_v50  ;;  %v18850_v39 = vld [vmem:[#allocation128_spill] sm:$0xff]  ;;  %v18854_v50 = vld [vmem:[#allocation130_spill] sm:$0xff] }
 0x78a   :  { %9224 = vmatpush.msra.mxu2 %v17707_v41  ;;  %9311 = vmatpush.msra.mxu3 %v18846_v52  ;;  %v18852_v52 = vld [vmem:[#allocation129_spill] sm:$0xff] }
 0x78b   :  { %9136 = vmatpush.msra.mxu0 %v18847_v22  ;;  %9191 = vmatpush.msra.mxu1 %v18823_v13  ;;  %v7443_v22 = vpop.f32.mrf.mxu0  ;;  %v18853_v13 = vld [vmem:[#allocation58_spill] sm:$0xff] }
 0x78c   :  { %9226 = vmatpush.msra.mxu2 %v17711_v29  ;;  %9317 = vmatpush.msra.mxu3 %v18848_v60  ;;  %v18855_v60 = vld [vmem:[#allocation64_spill] sm:$0xff] }
 0x78d   :  { %9140 = vmatpush.msra.mxu0 %v18849_v48  ;;  %9193 = vmatpush.msra.mxu1 %v18824_v45  ;;  %v18856_v48 = vld [vmem:[#allocation69_spill] sm:$0xff]  ;;  %v7544_v45 = vpop.f32.mrf.mxu1  ;;  %v7784_v27 = vpop.f32.mrf.mxu2 }
 0x78e   :  { %9228 = vmatpush.msra.mxu2 %v17715_v56  ;;  %9323 = vmatpush.msra.mxu3 %v18850_v39 }
 0x78f   :  { %9144 = vmatpush.msra.mxu0 %v18851_v63  ;;  %v7885_v20 = vpop.f32.mrf.mxu3  ;;  %v7545_v63 = vadd.f32 %v7544_v45, %v7443_v22 }
 0x790   :  { %9230 = vmatpush.msra.mxu2 %v18642_v4  ;;  %9329 = vmatpush.msra.mxu3 %v18852_v52  ;;  %v7886_v9 = vadd.f32 %v7885_v20, %v7784_v27 }
 0x791   :  { %9148 = vmatpush.msra.mxu0 %v18853_v13  ;;  %v7599_v47 = vadd.f32 %v7598_v16, %v7545_v63 }
 0x792   :  { %9335 = vmatpush.msra.mxu3 %v18854_v50 }
 0x793   :  { %9152 = vmatpush.msra.mxu0 %v18855_v60  ;;  %v7706_v24 = vpop.f32.mrf.mxu0  ;;  %v7638_v12 = vadd.f32 %v7637_v30, %v7599_v47 }
 0x795   :  { %9156 = vmatpush.msra.mxu0 %v18856_v48  ;;  %v7743_v39 = vpop.f32.mrf.mxu1  ;;  %v7707_v50 = vadd.f32 %v7706_v24, %v7638_v12  ;;  %v8047_v36 = vpop.f32.mrf.mxu2 }
 0x797   :  { %v7744_v53 = vadd.f32 %v7743_v39, %v7707_v50  ;;  %v8084_v48 = vpop.f32.mrf.mxu3 }
 0x799   :  { %v8773_v3 = vrot.slane %v7744_v53, 6 }
 0x79b   :  { %v7939_v23 = vpop.f32.mrf.mxu0  ;;  %v8781_v31 = vadd.f32 %v8773_v3, %v18857_v57 }
 0x79c   :  { %v7940_v52 = vadd.f32 %v7939_v23, %v7886_v9 }
 0x79d   :  { %v7978_v34 = vpop.f32.mrf.mxu1  ;;  %v11831_v22 = vmul.f32 -1.442695, %v8781_v31  ;;  %v8280_v63 = vpop.f32.mrf.mxu2 }
 0x79e   :  { %v7979_v13 = vadd.f32 %v7978_v34, %v7940_v52 }
 0x79f   :  { %11923 = vpow2.f32 %v11831_v22  ;;  %v8319_v52 = vpop.f32.mrf.mxu3 }
 0x7a0   :  { %v8048_v60 = vadd.f32 %v8047_v36, %v7979_v13 }
 0x7a2   :  { %v8085_v42 = vadd.f32 %v8084_v48, %v8048_v60 }
 0x7a3   :  { %v8125_v27 = vpop.f32.mrf.mxu0 }
 0x7a4   :  { %v8774_v46 = vrot.slane %v8085_v42, 6 }
 0x7a5   :  { %v8226_v20 = vpop.f32.mrf.mxu1  ;;  %v11924_v24 = vpop.eup %11923 }
 0x7a6   :  { %v8782_v45 = vadd.f32 %v8774_v46, %v18858_v25  ;;  %v8227_v36 = vadd.f32 %v8226_v20, %v8125_v27  ;;  %v8788_v39 = vadd.f32 1.0, %v11924_v24 }
 0x7a8   :  { %v11832_v4 = vmul.f32 -1.442695, %v8782_v45  ;;  %v8281_v42 = vadd.f32 %v8280_v63, %v8227_v36  ;;  %vm8794_vm0 = vweird.f32 %v8788_v39 }
 0x7aa   :  { %11925 = vpow2.f32 %v11832_v4  ;;  %v8320_v31 = vadd.f32 %v8319_v52, %v8281_v42 }
 0x7ab   :  { %11927 = vrcp.f32 %v8788_v39 }
 0x7ad   :  { %v8425_v50 = vpop.f32.mrf.mxu1 }
 0x7b0   :  { %v11926_v16 = vpop.eup %11925  ;;  %v8466_v3 = vpop.f32.mrf.mxu2 }
 0x7b1   :  { %v8807_v48 = vadd.f32 1.0, %v11926_v16  ;;  %v11928_v53 = vpop.eup %11927 }
 0x7b2   :  { %v8388_v23 = vpop.f32.mrf.mxu0  ;;  %v8790_v27 = vmul.f32 %v11928_v53, %v8788_v39  ;;  %vm8795_vm14 = vweird.f32 %v11928_v53 }
 0x7b3   :  { %v8567_v47 = vpop.f32.mrf.mxu3  ;;  %11929 = vrcp.f32 %v8807_v48  ;;  %v8389_v4 = vadd.f32 %v8388_v23, %v8320_v31  ;;  %vm8813_vm1 = vweird.f32 %v8807_v48  ;;  %vm8796_vm2 = vmor %vm8794_vm0, %vm8795_vm14 }
 0x7b4   :  { %v8568_v46 = vadd.f32 %v8567_v47, %v8466_v3  ;;  %v8791_v25 = vsub.f32 1.0, %v8790_v27 }
 0x7b5   :  { %v8426_v45 = vadd.f32 %v8425_v50, %v8389_v4  ;;  %v8817_v4 = vand.u32 2147483647, %v8807_v48 }
 0x7b6   :  { %v8792_v47 = vmul.f32 %v11928_v53, %v8791_v25 }
 0x7b7   :  { %v8775_v16 = vrot.slane %v8426_v45, 6  ;;  %vm8818_vm5 = vcmp.eq.f32.partialorder %v8817_v4, 8.507059e+37 }
 0x7b8   :  { %v8793_v31 = vadd.f32 %v11928_v53, %v8792_v47 }
 0x7b9   :  { %v11930_v34 = vpop.eup %11929  ;;  %v8783_v23 = vadd.f32 %v8775_v16, %v15350_v58 }
 0x7ba   :  { %v8809_v20 = vmul.f32 %v11930_v34, %v8807_v48  ;;  %vm8814_vm15 = vweird.f32 %v11930_v34 }
 0x7bb   :  { %vm8815_vm3 = vmor %vm8813_vm1, %vm8814_vm15 }
 0x7bc   :  { %v8810_v57 = vsub.f32 1.0, %v8809_v20 }
 0x7be   :  { %v8811_v3 = vmul.f32 %v11930_v34, %v8810_v57 }
 0x7c0   :  { %v8812_v50 = vadd.f32 %v11930_v34, %v8811_v3 }
 0x7c2   :  { %v8816_v45 = vsel %vm8815_vm3, %v11930_v34, %v8812_v50 }
 0x7ca   :  { %v8660_v13 = vpop.f32.mrf.mxu1 }
 0x7d2   :  { %v8621_v9 = vpop.f32.mrf.mxu0  ;;  %v8729_v60 = vpop.f32.mrf.mxu2 }
 0x7d3   :  { %v8622_v30 = vadd.f32 %v8621_v9, %v8568_v46  ;;  %v8819_v46 = vand.u32 2147483648, %v8807_v48  ;;  %v8800_v9 = vand.u32 2147483648, %v8788_v39 }
 0x7d4   :  { %v8766_v24 = vpop.f32.mrf.mxu3 }
 0x7d5   :  { %v8661_v12 = vadd.f32 %v8660_v13, %v8622_v30  ;;  %v8798_v30 = vand.u32 2147483647, %v8788_v39  ;;  %v8820_v25 = vor.u32 1.1754944e-38, %v8819_v46  ;;  %v11975_v46 = vld [vmem:[%s16553_s4] ss:$0 sm:$0xff] }
 0x7d7   :  { %v8730_v22 = vadd.f32 %v8729_v60, %v8661_v12  ;;  %v8797_v12 = vsel %vm8796_vm2, %v11928_v53, %v8793_v31  ;;  %vm8799_vm4 = vcmp.eq.f32.partialorder %v8798_v30, 8.507059e+37  ;;  %v8821_v20 = vsel %vm8818_vm5, %v8820_v25, %v8816_v45 }
 0x7d8   :  { %v7401_v45 = vmul.f32 %v11975_v46, %v15358_v19  ;;  %v18859_v19 = vld [vmem:[#allocation91_spill] sm:$0xff] }
 0x7d9   :  { %v8767_v63 = vadd.f32 %v8766_v24, %v8730_v22  ;;  %v8801_v22 = vor.u32 1.1754944e-38, %v8800_v9  ;;  %v8844_v24 = vrot.slane %v15355_v7, 6 }
 0x7db   :  { %v8776_v36 = vrot.slane %v8767_v63, 6  ;;  %v8802_v27 = vsel %vm8799_vm4, %v8801_v22, %v8797_v12  ;;  %v8846_v16 = vmul.f32 %v8844_v24, %v8821_v20  ;;  %v7402_v22 = vsel %vm1601_vm9, %v7401_v45, 0.0  ;;  %v18861_v20 = vld [vmem:[#allocation96_spill] sm:$0xff]  ;;  %v18862_v24 = vld [vmem:[#allocation114_spill] sm:$0xff] }
 0x7dc   :  { %v18881_v45 = vld [vmem:[#allocation138_spill] sm:$0xff] }
 0x7dd   :  { %v8784_v52 = vadd.f32 %v8776_v36, %v15345_v18 }
 0x7df   :  { %v11833_v42 = vmul.f32 -1.442695, %v8784_v52 }
 0x7e1   :  { %11931 = vpow2.f32 %v11833_v42 }
 0x7e2   :  { %11933 = vtanh.f32 %v8783_v23 }
 0x7e7   :  { %v11932_v13 = vpop.eup %11931 }
 0x7e8   :  { %v8827_v60 = vadd.f32 1.0, %v11932_v13  ;;  %v11934_v57 = vpop.eup %11933 }
 0x7e9   :  { %v8847_v63 = vmul.f32 %v11934_v57, %v8802_v27  ;;  %v18860_v27 = vld [vmem:[#allocation109_spill] sm:$0xff] }
 0x7ea   :  { %11935 = vrcp.f32 %v8827_v60  ;;  %v8839_v53 = vand.u32 2147483648, %v8827_v60  ;;  %v8837_v23 = vand.u32 2147483647, %v8827_v60  ;;  %vm8833_vm7 = vweird.f32 %v8827_v60 }
 0x7eb   :  { %v15787_v36 = vadd.f32 %v8847_v63, %v8846_v16  ;;  %v18863_v63 = vld [vmem:[#allocation100_spill] sm:$0xff]  ;;  %v18864_v16 = vld [vmem:[#allocation119_spill] sm:$0xff] }
 0x7ec   :  { %v8840_v3 = vor.u32 1.1754944e-38, %v8839_v53  ;;  %vm8838_vm14 = vcmp.eq.f32.partialorder %v8837_v23, 8.507059e+37  ;;  %v18868_v53 = vld [vmem:[#allocation108_spill] sm:$0xff]  ;;  %v18870_v23 = vld [vmem:[#allocation150_spill] sm:$0xff] }
 0x7ed   :  { %11937 = vtanh.f32 %v15787_v36 }
 0x7f0   :  { %v11936_v48 = vpop.eup %11935 }
 0x7f1   :  { %v8829_v39 = vmul.f32 %v11936_v48, %v8827_v60  ;;  %vm8834_vm6 = vweird.f32 %v11936_v48 }
 0x7f2   :  { %vm8835_vm13 = vmor %vm8833_vm7, %vm8834_vm6 }
 0x7f3   :  { %v8830_v52 = vsub.f32 1.0, %v8829_v39  ;;  %v11938_v7 = vpop.eup %11937  ;;  %v18866_v39 = vld [vmem:[#allocation122_spill] sm:$0xff] }
 0x7f5   :  { %v8831_v34 = vmul.f32 %v11936_v48, %v8830_v52  ;;  %v18867_v52 = vld [vmem:[#allocation117_spill] sm:$0xff] }
 0x7f7   :  { %v8832_v42 = vadd.f32 %v11936_v48, %v8831_v34  ;;  %v18869_v34 = vld [vmem:[#allocation124_spill] sm:$0xff] }
 0x7f9   :  { %v8836_v47 = vsel %vm8835_vm13, %v11936_v48, %v8832_v42  ;;  %v18865_v48 = vld [vmem:[#allocation104_spill] sm:$0xff] }
 0x7fa   :  { %v8841_v50 = vsel %vm8838_vm14, %v8840_v3, %v8836_v47  ;;  %v18871_v42 = vld [vmem:[#allocation112_spill] sm:$0xff]  ;;  %v18872_v3 = vld [vmem:[#allocation126_spill] sm:$0xff] }
 0x7fb   :  { %v8850_v31 = vmul.f32 %v11938_v7, %v8841_v50  ;;  %v18873_v47 = vld [vmem:[#allocation154_spill] sm:$0xff]  ;;  %v18874_v7 = vld [vmem:[#allocation133_spill] sm:$0xff]  ;;  %v18875_v50 = vld [vmem:[#allocation116_spill] sm:$0xff] }
 0x7fd   :  { %v8851_v9 = vmul.f32 %v11975_v46, %v8850_v31  ;;  %v8856_v4 = vrot.slane %v8850_v31, 2  ;;  %v18876_v31 = vld [vmem:[#allocation158_spill] sm:$0xff]  ;;  %v18877_v46 = vld [vmem:[#allocation135_spill] sm:$0xff] }
 0x7ff   :  { %v8852_v30 = vsel %vm3052_vm10, %v8851_v9, 0.0  ;;  %v15794_v13 = vand.u32 4294901760, %v8856_v4  ;;  %v18878_v9 = vld [vmem:[#allocation131_spill] sm:$0xff] }
 0x800   :  { %8853 = vadd.xlane.f32.xlu1 %v8852_v30  ;;  %v18880_v30 = vld [vmem:[#allocation162_spill] sm:$0xff] }
 0x801   :  { %v15797_v12 = vsub.f32 %v8856_v4, %v15794_v13  ;;  %8996 = vmatmul.f32.vlgmr.msrb.gmra.mxu1 %v15794_v13  ;;  %v18879_v4 = vld [vmem:[#allocation120_spill] sm:$0xff] }
 0x802   :  { %9396 = vmatpush.msrb.mxu1 %v17671_v11 }
 0x803   :  { %9050 = vmatmul.f32.vlgmr.msrb.gmra.mxu2 %v15797_v12  ;;  %v15803_v60 = vand.u32 4294901760, %v15797_v12 }
 0x804   :  { %9398 = vmatpush.msrb.mxu1 %v17674_v21  ;;  %9437 = vmatpush.msrb.mxu2 %v17729_v51 }
 0x805   :  { %9089 = vmatmul.f32.vlgmr.msrb.gmra.mxu3 %v15803_v60  ;;  %v8893_v57 = vsub.f32 %v15797_v12, %v15803_v60 }
 0x806   :  { %9400 = vmatpush.msrb.mxu1 %v17676_v2  ;;  %9441 = vmatpush.msrb.mxu2 %v17730_v32 }
 0x807   :  { %9504 = vmatpush.msrb.mxu3 %v17671_v11  ;;  %v15814_v25 = vand.u32 4294901760, %v8893_v57  ;;  %v18882_v57 = vld [vmem:[#allocation132_spill] sm:$0xff] }
 0x808   :  { %9402 = vmatpush.msrb.mxu1 %v17679_v38  ;;  %9445 = vmatpush.msrb.mxu2 %v17731_v44 }
 0x809   :  { %9506 = vmatpush.msrb.mxu3 %v17674_v21  ;;  %7403 = vadd.xlane.f32.xlu1 %v7402_v22  ;;  %v18883_v22 = vld [vmem:[#allocation123_spill] sm:$0xff] }
 0x80a   :  { %8895 = vmatmul.f32.vlgmr.msrb.gmra.mxu0 %v15814_v25  ;;  %9195 = vmatmul.f32.vlgmr.msra.gmra.mxu1 %v15794_v13 }
 0x80b   :  { %9343 = vmatpush.msrb.mxu0 %v17732_v35  ;;  %9404 = vmatpush.msrb.mxu1 %v17682_v17 }
 0x80c   :  { %9449 = vmatpush.msrb.mxu2 %v17733_v43  ;;  %9508 = vmatpush.msrb.mxu3 %v17676_v2 }
 0x80d   :  { %9236 = vmatmul.f32.vlgmr.msra.gmra.mxu2 %v15814_v25  ;;  %9346 = vmatpush.msrb.mxu0 %v17734_v14 }
 0x80e   :  { %9406 = vmatpush.msrb.mxu1 %v17685_v62  ;;  %9453 = vmatpush.msrb.mxu2 %v17735_v59 }
 0x80f   :  { %9510 = vmatpush.msrb.mxu3 %v17679_v38  ;;  %9349 = vmatpush.msrb.mxu0 %v17736_v28 }
 0x810   :  { %9337 = vmatmul.f32.vlgmr.msra.gmra.mxu3 %v15794_v13  ;;  %9408 = vmatpush.msrb.mxu1 %v17688_v33 }
 0x811   :  { %9457 = vmatpush.msrb.mxu2 %v17737_v0  ;;  %9512 = vmatpush.msrb.mxu3 %v17682_v17 }
 0x812   :  { %9352 = vmatpush.msrb.mxu0 %v17738_v26  ;;  %9410 = vmatpush.msrb.mxu1 %v17691_v40 }
 0x813   :  { %9461 = vmatpush.msrb.mxu2 %v17951_v54  ;;  %9514 = vmatpush.msrb.mxu3 %v17685_v62 }
 0x814   :  { %9158 = vmatmul.f32.vlgmr.msra.gmra.mxu0 %v15794_v13  ;;  %9412 = vmatpush.msrb.mxu1 %v17694_v8 }
 0x815   :  { %9355 = vmatpush.msrb.mxu0 %v17952_v49  ;;  %9465 = vmatpush.msrb.mxu2 %v17953_v37 }
 0x816   :  { %9516 = vmatpush.msrb.mxu3 %v17688_v33  ;;  %9414 = vmatpush.msrb.mxu1 %v17697_v1 }
 0x817   :  { %9358 = vmatpush.msrb.mxu0 %v17954_v10  ;;  %9469 = vmatpush.msrb.mxu2 %v17955_v6 }
 0x818   :  { %9518 = vmatpush.msrb.mxu3 %v17691_v40  ;;  %9416 = vmatpush.msrb.mxu1 %v17700_v15 }
 0x819   :  { %9361 = vmatpush.msrb.mxu0 %v17956_v55  ;;  %9473 = vmatpush.msrb.mxu2 %v17957_v61 }
 0x81a   :  { %9520 = vmatpush.msrb.mxu3 %v17694_v8  ;;  %9418 = vmatpush.msrb.mxu1 %v17704_v5 }
 0x81b   :  { %9364 = vmatpush.msrb.mxu0 %v18859_v19  ;;  %9477 = vmatpush.msrb.mxu2 %v18860_v27  ;;  %v18935_v27 = vld [vmem:[#allocation203_spill] sm:$0xff] }
 0x81c   :  { %9522 = vmatpush.msrb.mxu3 %v17697_v1  ;;  %9420 = vmatpush.msrb.mxu1 %v17707_v41 }
 0x81d   :  { %9367 = vmatpush.msrb.mxu0 %v18861_v20  ;;  %9481 = vmatpush.msrb.mxu2 %v18862_v24  ;;  %v18930_v24 = vld [vmem:[#allocation221_spill] sm:$0xff] }
 0x81e   :  { %9524 = vmatpush.msrb.mxu3 %v17700_v15  ;;  %9422 = vmatpush.msrb.mxu1 %v17711_v29  ;;  %v18933_v20 = vld [vmem:[#allocation225_spill] sm:$0xff] }
 0x81f   :  { %9370 = vmatpush.msrb.mxu0 %v18863_v63  ;;  %9485 = vmatpush.msrb.mxu2 %v18864_v16  ;;  %v18917_v16 = vld [vmem:[#allocation213_spill] sm:$0xff]  ;;  %v18929_v63 = vld [vmem:[#allocation194_spill] sm:$0xff] }
 0x820   :  { %9526 = vmatpush.msrb.mxu3 %v17704_v5  ;;  %9424 = vmatpush.msrb.mxu1 %v17715_v56 }
 0x821   :  { %9373 = vmatpush.msrb.mxu0 %v18865_v48  ;;  %9489 = vmatpush.msrb.mxu2 %v18866_v39  ;;  %v18911_v39 = vld [vmem:[#allocation205_spill] sm:$0xff]  ;;  %v18914_v48 = vld [vmem:[#allocation208_spill] sm:$0xff] }
 0x822   :  { %9528 = vmatpush.msrb.mxu3 %v17707_v41  ;;  %9426 = vmatpush.msrb.mxu1 %v18867_v52 }
 0x823   :  { %9376 = vmatpush.msrb.mxu0 %v18868_v53  ;;  %9493 = vmatpush.msrb.mxu2 %v18869_v34  ;;  %v18905_v34 = vld [vmem:[#allocation197_spill] sm:$0xff] }
 0x824   :  { %9530 = vmatpush.msrb.mxu3 %v17711_v29  ;;  %9430 = vmatmul.f32.vlgmr.msrb.gmra.mxu1 %v15803_v60  ;;  %v18908_v53 = vld [vmem:[#allocation201_spill] sm:$0xff] }
 0x825   :  { %9586 = vmatpush.msra.mxu1 %v18870_v23  ;;  %9379 = vmatpush.msrb.mxu0 %v18871_v42  ;;  %v18899_v23 = vld [vmem:[#allocation188_spill] sm:$0xff] }
 0x826   :  { %9497 = vmatpush.msrb.mxu2 %v18872_v3  ;;  %9532 = vmatpush.msrb.mxu3 %v17715_v56  ;;  %v18896_v3 = vld [vmem:[#allocation183_spill] sm:$0xff]  ;;  %v18902_v42 = vld [vmem:[#allocation192_spill] sm:$0xff] }
 0x827   :  { %9499 = vmatmul.f32.vlgmr.msrb.gmra.mxu2 %v15794_v13  ;;  %9592 = vmatpush.msra.mxu1 %v18873_v47  ;;  %v18893_v47 = vld [vmem:[#allocation177_spill] sm:$0xff] }
 0x828   :  { %9684 = vmatpush.msra.mxu2 %v18874_v7  ;;  %9382 = vmatpush.msrb.mxu0 %v18875_v50  ;;  %v18884_v50 = vld [vmem:[#allocation165_spill] sm:$0xff] }
 0x829   :  { %9534 = vmatpush.msrb.mxu3 %v18867_v52  ;;  %9598 = vmatpush.msra.mxu1 %v18876_v31  ;;  %v18885_v31 = vld [vmem:[#allocation141_spill] sm:$0xff] }
 0x82a   :  { %9536 = vmatmul.f32.vlgmr.msrb.gmra.mxu3 %v15794_v13  ;;  %9687 = vmatpush.msra.mxu2 %v18877_v46  ;;  %v18886_v46 = vld [vmem:[#allocation134_spill] sm:$0xff]  ;;  %v18887_v7 = vld [vmem:[#allocation169_spill] sm:$0xff] }
 0x82b   :  { %9737 = vmatpush.msra.mxu3 %v18878_v9  ;;  %9385 = vmatpush.msrb.mxu0 %v18879_v4  ;;  %v18890_v4 = vld [vmem:[#allocation173_spill] sm:$0xff] }
 0x82c   :  { %9604 = vmatpush.msra.mxu1 %v18880_v30  ;;  %9690 = vmatpush.msra.mxu2 %v18881_v45  ;;  %v18888_v30 = vld [vmem:[#allocation145_spill] sm:$0xff]  ;;  %v18889_v45 = vld [vmem:[#allocation136_spill] sm:$0xff] }
 0x82d   :  { %9739 = vmatpush.msra.mxu3 %v18882_v57  ;;  %9388 = vmatpush.msrb.mxu0 %v18883_v22  ;;  %v18891_v22 = vld [vmem:[#allocation148_spill] sm:$0xff] }
 0x82e   :  { %9391 = vmatmul.f32.vlgmr.msrb.gmra.mxu0 %v15797_v12  ;;  %9610 = vmatpush.msra.mxu1 %v18884_v50  ;;  %v18892_v50 = vld [vmem:[#allocation139_spill] sm:$0xff] }
 0x82f   :  { %9541 = vmatpush.msra.mxu0 %v18878_v9  ;;  %9693 = vmatpush.msra.mxu2 %v18885_v31  ;;  %v18894_v31 = vld [vmem:[#allocation149_spill] sm:$0xff] }
 0x830   :  { %9741 = vmatpush.msra.mxu3 %v18886_v46  ;;  %9616 = vmatpush.msra.mxu1 %v18887_v7  ;;  %v18895_v7 = vld [vmem:[#allocation142_spill] sm:$0xff] }
 0x831   :  { %9543 = vmatpush.msra.mxu0 %v18882_v57  ;;  %9696 = vmatpush.msra.mxu2 %v18888_v30  ;;  %v18897_v30 = vld [vmem:[#allocation153_spill] sm:$0xff] }
 0x832   :  { %9743 = vmatpush.msra.mxu3 %v18889_v45  ;;  %9622 = vmatpush.msra.mxu1 %v18890_v4  ;;  %v18898_v4 = vld [vmem:[#allocation143_spill] sm:$0xff] }
 0x833   :  { %9545 = vmatpush.msra.mxu0 %v18886_v46  ;;  %9699 = vmatpush.msra.mxu2 %v18891_v22  ;;  %v18900_v22 = vld [vmem:[#allocation159_spill] sm:$0xff] }
 0x834   :  { %9745 = vmatpush.msra.mxu3 %v18892_v50  ;;  %9628 = vmatpush.msra.mxu1 %v18893_v47  ;;  %v18901_v47 = vld [vmem:[#allocation146_spill] sm:$0xff] }
 0x835   :  { %9547 = vmatpush.msra.mxu0 %v18889_v45  ;;  %9702 = vmatpush.msra.mxu2 %v18894_v31  ;;  %v18903_v31 = vld [vmem:[#allocation163_spill] sm:$0xff] }
 0x836   :  { %9747 = vmatpush.msra.mxu3 %v18895_v7  ;;  %9634 = vmatpush.msra.mxu1 %v18896_v3  ;;  %v18904_v3 = vld [vmem:[#allocation152_spill] sm:$0xff] }
 0x837   :  { %9549 = vmatpush.msra.mxu0 %v18892_v50  ;;  %9705 = vmatpush.msra.mxu2 %v18897_v30  ;;  %v18906_v30 = vld [vmem:[#allocation167_spill] sm:$0xff] }
 0x838   :  { %9749 = vmatpush.msra.mxu3 %v18898_v4  ;;  %9640 = vmatpush.msra.mxu1 %v18899_v23  ;;  %v18907_v23 = vld [vmem:[#allocation156_spill] sm:$0xff] }
 0x839   :  { %9551 = vmatpush.msra.mxu0 %v18895_v7  ;;  %9708 = vmatpush.msra.mxu2 %v18900_v22  ;;  %v18909_v22 = vld [vmem:[#allocation171_spill] sm:$0xff] }
 0x83a   :  { %9751 = vmatpush.msra.mxu3 %v18901_v47  ;;  %9646 = vmatpush.msra.mxu1 %v18902_v42  ;;  %v18910_v42 = vld [vmem:[#allocation160_spill] sm:$0xff] }
 0x83b   :  { %9553 = vmatpush.msra.mxu0 %v18898_v4  ;;  %9711 = vmatpush.msra.mxu2 %v18903_v31  ;;  %v18912_v31 = vld [vmem:[#allocation175_spill] sm:$0xff] }
 0x83c   :  { %9753 = vmatpush.msra.mxu3 %v18904_v3  ;;  %9652 = vmatpush.msra.mxu1 %v18905_v34  ;;  %v18913_v34 = vld [vmem:[#allocation164_spill] sm:$0xff] }
 0x83d   :  { %9555 = vmatpush.msra.mxu0 %v18901_v47  ;;  %9714 = vmatpush.msra.mxu2 %v18906_v30  ;;  %v18915_v30 = vld [vmem:[#allocation180_spill] sm:$0xff] }
 0x83e   :  { %9755 = vmatpush.msra.mxu3 %v18907_v23  ;;  %9658 = vmatpush.msra.mxu1 %v18908_v53  ;;  %v18916_v53 = vld [vmem:[#allocation168_spill] sm:$0xff] }
 0x83f   :  { %9557 = vmatpush.msra.mxu0 %v18904_v3  ;;  %9717 = vmatpush.msra.mxu2 %v18909_v22  ;;  %v18918_v22 = vld [vmem:[#allocation185_spill] sm:$0xff] }
 0x840   :  { %9757 = vmatpush.msra.mxu3 %v18910_v42  ;;  %9664 = vmatpush.msra.mxu1 %v18911_v39  ;;  %v18919_v39 = vld [vmem:[#allocation172_spill] sm:$0xff] }
 0x841   :  { %9559 = vmatpush.msra.mxu0 %v18907_v23  ;;  %9720 = vmatpush.msra.mxu2 %v18912_v31  ;;  %v18921_v31 = vld [vmem:[#allocation176_spill] sm:$0xff] }
 0x842   :  { %9759 = vmatpush.msra.mxu3 %v18913_v34  ;;  %9670 = vmatpush.msra.mxu1 %v18914_v48  ;;  %v18920_v48 = vld [vmem:[#allocation190_spill] sm:$0xff] }
 0x843   :  { %9561 = vmatpush.msra.mxu0 %v18910_v42  ;;  %9723 = vmatpush.msra.mxu2 %v18915_v30  ;;  %v18924_v30 = vld [vmem:[#allocation182_spill] sm:$0xff] }
 0x844   :  { %9761 = vmatpush.msra.mxu3 %v18916_v53  ;;  %9676 = vmatpush.msra.mxu1 %v18917_v16  ;;  %v18922_v16 = vld [vmem:[#allocation178_spill] sm:$0xff] }
 0x845   :  { %9563 = vmatpush.msra.mxu0 %v18913_v34  ;;  %9726 = vmatpush.msra.mxu2 %v18918_v22  ;;  %v18923_v22 = vld [vmem:[#allocation181_spill] sm:$0xff] }
 0x846   :  { %9763 = vmatpush.msra.mxu3 %v18919_v39  ;;  %9678 = vmatmul.f32.vlgmr.msra.gmra.mxu1 %v15794_v13 }
 0x847   :  { %9845 = vmatpush.msrb.mxu1 %v18878_v9  ;;  %9565 = vmatpush.msra.mxu0 %v18916_v53  ;;  %v18925_v9 = vld [vmem:[#allocation212_spill] sm:$0xff] }
 0x848   :  { %9729 = vmatpush.msra.mxu2 %v18920_v48  ;;  %9765 = vmatpush.msra.mxu3 %v18921_v31  ;;  %v18926_v48 = vld [vmem:[#allocation187_spill] sm:$0xff] }
 0x849   :  { %9732 = vmatmul.f32.vlgmr.msra.gmra.mxu2 %v15797_v12  ;;  %9847 = vmatpush.msrb.mxu1 %v18882_v57  ;;  %v18927_v57 = vld [vmem:[#allocation217_spill] sm:$0xff] }
 0x84a   :  { %9882 = vmatpush.msrb.mxu2 %v18922_v16  ;;  %9567 = vmatpush.msra.mxu0 %v18919_v39 }
 0x84b   :  { %9767 = vmatpush.msra.mxu3 %v18923_v22  ;;  %9849 = vmatpush.msrb.mxu1 %v18886_v46  ;;  %v18928_v46 = vld [vmem:[#allocation137_spill] sm:$0xff] }
 0x84c   :  { %9771 = vmatmul.f32.vlgmr.msra.gmra.mxu3 %v15803_v60  ;;  %9884 = vmatpush.msrb.mxu2 %v18924_v30 }
 0x84d   :  { %9927 = vmatpush.msrb.mxu3 %v18925_v9  ;;  %9569 = vmatpush.msra.mxu0 %v18921_v31  ;;  %v18931_v9 = vld [vmem:[#allocation140_spill] sm:$0xff] }
 0x84e   :  { %9851 = vmatpush.msrb.mxu1 %v18889_v45  ;;  %9886 = vmatpush.msrb.mxu2 %v18926_v48  ;;  %v18932_v45 = vld [vmem:[#allocation199_spill] sm:$0xff] }
 0x84f   :  { %9933 = vmatpush.msrb.mxu3 %v18927_v57  ;;  %9571 = vmatpush.msra.mxu0 %v18923_v22  ;;  %v18934_v57 = vld [vmem:[#allocation144_spill] sm:$0xff] }
 0x850   :  { %9577 = vmatmul.f32.vlgmr.msra.gmra.mxu0 %v15814_v25  ;;  %9853 = vmatpush.msrb.mxu1 %v18892_v50  ;;  %v18936_v50 = vld [vmem:[#allocation229_spill] sm:$0xff] }
 0x851   :  { %9778 = vmatpush.msrb.mxu0 %v18928_v46  ;;  %9888 = vmatpush.msrb.mxu2 %v18929_v63  ;;  %v18937_v46 = vld [vmem:[#allocation147_spill] sm:$0xff] }
 0x852   :  { %9939 = vmatpush.msrb.mxu3 %v18930_v24  ;;  %9855 = vmatpush.msrb.mxu1 %v18895_v7  ;;  %v18938_v24 = vld [vmem:[#allocation207_spill] sm:$0xff]  ;;  %v18939_v7 = vld [vmem:[#allocation232_spill] sm:$0xff] }
 0x853   :  { %9782 = vmatpush.msrb.mxu0 %v18931_v9  ;;  %9890 = vmatpush.msrb.mxu2 %v18932_v45  ;;  %v18940_v9 = vld [vmem:[#allocation151_spill] sm:$0xff] }
 0x854   :  { %9945 = vmatpush.msrb.mxu3 %v18933_v20  ;;  %9857 = vmatpush.msrb.mxu1 %v18898_v4  ;;  %v18941_v20 = vld [vmem:[#allocation211_spill] sm:$0xff]  ;;  %v18942_v4 = vld [vmem:[#allocation236_spill] sm:$0xff] }
 0x855   :  { %9786 = vmatpush.msrb.mxu0 %v18934_v57  ;;  %9892 = vmatpush.msrb.mxu2 %v18935_v27  ;;  %v18943_v57 = vld [vmem:[#allocation155_spill] sm:$0xff] }
 0x856   :  { %9951 = vmatpush.msrb.mxu3 %v18936_v50  ;;  %9859 = vmatpush.msrb.mxu1 %v18901_v47  ;;  %v18944_v50 = vld [vmem:[#allocation216_spill] sm:$0xff]  ;;  %v18945_v47 = vld [vmem:[#allocation239_spill] sm:$0xff] }
 0x857   :  { %9790 = vmatpush.msrb.mxu0 %v18937_v46  ;;  %9894 = vmatpush.msrb.mxu2 %v18938_v24  ;;  %v18946_v46 = vld [vmem:[#allocation157_spill] sm:$0xff] }
 0x858   :  { %9957 = vmatpush.msrb.mxu3 %v18939_v7  ;;  %9861 = vmatpush.msrb.mxu1 %v18904_v3  ;;  %v18947_v7 = vld [vmem:[#allocation220_spill] sm:$0xff]  ;;  %v18948_v3 = vld [vmem:[#allocation243_spill] sm:$0xff] }
 0x859   :  { %9794 = vmatpush.msrb.mxu0 %v18940_v9  ;;  %9896 = vmatpush.msrb.mxu2 %v18941_v20  ;;  %v18949_v9 = vld [vmem:[#allocation161_spill] sm:$0xff] }
 0x85a   :  { %9963 = vmatpush.msrb.mxu3 %v18942_v4  ;;  %9863 = vmatpush.msrb.mxu1 %v18907_v23  ;;  %v18950_v4 = vld [vmem:[#allocation224_spill] sm:$0xff]  ;;  %v18951_v23 = vld [vmem:[#allocation246_spill] sm:$0xff] }
 0x85b   :  { %9798 = vmatpush.msrb.mxu0 %v18943_v57  ;;  %9898 = vmatpush.msrb.mxu2 %v18944_v50  ;;  %v18952_v57 = vld [vmem:[#allocation166_spill] sm:$0xff] }
 0x85c   :  { %9969 = vmatpush.msrb.mxu3 %v18945_v47  ;;  %9865 = vmatpush.msrb.mxu1 %v18910_v42  ;;  %v18953_v47 = vld [vmem:[#allocation228_spill] sm:$0xff]  ;;  %v18954_v42 = vld [vmem:[#allocation249_spill] sm:$0xff] }
 0x85d   :  { %9802 = vmatpush.msrb.mxu0 %v18946_v46  ;;  %9900 = vmatpush.msrb.mxu2 %v18947_v7  ;;  %v18955_v46 = vld [vmem:[#allocation170_spill] sm:$0xff] }
 0x85e   :  { %9975 = vmatpush.msrb.mxu3 %v18948_v3  ;;  %9867 = vmatpush.msrb.mxu1 %v18913_v34  ;;  %v18956_v3 = vld [vmem:[#allocation234_spill] sm:$0xff]  ;;  %v18957_v34 = vld [vmem:[#allocation253_spill] sm:$0xff] }
 0x85f   :  { %9806 = vmatpush.msrb.mxu0 %v18949_v9  ;;  %9902 = vmatpush.msrb.mxu2 %v18950_v4  ;;  %v18958_v9 = vld [vmem:[#allocation174_spill] sm:$0xff] }
 0x860   :  { %9981 = vmatpush.msrb.mxu3 %v18951_v23  ;;  %9869 = vmatpush.msrb.mxu1 %v18916_v53  ;;  %v18959_v23 = vld [vmem:[#allocation238_spill] sm:$0xff]  ;;  %v18960_v53 = vld [vmem:[#allocation255_spill] sm:$0xff] }
 0x861   :  { %9810 = vmatpush.msrb.mxu0 %v18952_v57  ;;  %9904 = vmatpush.msrb.mxu2 %v18953_v47  ;;  %v18961_v57 = vld [vmem:[#allocation179_spill] sm:$0xff] }
 0x862   :  { %9987 = vmatpush.msrb.mxu3 %v18954_v42  ;;  %9871 = vmatpush.msrb.mxu1 %v18919_v39  ;;  %v18962_v42 = vld [vmem:[#allocation241_spill] sm:$0xff]  ;;  %v18963_v39 = vld [vmem:[#allocation256_spill] sm:$0xff] }
 0x863   :  { %9814 = vmatpush.msrb.mxu0 %v18955_v46  ;;  %9906 = vmatpush.msrb.mxu2 %v18956_v3  ;;  %v18965_v46 = vld [vmem:[#allocation245_spill] sm:$0xff] }
 0x864   :  { %9993 = vmatpush.msrb.mxu3 %v18957_v34  ;;  %9873 = vmatpush.msrb.mxu1 %v18921_v31  ;;  %v18964_v34 = vld [vmem:[#allocation184_spill] sm:$0xff]  ;;  %v19084_v31 = vld [vmem:[#allocation94_spill] sm:$0xff] }
 0x865   :  { %9818 = vmatpush.msrb.mxu0 %v18958_v9  ;;  %9908 = vmatpush.msrb.mxu2 %v18959_v23  ;;  %v18966_v9 = vld [vmem:[#allocation257_spill] sm:$0xff] }
 0x866   :  { %9999 = vmatpush.msrb.mxu3 %v18960_v53  ;;  %9875 = vmatpush.msrb.mxu1 %v18923_v22  ;;  %v18967_v53 = vld [vmem:[#allocation195_spill] sm:$0xff]  ;;  %v18969_v22 = vld [vmem:[#allocation258_spill] sm:$0xff] }
 0x867   :  { %9822 = vmatpush.msrb.mxu0 %v18961_v57  ;;  %9910 = vmatpush.msrb.mxu2 %v18962_v42  ;;  %v18968_v57 = vld [vmem:[#allocation189_spill] sm:$0xff] }
 0x868   :  { %10005 = vmatpush.msrb.mxu3 %v18963_v39  ;;  %9877 = vmatmul.f32.vlgmr.msrb.gmra.mxu1 %v15794_v13  ;;  %v18970_v39 = vld [vmem:[#allocation200_spill] sm:$0xff] }
 0x869   :  { %10078 = vmatpush.msra.mxu1 %v18922_v16  ;;  %9826 = vmatpush.msrb.mxu0 %v18964_v34  ;;  %v18971_v34 = vld [vmem:[#allocation193_spill] sm:$0xff] }
 0x86a   :  { %9912 = vmatpush.msrb.mxu2 %v18965_v46  ;;  %10011 = vmatpush.msrb.mxu3 %v18966_v9  ;;  %v18976_v9 = vld [vmem:[#allocation191_spill] sm:$0xff] }
 0x86b   :  { %9918 = vmatmul.f32.vlgmr.msrb.gmra.mxu2 %v15814_v25  ;;  %10080 = vmatpush.msra.mxu1 %v18924_v30  ;;  %v18972_v25 = vld [vmem:[#allocation204_spill] sm:$0xff] }
 0x86c   :  { %10119 = vmatpush.msra.mxu2 %v18967_v53  ;;  %9830 = vmatpush.msrb.mxu0 %v18968_v57  ;;  %v18973_v53 = vld [vmem:[#allocation198_spill] sm:$0xff]  ;;  %v18975_v57 = vld [vmem:[#allocation209_spill] sm:$0xff] }
 0x86d   :  { %10017 = vmatpush.msrb.mxu3 %v18969_v22  ;;  %10082 = vmatpush.msra.mxu1 %v18926_v48  ;;  %v18974_v22 = vld [vmem:[#allocation186_spill] sm:$0xff] }
 0x86e   :  { %10019 = vmatmul.f32.vlgmr.msrb.gmra.mxu3 %v15794_v13  ;;  %10123 = vmatpush.msra.mxu2 %v18970_v39 }
 0x86f   :  { %10186 = vmatpush.msra.mxu3 %v18922_v16  ;;  %9834 = vmatpush.msrb.mxu0 %v18971_v34  ;;  %v18978_v16 = vld [vmem:[#allocation196_spill] sm:$0xff] }
 0x870   :  { %10084 = vmatpush.msra.mxu1 %v18929_v63  ;;  %10127 = vmatpush.msra.mxu2 %v18972_v25  ;;  %v18977_v25 = vld [vmem:[#allocation214_spill] sm:$0xff] }
 0x871   :  { %10188 = vmatpush.msra.mxu3 %v18924_v30  ;;  %9838 = vmatpush.msrb.mxu0 %v18973_v53  ;;  %v11976_v53 = vld [vmem:[#allocation2] ss:$0 sm:$0xff] }
 0x872   :  { %9840 = vmatmul.f32.vlgmr.msrb.gmra.mxu0 %v15794_v13  ;;  %10086 = vmatpush.msra.mxu1 %v18932_v45 }
 0x873   :  { %10025 = vmatpush.msra.mxu0 %v18974_v22  ;;  %10131 = vmatpush.msra.mxu2 %v18975_v57  ;;  %v8854_v39 = vpop.xlane.xlu1 %8853  ;;  %v18979_v22 = vld [vmem:[#allocation218_spill] sm:$0xff]  ;;  %v18987_v57 = vld [vmem:[#allocation233_spill] sm:$0xff] }
 0x874   :  { %10190 = vmatpush.msra.mxu3 %v18926_v48  ;;  %10088 = vmatpush.msra.mxu1 %v18935_v27  ;;  %v11771_v34 = vrot.slane %v8854_v39, 2  ;;  %v18980_v39 = vld [vmem:[#allocation202_spill] sm:$0xff] }
 0x875   :  { %10028 = vmatpush.msra.mxu0 %v18976_v9  ;;  %10135 = vmatpush.msra.mxu2 %v18977_v25  ;;  %v18981_v9 = vld [vmem:[#allocation222_spill] sm:$0xff] }
 0x876   :  { %10192 = vmatpush.msra.mxu3 %v18929_v63  ;;  %10090 = vmatpush.msra.mxu1 %v18938_v24  ;;  %v11788_v30 = vadd.f32 %v11976_v53, %v11771_v34  ;;  %v18982_v34 = vld [vmem:[#allocation206_spill] sm:$0xff] }
 0x877   :  { %10031 = vmatpush.msra.mxu0 %v18978_v16  ;;  %10139 = vmatpush.msra.mxu2 %v18979_v22  ;;  %v18983_v16 = vld [vmem:[#allocation226_spill] sm:$0xff] }
 0x878   :  { %10194 = vmatpush.msra.mxu3 %v18932_v45  ;;  %10092 = vmatpush.msra.mxu1 %v18941_v20  ;;  %11797 = vst.msk [vmem:[%s16556_s6 + $0xa] sm:$0x3] %vm11791_vm11, %v11788_v30  ;;  %v18984_v25 = vld [vmem:[#allocation210_spill] sm:$0xff] }
 0x879   :  { %10034 = vmatpush.msra.mxu0 %v18980_v39  ;;  %10143 = vmatpush.msra.mxu2 %v18981_v9  ;;  %v18985_v30 = vld [vmem:[#allocation230_spill] sm:$0xff]  ;;  %v18986_v9 = vld [vmem:[#allocation215_spill] sm:$0xff] }
 0x87a   :  { %10196 = vmatpush.msra.mxu3 %v18935_v27  ;;  %10094 = vmatpush.msra.mxu1 %v18944_v50  ;;  %v19083_v63 = vld [vmem:[#allocation90_spill] sm:$0xff] }
 0x87b   :  { %10037 = vmatpush.msra.mxu0 %v18982_v34  ;;  %10147 = vmatpush.msra.mxu2 %v18983_v16  ;;  %v19010_v34 = vld [vmem:[#allocation4_spill] sm:$0xff]  ;;  %v19023_v16 = vld [vmem:[#allocation51_spill] sm:$0xff] }
 0x87c   :  { %10198 = vmatpush.msra.mxu3 %v18938_v24  ;;  %10096 = vmatpush.msra.mxu1 %v18947_v7  ;;  %v7404_v22 = vpop.xlane.xlu1 %7403 }
 0x87d   :  { %10040 = vmatpush.msra.mxu0 %v18984_v25  ;;  %10151 = vmatpush.msra.mxu2 %v18985_v30  ;;  %v11787_v39 = vadd.f32 %v11976_v53, %v7404_v22  ;;  %v18988_v25 = vld [vmem:[#allocation219_spill] sm:$0xff]  ;;  %v18989_v53 = vld [vmem:[#allocation237_spill] sm:$0xff] }
 0x87e   :  { %10200 = vmatpush.msra.mxu3 %v18941_v20  ;;  %10098 = vmatpush.msra.mxu1 %v18950_v4  ;;  %v18990_v22 = vld [vmem:[#allocation223_spill] sm:$0xff] }
 0x87f   :  { %10043 = vmatpush.msra.mxu0 %v18986_v9  ;;  %10155 = vmatpush.msra.mxu2 %v18987_v57  ;;  %11796 = vst.msk [vmem:[%s16556_s6 + $0x8] sm:$0x3] %vm11791_vm11, %v11787_v39  ;;  %v18991_v9 = vld [vmem:[#allocation242_spill] sm:$0xff]  ;;  %v18992_v39 = vld [vmem:[#allocation227_spill] sm:$0xff] }
 0x880   :  { %10202 = vmatpush.msra.mxu3 %v18944_v50  ;;  %10100 = vmatpush.msra.mxu1 %v18953_v47  ;;  %v18993_v57 = vld [vmem:[#allocation247_spill] sm:$0xff]  ;;  %v19047_v50 = vld [vmem:[#allocation85_spill] sm:$0xff] }
 0x881   :  { %10046 = vmatpush.msra.mxu0 %v18988_v25  ;;  %10159 = vmatpush.msra.mxu2 %v18989_v53  ;;  %v18994_v25 = vld [vmem:[#allocation231_spill] sm:$0xff]  ;;  %v18995_v53 = vld [vmem:[#allocation250_spill] sm:$0xff] }
 0x882   :  { %10204 = vmatpush.msra.mxu3 %v18947_v7  ;;  %10102 = vmatpush.msra.mxu1 %v18956_v3  ;;  %v19007_v30 = vld [vmem:[#allocation3_spill] sm:$0xff]  ;;  %v19044_v7 = vld [vmem:[#allocation80_spill] sm:$0xff] }
 0x883   :  { %10049 = vmatpush.msra.mxu0 %v18990_v22  ;;  %10163 = vmatpush.msra.mxu2 %v18991_v9  ;;  %v18996_v22 = vld [vmem:[#allocation235_spill] sm:$0xff]  ;;  %v18997_v9 = vld [vmem:[#allocation252_spill] sm:$0xff] }
 0x884   :  { %10206 = vmatpush.msra.mxu3 %v18950_v4  ;;  %10104 = vmatpush.msra.mxu1 %v18959_v23  ;;  %v19041_v4 = vld [vmem:[#allocation76_spill] sm:$0xff] }
 0x885   :  { %10052 = vmatpush.msra.mxu0 %v18992_v39  ;;  %10167 = vmatpush.msra.mxu2 %v18993_v57  ;;  %v18998_v39 = vld [vmem:[#allocation240_spill] sm:$0xff]  ;;  %v18999_v57 = vld [vmem:[#allocation254_spill] sm:$0xff] }
 0x886   :  { %10208 = vmatpush.msra.mxu3 %v18953_v47  ;;  %10106 = vmatpush.msra.mxu1 %v18962_v42  ;;  %v19038_v47 = vld [vmem:[#allocation72_spill] sm:$0xff] }
 0x887   :  { %10055 = vmatpush.msra.mxu0 %v18994_v25  ;;  %10171 = vmatpush.msra.mxu2 %v18995_v53  ;;  %v19000_v25 = vld [vmem:[#allocation244_spill] sm:$0xff]  ;;  %v19001_v53 = vld [vmem:[#allocation25_spill] sm:$0xff] }
 0x888   :  { %10210 = vmatpush.msra.mxu3 %v18956_v3  ;;  %10108 = vmatpush.msra.mxu1 %v18965_v46  ;;  %v19035_v3 = vld [vmem:[#allocation68_spill] sm:$0xff] }
 0x889   :  { %10058 = vmatpush.msra.mxu0 %v18996_v22  ;;  %10175 = vmatpush.msra.mxu2 %v18997_v9  ;;  %v19002_v22 = vld [vmem:[#allocation5_spill] sm:$0xff]  ;;  %v19003_v9 = vld [vmem:[#allocation248_spill] sm:$0xff] }
 0x88a   :  { %10212 = vmatpush.msra.mxu3 %v18959_v23  ;;  %10112 = vmatmul.f32.vlgmr.msra.gmra.mxu1 %v15803_v60  ;;  %v19004_v60 = vld [vmem:[#allocation27_spill] sm:$0xff] }
 0x88b   :  { %10061 = vmatpush.msra.mxu0 %v18998_v39  ;;  %10179 = vmatpush.msra.mxu2 %v18999_v57  ;;  %v19005_v39 = vld [vmem:[#allocation9_spill] sm:$0xff]  ;;  %v19006_v57 = vld [vmem:[#allocation251_spill] sm:$0xff] }
 0x88c   :  { %10214 = vmatpush.msra.mxu3 %v18962_v42  ;;  %10181 = vmatmul.f32.vlgmr.msra.gmra.mxu2 %v15794_v13  ;;  %v19029_v42 = vld [vmem:[#allocation60_spill] sm:$0xff]  ;;  %v19032_v23 = vld [vmem:[#allocation63_spill] sm:$0xff] }
 0x88d   :  { %10064 = vmatpush.msra.mxu0 %v19000_v25  ;;  %10357 = vmatpush.msrb.mxu1 %v19001_v53  ;;  %v19008_v25 = vld [vmem:[#allocation29_spill] sm:$0xff]  ;;  %v19009_v53 = vld [vmem:[#allocation14_spill] sm:$0xff] }
 0x88e   :  { %10216 = vmatpush.msra.mxu3 %v18965_v46  ;;  %10455 = vmatpush.msrb.mxu2 %v19002_v22  ;;  %v19011_v22 = vld [vmem:[#allocation33_spill] sm:$0xff]  ;;  %v19026_v46 = vld [vmem:[#allocation55_spill] sm:$0xff] }
 0x88f   :  { %10218 = vmatmul.f32.vlgmr.msra.gmra.mxu3 %v15794_v13  ;;  %10067 = vmatpush.msra.mxu0 %v19003_v9  ;;  %v19012_v13 = vld [vmem:[#allocation15_spill] sm:$0xff]  ;;  %v19020_v9 = vld [vmem:[#allocation46_spill] sm:$0xff] }
 0x890   :  { %10363 = vmatpush.msrb.mxu1 %v19004_v60  ;;  %10458 = vmatpush.msrb.mxu2 %v19005_v39  ;;  %v19013_v60 = vld [vmem:[#allocation6_spill] sm:$0xff] }
 0x891   :  { %10070 = vmatpush.msra.mxu0 %v19006_v57  ;;  %10508 = vmatpush.msrb.mxu3 %v19007_v30  ;;  %v19014_v39 = vld [vmem:[#allocation38_spill] sm:$0xff]  ;;  %v19015_v57 = vld [vmem:[#allocation16_spill] sm:$0xff] }
 0x892   :  { %10073 = vmatmul.f32.vlgmr.msra.gmra.mxu0 %v15797_v12  ;;  %10369 = vmatpush.msrb.mxu1 %v19008_v25  ;;  %v19016_v12 = vld [vmem:[#allocation7_spill] sm:$0xff]  ;;  %v19017_v25 = vld [vmem:[#allocation42_spill] sm:$0xff] }
 0x893   :  { %10461 = vmatpush.msrb.mxu2 %v19009_v53  ;;  %10510 = vmatpush.msrb.mxu3 %v19010_v34  ;;  %v19018_v53 = vld [vmem:[#allocation18_spill] sm:$0xff] }
 0x894   :  { %10375 = vmatpush.msrb.mxu1 %v19011_v22  ;;  %10312 = vmatpush.msrb.mxu0 %v19007_v30  ;;  %v19019_v22 = vld [vmem:[#allocation8_spill] sm:$0xff] }
 0x895   :  { %10464 = vmatpush.msrb.mxu2 %v19012_v13  ;;  %10512 = vmatpush.msrb.mxu3 %v19013_v60  ;;  %v19021_v13 = vld [vmem:[#allocation19_spill] sm:$0xff] }
 0x896   :  { %10381 = vmatpush.msrb.mxu1 %v19014_v39  ;;  %10314 = vmatpush.msrb.mxu0 %v19010_v34  ;;  %v19022_v39 = vld [vmem:[#allocation10_spill] sm:$0xff] }
 0x897   :  { %10467 = vmatpush.msrb.mxu2 %v19015_v57  ;;  %10514 = vmatpush.msrb.mxu3 %v19016_v12  ;;  %v19024_v57 = vld [vmem:[#allocation26_spill] sm:$0xff] }
 0x898   :  { %10387 = vmatpush.msrb.mxu1 %v19017_v25  ;;  %10316 = vmatpush.msrb.mxu0 %v19013_v60  ;;  %v19025_v25 = vld [vmem:[#allocation11_spill] sm:$0xff] }
 0x899   :  { %10470 = vmatpush.msrb.mxu2 %v19018_v53  ;;  %10516 = vmatpush.msrb.mxu3 %v19019_v22  ;;  %v19027_v53 = vld [vmem:[#allocation30_spill] sm:$0xff] }
 0x89a   :  { %10393 = vmatpush.msrb.mxu1 %v19020_v9  ;;  %10318 = vmatpush.msrb.mxu0 %v19016_v12  ;;  %v19028_v9 = vld [vmem:[#allocation12_spill] sm:$0xff] }
 0x89b   :  { %10473 = vmatpush.msrb.mxu2 %v19021_v13  ;;  %10518 = vmatpush.msrb.mxu3 %v19022_v39  ;;  %v19030_v13 = vld [vmem:[#allocation35_spill] sm:$0xff] }
 0x89c   :  { %10399 = vmatpush.msrb.mxu1 %v19023_v16  ;;  %10320 = vmatpush.msrb.mxu0 %v19019_v22  ;;  %v19031_v16 = vld [vmem:[#allocation24_spill] sm:$0xff] }
 0x89d   :  { %10476 = vmatpush.msrb.mxu2 %v19024_v57  ;;  %10520 = vmatpush.msrb.mxu3 %v19025_v25  ;;  %v19033_v57 = vld [vmem:[#allocation40_spill] sm:$0xff] }
 0x89e   :  { %10405 = vmatpush.msrb.mxu1 %v19026_v46  ;;  %10322 = vmatpush.msrb.mxu0 %v19022_v39  ;;  %v19034_v46 = vld [vmem:[#allocation31_spill] sm:$0xff] }
 0x89f   :  { %10479 = vmatpush.msrb.mxu2 %v19027_v53  ;;  %10522 = vmatpush.msrb.mxu3 %v19028_v9  ;;  %v19036_v53 = vld [vmem:[#allocation44_spill] sm:$0xff] }
 0x8a0   :  { %10411 = vmatpush.msrb.mxu1 %v19029_v42  ;;  %10324 = vmatpush.msrb.mxu0 %v19025_v25  ;;  %v19037_v42 = vld [vmem:[#allocation32_spill] sm:$0xff] }
 0x8a1   :  { %10482 = vmatpush.msrb.mxu2 %v19030_v13  ;;  %10524 = vmatpush.msrb.mxu3 %v19031_v16  ;;  %v19039_v13 = vld [vmem:[#allocation45_spill] sm:$0xff] }
 0x8a2   :  { %10417 = vmatpush.msrb.mxu1 %v19032_v23  ;;  %10326 = vmatpush.msrb.mxu0 %v19028_v9  ;;  %v19040_v23 = vld [vmem:[#allocation36_spill] sm:$0xff] }
 0x8a3   :  { %10485 = vmatpush.msrb.mxu2 %v19033_v57  ;;  %10526 = vmatpush.msrb.mxu3 %v19034_v46  ;;  %v19042_v57 = vld [vmem:[#allocation49_spill] sm:$0xff] }
 0x8a4   :  { %10423 = vmatpush.msrb.mxu1 %v19035_v3  ;;  %10328 = vmatpush.msrb.mxu0 %v19031_v16  ;;  %v19043_v3 = vld [vmem:[#allocation37_spill] sm:$0xff] }
 0x8a5   :  { %10488 = vmatpush.msrb.mxu2 %v19036_v53  ;;  %10528 = vmatpush.msrb.mxu3 %v19037_v42  ;;  %v19045_v53 = vld [vmem:[#allocation56_spill] sm:$0xff] }
 0x8a6   :  { %10429 = vmatpush.msrb.mxu1 %v19038_v47  ;;  %10330 = vmatpush.msrb.mxu0 %v19034_v46  ;;  %v19046_v47 = vld [vmem:[#allocation41_spill] sm:$0xff] }
 0x8a7   :  { %10491 = vmatpush.msrb.mxu2 %v19039_v13  ;;  %10530 = vmatpush.msrb.mxu3 %v19040_v23  ;;  %v19049_v13 = vld [vmem:[#allocation48_spill] sm:$0xff] }
 0x8a8   :  { %10435 = vmatpush.msrb.mxu1 %v19041_v4  ;;  %10332 = vmatpush.msrb.mxu0 %v19037_v42  ;;  %v19048_v4 = vld [vmem:[#allocation61_spill] sm:$0xff] }
 0x8a9   :  { %10494 = vmatpush.msrb.mxu2 %v19042_v57  ;;  %10532 = vmatpush.msrb.mxu3 %v19043_v3  ;;  %v19054_v57 = vld [vmem:[#allocation92_spill] sm:$0xff] }
 0x8aa   :  { %10441 = vmatpush.msrb.mxu1 %v19044_v7  ;;  %10334 = vmatpush.msrb.mxu0 %v19040_v23  ;;  %v19050_v7 = vld [vmem:[#allocation53_spill] sm:$0xff] }
 0x8ab   :  { %10497 = vmatpush.msrb.mxu2 %v19045_v53  ;;  %10534 = vmatpush.msrb.mxu3 %v19046_v47  ;;  %v19056_v53 = vld [vmem:[#allocation95_spill] sm:$0xff] }
 0x8ac   :  { %10447 = vmatpush.msrb.mxu1 %v19047_v50  ;;  %10336 = vmatpush.msrb.mxu0 %v19043_v3  ;;  %v19051_v50 = vld [vmem:[#allocation83_spill] sm:$0xff] }
 0x8ad   :  { %10500 = vmatpush.msrb.mxu2 %v19048_v4  ;;  %10536 = vmatpush.msrb.mxu3 %v19049_v13  ;;  %v19058_v4 = vld [vmem:[#allocation99_spill] sm:$0xff] }
 0x8ae   :  { %10616 = vmatpush.msra.mxu1 %v19007_v30  ;;  %10338 = vmatpush.msrb.mxu0 %v19046_v47  ;;  %v19052_v30 = vld [vmem:[#allocation88_spill] sm:$0xff] }
 0x8af   :  { %10653 = vmatpush.msra.mxu2 %v17671_v11  ;;  %10538 = vmatpush.msrb.mxu3 %v19050_v7 }
 0x8b0   :  { %10618 = vmatpush.msra.mxu1 %v19010_v34  ;;  %10340 = vmatpush.msrb.mxu0 %v19049_v13  ;;  %v19053_v34 = vld [vmem:[#allocation13_spill] sm:$0xff] }
 0x8b1   :  { %10655 = vmatpush.msra.mxu2 %v17674_v21  ;;  %10698 = vmatpush.msra.mxu3 %v19051_v50  ;;  %v19060_v50 = vld [vmem:[#allocation102_spill] sm:$0xff] }
 0x8b2   :  { %10620 = vmatpush.msra.mxu1 %v19013_v60  ;;  %10342 = vmatpush.msrb.mxu0 %v19050_v7  ;;  %v19055_v60 = vld [vmem:[#allocation17_spill] sm:$0xff] }
 0x8b3   :  { %10657 = vmatpush.msra.mxu2 %v17676_v2  ;;  %10704 = vmatpush.msra.mxu3 %v19052_v30  ;;  %v19062_v30 = vld [vmem:[#allocation105_spill] sm:$0xff] }
 0x8b4   :  { %10622 = vmatpush.msra.mxu1 %v19016_v12  ;;  %10549 = vmatpush.msra.mxu0 %v19053_v34  ;;  %v19057_v12 = vld [vmem:[#allocation20_spill] sm:$0xff]  ;;  %v19064_v34 = vld [vmem:[#allocation111_spill] sm:$0xff] }
 0x8b5   :  { %10659 = vmatpush.msra.mxu2 %v17679_v38  ;;  %10710 = vmatpush.msra.mxu3 %v19054_v57  ;;  %v19066_v57 = vld [vmem:[#allocation115_spill] sm:$0xff] }
 0x8b6   :  { %10624 = vmatpush.msra.mxu1 %v19019_v22  ;;  %10553 = vmatpush.msra.mxu0 %v19055_v60  ;;  %v19059_v22 = vld [vmem:[#allocation21_spill] sm:$0xff]  ;;  %v19068_v60 = vld [vmem:[#allocation118_spill] sm:$0xff] }
 0x8b7   :  { %10661 = vmatpush.msra.mxu2 %v17682_v17  ;;  %10716 = vmatpush.msra.mxu3 %v19056_v53  ;;  %v19070_v53 = vld [vmem:[#allocation121_spill] sm:$0xff] }
 0x8b8   :  { %10626 = vmatpush.msra.mxu1 %v19022_v39  ;;  %10557 = vmatpush.msra.mxu0 %v19057_v12  ;;  %v19061_v39 = vld [vmem:[#allocation22_spill] sm:$0xff]  ;;  %v19072_v12 = vld [vmem:[#allocation125_spill] sm:$0xff] }
 0x8b9   :  { %10663 = vmatpush.msra.mxu2 %v17685_v62  ;;  %10722 = vmatpush.msra.mxu3 %v19058_v4  ;;  %v19074_v4 = vld [vmem:[#allocation127_spill] sm:$0xff] }
 0x8ba   :  { %10628 = vmatpush.msra.mxu1 %v19025_v25  ;;  %10561 = vmatpush.msra.mxu0 %v19059_v22  ;;  %v19063_v25 = vld [vmem:[#allocation23_spill] sm:$0xff]  ;;  %v19076_v22 = vld [vmem:[#allocation128_spill] sm:$0xff] }
 0x8bb   :  { %10665 = vmatpush.msra.mxu2 %v17688_v33  ;;  %10728 = vmatpush.msra.mxu3 %v19060_v50  ;;  %v8896_v50 = vpop.f32.mrf.mxu0 }
 0x8bc   :  { %10630 = vmatpush.msra.mxu1 %v19028_v9  ;;  %10565 = vmatpush.msra.mxu0 %v19061_v39  ;;  %v19065_v9 = vld [vmem:[#allocation28_spill] sm:$0xff]  ;;  %v19078_v39 = vld [vmem:[#allocation129_spill] sm:$0xff] }
 0x8bd   :  { %10667 = vmatpush.msra.mxu2 %v17691_v40  ;;  %10734 = vmatpush.msra.mxu3 %v19062_v30  ;;  %v19079_v30 = vld [vmem:[#allocation58_spill] sm:$0xff] }
 0x8be   :  { %10632 = vmatpush.msra.mxu1 %v19031_v16  ;;  %10569 = vmatpush.msra.mxu0 %v19063_v25  ;;  %v19067_v16 = vld [vmem:[#allocation34_spill] sm:$0xff]  ;;  %v19081_v25 = vld [vmem:[#allocation64_spill] sm:$0xff] }
 0x8bf   :  { %10669 = vmatpush.msra.mxu2 %v17694_v8  ;;  %10740 = vmatpush.msra.mxu3 %v19064_v34  ;;  %v19082_v34 = vld [vmem:[#allocation69_spill] sm:$0xff] }
 0x8c0   :  { %10634 = vmatpush.msra.mxu1 %v19034_v46  ;;  %10573 = vmatpush.msra.mxu0 %v19065_v9  ;;  %v19069_v46 = vld [vmem:[#allocation39_spill] sm:$0xff]  ;;  %v8997_v9 = vpop.f32.mrf.mxu1 }
 0x8c1   :  { %10671 = vmatpush.msra.mxu2 %v17697_v1  ;;  %10746 = vmatpush.msra.mxu3 %v19066_v57  ;;  %v9090_v57 = vpop.f32.mrf.mxu3 }
 0x8c2   :  { %10636 = vmatpush.msra.mxu1 %v19037_v42  ;;  %10577 = vmatpush.msra.mxu0 %v19067_v16  ;;  %v19071_v42 = vld [vmem:[#allocation43_spill] sm:$0xff] }
 0x8c3   :  { %10673 = vmatpush.msra.mxu2 %v17700_v15  ;;  %10752 = vmatpush.msra.mxu3 %v19068_v60  ;;  %v9159_v16 = vpop.f32.mrf.mxu0 }
 0x8c4   :  { %10638 = vmatpush.msra.mxu1 %v19040_v23  ;;  %10581 = vmatpush.msra.mxu0 %v19069_v46  ;;  %v19073_v23 = vld [vmem:[#allocation47_spill] sm:$0xff] }
 0x8c5   :  { %10675 = vmatpush.msra.mxu2 %v17704_v5  ;;  %10758 = vmatpush.msra.mxu3 %v19070_v53  ;;  %v8998_v53 = vadd.f32 %v8997_v9, %v8896_v50 }
 0x8c6   :  { %10640 = vmatpush.msra.mxu1 %v19043_v3  ;;  %10585 = vmatpush.msra.mxu0 %v19071_v42  ;;  %v19075_v3 = vld [vmem:[#allocation52_spill] sm:$0xff] }
 0x8c7   :  { %10677 = vmatpush.msra.mxu2 %v17707_v41  ;;  %10764 = vmatpush.msra.mxu3 %v19072_v12 }
 0x8c8   :  { %10642 = vmatpush.msra.mxu1 %v19046_v47  ;;  %10589 = vmatpush.msra.mxu0 %v19073_v23  ;;  %v19077_v47 = vld [vmem:[#allocation54_spill] sm:$0xff]  ;;  %v9196_v60 = vpop.f32.mrf.mxu1 }
 0x8c9   :  { %10679 = vmatpush.msra.mxu2 %v17711_v29  ;;  %10770 = vmatpush.msra.mxu3 %v19074_v4  ;;  %v9338_v46 = vpop.f32.mrf.mxu3 }
 0x8ca   :  { %10644 = vmatpush.msra.mxu1 %v19049_v13  ;;  %10593 = vmatpush.msra.mxu0 %v19075_v3  ;;  %v19080_v13 = vld [vmem:[#allocation130_spill] sm:$0xff] }
 0x8cb   :  { %10681 = vmatpush.msra.mxu2 %v17715_v56  ;;  %10776 = vmatpush.msra.mxu3 %v19076_v22  ;;  %v9392_v12 = vpop.f32.mrf.mxu0 }
 0x8cc   :  { %10646 = vmatpush.msra.mxu1 %v19050_v7  ;;  %10597 = vmatpush.msra.mxu0 %v19077_v47  ;;  %v9051_v7 = vpop.f32.mrf.mxu2 }
 0x8cd   :  { %10683 = vmatpush.msra.mxu2 %v18867_v52  ;;  %10782 = vmatpush.msra.mxu3 %v19078_v39  ;;  %v9052_v3 = vadd.f32 %v9051_v7, %v8998_v53 }
 0x8ce   :  { %10601 = vmatpush.msra.mxu0 %v19079_v30 }
 0x8cf   :  { %10788 = vmatpush.msra.mxu3 %v19080_v13  ;;  %v9091_v39 = vadd.f32 %v9090_v57, %v9052_v3 }
 0x8d0   :  { %10605 = vmatpush.msra.mxu0 %v19081_v25  ;;  %v9431_v22 = vpop.f32.mrf.mxu1 }
 0x8d1   :  { %v9160_v30 = vadd.f32 %v9159_v16, %v9091_v39 }
 0x8d2   :  { %10609 = vmatpush.msra.mxu0 %v19082_v34  ;;  %v9537_v34 = vpop.f32.mrf.mxu3 }
 0x8d3   :  { %v9197_v20 = vadd.f32 %v9196_v60, %v9160_v30  ;;  %v9578_v7 = vpop.f32.mrf.mxu0 }
 0x8d4   :  { %v9237_v42 = vpop.f32.mrf.mxu2 }
 0x8d5   :  { %v9339_v23 = vadd.f32 %v9338_v46, %v9237_v42  ;;  %v10226_v27 = vrot.slane %v9197_v20, 4 }
 0x8d7   :  { %v9393_v4 = vadd.f32 %v9392_v12, %v9339_v23  ;;  %v10234_v48 = vadd.f32 %v10226_v27, %v19083_v63 }
 0x8d8   :  { %v9679_v46 = vpop.f32.mrf.mxu1 }
 0x8d9   :  { %v9432_v47 = vadd.f32 %v9431_v22, %v9393_v4  ;;  %v11834_v9 = vmul.f32 -1.442695, %v10234_v48  ;;  %v9680_v12 = vadd.f32 %v9679_v46, %v9578_v7 }
 0x8da   :  { %v9772_v57 = vpop.f32.mrf.mxu3 }
 0x8db   :  { %11939 = vpow2.f32 %v11834_v9 }
 0x8dc   :  { %v9500_v13 = vpop.f32.mrf.mxu2 }
 0x8dd   :  { %v9501_v25 = vadd.f32 %v9500_v13, %v9432_v47 }
 0x8df   :  { %v9538_v24 = vadd.f32 %v9537_v34, %v9501_v25 }
 0x8e1   :  { %v10227_v45 = vrot.slane %v9538_v24, 4  ;;  %v11940_v16 = vpop.eup %11939 }
 0x8e2   :  { %v10241_v60 = vadd.f32 1.0, %v11940_v16 }
 0x8e3   :  { %v10235_v50 = vadd.f32 %v10227_v45, %v19084_v31 }
 0x8e4   :  { %v9733_v53 = vpop.f32.mrf.mxu2  ;;  %vm10247_vm15 = vweird.f32 %v10241_v60 }
 0x8e5   :  { %v11835_v52 = vmul.f32 -1.442695, %v10235_v50  ;;  %v9878_v20 = vpop.f32.mrf.mxu1  ;;  %v9734_v24 = vadd.f32 %v9733_v53, %v9680_v12 }
 0x8e7   :  { %11941 = vpow2.f32 %v11835_v52  ;;  %v9773_v48 = vadd.f32 %v9772_v57, %v9734_v24 }
 0x8e8   :  { %11943 = vrcp.f32 %v10241_v60 }
 0x8ed   :  { %v11942_v42 = vpop.eup %11941 }
 0x8ee   :  { %v10260_v4 = vadd.f32 1.0, %v11942_v42  ;;  %v9919_v27 = vpop.f32.mrf.mxu2  ;;  %v11944_v39 = vpop.eup %11943 }
 0x8ef   :  { %v9841_v23 = vpop.f32.mrf.mxu0  ;;  %v10243_v7 = vmul.f32 %v11944_v39, %v10241_v60  ;;  %vm10248_vm10 = vweird.f32 %v11944_v39 }
 0x8f0   :  { %11945 = vrcp.f32 %v10260_v4  ;;  %v9842_v52 = vadd.f32 %v9841_v23, %v9773_v48  ;;  %vm10266_vm0 = vweird.f32 %v10260_v4  ;;  %vm10249_vm1 = vmor %vm10247_vm15, %vm10248_vm10 }
 0x8f1   :  { %v10020_v3 = vpop.f32.mrf.mxu3  ;;  %v10244_v31 = vsub.f32 1.0, %v10243_v7 }
 0x8f2   :  { %v10021_v45 = vadd.f32 %v10020_v3, %v9919_v27  ;;  %v9879_v50 = vadd.f32 %v9878_v20, %v9842_v52  ;;  %v10270_v52 = vand.u32 2147483647, %v10260_v4 }
 0x8f3   :  { %v10245_v3 = vmul.f32 %v11944_v39, %v10244_v31 }
 0x8f4   :  { %v10228_v42 = vrot.slane %v9879_v50, 4  ;;  %vm10271_vm4 = vcmp.eq.f32.partialorder %v10270_v52, 8.507059e+37 }
 0x8f5   :  { %v10246_v20 = vadd.f32 %v11944_v39, %v10245_v3 }
 0x8f6   :  { %v11946_v13 = vpop.eup %11945  ;;  %v10236_v23 = vadd.f32 %v10228_v42, %v15350_v58 }
 0x8f7   :  { %v10262_v46 = vmul.f32 %v11946_v13, %v10260_v4  ;;  %vm10267_vm9 = vweird.f32 %v11946_v13 }
 0x8f8   :  { %vm10268_vm2 = vmor %vm10266_vm0, %vm10267_vm9 }
 0x8f9   :  { %v10263_v63 = vsub.f32 1.0, %v10262_v46 }
 0x8fb   :  { %v10264_v27 = vmul.f32 %v11946_v13, %v10263_v63 }
 0x8fd   :  { %v10265_v48 = vadd.f32 %v11946_v13, %v10264_v27 }
 0x8ff   :  { %v10269_v50 = vsel %vm10268_vm2, %v11946_v13, %v10265_v48 }
 0x907   :  { %v10113_v30 = vpop.f32.mrf.mxu1 }
 0x90f   :  { %v10074_v22 = vpop.f32.mrf.mxu0  ;;  %v10182_v34 = vpop.f32.mrf.mxu2 }
 0x910   :  { %v10075_v47 = vadd.f32 %v10074_v22, %v10021_v45  ;;  %v10272_v45 = vand.u32 2147483648, %v10260_v4  ;;  %v10253_v22 = vand.u32 2147483648, %v10241_v60 }
 0x912   :  { %v10114_v25 = vadd.f32 %v10113_v30, %v10075_v47  ;;  %v10219_v16 = vpop.f32.mrf.mxu3  ;;  %v10251_v47 = vand.u32 2147483647, %v10241_v60  ;;  %v10273_v31 = vor.u32 1.1754944e-38, %v10272_v45  ;;  %v16235_v45 = vld [vmem:[%s16553_s4] ss:$0 sm:$0xff] }
 0x914   :  { %v10183_v9 = vadd.f32 %v10182_v34, %v10114_v25  ;;  %v10250_v25 = vsel %vm10249_vm1, %v11944_v39, %v10246_v20  ;;  %vm10252_vm3 = vcmp.eq.f32.partialorder %v10251_v47, 8.507059e+37  ;;  %v10274_v46 = vsel %vm10271_vm4, %v10273_v31, %v10269_v50  ;;  %v19118_v31 = vld [vmem:[#allocation177_spill] sm:$0xff] }
 0x916   :  { %v10220_v53 = vadd.f32 %v10219_v16, %v10183_v9  ;;  %v10254_v9 = vor.u32 1.1754944e-38, %v10253_v22  ;;  %v10297_v16 = vrot.slane %v15787_v36, 6 }
 0x918   :  { %v10229_v12 = vrot.slane %v10220_v53, 4  ;;  %v10255_v7 = vsel %vm10252_vm3, %v10254_v9, %v10250_v25  ;;  %v10299_v42 = vmul.f32 %v10297_v16, %v10274_v46  ;;  %v19119_v9 = vld [vmem:[#allocation149_spill] sm:$0xff]  ;;  %v19121_v46 = vld [vmem:[#allocation183_spill] sm:$0xff] }
 0x919   :  { %v19122_v16 = vld [vmem:[#allocation153_spill] sm:$0xff] }
 0x91a   :  { %v10237_v57 = vadd.f32 %v10229_v12, %v15345_v18 }
 0x91c   :  { %v11836_v24 = vmul.f32 -1.442695, %v10237_v57 }
 0x91e   :  { %11947 = vpow2.f32 %v11836_v24 }
 0x91f   :  { %11949 = vtanh.f32 %v10236_v23 }
 0x924   :  { %v11948_v30 = vpop.eup %11947 }
 0x925   :  { %v10280_v34 = vadd.f32 1.0, %v11948_v30  ;;  %v11950_v63 = vpop.eup %11949 }
 0x926   :  { %v10300_v53 = vmul.f32 %v11950_v63, %v10255_v7  ;;  %v19120_v7 = vld [vmem:[#allocation142_spill] sm:$0xff] }
 0x927   :  { %11951 = vrcp.f32 %v10280_v34  ;;  %v10292_v39 = vand.u32 2147483648, %v10280_v34  ;;  %v10290_v23 = vand.u32 2147483647, %v10280_v34  ;;  %vm10286_vm6 = vweird.f32 %v10280_v34 }
 0x928   :  { %v16229_v12 = vadd.f32 %v10300_v53, %v10299_v42  ;;  %v19123_v53 = vld [vmem:[#allocation143_spill] sm:$0xff]  ;;  %v19124_v42 = vld [vmem:[#allocation188_spill] sm:$0xff] }
 0x929   :  { %v10293_v27 = vor.u32 1.1754944e-38, %v10292_v39  ;;  %vm10291_vm13 = vcmp.eq.f32.partialorder %v10290_v23, 8.507059e+37  ;;  %v19128_v39 = vld [vmem:[#allocation163_spill] sm:$0xff]  ;;  %v19130_v23 = vld [vmem:[#allocation197_spill] sm:$0xff] }
 0x92a   :  { %11953 = vtanh.f32 %v16229_v12 }
 0x92d   :  { %v11952_v4 = vpop.eup %11951 }
 0x92e   :  { %v10282_v60 = vmul.f32 %v11952_v4, %v10280_v34  ;;  %vm10287_vm5 = vweird.f32 %v11952_v4 }
 0x92f   :  { %vm10288_vm7 = vmor %vm10286_vm6, %vm10287_vm5 }
 0x930   :  { %v10283_v57 = vsub.f32 1.0, %v10282_v60  ;;  %v11954_v36 = vpop.eup %11953  ;;  %v19126_v60 = vld [vmem:[#allocation146_spill] sm:$0xff] }
 0x932   :  { %v10284_v13 = vmul.f32 %v11952_v4, %v10283_v57  ;;  %v19127_v57 = vld [vmem:[#allocation192_spill] sm:$0xff] }
 0x934   :  { %v10285_v24 = vadd.f32 %v11952_v4, %v10284_v13  ;;  %v19129_v13 = vld [vmem:[#allocation152_spill] sm:$0xff] }
 0x936   :  { %v10289_v3 = vsel %vm10288_vm7, %v11952_v4, %v10285_v24  ;;  %v19125_v4 = vld [vmem:[#allocation159_spill] sm:$0xff] }
 0x937   :  { %v10294_v20 = vsel %vm10291_vm13, %v10293_v27, %v10289_v3  ;;  %v19131_v24 = vld [vmem:[#allocation167_spill] sm:$0xff]  ;;  %v19132_v27 = vld [vmem:[#allocation156_spill] sm:$0xff]  ;;  %v19133_v3 = vld [vmem:[#allocation201_spill] sm:$0xff] }
 0x938   :  { %v10303_v48 = vmul.f32 %v11954_v36, %v10294_v20  ;;  %v19134_v36 = vld [vmem:[#allocation171_spill] sm:$0xff]  ;;  %v19135_v20 = vld [vmem:[#allocation160_spill] sm:$0xff] }
 0x93a   :  { %v10304_v22 = vmul.f32 %v16235_v45, %v10303_v48  ;;  %v10309_v52 = vrot.slane %v10303_v48, 4  ;;  %v19136_v48 = vld [vmem:[#allocation205_spill] sm:$0xff] }
 0x93c   :  { %v10305_v47 = vsel %vm4506_vm8, %v10304_v22, 0.0  ;;  %v16239_v30 = vand.u32 4294901760, %v10309_v52  ;;  %v19137_v22 = vld [vmem:[#allocation175_spill] sm:$0xff] }
 0x93d   :  { %10306 = vadd.xlane.f32.xlu2 %v10305_v47  ;;  %v19139_v47 = vld [vmem:[#allocation208_spill] sm:$0xff] }
 0x93e   :  { %v16242_v25 = vsub.f32 %v10309_v52, %v16239_v30  ;;  %10449 = vmatmul.f32.vlgmr.msrb.gmra.mxu1 %v16239_v30  ;;  %v19138_v52 = vld [vmem:[#allocation164_spill] sm:$0xff] }
 0x93f   :  { %10849 = vmatpush.msrb.mxu1 %v17671_v11 }
 0x940   :  { %10503 = vmatmul.f32.vlgmr.msrb.gmra.mxu2 %v16242_v25  ;;  %v16248_v34 = vand.u32 4294901760, %v16242_v25 }
 0x941   :  { %10851 = vmatpush.msrb.mxu1 %v17674_v21  ;;  %10890 = vmatpush.msrb.mxu2 %v17729_v51  ;;  %v19097_v51 = vld [vmem:[#allocation126_spill] sm:$0xff] }
 0x942   :  { %10542 = vmatmul.f32.vlgmr.msrb.gmra.mxu3 %v16248_v34  ;;  %v10346_v50 = vsub.f32 %v16242_v25, %v16248_v34 }
 0x943   :  { %10853 = vmatpush.msrb.mxu1 %v17676_v2  ;;  %10894 = vmatpush.msrb.mxu2 %v17730_v32  ;;  %v19099_v32 = vld [vmem:[#allocation133_spill] sm:$0xff] }
 0x944   :  { %10957 = vmatpush.msrb.mxu3 %v17671_v11  ;;  %v16258_v63 = vand.u32 4294901760, %v10346_v50  ;;  %v19085_v11 = vld [vmem:[#allocation109_spill] sm:$0xff]  ;;  %v19140_v50 = vld [vmem:[#allocation180_spill] sm:$0xff] }
 0x945   :  { %10855 = vmatpush.msrb.mxu1 %v17679_v38  ;;  %10898 = vmatpush.msrb.mxu2 %v17731_v44  ;;  %v19100_v44 = vld [vmem:[#allocation116_spill] sm:$0xff] }
 0x946   :  { %10959 = vmatpush.msrb.mxu3 %v17674_v21  ;;  %10348 = vmatmul.f32.vlgmr.msrb.gmra.mxu0 %v16258_v63  ;;  %v19086_v21 = vld [vmem:[#allocation96_spill] sm:$0xff] }
 0x947   :  { %10648 = vmatmul.f32.vlgmr.msra.gmra.mxu1 %v16239_v30  ;;  %10796 = vmatpush.msrb.mxu0 %v17732_v35  ;;  %v19102_v35 = vld [vmem:[#allocation135_spill] sm:$0xff] }
 0x948   :  { %10857 = vmatpush.msrb.mxu1 %v17682_v17  ;;  %10902 = vmatpush.msrb.mxu2 %v17733_v43  ;;  %v19103_v43 = vld [vmem:[#allocation131_spill] sm:$0xff] }
 0x949   :  { %10961 = vmatpush.msrb.mxu3 %v17676_v2  ;;  %10689 = vmatmul.f32.vlgmr.msra.gmra.mxu2 %v16258_v63  ;;  %v19089_v2 = vld [vmem:[#allocation119_spill] sm:$0xff] }
 0x94a   :  { %10799 = vmatpush.msrb.mxu0 %v17734_v14  ;;  %10859 = vmatpush.msrb.mxu1 %v17685_v62  ;;  %v19104_v14 = vld [vmem:[#allocation120_spill] sm:$0xff] }
 0x94b   :  { %10906 = vmatpush.msrb.mxu2 %v17735_v59  ;;  %10963 = vmatpush.msrb.mxu3 %v17679_v38  ;;  %v19095_v38 = vld [vmem:[#allocation112_spill] sm:$0xff]  ;;  %v19106_v59 = vld [vmem:[#allocation138_spill] sm:$0xff] }
 0x94c   :  { %10790 = vmatmul.f32.vlgmr.msra.gmra.mxu3 %v16239_v30  ;;  %10802 = vmatpush.msrb.mxu0 %v17736_v28  ;;  %v19107_v28 = vld [vmem:[#allocation132_spill] sm:$0xff] }
 0x94d   :  { %10861 = vmatpush.msrb.mxu1 %v17688_v33  ;;  %10910 = vmatpush.msrb.mxu2 %v17737_v0  ;;  %v19108_v0 = vld [vmem:[#allocation123_spill] sm:$0xff] }
 0x94e   :  { %10965 = vmatpush.msrb.mxu3 %v17682_v17  ;;  %10805 = vmatpush.msrb.mxu0 %v17738_v26  ;;  %v19090_v17 = vld [vmem:[#allocation104_spill] sm:$0xff]  ;;  %v19109_v26 = vld [vmem:[#allocation165_spill] sm:$0xff] }
 0x94f   :  { %10863 = vmatpush.msrb.mxu1 %v17691_v40  ;;  %10914 = vmatpush.msrb.mxu2 %v17951_v54  ;;  %v19110_v54 = vld [vmem:[#allocation141_spill] sm:$0xff] }
 0x950   :  { %10967 = vmatpush.msrb.mxu3 %v17685_v62  ;;  %10611 = vmatmul.f32.vlgmr.msra.gmra.mxu0 %v16239_v30  ;;  %v19088_v62 = vld [vmem:[#allocation100_spill] sm:$0xff] }
 0x951   :  { %10808 = vmatpush.msrb.mxu0 %v17952_v49  ;;  %10865 = vmatpush.msrb.mxu1 %v17694_v8  ;;  %v19111_v49 = vld [vmem:[#allocation134_spill] sm:$0xff] }
 0x952   :  { %10918 = vmatpush.msrb.mxu2 %v17953_v37  ;;  %10969 = vmatpush.msrb.mxu3 %v17688_v33  ;;  %v19087_v33 = vld [vmem:[#allocation114_spill] sm:$0xff]  ;;  %v19112_v37 = vld [vmem:[#allocation169_spill] sm:$0xff] }
 0x953   :  { %10811 = vmatpush.msrb.mxu0 %v17954_v10  ;;  %10867 = vmatpush.msrb.mxu1 %v17697_v1  ;;  %v19113_v10 = vld [vmem:[#allocation145_spill] sm:$0xff] }
 0x954   :  { %10922 = vmatpush.msrb.mxu2 %v17955_v6  ;;  %10971 = vmatpush.msrb.mxu3 %v17691_v40  ;;  %v19093_v40 = vld [vmem:[#allocation117_spill] sm:$0xff]  ;;  %v19114_v6 = vld [vmem:[#allocation136_spill] sm:$0xff] }
 0x955   :  { %10814 = vmatpush.msrb.mxu0 %v17956_v55  ;;  %10869 = vmatpush.msrb.mxu1 %v17700_v15  ;;  %v19115_v55 = vld [vmem:[#allocation173_spill] sm:$0xff] }
 0x956   :  { %10926 = vmatpush.msrb.mxu2 %v17957_v61  ;;  %10973 = vmatpush.msrb.mxu3 %v17694_v8  ;;  %v19092_v8 = vld [vmem:[#allocation108_spill] sm:$0xff] }
 0x957   :  { %10817 = vmatpush.msrb.mxu0 %v18859_v19  ;;  %10871 = vmatpush.msrb.mxu1 %v17704_v5  ;;  %v19116_v61 = vld [vmem:[#allocation148_spill] sm:$0xff]  ;;  %v19117_v19 = vld [vmem:[#allocation139_spill] sm:$0xff] }
 0x958   :  { %10930 = vmatpush.msrb.mxu2 %v19085_v11  ;;  %10975 = vmatpush.msrb.mxu3 %v17697_v1  ;;  %v19091_v1 = vld [vmem:[#allocation122_spill] sm:$0xff]  ;;  %v19141_v11 = vld [vmem:[#allocation168_spill] sm:$0xff] }
 0x959   :  { %10820 = vmatpush.msrb.mxu0 %v19086_v21  ;;  %10873 = vmatpush.msrb.mxu1 %v17707_v41  ;;  %v19142_v21 = vld [vmem:[#allocation213_spill] sm:$0xff] }
 0x95a   :  { %10934 = vmatpush.msrb.mxu2 %v19087_v33  ;;  %10977 = vmatpush.msrb.mxu3 %v17700_v15  ;;  %v19094_v15 = vld [vmem:[#allocation124_spill] sm:$0xff]  ;;  %v19143_v33 = vld [vmem:[#allocation185_spill] sm:$0xff] }
 0x95b   :  { %10823 = vmatpush.msrb.mxu0 %v19088_v62  ;;  %10875 = vmatpush.msrb.mxu1 %v17711_v29  ;;  %v19144_v62 = vld [vmem:[#allocation172_spill] sm:$0xff] }
 0x95c   :  { %10938 = vmatpush.msrb.mxu2 %v19089_v2  ;;  %10979 = vmatpush.msrb.mxu3 %v17704_v5  ;;  %v19096_v5 = vld [vmem:[#allocation150_spill] sm:$0xff] }
 0x95d   :  { %10826 = vmatpush.msrb.mxu0 %v19090_v17  ;;  %10877 = vmatpush.msrb.mxu1 %v17715_v56  ;;  %v19145_v2 = vld [vmem:[#allocation190_spill] sm:$0xff]  ;;  %v19146_v17 = vld [vmem:[#allocation176_spill] sm:$0xff] }
 0x95e   :  { %10942 = vmatpush.msrb.mxu2 %v19091_v1  ;;  %10981 = vmatpush.msrb.mxu3 %v17707_v41  ;;  %v19098_v41 = vld [vmem:[#allocation154_spill] sm:$0xff] }
 0x95f   :  { %10829 = vmatpush.msrb.mxu0 %v19092_v8  ;;  %10879 = vmatpush.msrb.mxu1 %v19093_v40  ;;  %v19147_v1 = vld [vmem:[#allocation178_spill] sm:$0xff]  ;;  %v19148_v8 = vld [vmem:[#allocation181_spill] sm:$0xff] }
 0x960   :  { %10946 = vmatpush.msrb.mxu2 %v19094_v15  ;;  %10983 = vmatpush.msrb.mxu3 %v17711_v29  ;;  %v19101_v29 = vld [vmem:[#allocation158_spill] sm:$0xff]  ;;  %v19150_v15 = vld [vmem:[#allocation212_spill] sm:$0xff] }
 0x961   :  { %10883 = vmatmul.f32.vlgmr.msrb.gmra.mxu1 %v16248_v34  ;;  %10832 = vmatpush.msrb.mxu0 %v19095_v38  ;;  %v19151_v38 = vld [vmem:[#allocation187_spill] sm:$0xff] }
 0x962   :  { %11039 = vmatpush.msra.mxu1 %v19096_v5  ;;  %10950 = vmatpush.msrb.mxu2 %v19097_v51  ;;  %v19152_v5 = vld [vmem:[#allocation217_spill] sm:$0xff]  ;;  %v19153_v51 = vld [vmem:[#allocation194_spill] sm:$0xff] }
 0x963   :  { %10985 = vmatpush.msrb.mxu3 %v17715_v56  ;;  %10952 = vmatmul.f32.vlgmr.msrb.gmra.mxu2 %v16239_v30  ;;  %v19105_v56 = vld [vmem:[#allocation162_spill] sm:$0xff] }
 0x964   :  { %11045 = vmatpush.msra.mxu1 %v19098_v41  ;;  %11137 = vmatpush.msra.mxu2 %v19099_v32  ;;  %v19154_v41 = vld [vmem:[#allocation137_spill] sm:$0xff] }
 0x965   :  { %10835 = vmatpush.msrb.mxu0 %v19100_v44  ;;  %10987 = vmatpush.msrb.mxu3 %v19093_v40  ;;  %v19149_v40 = vld [vmem:[#allocation182_spill] sm:$0xff]  ;;  %v19155_v32 = vld [vmem:[#allocation221_spill] sm:$0xff]  ;;  %v19156_v44 = vld [vmem:[#allocation199_spill] sm:$0xff] }
 0x966   :  { %10989 = vmatmul.f32.vlgmr.msrb.gmra.mxu3 %v16239_v30  ;;  %11051 = vmatpush.msra.mxu1 %v19101_v29  ;;  %v19157_v29 = vld [vmem:[#allocation140_spill] sm:$0xff] }
 0x967   :  { %11140 = vmatpush.msra.mxu2 %v19102_v35  ;;  %11190 = vmatpush.msra.mxu3 %v19103_v43  ;;  %v19158_v35 = vld [vmem:[#allocation225_spill] sm:$0xff] }
 0x968   :  { %10838 = vmatpush.msrb.mxu0 %v19104_v14  ;;  %11057 = vmatpush.msra.mxu1 %v19105_v56  ;;  %v19160_v14 = vld [vmem:[#allocation144_spill] sm:$0xff]  ;;  %v19161_v56 = vld [vmem:[#allocation229_spill] sm:$0xff] }
 0x969   :  { %11143 = vmatpush.msra.mxu2 %v19106_v59  ;;  %11192 = vmatpush.msra.mxu3 %v19107_v28  ;;  %v19162_v59 = vld [vmem:[#allocation207_spill] sm:$0xff] }
 0x96a   :  { %10841 = vmatpush.msrb.mxu0 %v19108_v0  ;;  %11063 = vmatpush.msra.mxu1 %v19109_v26  ;;  %v19164_v0 = vld [vmem:[#allocation232_spill] sm:$0xff]  ;;  %v19165_v26 = vld [vmem:[#allocation211_spill] sm:$0xff] }
 0x96b   :  { %10844 = vmatmul.f32.vlgmr.msrb.gmra.mxu0 %v16242_v25  ;;  %11146 = vmatpush.msra.mxu2 %v19110_v54  ;;  %v19166_v54 = vld [vmem:[#allocation151_spill] sm:$0xff] }
 0x96c   :  { %10994 = vmatpush.msra.mxu0 %v19103_v43  ;;  %11194 = vmatpush.msra.mxu3 %v19111_v49 }
 0x96d   :  { %11069 = vmatpush.msra.mxu1 %v19112_v37  ;;  %11149 = vmatpush.msra.mxu2 %v19113_v10  ;;  %v19168_v37 = vld [vmem:[#allocation216_spill] sm:$0xff]  ;;  %v19169_v10 = vld [vmem:[#allocation155_spill] sm:$0xff] }
 0x96e   :  { %10996 = vmatpush.msra.mxu0 %v19107_v28  ;;  %11196 = vmatpush.msra.mxu3 %v19114_v6 }
 0x96f   :  { %11075 = vmatpush.msra.mxu1 %v19115_v55  ;;  %11152 = vmatpush.msra.mxu2 %v19116_v61  ;;  %v19171_v55 = vld [vmem:[#allocation220_spill] sm:$0xff]  ;;  %v19172_v61 = vld [vmem:[#allocation157_spill] sm:$0xff] }
 0x970   :  { %10998 = vmatpush.msra.mxu0 %v19111_v49  ;;  %11198 = vmatpush.msra.mxu3 %v19117_v19 }
 0x971   :  { %11081 = vmatpush.msra.mxu1 %v19118_v31  ;;  %11155 = vmatpush.msra.mxu2 %v19119_v9  ;;  %v19174_v31 = vld [vmem:[#allocation224_spill] sm:$0xff]  ;;  %v19175_v9 = vld [vmem:[#allocation161_spill] sm:$0xff] }
 0x972   :  { %11000 = vmatpush.msra.mxu0 %v19114_v6  ;;  %11200 = vmatpush.msra.mxu3 %v19120_v7 }
 0x973   :  { %11087 = vmatpush.msra.mxu1 %v19121_v46  ;;  %11158 = vmatpush.msra.mxu2 %v19122_v16  ;;  %v19177_v46 = vld [vmem:[#allocation228_spill] sm:$0xff]  ;;  %v19178_v16 = vld [vmem:[#allocation166_spill] sm:$0xff] }
 0x974   :  { %11002 = vmatpush.msra.mxu0 %v19117_v19  ;;  %11202 = vmatpush.msra.mxu3 %v19123_v53 }
 0x975   :  { %11093 = vmatpush.msra.mxu1 %v19124_v42  ;;  %11161 = vmatpush.msra.mxu2 %v19125_v4  ;;  %v19180_v42 = vld [vmem:[#allocation234_spill] sm:$0xff] }
 0x976   :  { %11004 = vmatpush.msra.mxu0 %v19120_v7  ;;  %11204 = vmatpush.msra.mxu3 %v19126_v60  ;;  %v19181_v4 = vld [vmem:[#allocation170_spill] sm:$0xff] }
 0x977   :  { %11099 = vmatpush.msra.mxu1 %v19127_v57  ;;  %11164 = vmatpush.msra.mxu2 %v19128_v39  ;;  %v19183_v57 = vld [vmem:[#allocation238_spill] sm:$0xff] }
 0x978   :  { %11006 = vmatpush.msra.mxu0 %v19123_v53  ;;  %11206 = vmatpush.msra.mxu3 %v19129_v13  ;;  %v19184_v39 = vld [vmem:[#allocation174_spill] sm:$0xff] }
 0x979   :  { %11105 = vmatpush.msra.mxu1 %v19130_v23  ;;  %11167 = vmatpush.msra.mxu2 %v19131_v24  ;;  %v19186_v23 = vld [vmem:[#allocation241_spill] sm:$0xff]  ;;  %v19187_v24 = vld [vmem:[#allocation179_spill] sm:$0xff] }
 0x97a   :  { %11008 = vmatpush.msra.mxu0 %v19126_v60  ;;  %11208 = vmatpush.msra.mxu3 %v19132_v27 }
 0x97b   :  { %11111 = vmatpush.msra.mxu1 %v19133_v3  ;;  %11170 = vmatpush.msra.mxu2 %v19134_v36  ;;  %v19189_v3 = vld [vmem:[#allocation245_spill] sm:$0xff]  ;;  %v19190_v36 = vld [vmem:[#allocation184_spill] sm:$0xff] }
 0x97c   :  { %11010 = vmatpush.msra.mxu0 %v19129_v13  ;;  %11210 = vmatpush.msra.mxu3 %v19135_v20 }
 0x97d   :  { %11117 = vmatpush.msra.mxu1 %v19136_v48  ;;  %11173 = vmatpush.msra.mxu2 %v19137_v22  ;;  %v19192_v48 = vld [vmem:[#allocation195_spill] sm:$0xff]  ;;  %v19193_v22 = vld [vmem:[#allocation189_spill] sm:$0xff] }
 0x97e   :  { %11012 = vmatpush.msra.mxu0 %v19132_v27  ;;  %11212 = vmatpush.msra.mxu3 %v19138_v52 }
 0x97f   :  { %11123 = vmatpush.msra.mxu1 %v19139_v47  ;;  %11176 = vmatpush.msra.mxu2 %v19140_v50  ;;  %v19195_v47 = vld [vmem:[#allocation200_spill] sm:$0xff]  ;;  %v19196_v50 = vld [vmem:[#allocation193_spill] sm:$0xff] }
 0x980   :  { %11014 = vmatpush.msra.mxu0 %v19135_v20  ;;  %11214 = vmatpush.msra.mxu3 %v19141_v11 }
 0x981   :  { %11129 = vmatpush.msra.mxu1 %v19142_v21  ;;  %11179 = vmatpush.msra.mxu2 %v19143_v33  ;;  %v19199_v21 = vld [vmem:[#allocation209_spill] sm:$0xff]  ;;  %v19200_v33 = vld [vmem:[#allocation186_spill] sm:$0xff] }
 0x982   :  { %11016 = vmatpush.msra.mxu0 %v19138_v52  ;;  %11216 = vmatpush.msra.mxu3 %v19144_v62 }
 0x983   :  { %11131 = vmatmul.f32.vlgmr.msra.gmra.mxu1 %v16239_v30  ;;  %11182 = vmatpush.msra.mxu2 %v19145_v2  ;;  %v19201_v2 = vld [vmem:[#allocation214_spill] sm:$0xff] }
 0x984   :  { %11298 = vmatpush.msrb.mxu1 %v19103_v43  ;;  %11018 = vmatpush.msra.mxu0 %v19141_v11  ;;  %v19159_v43 = vld [vmem:[#allocation203_spill] sm:$0xff] }
 0x985   :  { %11218 = vmatpush.msra.mxu3 %v19146_v17  ;;  %11185 = vmatmul.f32.vlgmr.msra.gmra.mxu2 %v16242_v25 }
 0x986   :  { %11300 = vmatpush.msrb.mxu1 %v19107_v28  ;;  %11335 = vmatpush.msrb.mxu2 %v19147_v1  ;;  %v19163_v28 = vld [vmem:[#allocation147_spill] sm:$0xff] }
 0x987   :  { %11020 = vmatpush.msra.mxu0 %v19144_v62  ;;  %11220 = vmatpush.msra.mxu3 %v19148_v8 }
 0x988   :  { %11224 = vmatmul.f32.vlgmr.msra.gmra.mxu3 %v16248_v34  ;;  %11302 = vmatpush.msrb.mxu1 %v19111_v49  ;;  %v19167_v49 = vld [vmem:[#allocation236_spill] sm:$0xff] }
 0x989   :  { %11337 = vmatpush.msrb.mxu2 %v19149_v40  ;;  %11380 = vmatpush.msrb.mxu3 %v19150_v15 }
 0x98a   :  { %11022 = vmatpush.msra.mxu0 %v19146_v17  ;;  %11304 = vmatpush.msrb.mxu1 %v19114_v6  ;;  %v19170_v6 = vld [vmem:[#allocation239_spill] sm:$0xff] }
 0x98b   :  { %11339 = vmatpush.msrb.mxu2 %v19151_v38  ;;  %11386 = vmatpush.msrb.mxu3 %v19152_v5  ;;  %v19204_v5 = vld [vmem:[#allocation196_spill] sm:$0xff] }
 0x98c   :  { %11024 = vmatpush.msra.mxu0 %v19148_v8  ;;  %11306 = vmatpush.msrb.mxu1 %v19117_v19  ;;  %v19173_v19 = vld [vmem:[#allocation243_spill] sm:$0xff] }
 0x98d   :  { %11030 = vmatmul.f32.vlgmr.msra.gmra.mxu0 %v16258_v63  ;;  %11341 = vmatpush.msrb.mxu2 %v19153_v51 }
 0x98e   :  { %11231 = vmatpush.msrb.mxu0 %v19154_v41  ;;  %11392 = vmatpush.msrb.mxu3 %v19155_v32  ;;  %v19207_v41 = vld [vmem:[#allocation226_spill] sm:$0xff] }
 0x98f   :  { %11308 = vmatpush.msrb.mxu1 %v19120_v7  ;;  %11343 = vmatpush.msrb.mxu2 %v19156_v44  ;;  %v19176_v7 = vld [vmem:[#allocation246_spill] sm:$0xff] }
 0x990   :  { %11235 = vmatpush.msrb.mxu0 %v19157_v29  ;;  %11398 = vmatpush.msrb.mxu3 %v19158_v35  ;;  %v19208_v32 = vld [vmem:[#allocation206_spill] sm:$0xff]  ;;  %v19211_v35 = vld [vmem:[#allocation233_spill] sm:$0xff] }
 0x991   :  { %11310 = vmatpush.msrb.mxu1 %v19123_v53  ;;  %11345 = vmatpush.msrb.mxu2 %v19159_v43  ;;  %v19179_v53 = vld [vmem:[#allocation249_spill] sm:$0xff]  ;;  %v19210_v29 = vld [vmem:[#allocation210_spill] sm:$0xff] }
 0x992   :  { %11239 = vmatpush.msrb.mxu0 %v19160_v14  ;;  %11404 = vmatpush.msrb.mxu3 %v19161_v56  ;;  %v19213_v14 = vld [vmem:[#allocation237_spill] sm:$0xff]  ;;  %v19214_v56 = vld [vmem:[#allocation219_spill] sm:$0xff] }
 0x993   :  { %11312 = vmatpush.msrb.mxu1 %v19126_v60  ;;  %11347 = vmatpush.msrb.mxu2 %v19162_v59  ;;  %v19182_v60 = vld [vmem:[#allocation253_spill] sm:$0xff] }
 0x994   :  { %11243 = vmatpush.msrb.mxu0 %v19163_v28  ;;  %11410 = vmatpush.msrb.mxu3 %v19164_v0  ;;  %v19216_v28 = vld [vmem:[#allocation223_spill] sm:$0xff] }
 0x995   :  { %11314 = vmatpush.msrb.mxu1 %v19129_v13  ;;  %11349 = vmatpush.msrb.mxu2 %v19165_v26  ;;  %v19185_v13 = vld [vmem:[#allocation255_spill] sm:$0xff] }
 0x996   :  { %11247 = vmatpush.msrb.mxu0 %v19166_v54  ;;  %11416 = vmatpush.msrb.mxu3 %v19167_v49  ;;  %v19217_v0 = vld [vmem:[#allocation247_spill] sm:$0xff]  ;;  %v19219_v54 = vld [vmem:[#allocation250_spill] sm:$0xff] }
 0x997   :  { %11316 = vmatpush.msrb.mxu1 %v19132_v27  ;;  %11351 = vmatpush.msrb.mxu2 %v19168_v37  ;;  %v19188_v27 = vld [vmem:[#allocation256_spill] sm:$0xff]  ;;  %v19220_v49 = vld [vmem:[#allocation231_spill] sm:$0xff] }
 0x998   :  { %11251 = vmatpush.msrb.mxu0 %v19169_v10  ;;  %11422 = vmatpush.msrb.mxu3 %v19170_v6  ;;  %v19222_v10 = vld [vmem:[#allocation235_spill] sm:$0xff]  ;;  %v19223_v6 = vld [vmem:[#allocation254_spill] sm:$0xff] }
 0x999   :  { %11318 = vmatpush.msrb.mxu1 %v19135_v20  ;;  %11353 = vmatpush.msrb.mxu2 %v19171_v55  ;;  %v19191_v20 = vld [vmem:[#allocation257_spill] sm:$0xff] }
 0x99a   :  { %11255 = vmatpush.msrb.mxu0 %v19172_v61  ;;  %11428 = vmatpush.msrb.mxu3 %v19173_v19  ;;  %v19225_v61 = vld [vmem:[#allocation244_spill] sm:$0xff] }
 0x99b   :  { %11320 = vmatpush.msrb.mxu1 %v19138_v52  ;;  %11355 = vmatpush.msrb.mxu2 %v19174_v31  ;;  %v19194_v52 = vld [vmem:[#allocation258_spill] sm:$0xff]  ;;  %v19226_v19 = vld [vmem:[#allocation248_spill] sm:$0xff] }
 0x99c   :  { %11259 = vmatpush.msrb.mxu0 %v19175_v9  ;;  %11434 = vmatpush.msrb.mxu3 %v19176_v7 }
 0x99d   :  { %11322 = vmatpush.msrb.mxu1 %v19141_v11  ;;  %11357 = vmatpush.msrb.mxu2 %v19177_v46  ;;  %v19198_v11 = vld [vmem:[#allocation198_spill] sm:$0xff] }
 0x99e   :  { %11263 = vmatpush.msrb.mxu0 %v19178_v16  ;;  %11440 = vmatpush.msrb.mxu3 %v19179_v53 }
 0x99f   :  { %11324 = vmatpush.msrb.mxu1 %v19144_v62  ;;  %11359 = vmatpush.msrb.mxu2 %v19180_v42 }
 0x9a0   :  { %11267 = vmatpush.msrb.mxu0 %v19181_v4  ;;  %11446 = vmatpush.msrb.mxu3 %v19182_v60 }
 0x9a1   :  { %11326 = vmatpush.msrb.mxu1 %v19146_v17  ;;  %11361 = vmatpush.msrb.mxu2 %v19183_v57 }
 0x9a2   :  { %11271 = vmatpush.msrb.mxu0 %v19184_v39  ;;  %11452 = vmatpush.msrb.mxu3 %v19185_v13 }
 0x9a3   :  { %11328 = vmatpush.msrb.mxu1 %v19148_v8  ;;  %11363 = vmatpush.msrb.mxu2 %v19186_v23  ;;  %v19203_v8 = vld [vmem:[#allocation218_spill] sm:$0xff] }
 0x9a4   :  { %11275 = vmatpush.msrb.mxu0 %v19187_v24  ;;  %11458 = vmatpush.msrb.mxu3 %v19188_v27 }
 0x9a5   :  { %11330 = vmatmul.f32.vlgmr.msrb.gmra.mxu1 %v16239_v30  ;;  %11365 = vmatpush.msrb.mxu2 %v19189_v3 }
 0x9a6   :  { %11531 = vmatpush.msra.mxu1 %v19147_v1  ;;  %11279 = vmatpush.msrb.mxu0 %v19190_v36 }
 0x9a7   :  { %11464 = vmatpush.msrb.mxu3 %v19191_v20  ;;  %11371 = vmatmul.f32.vlgmr.msrb.gmra.mxu2 %v16258_v63  ;;  %v19197_v63 = vld [vmem:[#allocation204_spill] sm:$0xff] }
 0x9a8   :  { %11533 = vmatpush.msra.mxu1 %v19149_v40  ;;  %11572 = vmatpush.msra.mxu2 %v19192_v48 }
 0x9a9   :  { %11283 = vmatpush.msrb.mxu0 %v19193_v22  ;;  %11470 = vmatpush.msrb.mxu3 %v19194_v52 }
 0x9aa   :  { %11472 = vmatmul.f32.vlgmr.msrb.gmra.mxu3 %v16239_v30  ;;  %11535 = vmatpush.msra.mxu1 %v19151_v38 }
 0x9ab   :  { %11576 = vmatpush.msra.mxu2 %v19195_v47  ;;  %11639 = vmatpush.msra.mxu3 %v19147_v1  ;;  %v19202_v1 = vld [vmem:[#allocation191_spill] sm:$0xff] }
 0x9ac   :  { %11287 = vmatpush.msrb.mxu0 %v19196_v50  ;;  %11537 = vmatpush.msra.mxu1 %v19153_v51  ;;  %v19228_v50 = vld [vmem:[#allocation90_spill] sm:$0xff] }
 0x9ad   :  { %11580 = vmatpush.msra.mxu2 %v19197_v63  ;;  %11641 = vmatpush.msra.mxu3 %v19149_v40  ;;  %v16482_v40 = vld [vmem:[#allocation2] ss:$0 sm:$0xff] }
 0x9ae   :  { %11291 = vmatpush.msrb.mxu0 %v19198_v11  ;;  %11539 = vmatpush.msra.mxu1 %v19156_v44  ;;  %v19229_v11 = vld [vmem:[#allocation94_spill] sm:$0xff] }
 0x9af   :  { %11293 = vmatmul.f32.vlgmr.msrb.gmra.mxu0 %v16239_v30  ;;  %11584 = vmatpush.msra.mxu2 %v19199_v21 }
 0x9b0   :  { %11478 = vmatpush.msra.mxu0 %v19200_v33  ;;  %11643 = vmatpush.msra.mxu3 %v19151_v38  ;;  %v10307_v62 = vpop.xlane.xlu2 %10306  ;;  %v19205_v38 = vld [vmem:[#allocation222_spill] sm:$0xff] }
 0x9b1   :  { %11541 = vmatpush.msra.mxu1 %v19159_v43  ;;  %11588 = vmatpush.msra.mxu2 %v19201_v2  ;;  %v11774_v17 = vrot.slane %v10307_v62, 4 }
 0x9b2   :  { %11481 = vmatpush.msra.mxu0 %v19202_v1  ;;  %11645 = vmatpush.msra.mxu3 %v19153_v51  ;;  %v19206_v51 = vld [vmem:[#allocation202_spill] sm:$0xff] }
 0x9b3   :  { %11543 = vmatpush.msra.mxu1 %v19162_v59  ;;  %11592 = vmatpush.msra.mxu2 %v19203_v8  ;;  %v11789_v15 = vadd.f32 %v16482_v40, %v11774_v17 }
 0x9b4   :  { %11484 = vmatpush.msra.mxu0 %v19204_v5  ;;  %11647 = vmatpush.msra.mxu3 %v19156_v44  ;;  %v19209_v44 = vld [vmem:[#allocation230_spill] sm:$0xff] }
 0x9b5   :  { %11545 = vmatpush.msra.mxu1 %v19165_v26  ;;  %11596 = vmatpush.msra.mxu2 %v19205_v38  ;;  %11798 = vst.msk [vmem:[%s16556_s6 + $0xc] sm:$0x3] %vm11791_vm11, %v11789_v15 }
 0x9b6   :  { %11487 = vmatpush.msra.mxu0 %v19206_v51  ;;  %11649 = vmatpush.msra.mxu3 %v19159_v43  ;;  %v19212_v43 = vld [vmem:[#allocation215_spill] sm:$0xff] }
 0x9b7   :  { %11547 = vmatpush.msra.mxu1 %v19168_v37  ;;  %11600 = vmatpush.msra.mxu2 %v19207_v41 }
 0x9b8   :  { %11490 = vmatpush.msra.mxu0 %v19208_v32  ;;  %11651 = vmatpush.msra.mxu3 %v19162_v59  ;;  %v19215_v59 = vld [vmem:[#allocation242_spill] sm:$0xff] }
 0x9b9   :  { %11549 = vmatpush.msra.mxu1 %v19171_v55  ;;  %11604 = vmatpush.msra.mxu2 %v19209_v44 }
 0x9ba   :  { %11493 = vmatpush.msra.mxu0 %v19210_v29  ;;  %11653 = vmatpush.msra.mxu3 %v19165_v26  ;;  %v19218_v26 = vld [vmem:[#allocation227_spill] sm:$0xff] }
 0x9bb   :  { %11551 = vmatpush.msra.mxu1 %v19174_v31  ;;  %11608 = vmatpush.msra.mxu2 %v19211_v35  ;;  %v10450_v9 = vpop.f32.mrf.mxu1 }
 0x9bc   :  { %11496 = vmatpush.msra.mxu0 %v19212_v43  ;;  %11655 = vmatpush.msra.mxu3 %v19168_v37  ;;  %v19221_v37 = vld [vmem:[#allocation252_spill] sm:$0xff] }
 0x9bd   :  { %11553 = vmatpush.msra.mxu1 %v19177_v46  ;;  %11612 = vmatpush.msra.mxu2 %v19213_v14 }
 0x9be   :  { %11499 = vmatpush.msra.mxu0 %v19214_v56  ;;  %11657 = vmatpush.msra.mxu3 %v19171_v55  ;;  %v19224_v55 = vld [vmem:[#allocation240_spill] sm:$0xff] }
 0x9bf   :  { %11555 = vmatpush.msra.mxu1 %v19180_v42  ;;  %11616 = vmatpush.msra.mxu2 %v19215_v59 }
 0x9c0   :  { %11502 = vmatpush.msra.mxu0 %v19216_v28  ;;  %11659 = vmatpush.msra.mxu3 %v19174_v31  ;;  %v19227_v31 = vld [vmem:[#allocation251_spill] sm:$0xff] }
 0x9c1   :  { %11557 = vmatpush.msra.mxu1 %v19183_v57  ;;  %11620 = vmatpush.msra.mxu2 %v19217_v0 }
 0x9c2   :  { %11505 = vmatpush.msra.mxu0 %v19218_v26  ;;  %11661 = vmatpush.msra.mxu3 %v19177_v46 }
 0x9c3   :  { %11559 = vmatpush.msra.mxu1 %v19186_v23  ;;  %11624 = vmatpush.msra.mxu2 %v19219_v54  ;;  %v10504_v46 = vpop.f32.mrf.mxu2 }
 0x9c4   :  { %11508 = vmatpush.msra.mxu0 %v19220_v49  ;;  %11663 = vmatpush.msra.mxu3 %v19180_v42  ;;  %v10649_v53 = vpop.f32.mrf.mxu1 }
 0x9c5   :  { %11561 = vmatpush.msra.mxu1 %v19189_v3  ;;  %11628 = vmatpush.msra.mxu2 %v19221_v37  ;;  %v10543_v7 = vpop.f32.mrf.mxu3 }
 0x9c6   :  { %11511 = vmatpush.msra.mxu0 %v19222_v10  ;;  %11665 = vmatpush.msra.mxu3 %v19183_v57 }
 0x9c7   :  { %11565 = vmatmul.f32.vlgmr.msra.gmra.mxu1 %v16248_v34  ;;  %11632 = vmatpush.msra.mxu2 %v19223_v6  ;;  %v10349_v34 = vpop.f32.mrf.mxu0 }
 0x9c8   :  { %11514 = vmatpush.msra.mxu0 %v19224_v55  ;;  %11667 = vmatpush.msra.mxu3 %v19186_v23  ;;  %v10451_v4 = vadd.f32 %v10450_v9, %v10349_v34 }
 0x9c9   :  { %11634 = vmatmul.f32.vlgmr.msra.gmra.mxu2 %v16239_v30 }
 0x9ca   :  { %11517 = vmatpush.msra.mxu0 %v19225_v61  ;;  %11669 = vmatpush.msra.mxu3 %v19189_v3  ;;  %v10505_v23 = vadd.f32 %v10504_v46, %v10451_v4 }
 0x9cb   :  { %11671 = vmatmul.f32.vlgmr.msra.gmra.mxu3 %v16239_v30 }
 0x9cc   :  { %11520 = vmatpush.msra.mxu0 %v19226_v19  ;;  %v10690_v60 = vpop.f32.mrf.mxu2  ;;  %v10544_v27 = vadd.f32 %v10543_v7, %v10505_v23 }
 0x9ce   :  { %11523 = vmatpush.msra.mxu0 %v19227_v31 }
 0x9cf   :  { %11526 = vmatmul.f32.vlgmr.msra.gmra.mxu0 %v16242_v25  ;;  %v10612_v16 = vpop.f32.mrf.mxu0  ;;  %v10791_v42 = vpop.f32.mrf.mxu3 }
 0x9d0   :  { %v10792_v39 = vadd.f32 %v10791_v42, %v10690_v60  ;;  %v10613_v3 = vadd.f32 %v10612_v16, %v10544_v27 }
 0x9d2   :  { %v10650_v25 = vadd.f32 %v10649_v53, %v10613_v3 }
 0x9d4   :  { %v11679_v52 = vrot.slane %v10650_v25, 2 }
 0x9d6   :  { %v11687_v63 = vadd.f32 %v11679_v52, %v19228_v50 }
 0x9d8   :  { %v11837_v33 = vmul.f32 -1.442695, %v11687_v63 }
 0x9da   :  { %11955 = vpow2.f32 %v11837_v33 }
 0x9de   :  { %v10884_v30 = vpop.f32.mrf.mxu1 }
 0x9e0   :  { %v11956_v15 = vpop.eup %11955 }
 0x9e1   :  { %v11694_v51 = vadd.f32 1.0, %v11956_v15 }
 0x9e3   :  { %vm11700_vm10 = vweird.f32 %v11694_v51 }
 0x9e6   :  { %v10953_v36 = vpop.f32.mrf.mxu2 }
 0x9e8   :  { %v10845_v57 = vpop.f32.mrf.mxu0 }
 0x9e9   :  { %v10846_v13 = vadd.f32 %v10845_v57, %v10792_v39  ;;  %v10990_v48 = vpop.f32.mrf.mxu3 }
 0x9eb   :  { %v10885_v24 = vadd.f32 %v10884_v30, %v10846_v13  ;;  %v11706_v30 = vand.u32 2147483648, %v11694_v51 }
 0x9ed   :  { %v10954_v20 = vadd.f32 %v10953_v36, %v10885_v24  ;;  %v11704_v24 = vand.u32 2147483647, %v11694_v51 }
 0x9ef   :  { %v10991_v22 = vadd.f32 %v10990_v48, %v10954_v20  ;;  %v11707_v48 = vor.u32 1.1754944e-38, %v11706_v30  ;;  %vm11705_vm1 = vcmp.eq.f32.partialorder %v11704_v24, 8.507059e+37 }
 0x9f1   :  { %v11680_v47 = vrot.slane %v10991_v22, 2 }
 0x9f3   :  { %v11688_v21 = vadd.f32 %v11680_v47, %v19229_v11  ;;  %v11750_v47 = vrot.slane %v16229_v12, 6 }
 0x9f5   :  { %v11838_v62 = vmul.f32 -1.442695, %v11688_v21 }
 0x9f7   :  { %11957 = vpow2.f32 %v11838_v62 }
 0x9f8   :  { %11959 = vrcp.f32 %v11694_v51 }
 0x9fd   :  { %v11958_v5 = vpop.eup %11957 }
 0x9fe   :  { %v11713_v32 = vadd.f32 1.0, %v11958_v5  ;;  %v11960_v26 = vpop.eup %11959 }
 0x9ff   :  { %v11696_v61 = vmul.f32 %v11960_v26, %v11694_v51  ;;  %vm11701_vm8 = vweird.f32 %v11960_v26 }
 0xa00   :  { %v11132_v17 = vpop.f32.mrf.mxu1  ;;  %11961 = vrcp.f32 %v11713_v32  ;;  %v11725_v23 = vand.u32 2147483648, %v11713_v32  ;;  %vm11719_vm9 = vweird.f32 %v11713_v32  ;;  %vm11702_vm15 = vmor %vm11700_vm10, %vm11701_vm8  ;;  %v11723_v27 = vand.u32 2147483647, %v11713_v32 }
 0xa01   :  { %v11697_v46 = vsub.f32 1.0, %v11696_v61 }
 0xa02   :  { %v11726_v25 = vor.u32 1.1754944e-38, %v11725_v23  ;;  %vm11724_vm2 = vcmp.eq.f32.partialorder %v11723_v27, 8.507059e+37 }
 0xa03   :  { %v11698_v57 = vmul.f32 %v11960_v26, %v11697_v46 }
 0xa05   :  { %v11699_v39 = vadd.f32 %v11960_v26, %v11698_v57 }
 0xa06   :  { %v11962_v49 = vpop.eup %11961 }
 0xa07   :  { %v11715_v19 = vmul.f32 %v11962_v49, %v11713_v32  ;;  %vm11720_vm14 = vweird.f32 %v11962_v49 }
 0xa08   :  { %v11186_v1 = vpop.f32.mrf.mxu2  ;;  %vm11721_vm0 = vmor %vm11719_vm9, %vm11720_vm14 }
 0xa09   :  { %v11716_v16 = vsub.f32 1.0, %v11715_v19 }
 0xa0a   :  { %v11031_v2 = vpop.f32.mrf.mxu0 }
 0xa0b   :  { %v11225_v8 = vpop.f32.mrf.mxu3  ;;  %v11133_v38 = vadd.f32 %v11132_v17, %v11031_v2  ;;  %v11717_v60 = vmul.f32 %v11962_v49, %v11716_v16 }
 0xa0d   :  { %v11187_v29 = vadd.f32 %v11186_v1, %v11133_v38  ;;  %v11718_v13 = vadd.f32 %v11962_v49, %v11717_v60 }
 0xa0f   :  { %v11226_v14 = vadd.f32 %v11225_v8, %v11187_v29  ;;  %v11722_v36 = vsel %vm11721_vm0, %v11962_v49, %v11718_v13 }
 0xa10   :  { %v11727_v52 = vsel %vm11724_vm2, %v11726_v25, %v11722_v36 }
 0xa11   :  { %v11752_v63 = vmul.f32 %v11750_v47, %v11727_v52 }
 0xa22   :  { %v11331_v44 = vpop.f32.mrf.mxu1 }
 0xa2a   :  { %v11372_v35 = vpop.f32.mrf.mxu2 }
 0xa2c   :  { %v11294_v41 = vpop.f32.mrf.mxu0 }
 0xa2d   :  { %v11473_v43 = vpop.f32.mrf.mxu3  ;;  %v11295_v28 = vadd.f32 %v11294_v41, %v11226_v14 }
 0xa2e   :  { %v11474_v56 = vadd.f32 %v11473_v43, %v11372_v35 }
 0xa2f   :  { %v11332_v6 = vadd.f32 %v11331_v44, %v11295_v28 }
 0xa31   :  { %v11681_v9 = vrot.slane %v11332_v6, 2 }
 0xa33   :  { %v11689_v42 = vadd.f32 %v11681_v9, %v15350_v58 }
 0xa44   :  { %v11566_v54 = vpop.f32.mrf.mxu1 }
 0xa4c   :  { %v11527_v59 = vpop.f32.mrf.mxu0  ;;  %v11635_v10 = vpop.f32.mrf.mxu2 }
 0xa4d   :  { %v11528_v0 = vadd.f32 %v11527_v59, %v11474_v56 }
 0xa4e   :  { %v11672_v31 = vpop.f32.mrf.mxu3 }
 0xa4f   :  { %v11567_v37 = vadd.f32 %v11566_v54, %v11528_v0 }
 0xa51   :  { %v11636_v55 = vadd.f32 %v11635_v10, %v11567_v37 }
 0xa53   :  { %v11673_v34 = vadd.f32 %v11672_v31, %v11636_v55 }
 0xa55   :  { %v11682_v7 = vrot.slane %v11673_v34, 2 }
 0xa57   :  { %v11690_v53 = vadd.f32 %v11682_v7, %v15345_v18  ;;  %v11703_v18 = vsel %vm11702_vm15, %v11960_v26, %v11699_v39 }
 0xa58   :  { %v11708_v22 = vsel %vm11705_vm1, %v11707_v48, %v11703_v18 }
 0xa59   :  { %v11839_v4 = vmul.f32 -1.442695, %v11690_v53 }
 0xa5b   :  { %11963 = vpow2.f32 %v11839_v4 }
 0xa5c   :  { %11965 = vtanh.f32 %v11689_v42 }
 0xa61   :  { %v11964_v3 = vpop.eup %11963 }
 0xa62   :  { %v11733_v58 = vadd.f32 1.0, %v11964_v3  ;;  %v11966_v20 = vpop.eup %11965 }
 0xa63   :  { %v11753_v50 = vmul.f32 %v11966_v20, %v11708_v22 }
 0xa64   :  { %11967 = vrcp.f32 %v11733_v58  ;;  %v11745_v2 = vand.u32 2147483648, %v11733_v58  ;;  %v11743_v1 = vand.u32 2147483647, %v11733_v58  ;;  %vm11739_vm4 = vweird.f32 %v11733_v58 }
 0xa65   :  { %v11754_v21 = vadd.f32 %v11753_v50, %v11752_v63 }
 0xa66   :  { %v11746_v15 = vor.u32 1.1754944e-38, %v11745_v2  ;;  %vm11744_vm6 = vcmp.eq.f32.partialorder %v11743_v1, 8.507059e+37 }
 0xa67   :  { %11969 = vtanh.f32 %v11754_v21 }
 0xa6a   :  { %v11968_v11 = vpop.eup %11967 }
 0xa6b   :  { %v11735_v33 = vmul.f32 %v11968_v11, %v11733_v58  ;;  %vm11740_vm3 = vweird.f32 %v11968_v11 }
 0xa6c   :  { %vm11741_vm5 = vmor %vm11739_vm4, %vm11740_vm3 }
 0xa6d   :  { %v11736_v62 = vsub.f32 1.0, %v11735_v33  ;;  %v11970_v38 = vpop.eup %11969 }
 0xa6f   :  { %v11737_v17 = vmul.f32 %v11968_v11, %v11736_v62 }
 0xa71   :  { %v11738_v8 = vadd.f32 %v11968_v11, %v11737_v17 }
 0xa73   :  { %v11742_v5 = vsel %vm11741_vm5, %v11968_v11, %v11738_v8 }
 0xa74   :  { %v11747_v51 = vsel %vm11744_vm6, %v11746_v15, %v11742_v5 }
 0xa75   :  { %v11756_v12 = vmul.f32 %v11970_v38, %v11747_v51 }
 0xa77   :  { %v11757_v41 = vmul.f32 %v16235_v45, %v11756_v12 }
 0xa79   :  { %v11758_v32 = vsel %vm5960_vm12, %v11757_v41, 0.0 }
 0xa7a   :  { %11759 = vadd.xlane.f32.xlu2 %v11758_v32 }
 0xaed   :  { %v11760_v44 = vpop.xlane.xlu2 %11759 }
 0xaee   :  { %v11777_v29 = vrot.slane %v11760_v44, 6 }
 0xaf0   :  { %v11790_v35 = vadd.f32 %v16482_v40, %v11777_v29 }
 0xaf2   :  { %11799 = vst.msk [vmem:[%s16556_s6 + $0xe] sm:$0x3] %vm11791_vm11, %v11790_v35 }

</bundles_post_ra>
